<compile_context>
chip_gen: v6e
topology: v6e:2x2x1
jax: 0.10.0
libtpu: 0.0.40
codegen_flags: <defaults>
</compile_context>

<pallas_src>
import jax
import jax.numpy as jnp
from jax import lax
from jax.experimental import pallas as pl
from jax.experimental.pallas import tpu as pltpu

BATCH = 2
L_IN = 54              # 54 / 2 / 3 / 3 == 3, so 64*3 == 192 matches fc1
LANES = 128            # one full vreg of lanes; holds BATCH * L_IN = 108 data columns
C3 = 64                # channels after pointwise3
N_FC1 = 1000


def _roll(h, shift):
    """Lane roll with jnp.roll semantics; static shift mapped into [0, n)."""
    n = h.shape[-1]
    return pltpu.roll(h, shift % n, axis=1)


def _make_fused_kernel(batch):
    seg = L_IN
    assert batch * seg <= LANES, "batch does not fit in one lane vector"

    def lane_mask(col, offsets):
        m = col == offsets[0]
        for o in offsets[1:]:
            m = m | (col == o)
        return m

    def depthwise(h, w, shift, mask_l, mask_r):
        # Conv1d(k=3, pad=1) per channel: w0*x[p-1] + w1*x[p] + w2*x[p+1], zero padded.
        left = jnp.where(mask_l, 0.0, _roll(h, shift))     # x[p-1] (0 at left boundary)
        right = jnp.where(mask_r, 0.0, _roll(h, -shift))   # x[p+1] (0 at right boundary)
        return w[:, 0:1] * left + w[:, 1:2] * h + w[:, 2:3] * right

    def maxpool(h, step, k):
        # max over k consecutive valid positions (spaced `step` lanes apart); result is
        # kept at the lane of the first contributing position (stride map gets k* sparser).
        m = h
        for i in range(1, k):
            m = jnp.maximum(m, _roll(h, -i * step))
        return m

    def kernel(x_ref, wd1_ref, wp1_ref, wd2_ref, wp2_ref, wd3_ref, wp3_ref,
               w1a_ref, w1b_ref, w1c_ref, b1_ref, w2_ref, b2_ref,
               w3_ref, b3_ref, w4t_ref, b4_ref, out_ref):
        col = lax.broadcasted_iota(jnp.int32, (1, LANES), 1)
        # left boundary (position 0 of every batch segment) is the same at all stages
        m_l = lane_mask(col, [b * seg for b in range(batch)])
        m_r1 = lane_mask(col, [b * seg + 53 for b in range(batch)])   # last pos, stride 1
        m_r2 = lane_mask(col, [b * seg + 52 for b in range(batch)])   # last pos, stride 2
        m_r3 = lane_mask(col, [b * seg + 48 for b in range(batch)])   # last pos, stride 6

        # ---------------- conv stack: lane j = b*54 + position ----------------
        x = x_ref[...]                                               # (1, 128)
        h = depthwise(x, wd1_ref[...], 1, m_l, m_r1)                 # (1, 128)
        h = jnp.maximum(wp1_ref[...] * h, 0.0)                       # (16, 128)  Cin=1 broadcast
        h = maxpool(h, 1, 2)                                         # valid stride -> 2

        h = depthwise(h, wd2_ref[...], 2, m_l, m_r2)                 # (16, 128)
        h = jnp.maximum(
            jnp.dot(wp2_ref[...], h, preferred_element_type=jnp.float32), 0.0)   # (32, 128)
        h = maxpool(h, 2, 3)                                         # valid stride -> 6

        h = depthwise(h, wd3_ref[...], 6, m_l, m_r3)                 # (32, 128)
        h = jnp.maximum(
            jnp.dot(wp3_ref[...], h, preferred_element_type=jnp.float32), 0.0)   # (64, 128)
        h = maxpool(h, 6, 3)                                         # valid stride -> 18
        # valid data now lives at lanes b*54 + 18*u, u in {0,1,2}  -> feat[b, c*3+u] = h[c, b*54+18u]

        # ------------- flatten + fc1..fc3 in (features x batch) orientation -------------
        iota_b = lax.broadcasted_iota(jnp.int32, (1, batch), 1)
        z = b1_ref[...]                                              # (1000, 1) broadcasts over batch
        for u, w1_ref in enumerate((w1a_ref, w1b_ref, w1c_ref)):
            cols = jnp.zeros((C3, batch), jnp.float32)
            for b in range(batch):
                c = b * seg + 18 * u
                cols = cols + jnp.where(iota_b == b, h[:, c:c + 1], 0.0)   # (64, B)
            z = z + jnp.dot(w1_ref[...], cols.astype(jnp.bfloat16),
                            preferred_element_type=jnp.float32)            # (1000, B)
        z = jnp.maximum(z, 0.0)
        z = jnp.maximum(
            jnp.dot(w2_ref[...], z.astype(jnp.bfloat16),
                    preferred_element_type=jnp.float32) + b2_ref[...], 0.0)  # (500, B)
        z = jnp.maximum(
            jnp.dot(w3_ref[...], z.astype(jnp.bfloat16),
                    preferred_element_type=jnp.float32) + b3_ref[...], 0.0)  # (200, B)

        # ------------- fc4, emitted directly as (B, 10) -------------
        w4t = w4t_ref[...]                                           # (200, 10)
        iota_brow = lax.broadcasted_iota(jnp.int32, (batch, 1), 0)
        out = jnp.zeros((batch, 10), jnp.float32)
        for b in range(batch):
            r = jnp.sum(w4t * z[:, b:b + 1], axis=0, keepdims=True)  # (1, 10)
            out = out + jnp.where(iota_brow == b, r, 0.0)
        out_ref[...] = out + b4_ref[...]

    return kernel


# ------------------------------ host-side weight prep (done once) ------------------------------
def prepare_params(params):
    (wd1, wp1, wd2, wp2, wd3, wp3, W1, b1, W2, b2, W3, b3, W4, b4) = params
    w1r = W1.reshape(W1.shape[0], C3, 3)       # fc1 columns grouped as (channel, position)
    return dict(
        wd1=wd1[:, 0, :],                      # (1, 3)
        wp1=wp1[:, :, 0],                      # (16, 1)
        wd2=wd2[:, 0, :],                      # (16, 3)
        wp2=wp2[:, :, 0],                      # (32, 16)
        wd3=wd3[:, 0, :],                      # (32, 3)
        wp3=wp3[:, :, 0],                      # (64, 32)
        w1a=w1r[:, :, 0].astype(jnp.bfloat16),  # (1000, 64)
        w1b=w1r[:, :, 1].astype(jnp.bfloat16),
        w1c=w1r[:, :, 2].astype(jnp.bfloat16),
        b1=b1.reshape(-1, 1),                  # (1000, 1)
        w2=W2.astype(jnp.bfloat16),            # (500, 1000)
        b2=b2.reshape(-1, 1),
        w3=W3.astype(jnp.bfloat16),            # (200, 500)
        b3=b3.reshape(-1, 1),
        w4t=W4.T,                              # (200, 10), f32
        b4=b4.reshape(1, -1),                  # (1, 10)
    )


def depthwise_separable_conv_forward(x, prepped):
    batch = x.shape[0]
    assert x.shape[1:] == (1, L_IN)
    # fold batch into lanes: lane j = b*54 + position, zero-padded to 128 lanes
    x_lanes = jnp.zeros((1, LANES), jnp.float32).at[:, :batch * L_IN].set(
        x.reshape(1, batch * L_IN))
    kernel = _make_fused_kernel(batch)
    p = prepped
    return pl.pallas_call(
        kernel,
        out_shape=jax.ShapeDtypeStruct((batch, 10), jnp.float32),
    )(x_lanes, p["wd1"], p["wp1"], p["wd2"], p["wp2"], p["wd3"], p["wp3"],
      p["w1a"], p["w1b"], p["w1c"], p["b1"], p["w2"], p["b2"],
      p["w3"], p["b3"], p["w4t"], p["b4"])


# ------------------------------ pure-JAX reference --------------------------------
def reference_forward(x, params):
    (wd1, wp1, wd2, wp2, wd3, wp3, W1, b1, W2, b2, W3, b3, W4, b4) = params

    def dw(h, w):  # w (C,1,3), pad=1
        w = w[:, 0, :]
        hp = jnp.pad(h, ((0, 0), (0, 0), (1, 1)))
        return (w[None, :, 0:1] * hp[..., :-2] + w[None, :, 1:2] * hp[..., 1:-1]
                + w[None, :, 2:3] * hp[..., 2:])

    def pw(h, w):  # w (Cout,Cin,1)
        return jnp.einsum('oc,bcl->bol', w[:, :, 0], h)

    def mp(h, k):
        B, C, L = h.shape
        return h[..., :(L // k) * k].reshape(B, C, L // k, k).max(-1)

    h = mp(jax.nn.relu(pw(dw(x, wd1), wp1)), 2)
    h = mp(jax.nn.relu(pw(dw(h, wd2), wp2)), 3)
    h = mp(jax.nn.relu(pw(dw(h, wd3), wp3)), 3)
    f = h.reshape(x.shape[0], -1)
    f = jax.nn.relu(f @ W1.T + b1)
    f = jax.nn.relu(f @ W2.T + b2)
    f = jax.nn.relu(f @ W3.T + b3)
    return f @ W4.T + b4


# ---------------------------------- main ------------------------------------------
if __name__ == "__main__":
    key = jax.random.PRNGKey(0)
    ks = jax.random.split(key, 16)

    def init(k, shape, scale):
        return jax.random.normal(k, shape, jnp.float32) * scale

    params = (
        init(ks[0], (1, 1, 3), 0.3),     # depthwise1.weight
        init(ks[1], (16, 1, 1), 0.3),    # pointwise1.weight
        init(ks[2], (16, 1, 3), 0.2),    # depthwise2.weight
        init(ks[3], (32, 16, 1), 0.15),  # pointwise2.weight
        init(ks[4], (32, 1, 3), 0.15),   # depthwise3.weight
        init(ks[5], (64, 32, 1), 0.1),   # pointwise3.weight
        init(ks[6], (1000, 192), 0.05),  # fc1.weight
        init(ks[7], (1000,), 0.05),      # fc1.bias
        init(ks[8], (500, 1000), 0.03),  # fc2.weight
        init(ks[9], (500,), 0.03),       # fc2.bias
        init(ks[10], (200, 500), 0.04),  # fc3.weight
        init(ks[11], (200,), 0.04),      # fc3.bias
        init(ks[12], (10, 200), 0.07),   # fc4.weight
        init(ks[13], (10,), 0.07),       # fc4.bias
    )

    x = jax.random.normal(ks[14], (BATCH, 1, L_IN), jnp.float32)

    prepped = prepare_params(params)
    out = depthwise_separable_conv_forward(x, prepped)
    out = jax.block_until_ready(out)

    ref = reference_forward(x, params)
    assert out.shape == (BATCH, 10)
    err = jnp.max(jnp.abs(out - ref))
    assert jnp.allclose(out, ref, rtol=2e-2, atol=2e-3), f"mismatch: max abs err {err}"

    print("KERNEL_OK")
</pallas_src>

<mosaic_0001>
module attributes {stable_mosaic.version = 11 : i64} {
  func.func @kernel(%arg0: memref<1x128xf32, #tpu.memory_space<vmem>>, %arg1: memref<1x3xf32, #tpu.memory_space<vmem>>, %arg2: memref<16x1xf32, #tpu.memory_space<vmem>>, %arg3: memref<16x3xf32, #tpu.memory_space<vmem>>, %arg4: memref<32x16xf32, #tpu.memory_space<vmem>>, %arg5: memref<32x3xf32, #tpu.memory_space<vmem>>, %arg6: memref<64x32xf32, #tpu.memory_space<vmem>>, %arg7: memref<1000x64xbf16, #tpu.memory_space<vmem>>, %arg8: memref<1000x64xbf16, #tpu.memory_space<vmem>>, %arg9: memref<1000x64xbf16, #tpu.memory_space<vmem>>, %arg10: memref<1000x1xf32, #tpu.memory_space<vmem>>, %arg11: memref<500x1000xbf16, #tpu.memory_space<vmem>>, %arg12: memref<500x1xf32, #tpu.memory_space<vmem>>, %arg13: memref<200x500xbf16, #tpu.memory_space<vmem>>, %arg14: memref<200x1xf32, #tpu.memory_space<vmem>>, %arg15: memref<200x10xf32, #tpu.memory_space<vmem>>, %arg16: memref<1x10xf32, #tpu.memory_space<vmem>>, %arg17: memref<2x10xf32, #tpu.memory_space<vmem>>) attributes {dimension_semantics = [], scalar_prefetch = 0 : i64, scratch_operands = 0 : i64, tpu.core_type = #tpu.core_type<tc>} {
    %0 = tpu.iota {dimensions = array<i32: 1>} : vector<1x128xi32>
    %c0_i32 = arith.constant 0 : i32
    %1 = vector.broadcast %c0_i32 : i32 to vector<1x128xi32>
    %2 = arith.cmpi eq, %0, %1 : vector<1x128xi32>
    %c54_i32 = arith.constant 54 : i32
    %3 = vector.broadcast %c54_i32 : i32 to vector<1x128xi32>
    %4 = arith.cmpi eq, %0, %3 : vector<1x128xi32>
    %5 = arith.ori %2, %4 : vector<1x128xi1>
    %c53_i32 = arith.constant 53 : i32
    %6 = vector.broadcast %c53_i32 : i32 to vector<1x128xi32>
    %7 = arith.cmpi eq, %0, %6 : vector<1x128xi32>
    %c107_i32 = arith.constant 107 : i32
    %8 = vector.broadcast %c107_i32 : i32 to vector<1x128xi32>
    %9 = arith.cmpi eq, %0, %8 : vector<1x128xi32>
    %10 = arith.ori %7, %9 : vector<1x128xi1>
    %c52_i32 = arith.constant 52 : i32
    %11 = vector.broadcast %c52_i32 : i32 to vector<1x128xi32>
    %12 = arith.cmpi eq, %0, %11 : vector<1x128xi32>
    %c106_i32 = arith.constant 106 : i32
    %13 = vector.broadcast %c106_i32 : i32 to vector<1x128xi32>
    %14 = arith.cmpi eq, %0, %13 : vector<1x128xi32>
    %15 = arith.ori %12, %14 : vector<1x128xi1>
    %c48_i32 = arith.constant 48 : i32
    %16 = vector.broadcast %c48_i32 : i32 to vector<1x128xi32>
    %17 = arith.cmpi eq, %0, %16 : vector<1x128xi32>
    %c102_i32 = arith.constant 102 : i32
    %18 = vector.broadcast %c102_i32 : i32 to vector<1x128xi32>
    %19 = arith.cmpi eq, %0, %18 : vector<1x128xi32>
    %20 = arith.ori %17, %19 : vector<1x128xi1>
    %c0 = arith.constant 0 : index
    %c0_0 = arith.constant 0 : index
    %21 = vector.load %arg0[%c0, %c0_0] : memref<1x128xf32, #tpu.memory_space<vmem>>, vector<1x128xf32>
    %c0_1 = arith.constant 0 : index
    %c0_2 = arith.constant 0 : index
    %22 = vector.load %arg1[%c0_1, %c0_2] : memref<1x3xf32, #tpu.memory_space<vmem>>, vector<1x3xf32>
    %c1_i32 = arith.constant 1 : i32
    %23 = tpu.dynamic_rotate %21 by %c1_i32 dim 1 : vector<1x128xf32>, i32 -> vector<1x128xf32>
    %cst = arith.constant 0.000000e+00 : f32
    %24 = vector.broadcast %cst : f32 to vector<1x128xf32>
    %25 = arith.select %5, %24, %23 : vector<1x128xi1>, vector<1x128xf32>
    %c127_i32 = arith.constant 127 : i32
    %26 = tpu.dynamic_rotate %21 by %c127_i32 dim 1 : vector<1x128xf32>, i32 -> vector<1x128xf32>
    %cst_3 = arith.constant 0.000000e+00 : f32
    %27 = vector.broadcast %cst_3 : f32 to vector<1x128xf32>
    %28 = arith.select %10, %27, %26 : vector<1x128xi1>, vector<1x128xf32>
    %29 = vector.extract_strided_slice %22 {offsets = [0, 0], sizes = [1, 1], strides = [1, 1]} : vector<1x3xf32> to vector<1x1xf32>
    %30 = vector.broadcast %29 : vector<1x1xf32> to vector<1x128xf32>
    %31 = arith.mulf %30, %25 : vector<1x128xf32>
    %32 = vector.extract_strided_slice %22 {offsets = [0, 1], sizes = [1, 1], strides = [1, 1]} : vector<1x3xf32> to vector<1x1xf32>
    %33 = vector.broadcast %32 : vector<1x1xf32> to vector<1x128xf32>
    %34 = arith.mulf %33, %21 : vector<1x128xf32>
    %35 = arith.addf %31, %34 : vector<1x128xf32>
    %36 = vector.extract_strided_slice %22 {offsets = [0, 2], sizes = [1, 1], strides = [1, 1]} : vector<1x3xf32> to vector<1x1xf32>
    %37 = vector.broadcast %36 : vector<1x1xf32> to vector<1x128xf32>
    %38 = arith.mulf %37, %28 : vector<1x128xf32>
    %39 = arith.addf %35, %38 : vector<1x128xf32>
    %c0_4 = arith.constant 0 : index
    %c0_5 = arith.constant 0 : index
    %40 = vector.load %arg2[%c0_4, %c0_5] : memref<16x1xf32, #tpu.memory_space<vmem>>, vector<16x1xf32>
    %41 = vector.broadcast %40 : vector<16x1xf32> to vector<16x128xf32>
    %42 = vector.broadcast %39 : vector<1x128xf32> to vector<16x128xf32>
    %43 = arith.mulf %41, %42 : vector<16x128xf32>
    %cst_6 = arith.constant 0.000000e+00 : f32
    %44 = vector.broadcast %cst_6 : f32 to vector<16x128xf32>
    %45 = arith.maximumf %43, %44 : vector<16x128xf32>
    %c127_i32_7 = arith.constant 127 : i32
    %46 = tpu.dynamic_rotate %45 by %c127_i32_7 dim 1 : vector<16x128xf32>, i32 -> vector<16x128xf32>
    %47 = arith.maximumf %45, %46 : vector<16x128xf32>
    %c0_8 = arith.constant 0 : index
    %c0_9 = arith.constant 0 : index
    %48 = vector.load %arg3[%c0_8, %c0_9] : memref<16x3xf32, #tpu.memory_space<vmem>>, vector<16x3xf32>
    %c2_i32 = arith.constant 2 : i32
    %49 = tpu.dynamic_rotate %47 by %c2_i32 dim 1 : vector<16x128xf32>, i32 -> vector<16x128xf32>
    %cst_10 = arith.constant 0.000000e+00 : f32
    %50 = vector.shape_cast %5 : vector<1x128xi1> to vector<1x128xi1>
    %51 = vector.broadcast %50 : vector<1x128xi1> to vector<16x128xi1>
    %52 = vector.broadcast %cst_10 : f32 to vector<16x128xf32>
    %53 = arith.select %51, %52, %49 : vector<16x128xi1>, vector<16x128xf32>
    %c126_i32 = arith.constant 126 : i32
    %54 = tpu.dynamic_rotate %47 by %c126_i32 dim 1 : vector<16x128xf32>, i32 -> vector<16x128xf32>
    %cst_11 = arith.constant 0.000000e+00 : f32
    %55 = vector.shape_cast %15 : vector<1x128xi1> to vector<1x128xi1>
    %56 = vector.broadcast %55 : vector<1x128xi1> to vector<16x128xi1>
    %57 = vector.broadcast %cst_11 : f32 to vector<16x128xf32>
    %58 = arith.select %56, %57, %54 : vector<16x128xi1>, vector<16x128xf32>
    %59 = vector.extract_strided_slice %48 {offsets = [0, 0], sizes = [16, 1], strides = [1, 1]} : vector<16x3xf32> to vector<16x1xf32>
    %60 = vector.broadcast %59 : vector<16x1xf32> to vector<16x128xf32>
    %61 = arith.mulf %60, %53 : vector<16x128xf32>
    %62 = vector.extract_strided_slice %48 {offsets = [0, 1], sizes = [16, 1], strides = [1, 1]} : vector<16x3xf32> to vector<16x1xf32>
    %63 = vector.broadcast %62 : vector<16x1xf32> to vector<16x128xf32>
    %64 = arith.mulf %63, %47 : vector<16x128xf32>
    %65 = arith.addf %61, %64 : vector<16x128xf32>
    %66 = vector.extract_strided_slice %48 {offsets = [0, 2], sizes = [16, 1], strides = [1, 1]} : vector<16x3xf32> to vector<16x1xf32>
    %67 = vector.broadcast %66 : vector<16x1xf32> to vector<16x128xf32>
    %68 = arith.mulf %67, %58 : vector<16x128xf32>
    %69 = arith.addf %65, %68 : vector<16x128xf32>
    %c0_12 = arith.constant 0 : index
    %c0_13 = arith.constant 0 : index
    %70 = vector.load %arg4[%c0_12, %c0_13] : memref<32x16xf32, #tpu.memory_space<vmem>>, vector<32x16xf32>
    %cst_14 = arith.constant dense<0.000000e+00> : vector<32x128xf32>
    %71 = tpu.matmul %70, %69, %cst_14 {dimension_numbers = #tpu.dot_dimension_numbers<[1], [0], [0], [1], [0, 0, 1, 1], [], []>} : vector<32x16xf32>, vector<16x128xf32>, vector<32x128xf32> -> vector<32x128xf32>
    %cst_15 = arith.constant 0.000000e+00 : f32
    %72 = vector.broadcast %cst_15 : f32 to vector<32x128xf32>
    %73 = arith.maximumf %71, %72 : vector<32x128xf32>
    %c126_i32_16 = arith.constant 126 : i32
    %74 = tpu.dynamic_rotate %73 by %c126_i32_16 dim 1 : vector<32x128xf32>, i32 -> vector<32x128xf32>
    %75 = arith.maximumf %73, %74 : vector<32x128xf32>
    %c124_i32 = arith.constant 124 : i32
    %76 = tpu.dynamic_rotate %73 by %c124_i32 dim 1 : vector<32x128xf32>, i32 -> vector<32x128xf32>
    %77 = arith.maximumf %75, %76 : vector<32x128xf32>
    %c0_17 = arith.constant 0 : index
    %c0_18 = arith.constant 0 : index
    %78 = vector.load %arg5[%c0_17, %c0_18] : memref<32x3xf32, #tpu.memory_space<vmem>>, vector<32x3xf32>
    %c6_i32 = arith.constant 6 : i32
    %79 = tpu.dynamic_rotate %77 by %c6_i32 dim 1 : vector<32x128xf32>, i32 -> vector<32x128xf32>
    %cst_19 = arith.constant 0.000000e+00 : f32
    %80 = vector.shape_cast %5 : vector<1x128xi1> to vector<1x128xi1>
    %81 = vector.broadcast %80 : vector<1x128xi1> to vector<32x128xi1>
    %82 = vector.broadcast %cst_19 : f32 to vector<32x128xf32>
    %83 = arith.select %81, %82, %79 : vector<32x128xi1>, vector<32x128xf32>
    %c122_i32 = arith.constant 122 : i32
    %84 = tpu.dynamic_rotate %77 by %c122_i32 dim 1 : vector<32x128xf32>, i32 -> vector<32x128xf32>
    %cst_20 = arith.constant 0.000000e+00 : f32
    %85 = vector.shape_cast %20 : vector<1x128xi1> to vector<1x128xi1>
    %86 = vector.broadcast %85 : vector<1x128xi1> to vector<32x128xi1>
    %87 = vector.broadcast %cst_20 : f32 to vector<32x128xf32>
    %88 = arith.select %86, %87, %84 : vector<32x128xi1>, vector<32x128xf32>
    %89 = vector.extract_strided_slice %78 {offsets = [0, 0], sizes = [32, 1], strides = [1, 1]} : vector<32x3xf32> to vector<32x1xf32>
    %90 = vector.broadcast %89 : vector<32x1xf32> to vector<32x128xf32>
    %91 = arith.mulf %90, %83 : vector<32x128xf32>
    %92 = vector.extract_strided_slice %78 {offsets = [0, 1], sizes = [32, 1], strides = [1, 1]} : vector<32x3xf32> to vector<32x1xf32>
    %93 = vector.broadcast %92 : vector<32x1xf32> to vector<32x128xf32>
    %94 = arith.mulf %93, %77 : vector<32x128xf32>
    %95 = arith.addf %91, %94 : vector<32x128xf32>
    %96 = vector.extract_strided_slice %78 {offsets = [0, 2], sizes = [32, 1], strides = [1, 1]} : vector<32x3xf32> to vector<32x1xf32>
    %97 = vector.broadcast %96 : vector<32x1xf32> to vector<32x128xf32>
    %98 = arith.mulf %97, %88 : vector<32x128xf32>
    %99 = arith.addf %95, %98 : vector<32x128xf32>
    %c0_21 = arith.constant 0 : index
    %c0_22 = arith.constant 0 : index
    %100 = vector.load %arg6[%c0_21, %c0_22] : memref<64x32xf32, #tpu.memory_space<vmem>>, vector<64x32xf32>
    %cst_23 = arith.constant dense<0.000000e+00> : vector<64x128xf32>
    %101 = tpu.matmul %100, %99, %cst_23 {dimension_numbers = #tpu.dot_dimension_numbers<[1], [0], [0], [1], [0, 0, 1, 1], [], []>} : vector<64x32xf32>, vector<32x128xf32>, vector<64x128xf32> -> vector<64x128xf32>
    %cst_24 = arith.constant 0.000000e+00 : f32
    %102 = vector.broadcast %cst_24 : f32 to vector<64x128xf32>
    %103 = arith.maximumf %101, %102 : vector<64x128xf32>
    %c122_i32_25 = arith.constant 122 : i32
    %104 = tpu.dynamic_rotate %103 by %c122_i32_25 dim 1 : vector<64x128xf32>, i32 -> vector<64x128xf32>
    %105 = arith.maximumf %103, %104 : vector<64x128xf32>
    %c116_i32 = arith.constant 116 : i32
    %106 = tpu.dynamic_rotate %103 by %c116_i32 dim 1 : vector<64x128xf32>, i32 -> vector<64x128xf32>
    %107 = arith.maximumf %105, %106 : vector<64x128xf32>
    %108 = tpu.iota {dimensions = array<i32: 1>} : vector<1x2xi32>
    %c0_26 = arith.constant 0 : index
    %c0_27 = arith.constant 0 : index
    %109 = vector.load %arg10[%c0_26, %c0_27] : memref<1000x1xf32, #tpu.memory_space<vmem>>, vector<1000x1xf32>
    %cst_28 = arith.constant 0.000000e+00 : f32
    %110 = vector.broadcast %cst_28 : f32 to vector<64x2xf32>
    %c0_i32_29 = arith.constant 0 : i32
    %111 = vector.broadcast %c0_i32_29 : i32 to vector<1x2xi32>
    %112 = arith.cmpi eq, %108, %111 : vector<1x2xi32>
    %113 = vector.extract_strided_slice %107 {offsets = [0, 0], sizes = [64, 1], strides = [1, 1]} : vector<64x128xf32> to vector<64x1xf32>
    %cst_30 = arith.constant 0.000000e+00 : f32
    %114 = vector.shape_cast %112 : vector<1x2xi1> to vector<1x2xi1>
    %115 = vector.broadcast %114 : vector<1x2xi1> to vector<64x2xi1>
    %116 = vector.shape_cast %113 : vector<64x1xf32> to vector<64x1xf32>
    %117 = vector.broadcast %116 : vector<64x1xf32> to vector<64x2xf32>
    %118 = vector.broadcast %cst_30 : f32 to vector<64x2xf32>
    %119 = arith.select %115, %117, %118 : vector<64x2xi1>, vector<64x2xf32>
    %120 = arith.addf %110, %119 : vector<64x2xf32>
    %c1_i32_31 = arith.constant 1 : i32
    %121 = vector.broadcast %c1_i32_31 : i32 to vector<1x2xi32>
    %122 = arith.cmpi eq, %108, %121 : vector<1x2xi32>
    %123 = vector.extract_strided_slice %107 {offsets = [0, 54], sizes = [64, 1], strides = [1, 1]} : vector<64x128xf32> to vector<64x1xf32>
    %cst_32 = arith.constant 0.000000e+00 : f32
    %124 = vector.shape_cast %122 : vector<1x2xi1> to vector<1x2xi1>
    %125 = vector.broadcast %124 : vector<1x2xi1> to vector<64x2xi1>
    %126 = vector.shape_cast %123 : vector<64x1xf32> to vector<64x1xf32>
    %127 = vector.broadcast %126 : vector<64x1xf32> to vector<64x2xf32>
    %128 = vector.broadcast %cst_32 : f32 to vector<64x2xf32>
    %129 = arith.select %125, %127, %128 : vector<64x2xi1>, vector<64x2xf32>
    %130 = arith.addf %120, %129 : vector<64x2xf32>
    %c0_33 = arith.constant 0 : index
    %c0_34 = arith.constant 0 : index
    %131 = vector.load %arg7[%c0_33, %c0_34] : memref<1000x64xbf16, #tpu.memory_space<vmem>>, vector<1000x64xbf16>
    %132 = arith.truncf %130 : vector<64x2xf32> to vector<64x2xbf16>
    %cst_35 = arith.constant dense<0.000000e+00> : vector<1000x2xf32>
    %133 = tpu.matmul %131, %132, %cst_35 {dimension_numbers = #tpu.dot_dimension_numbers<[1], [0], [0], [1], [0, 0, 1, 1], [], []>} : vector<1000x64xbf16>, vector<64x2xbf16>, vector<1000x2xf32> -> vector<1000x2xf32>
    %134 = vector.broadcast %109 : vector<1000x1xf32> to vector<1000x2xf32>
    %135 = arith.addf %134, %133 : vector<1000x2xf32>
    %cst_36 = arith.constant 0.000000e+00 : f32
    %136 = vector.broadcast %cst_36 : f32 to vector<64x2xf32>
    %c0_i32_37 = arith.constant 0 : i32
    %137 = vector.broadcast %c0_i32_37 : i32 to vector<1x2xi32>
    %138 = arith.cmpi eq, %108, %137 : vector<1x2xi32>
    %139 = vector.extract_strided_slice %107 {offsets = [0, 18], sizes = [64, 1], strides = [1, 1]} : vector<64x128xf32> to vector<64x1xf32>
    %cst_38 = arith.constant 0.000000e+00 : f32
    %140 = vector.shape_cast %138 : vector<1x2xi1> to vector<1x2xi1>
    %141 = vector.broadcast %140 : vector<1x2xi1> to vector<64x2xi1>
    %142 = vector.shape_cast %139 : vector<64x1xf32> to vector<64x1xf32>
    %143 = vector.broadcast %142 : vector<64x1xf32> to vector<64x2xf32>
    %144 = vector.broadcast %cst_38 : f32 to vector<64x2xf32>
    %145 = arith.select %141, %143, %144 : vector<64x2xi1>, vector<64x2xf32>
    %146 = arith.addf %136, %145 : vector<64x2xf32>
    %c1_i32_39 = arith.constant 1 : i32
    %147 = vector.broadcast %c1_i32_39 : i32 to vector<1x2xi32>
    %148 = arith.cmpi eq, %108, %147 : vector<1x2xi32>
    %149 = vector.extract_strided_slice %107 {offsets = [0, 72], sizes = [64, 1], strides = [1, 1]} : vector<64x128xf32> to vector<64x1xf32>
    %cst_40 = arith.constant 0.000000e+00 : f32
    %150 = vector.shape_cast %148 : vector<1x2xi1> to vector<1x2xi1>
    %151 = vector.broadcast %150 : vector<1x2xi1> to vector<64x2xi1>
    %152 = vector.shape_cast %149 : vector<64x1xf32> to vector<64x1xf32>
    %153 = vector.broadcast %152 : vector<64x1xf32> to vector<64x2xf32>
    %154 = vector.broadcast %cst_40 : f32 to vector<64x2xf32>
    %155 = arith.select %151, %153, %154 : vector<64x2xi1>, vector<64x2xf32>
    %156 = arith.addf %146, %155 : vector<64x2xf32>
    %c0_41 = arith.constant 0 : index
    %c0_42 = arith.constant 0 : index
    %157 = vector.load %arg8[%c0_41, %c0_42] : memref<1000x64xbf16, #tpu.memory_space<vmem>>, vector<1000x64xbf16>
    %158 = arith.truncf %156 : vector<64x2xf32> to vector<64x2xbf16>
    %cst_43 = arith.constant dense<0.000000e+00> : vector<1000x2xf32>
    %159 = tpu.matmul %157, %158, %cst_43 {dimension_numbers = #tpu.dot_dimension_numbers<[1], [0], [0], [1], [0, 0, 1, 1], [], []>} : vector<1000x64xbf16>, vector<64x2xbf16>, vector<1000x2xf32> -> vector<1000x2xf32>
    %160 = arith.addf %135, %159 : vector<1000x2xf32>
    %cst_44 = arith.constant 0.000000e+00 : f32
    %161 = vector.broadcast %cst_44 : f32 to vector<64x2xf32>
    %c0_i32_45 = arith.constant 0 : i32
    %162 = vector.broadcast %c0_i32_45 : i32 to vector<1x2xi32>
    %163 = arith.cmpi eq, %108, %162 : vector<1x2xi32>
    %164 = vector.extract_strided_slice %107 {offsets = [0, 36], sizes = [64, 1], strides = [1, 1]} : vector<64x128xf32> to vector<64x1xf32>
    %cst_46 = arith.constant 0.000000e+00 : f32
    %165 = vector.shape_cast %163 : vector<1x2xi1> to vector<1x2xi1>
    %166 = vector.broadcast %165 : vector<1x2xi1> to vector<64x2xi1>
    %167 = vector.shape_cast %164 : vector<64x1xf32> to vector<64x1xf32>
    %168 = vector.broadcast %167 : vector<64x1xf32> to vector<64x2xf32>
    %169 = vector.broadcast %cst_46 : f32 to vector<64x2xf32>
    %170 = arith.select %166, %168, %169 : vector<64x2xi1>, vector<64x2xf32>
    %171 = arith.addf %161, %170 : vector<64x2xf32>
    %c1_i32_47 = arith.constant 1 : i32
    %172 = vector.broadcast %c1_i32_47 : i32 to vector<1x2xi32>
    %173 = arith.cmpi eq, %108, %172 : vector<1x2xi32>
    %174 = vector.extract_strided_slice %107 {offsets = [0, 90], sizes = [64, 1], strides = [1, 1]} : vector<64x128xf32> to vector<64x1xf32>
    %cst_48 = arith.constant 0.000000e+00 : f32
    %175 = vector.shape_cast %173 : vector<1x2xi1> to vector<1x2xi1>
    %176 = vector.broadcast %175 : vector<1x2xi1> to vector<64x2xi1>
    %177 = vector.shape_cast %174 : vector<64x1xf32> to vector<64x1xf32>
    %178 = vector.broadcast %177 : vector<64x1xf32> to vector<64x2xf32>
    %179 = vector.broadcast %cst_48 : f32 to vector<64x2xf32>
    %180 = arith.select %176, %178, %179 : vector<64x2xi1>, vector<64x2xf32>
    %181 = arith.addf %171, %180 : vector<64x2xf32>
    %c0_49 = arith.constant 0 : index
    %c0_50 = arith.constant 0 : index
    %182 = vector.load %arg9[%c0_49, %c0_50] : memref<1000x64xbf16, #tpu.memory_space<vmem>>, vector<1000x64xbf16>
    %183 = arith.truncf %181 : vector<64x2xf32> to vector<64x2xbf16>
    %cst_51 = arith.constant dense<0.000000e+00> : vector<1000x2xf32>
    %184 = tpu.matmul %182, %183, %cst_51 {dimension_numbers = #tpu.dot_dimension_numbers<[1], [0], [0], [1], [0, 0, 1, 1], [], []>} : vector<1000x64xbf16>, vector<64x2xbf16>, vector<1000x2xf32> -> vector<1000x2xf32>
    %185 = arith.addf %160, %184 : vector<1000x2xf32>
    %cst_52 = arith.constant 0.000000e+00 : f32
    %186 = vector.broadcast %cst_52 : f32 to vector<1000x2xf32>
    %187 = arith.maximumf %185, %186 : vector<1000x2xf32>
    %c0_53 = arith.constant 0 : index
    %c0_54 = arith.constant 0 : index
    %188 = vector.load %arg11[%c0_53, %c0_54] : memref<500x1000xbf16, #tpu.memory_space<vmem>>, vector<500x1000xbf16>
    %189 = arith.truncf %187 : vector<1000x2xf32> to vector<1000x2xbf16>
    %cst_55 = arith.constant dense<0.000000e+00> : vector<500x2xf32>
    %190 = tpu.matmul %188, %189, %cst_55 {dimension_numbers = #tpu.dot_dimension_numbers<[1], [0], [0], [1], [0, 0, 1, 1], [], []>} : vector<500x1000xbf16>, vector<1000x2xbf16>, vector<500x2xf32> -> vector<500x2xf32>
    %c0_56 = arith.constant 0 : index
    %c0_57 = arith.constant 0 : index
    %191 = vector.load %arg12[%c0_56, %c0_57] : memref<500x1xf32, #tpu.memory_space<vmem>>, vector<500x1xf32>
    %192 = vector.broadcast %191 : vector<500x1xf32> to vector<500x2xf32>
    %193 = arith.addf %190, %192 : vector<500x2xf32>
    %cst_58 = arith.constant 0.000000e+00 : f32
    %194 = vector.broadcast %cst_58 : f32 to vector<500x2xf32>
    %195 = arith.maximumf %193, %194 : vector<500x2xf32>
    %c0_59 = arith.constant 0 : index
    %c0_60 = arith.constant 0 : index
    %196 = vector.load %arg13[%c0_59, %c0_60] : memref<200x500xbf16, #tpu.memory_space<vmem>>, vector<200x500xbf16>
    %197 = arith.truncf %195 : vector<500x2xf32> to vector<500x2xbf16>
    %cst_61 = arith.constant dense<0.000000e+00> : vector<200x2xf32>
    %198 = tpu.matmul %196, %197, %cst_61 {dimension_numbers = #tpu.dot_dimension_numbers<[1], [0], [0], [1], [0, 0, 1, 1], [], []>} : vector<200x500xbf16>, vector<500x2xbf16>, vector<200x2xf32> -> vector<200x2xf32>
    %c0_62 = arith.constant 0 : index
    %c0_63 = arith.constant 0 : index
    %199 = vector.load %arg14[%c0_62, %c0_63] : memref<200x1xf32, #tpu.memory_space<vmem>>, vector<200x1xf32>
    %200 = vector.broadcast %199 : vector<200x1xf32> to vector<200x2xf32>
    %201 = arith.addf %198, %200 : vector<200x2xf32>
    %cst_64 = arith.constant 0.000000e+00 : f32
    %202 = vector.broadcast %cst_64 : f32 to vector<200x2xf32>
    %203 = arith.maximumf %201, %202 : vector<200x2xf32>
    %c0_65 = arith.constant 0 : index
    %c0_66 = arith.constant 0 : index
    %204 = vector.load %arg15[%c0_65, %c0_66] : memref<200x10xf32, #tpu.memory_space<vmem>>, vector<200x10xf32>
    %205 = tpu.iota {dimensions = array<i32: 0>} : vector<2x1xi32>
    %cst_67 = arith.constant 0.000000e+00 : f32
    %206 = vector.broadcast %cst_67 : f32 to vector<2x10xf32>
    %207 = vector.extract_strided_slice %203 {offsets = [0, 0], sizes = [200, 1], strides = [1, 1]} : vector<200x2xf32> to vector<200x1xf32>
    %208 = vector.broadcast %207 : vector<200x1xf32> to vector<200x10xf32>
    %209 = arith.mulf %204, %208 : vector<200x10xf32>
    %cst_68 = arith.constant dense<0.000000e+00> : vector<10xf32>
    %210 = vector.multi_reduction <add>, %209, %cst_68 [0] : vector<200x10xf32> to vector<10xf32>
    %211 = vector.shape_cast %210 : vector<10xf32> to vector<1x10xf32>
    %c0_i32_69 = arith.constant 0 : i32
    %212 = vector.broadcast %c0_i32_69 : i32 to vector<2x1xi32>
    %213 = arith.cmpi eq, %205, %212 : vector<2x1xi32>
    %cst_70 = arith.constant 0.000000e+00 : f32
    %214 = vector.shape_cast %213 : vector<2x1xi1> to vector<2x1xi1>
    %215 = vector.broadcast %214 : vector<2x1xi1> to vector<2x10xi1>
    %216 = vector.shape_cast %211 : vector<1x10xf32> to vector<1x10xf32>
    %217 = vector.broadcast %216 : vector<1x10xf32> to vector<2x10xf32>
    %218 = vector.broadcast %cst_70 : f32 to vector<2x10xf32>
    %219 = arith.select %215, %217, %218 : vector<2x10xi1>, vector<2x10xf32>
    %220 = arith.addf %206, %219 : vector<2x10xf32>
    %221 = vector.extract_strided_slice %203 {offsets = [0, 1], sizes = [200, 1], strides = [1, 1]} : vector<200x2xf32> to vector<200x1xf32>
    %222 = vector.broadcast %221 : vector<200x1xf32> to vector<200x10xf32>
    %223 = arith.mulf %204, %222 : vector<200x10xf32>
    %cst_71 = arith.constant dense<0.000000e+00> : vector<10xf32>
    %224 = vector.multi_reduction <add>, %223, %cst_71 [0] : vector<200x10xf32> to vector<10xf32>
    %225 = vector.shape_cast %224 : vector<10xf32> to vector<1x10xf32>
    %c1_i32_72 = arith.constant 1 : i32
    %226 = vector.broadcast %c1_i32_72 : i32 to vector<2x1xi32>
    %227 = arith.cmpi eq, %205, %226 : vector<2x1xi32>
    %cst_73 = arith.constant 0.000000e+00 : f32
    %228 = vector.shape_cast %227 : vector<2x1xi1> to vector<2x1xi1>
    %229 = vector.broadcast %228 : vector<2x1xi1> to vector<2x10xi1>
    %230 = vector.shape_cast %225 : vector<1x10xf32> to vector<1x10xf32>
    %231 = vector.broadcast %230 : vector<1x10xf32> to vector<2x10xf32>
    %232 = vector.broadcast %cst_73 : f32 to vector<2x10xf32>
    %233 = arith.select %229, %231, %232 : vector<2x10xi1>, vector<2x10xf32>
    %234 = arith.addf %220, %233 : vector<2x10xf32>
    %c0_74 = arith.constant 0 : index
    %c0_75 = arith.constant 0 : index
    %235 = vector.load %arg16[%c0_74, %c0_75] : memref<1x10xf32, #tpu.memory_space<vmem>>, vector<1x10xf32>
    %236 = vector.broadcast %235 : vector<1x10xf32> to vector<2x10xf32>
    %237 = arith.addf %234, %236 : vector<2x10xf32>
    %c0_76 = arith.constant 0 : index
    %c0_77 = arith.constant 0 : index
    %238 = vector.load %arg17[%c0_76, %c0_77] : memref<2x10xf32, #tpu.memory_space<vmem>>, vector<2x10xf32>
    tpu.vector_store %arg17[%c0_76, %c0_77], %237 {strides = array<i32>} : memref<2x10xf32, #tpu.memory_space<vmem>>, vector<2x10xf32>,
    return
  }
}

</mosaic_0001>

<bundles_post_ra>
// kernel: tpu_custom_call.1
= control target key start
LH: loop header
LB: loop body
LE: loop exit
PB: predicated region body
PF: predicated region fallthrough
CT: control target
= control target key end

     0   :  { %s17967_s0 = inlined_call_operand.vmem [shape: f32[1,128], index: 0, kind: input, shape index: {}]   ;;  %s17968_s1 = inlined_call_operand.vmem [shape: f32[1,3], index: 1, kind: input, shape index: {}]   ;;  %s17969_s2 = inlined_call_operand.vmem [shape: f32[16,1], index: 2, kind: input, shape index: {}]   ;;  %s17970_s3 = inlined_call_operand.vmem [shape: f32[16,3], index: 3, kind: input, shape index: {}]   ;;  %s17971_s4 = inlined_call_operand.vmem [shape: f32[32,16], index: 4, kind: input, shape index: {}]   ;;  %s17972_s5 = inlined_call_operand.vmem [shape: f32[32,3], index: 5, kind: input, shape index: {}]   ;;  %s17973_s6 = inlined_call_operand.vmem [shape: f32[64,32], index: 6, kind: input, shape index: {}]   ;;  %s17974_s7 = inlined_call_operand.vmem [shape: bf16[1000,64], index: 7, kind: input, shape index: {}]   ;;  %s17975_s8 = inlined_call_operand.vmem [shape: bf16[1000,64], index: 8, kind: input, shape index: {}]   ;;  %s17976_s9 = inlined_call_operand.vmem [shape: bf16[1000,64], index: 9, kind: input, shape index: {}]   ;;  %s17977_s10 = inlined_call_operand.vmem [shape: f32[1000,1], index: 10, kind: input, shape index: {}]   ;;  %s17978_s11 = inlined_call_operand.vmem [shape: bf16[500,1000], index: 11, kind: input, shape index: {}]   ;;  %s17979_s12 = inlined_call_operand.vmem [shape: f32[500,1], index: 12, kind: input, shape index: {}]   ;;  %s17980_s13 = inlined_call_operand.vmem [shape: bf16[200,500], index: 13, kind: input, shape index: {}]   ;;  %s17981_s14 = inlined_call_operand.vmem [shape: f32[200,1], index: 14, kind: input, shape index: {}]   ;;  %s17982_s15 = inlined_call_operand.vmem [shape: f32[200,10], index: 15, kind: input, shape index: {}]   ;;  %s17983_s16 = inlined_call_operand.vmem [shape: f32[1,10], index: 16, kind: input, shape index: {}]   ;;  %s17984_s17 = inlined_call_operand.hbm [shape: f32[2,10], index: 17, kind: output, shape index: {}]  }
   0x1   :  { %17994 = sst [smem:[#allocation93_spill]] %s17967_s0 }
   0x2   :  { %17995 = sst [smem:[#allocation94_spill]] %s17968_s1 }
   0x3   :  { %s17996_s26 = sld [smem:[#allocation94_spill]]  ;;  %v12547_v1 = vmov 2   ;;  %v17987_v2 = vmov 0   ;;  %v17985_v4 = vmov 1   ;;  %s12550_s0 = smov 1   ;;  %v111_v5 = vld [vmem:[%s17969_s2 + $0x8] sm:$0xff]  ;;  %v58_v7 = vlaneseq }
   0x4   :  { %12158 = vset.pattern.permute.xlu1 %v12547_v1  ;;  %12156 = vset.pattern.permute.xlu0 %v17987_v2  ;;  %s17997_s29 = sld [smem:[#allocation93_spill]]  ;;  %v110_v6 = vld [vmem:[%s17969_s2] sm:$0xff]  ;;  %s12551_s20 = smov 127  }
   0x5   :  { %v12675_v8 = vshrl.u32 %v58_v7, 7  ;;  %v12677_v9 = vand.u32 127, %v58_v7 }
   0x7   :  { %17998 = vst [vmem:[#allocation5_spill] sm:$0xff] %v12675_v8  ;;  %v87_v10 = vsub.s32 0, %v12675_v8  ;;  %vm60_vm0 = vcmp.eq.s32.totalorder %v12677_v9, 0  ;;  %vm61_vm1 = vcmp.eq.s32.totalorder %v12677_v9, 54  ;;  %vm63_vm2 = vcmp.eq.s32.totalorder %v12677_v9, 53 }
   0x8   :  { %vm64_vm3 = vcmp.eq.s32.totalorder %v12677_v9, 107  ;;  %vm12686_vm4 = vmor %vm60_vm0, %vm61_vm1 }
   0x9   :  { %v73_v0 = vld [vmem:[%s17996_s26] sm:$0x1]  ;;  %vm65_vm5 = vmor %vm63_vm2, %vm64_vm3 }
   0xa   :  { %101 = vperm.xlu1 %12158, %v73_v0   ;;  %82 = vperm.xlu0 %12156, %v73_v0   ;;  %v72_v3 = vld [vmem:[%s17997_s29] sm:$0x1] }
   0xe   :  { %12157 = vset.pattern.permute.xlu0 %v17985_v4  ;;  %74 = vrot.lane.b32.xlu1 %v72_v3, %s12550_s0 }
   0xf   :  { %91 = vperm.xlu0 %12157, %v73_v0   ;;  %12160 = vset.pattern.permute.xlu1 %v17987_v2 }
  0x12   :  { %77 = vrot.lane.b32.xlu1 %v72_v3, %s12551_s20 }
  0x13   :  { %12159 = vset.pattern.permute.xlu0 %v17987_v2 }
  0x14   :  { %119 = vperm.xlu0 %12159, %v111_v5  }
  0x16   :  { %114 = vperm.xlu1 %12160, %v110_v6  }
  0x18   :  { %12162 = vset.pattern.permute.xlu0 %v12547_v1 }
  0x85   :  { %v102_v12 = vpop.permute.xlu1 %101  ;;  %v83_v13 = vpop.permute.xlu0 %82 }
  0x86   :  { %v88_v17 = vrot.slane %v83_v13, %v87_v10  ;;  %v107_v19 = vrot.slane %v102_v12, %v87_v10 }
  0x89   :  { %v75_v14 = vpop.permute.xlu1 %74 }
  0x8a   :  { %v76_v15 = vsel %vm12686_vm4, 0.0, %v75_v14  ;;  %v92_v16 = vpop.permute.xlu0 %91 }
  0x8b   :  { %v97_v18 = vrot.slane %v92_v16, %v87_v10  ;;  %v89_v20 = vmul.f32 %v88_v17, %v76_v15 }
  0x8d   :  { %v98_v21 = vmul.f32 %v97_v18, %v72_v3  ;;  %v78_v22 = vpop.permute.xlu1 %77 }
  0x8e   :  { %v79_v23 = vsel %vm65_vm5, 0.0, %v78_v22 }
  0x8f   :  { %v99_v24 = vadd.f32 %v98_v21, %v89_v20  ;;  %v108_v25 = vmul.f32 %v107_v19, %v79_v23  ;;  %v120_v27 = vpop.permute.xlu0 %119 }
  0x91   :  { %v109_v26 = vadd.f32 %v108_v25, %v99_v24  ;;  %v115_v28 = vpop.permute.xlu1 %114 }
  0x93   :  { %v125_v29 = vrot.slane %v109_v26, %v87_v10 }
  0x95   :  { %v127_v30 = vmul.f32 %v125_v29, %v120_v27  ;;  %v126_v31 = vmul.f32 %v125_v29, %v115_v28 }
  0x97   :  { %v129_v32 = vmax.f32 %v127_v30, 0.0  ;;  %v128_v33 = vmax.f32 %v126_v31, 0.0 }
  0x99   :  { %132 = vrot.lane.b32.xlu1 %v129_v32, %s12551_s20  ;;  %130 = vrot.lane.b32.xlu0 %v128_v33, %s12551_s20 }
  0x9a   :  { %22 = vsyncpa [#allocation3], 0  ;;  %v137_v34 = vld [vmem:[%s17970_s3 + $0x8] sm:$0xff]  ;;  %v136_v35 = vld [vmem:[%s17970_s3] sm:$0xff]  ;;  %vm194_vm6 = vcmask 130048   ;;  %s12552_s3 = smov 2  }
  0x9b   :  { %v190_v40 = vld [vmem:[%s17971_s4] sm:$0xff]  ;;  %s12553_s26 = smov 126   ;;  %vm66_vm7 = vcmp.eq.s32.totalorder %v12677_v9, 52  ;;  %vm67_vm8 = vcmp.eq.s32.totalorder %v12677_v9, 106  ;;  %v191_v3 = vld [vmem:[%s17971_s4 + $0x8] sm:$0xff]  ;;  %v192_v5 = vld [vmem:[%s17971_s4 + $0x10] sm:$0xff] }
  0x9c   :  { %11330 = vmatprep.mubr.msk.f32.mxu0 %vm194_vm6, %v190_v40  ;;  %vm68_vm9 = vmor %vm66_vm7, %vm67_vm8  ;;  %v193_v6 = vld [vmem:[%s17971_s4 + $0x18] sm:$0xff]  ;;  %s12554_s19 = smov 124   ;;  %v321_v19 = vld [vmem:[%s17972_s5 + $0x8] sm:$0xff]  ;;  %s12556_s25 = smov 122   ;;  %vm430_vm10 = vcmask 261120   ;;  %vm69_vm11 = vcmp.eq.s32.totalorder %v12677_v9, 48 }
  0x9d   :  { %161 = vperm.xlu1 %12160, %v137_v34   ;;  %183 = vperm.xlu0 %12162, %v137_v34   ;;  %v323_v18 = vld [vmem:[%s17972_s5 + $0x18] sm:$0xff]  ;;  %v322_v20 = vld [vmem:[%s17972_s5 + $0x10] sm:$0xff]  ;;  %v320_v21 = vld [vmem:[%s17972_s5] sm:$0xff]  ;;  %s12555_s5 = smov 6   ;;  %vm70_vm12 = vcmp.eq.s32.totalorder %v12677_v9, 102  ;;  %vm12562_vm14 = vmmov 0  }
  0x9e   :  { %vm12768_vm13 = vmor %vm69_vm11, %vm70_vm12  ;;  %v424_v11 = vld [vmem:[%s17973_s6 + $0x10] sm:$0xff]  ;;  %vm799_vm15 = vcmp.eq.s32.totalorder %v12677_v9, 1  ;;  %vm1292_vm1 = vcmask 523264   ;;  %vm7598_vm2 = vcmask 850944   ;;  %vm9387_vm3 = vcmask 949248   ;;  %s12565_s24 = smov [#allocation2]  }
  0x9f   :  { %v12271_v9 = vld [vmem:[%s17975_s8 + $0x30] sm:$0xff]   ;;  %vm9905_vm5 = vcmask 80896   ;;  %vm10159_vm8 = vcmask 74752  }
  0xa1   :  { %156 = vperm.xlu1 %12160, %v136_v35   ;;  %12163 = vset.pattern.permute.xlu0 %v17985_v4 }
  0xa2   :  { %171 = vperm.xlu0 %12163, %v137_v34  }
  0xa5   :  { %12161 = vset.pattern.permute.xlu1 %v17985_v4 }
  0xa6   :  { %167 = vperm.xlu1 %12161, %v136_v35  }
  0xaa   :  { %12164 = vset.pattern.permute.xlu1 %v12547_v1 }
  0xab   :  { %179 = vperm.xlu1 %12164, %v136_v35  }
  0xaf   :  { %12165 = vset.pattern.permute.xlu1 %v17987_v2 }
 0x10b   :  { %v133_v36 = vpop.permute.xlu1 %132  ;;  %v131_v37 = vpop.permute.xlu0 %130 }
 0x10c   :  { %v135_v38 = vmax.f32 %v129_v32, %v133_v36  ;;  %v134_v39 = vmax.f32 %v128_v33, %v131_v37  ;;  %v422_v37 = vld [vmem:[%s17973_s6] sm:$0xff] }
 0x10e   :  { %140 = vrot.lane.b32.xlu1 %v135_v38, %s12552_s3  ;;  %138 = vrot.lane.b32.xlu0 %v134_v39, %s12552_s3 }
 0x112   :  { %148 = vrot.lane.b32.xlu1 %v135_v38, %s12553_s26  ;;  %146 = vrot.lane.b32.xlu0 %v134_v39, %s12553_s26 }
 0x118   :  { %v162_v41 = vpop.permute.xlu1 %161  ;;  %v184_v43 = vpop.permute.xlu0 %183 }
 0x11c   :  { %v157_v42 = vpop.permute.xlu1 %156 }
 0x11d   :  { %v172_v46 = vpop.permute.xlu0 %171 }
 0x11e   :  { %v175_v52 = vmul.f32 %v172_v46, %v135_v38 }
 0x121   :  { %v168_v44 = vpop.permute.xlu1 %167 }
 0x122   :  { %v174_v58 = vmul.f32 %v168_v44, %v134_v39 }
 0x126   :  { %v180_v45 = vpop.permute.xlu1 %179 }
 0x180   :  { %v141_v47 = vpop.permute.xlu1 %140  ;;  %v139_v48 = vpop.permute.xlu0 %138 }
 0x181   :  { %v145_v49 = vsel %vm12686_vm4, 0.0, %v141_v47  ;;  %v144_v50 = vsel %vm12686_vm4, 0.0, %v139_v48 }
 0x182   :  { %v165_v51 = vmul.f32 %v162_v41, %v145_v49  ;;  %v164_v53 = vmul.f32 %v157_v42, %v144_v50 }
 0x184   :  { %v149_v54 = vpop.permute.xlu1 %148  ;;  %v147_v55 = vpop.permute.xlu0 %146  ;;  %v177_v61 = vadd.f32 %v175_v52, %v165_v51  ;;  %v176_v62 = vadd.f32 %v174_v58, %v164_v53 }
 0x185   :  { %v153_v56 = vsel %vm68_vm9, 0.0, %v149_v54  ;;  %v152_v57 = vsel %vm68_vm9, 0.0, %v147_v55 }
 0x186   :  { %v187_v59 = vmul.f32 %v184_v43, %v153_v56  ;;  %v186_v60 = vmul.f32 %v180_v45, %v152_v57 }
 0x188   :  { %v189_v63 = vadd.f32 %v187_v59, %v177_v61  ;;  %v188_v0 = vadd.f32 %v186_v60, %v176_v62 }
 0x18a   :  { %11326 = vmatprep.subr.mxu0 %v189_v63 }
 0x18b   :  { %11327 = vmatpush3.msra.mxu0 %v189_v63 }
 0x18c   :  { %11328 = vmatprep.subr.mxu0 %v188_v0 }
 0x18d   :  { %11329 = vmatpush3.msra.mxu0 %v188_v0 }
 0x18e   :  { %11331 = vmatmul.mubr.msk.f32.vlgmr.msra.gmra.mxu0 %vm194_vm6, %v191_v3 }
 0x18f   :  { %11333 = vmatprep.mubr.msk.f32.mxu0 %vm194_vm6, %v192_v5 }
 0x192   :  { %11334 = vmatmul.mubr.msk.f32.gmra.mxu0 %vm194_vm6, %v193_v6 }
 0x193   :  { %11344 = vmatprep.mubr.msk.f32.mxu0 %vm430_vm10, %v422_v37 }
 0x24e   :  { %v11332_v7 = vpop.f32.mrf.mxu0 }
 0x24f   :  { %v293_v10 = vmax.f32 %v11332_v7, 0.0 }
 0x250   :  { %v273_v12 = vpop.f32.mrf.mxu0 }
 0x251   :  { %298 = vrot.lane.b32.xlu0 %v293_v10, %s12553_s26  ;;  %v292_v17 = vmax.f32 %v273_v12, 0.0 }
 0x252   :  { %v11335_v13 = vpop.f32.mrf.mxu0 }
 0x253   :  { %v295_v14 = vmax.f32 %v11335_v13, 0.0 }
 0x254   :  { %v283_v15 = vpop.f32.mrf.mxu0 }
 0x255   :  { %v294_v16 = vmax.f32 %v283_v15, 0.0  ;;  %302 = vrot.lane.b32.xlu1 %v295_v14, %s12553_s26 }
 0x257   :  { %300 = vrot.lane.b32.xlu0 %v294_v16, %s12553_s26 }
 0x259   :  { %314 = vrot.lane.b32.xlu1 %v295_v14, %s12554_s19 }
 0x25b   :  { %296 = vrot.lane.b32.xlu0 %v292_v17, %s12553_s26 }
 0x25d   :  { %312 = vrot.lane.b32.xlu1 %v294_v16, %s12554_s19 }
 0x25f   :  { %308 = vrot.lane.b32.xlu0 %v292_v17, %s12554_s19 }
 0x261   :  { %310 = vrot.lane.b32.xlu1 %v293_v10, %s12554_s19 }
 0x263   :  { %387 = vperm.xlu0 %12163, %v323_v18  }
 0x265   :  { %367 = vperm.xlu1 %12165, %v323_v18  }
 0x267   :  { %379 = vperm.xlu0 %12163, %v321_v19  }
 0x269   :  { %362 = vperm.xlu1 %12165, %v322_v20  }
 0x26b   :  { %375 = vperm.xlu0 %12163, %v320_v21  }
 0x26d   :  { %12166 = vset.pattern.permute.xlu1 %v17985_v4 }
 0x26e   :  { %383 = vperm.xlu1 %12166, %v322_v20  }
 0x26f   :  { %12170 = vset.pattern.permute.xlu0 %v12547_v1 }
 0x270   :  { %411 = vperm.xlu0 %12170, %v323_v18  }
 0x272   :  { %12167 = vset.pattern.permute.xlu1 %v17987_v2 }
 0x273   :  { %357 = vperm.xlu1 %12167, %v321_v19  }
 0x277   :  { %12168 = vset.pattern.permute.xlu1 %v12547_v1 }
 0x278   :  { %407 = vperm.xlu1 %12168, %v322_v20  }
 0x27c   :  { %12169 = vset.pattern.permute.xlu1 %v17987_v2 }
 0x27d   :  { %352 = vperm.xlu1 %12169, %v320_v21  }
 0x281   :  { %12171 = vset.pattern.permute.xlu1 %v12547_v1 }
 0x282   :  { %403 = vperm.xlu1 %12171, %v321_v19  }
 0x286   :  { %12173 = vset.pattern.permute.xlu1 %v17987_v2 }
 0x2c3   :  { %v299_v22 = vpop.permute.xlu0 %298 }
 0x2c4   :  { %v305_v32 = vmax.f32 %v293_v10, %v299_v22 }
 0x2c7   :  { %v303_v23 = vpop.permute.xlu1 %302 }
 0x2c8   :  { %v307_v25 = vmax.f32 %v295_v14, %v303_v23 }
 0x2c9   :  { %v301_v24 = vpop.permute.xlu0 %300 }
 0x2ca   :  { %v306_v1 = vmax.f32 %v294_v16, %v301_v24 }
 0x2cb   :  { %v315_v26 = vpop.permute.xlu1 %314 }
 0x2cc   :  { %v319_v27 = vmax.f32 %v307_v25, %v315_v26 }
 0x2cd   :  { %v297_v28 = vpop.permute.xlu0 %296 }
 0x2ce   :  { %330 = vrot.lane.b32.xlu1 %v319_v27, %s12555_s5  ;;  %v304_v30 = vmax.f32 %v292_v17, %v297_v28 }
 0x2cf   :  { %v313_v29 = vpop.permute.xlu1 %312 }
 0x2d0   :  { %v318_v36 = vmax.f32 %v306_v1, %v313_v29  ;;  %v423_v29 = vld [vmem:[%s17973_s6 + $0x8] sm:$0xff] }
 0x2d1   :  { %v309_v31 = vpop.permute.xlu0 %308 }
 0x2d2   :  { %v12751_v33 = vmax.f32 %v304_v30, %v309_v31  ;;  %v425_v30 = vld [vmem:[%s17973_s6 + $0x18] sm:$0xff]  ;;  %v426_v31 = vld [vmem:[%s17973_s6 + $0x20] sm:$0xff] }
 0x2d3   :  { %v311_v34 = vpop.permute.xlu1 %310 }
 0x2d4   :  { %v317_v35 = vmax.f32 %v305_v32, %v311_v34  ;;  %324 = vrot.lane.b32.xlu1 %v12751_v33, %s12555_s5  ;;  %v427_v32 = vld [vmem:[%s17973_s6 + $0x28] sm:$0xff]  ;;  %v429_v34 = vld [vmem:[%s17973_s6 + $0x38] sm:$0xff] }
 0x2d6   :  { %326 = vrot.lane.b32.xlu0 %v317_v35, %s12555_s5 }
 0x2d8   :  { %328 = vrot.lane.b32.xlu1 %v318_v36, %s12555_s5  ;;  %s10167_s5 = sshll.u32 %s12565_s24, 4  ;;  %s10168_s5 = int_to_ptr.vmem [resolvable:$true] %s10167_s5 }
 0x2d9   :  { %p12530_p1 = scmp.lt.s32.totalorder %s10168_s5, %s10168_s5 }
 0x2da   :  { %342 = vrot.lane.b32.xlu0 %v319_v27, %s12556_s25 }
 0x2dc   :  { %340 = vrot.lane.b32.xlu1 %v318_v36, %s12556_s25 }
 0x2de   :  { %399 = vperm.xlu0 %12170, %v320_v21   ;;  %v388_v43 = vpop.permute.xlu0 %387 }
 0x2df   :  { %v393_v57 = vmul.f32 %v388_v43, %v319_v27 }
 0x2e0   :  { %338 = vrot.lane.b32.xlu1 %v317_v35, %s12556_s25  ;;  %v368_v38 = vpop.permute.xlu1 %367 }
 0x2e2   :  { %336 = vrot.lane.b32.xlu0 %v12751_v33, %s12556_s25  ;;  %v380_v45 = vpop.permute.xlu0 %379 }
 0x2e3   :  { %12172 = vset.pattern.permute.xlu0 %v17987_v2  ;;  %v391_v13 = vmul.f32 %v380_v45, %v317_v35 }
 0x2e4   :  { %v363_v39 = vpop.permute.xlu1 %362 }
 0x2e6   :  { %v376_v47 = vpop.permute.xlu0 %375 }
 0x2e7   :  { %v390_v23 = vmul.f32 %v376_v47, %v12751_v33  ;;  %v428_v33 = vld [vmem:[%s17973_s6 + $0x30] sm:$0xff]  ;;  %s12557_s6 = smov 116  }
 0x2e9   :  { %v384_v40 = vpop.permute.xlu1 %383 }
 0x2ea   :  { %v392_v62 = vmul.f32 %v384_v40, %v318_v36 }
 0x2eb   :  { %v412_v49 = vpop.permute.xlu0 %411 }
 0x2ee   :  { %v358_v41 = vpop.permute.xlu1 %357 }
 0x2f3   :  { %v408_v42 = vpop.permute.xlu1 %407 }
 0x2f8   :  { %v353_v44 = vpop.permute.xlu1 %352 }
 0x2fd   :  { %v404_v46 = vpop.permute.xlu1 %403 }
 0x340   :  { %v331_v48 = vpop.permute.xlu1 %330 }
 0x341   :  { %v335_v51 = vsel %vm12686_vm4, 0.0, %v331_v48 }
 0x342   :  { %v373_v53 = vmul.f32 %v368_v38, %v335_v51 }
 0x344   :  { %v397_v63 = vadd.f32 %v393_v57, %v373_v53 }
 0x346   :  { %v325_v50 = vpop.permute.xlu1 %324 }
 0x347   :  { %v332_v20 = vsel %vm12686_vm4, 0.0, %v325_v50 }
 0x348   :  { %v327_v52 = vpop.permute.xlu0 %326  ;;  %v370_v22 = vmul.f32 %v353_v44, %v332_v20 }
 0x349   :  { %v333_v60 = vsel %vm12686_vm4, 0.0, %v327_v52 }
 0x34a   :  { %v329_v54 = vpop.permute.xlu1 %328  ;;  %v371_v6 = vmul.f32 %v358_v41, %v333_v60  ;;  %v394_v26 = vadd.f32 %v390_v23, %v370_v22  ;;  %v17991_v23 = vmov 0.0  }
 0x34b   :  { %v334_v56 = vsel %vm12686_vm4, 0.0, %v329_v54  ;;  %11616 = vmatprep.subr.bf16.mxu1 %v17991_v23  ;;  %11624 = vmatprep.mubr.msk.bf16.mxu1 %vm12562_vm14, %v17991_v23  ;;  %vm9427_vm4 = vcmask 1041408  }
 0x34c   :  { %v372_v58 = vmul.f32 %v363_v39, %v334_v56  ;;  %v343_v59 = vpop.permute.xlu0 %342  ;;  %v395_v17 = vadd.f32 %v391_v13, %v371_v6 }
 0x34d   :  { %v349_v61 = vsel %vm12768_vm13, 0.0, %v343_v59 }
 0x34e   :  { %v417_v0 = vmul.f32 %v412_v49, %v349_v61  ;;  %v341_v3 = vpop.permute.xlu1 %340  ;;  %v396_v7 = vadd.f32 %v392_v62, %v372_v58 }
 0x34f   :  { %v348_v5 = vsel %vm12768_vm13, 0.0, %v341_v3 }
 0x350   :  { %v416_v10 = vmul.f32 %v408_v42, %v348_v5  ;;  %v421_v12 = vadd.f32 %v417_v0, %v397_v63 }
 0x352   :  { %v339_v14 = vpop.permute.xlu1 %338  ;;  %11336 = vmatprep.subr.mxu0 %v421_v12  ;;  %v420_v15 = vadd.f32 %v416_v10, %v396_v7  ;;  %v12558_v7 = vmov 54  }
 0x353   :  { %v347_v16 = vsel %vm12768_vm13, 0.0, %v339_v14  ;;  %11337 = vmatpush3.msra.mxu0 %v421_v12 }
 0x354   :  { %v415_v18 = vmul.f32 %v404_v46, %v347_v16  ;;  %11338 = vmatprep.subr.mxu0 %v420_v15 }
 0x355   :  { %11339 = vmatpush3.msra.mxu0 %v420_v15 }
 0x356   :  { %v419_v19 = vadd.f32 %v415_v18, %v395_v17 }
 0x358   :  { %11340 = vmatprep.subr.mxu0 %v419_v19 }
 0x359   :  { %11341 = vmatpush3.msra.mxu0 %v419_v19  ;;  %v400_v21 = vpop.permute.xlu0 %399 }
 0x35d   :  { %v337_v24 = vpop.permute.xlu0 %336 }
 0x35e   :  { %v346_v25 = vsel %vm12768_vm13, 0.0, %v337_v24  ;;  %v12561_v24 = vmov 18  }
 0x35f   :  { %v414_v27 = vmul.f32 %v400_v21, %v346_v25  ;;  %v12559_v21 = vmov 72  }
 0x361   :  { %v418_v28 = vadd.f32 %v414_v27, %v394_v26 }
 0x363   :  { %11342 = vmatprep.subr.mxu0 %v418_v28 }
 0x364   :  { %11343 = vmatpush3.msra.mxu0 %v418_v28  ;;  %v12563_v28 = vmov 90  }
 0x365   :  { %11345 = vmatmul.mubr.msk.f32.vlgmr.msra.gmra.mxu0 %vm430_vm10, %v423_v29  ;;  %11356 = vmatprep.subr.bf16.mxu0 %v17991_v23  ;;  %v12564_v29 = vmov 36  }
 0x366   :  { %11347 = vmatprep.mubr.msk.f32.mxu0 %vm430_vm10, %v424_v11  ;;  %v631_v11 = vld [vmem:[%s17977_s10 + $0x78] sm:$0xff] }
 0x369   :  { %11348 = vmatmul.mubr.msk.f32.gmra.mxu0 %vm430_vm10, %v425_v30  ;;  %v626_v30 = vld [vmem:[%s17977_s10 + $0x50] sm:$0xff] }
 0x36a   :  { %11350 = vmatprep.mubr.msk.f32.mxu0 %vm430_vm10, %v426_v31  ;;  %v624_v31 = vld [vmem:[%s17977_s10 + $0x40] sm:$0xff] }
 0x36d   :  { %11351 = vmatmul.mubr.msk.f32.gmra.mxu0 %vm430_vm10, %v427_v32  ;;  %v622_v32 = vld [vmem:[%s17977_s10 + $0x30] sm:$0xff] }
 0x36e   :  { %11353 = vmatprep.mubr.msk.f32.mxu0 %vm430_vm10, %v428_v33  ;;  %v620_v33 = vld [vmem:[%s17977_s10 + $0x20] sm:$0xff] }
 0x371   :  { %11354 = vmatmul.mubr.msk.f32.gmra.mxu0 %vm430_vm10, %v429_v34  ;;  %v618_v34 = vld [vmem:[%s17977_s10 + $0x10] sm:$0xff] }
 0x372   :  { %11364 = vmatprep.mubr.msk.bf16.mxu0 %vm12562_vm14, %v17991_v23 }
 0x425   :  { %v11346_v1 = vpop.f32.mrf.mxu0 }
 0x426   :  { %v12821_v48 = vmax.f32 %v11346_v1, 0.0  ;;  %v616_v1 = vld [vmem:[%s17977_s10] sm:$0xff] }
 0x427   :  { %v521_v35 = vpop.f32.mrf.mxu0 }
 0x428   :  { %v560_v49 = vmax.f32 %v521_v35, 0.0 }
 0x429   :  { %v11349_v36 = vpop.f32.mrf.mxu0 }
 0x42a   :  { %v563_v37 = vmax.f32 %v11349_v36, 0.0 }
 0x42b   :  { %v531_v38 = vpop.f32.mrf.mxu0 }
 0x42c   :  { %v562_v39 = vmax.f32 %v531_v38, 0.0  ;;  %574 = vrot.lane.b32.xlu0 %v563_v37, %s12556_s25 }
 0x42d   :  { %v11352_v40 = vpop.f32.mrf.mxu0 }
 0x42e   :  { %v565_v41 = vmax.f32 %v11352_v40, 0.0  ;;  %572 = vrot.lane.b32.xlu1 %v562_v39, %s12556_s25 }
 0x42f   :  { %v541_v42 = vpop.f32.mrf.mxu0 }
 0x430   :  { %v564_v43 = vmax.f32 %v541_v42, 0.0  ;;  %578 = vrot.lane.b32.xlu0 %v565_v41, %s12556_s25  ;;  %v630_v42 = vld [vmem:[%s17977_s10 + $0x70] sm:$0xff] }
 0x431   :  { %v11355_v44 = vpop.f32.mrf.mxu0 }
 0x432   :  { %576 = vrot.lane.b32.xlu1 %v564_v43, %s12556_s25  ;;  %v567_v45 = vmax.f32 %v11355_v44, 0.0 }
 0x433   :  { %v551_v46 = vpop.f32.mrf.mxu0 }
 0x434   :  { %602 = vrot.lane.b32.xlu0 %v565_v41, %s12557_s6  ;;  %v566_v47 = vmax.f32 %v551_v46, 0.0 }
 0x436   :  { %600 = vrot.lane.b32.xlu1 %v564_v43, %s12557_s6 }
 0x438   :  { %582 = vrot.lane.b32.xlu0 %v567_v45, %s12556_s25 }
 0x43a   :  { %580 = vrot.lane.b32.xlu1 %v566_v47, %s12556_s25 }
 0x43c   :  { %606 = vrot.lane.b32.xlu0 %v567_v45, %s12557_s6 }
 0x43e   :  { %604 = vrot.lane.b32.xlu1 %v566_v47, %s12557_s6 }
 0x440   :  { %598 = vrot.lane.b32.xlu0 %v563_v37, %s12557_s6 }
 0x442   :  { %596 = vrot.lane.b32.xlu1 %v562_v39, %s12557_s6 }
 0x444   :  { %570 = vrot.lane.b32.xlu0 %v12821_v48, %s12556_s25 }
 0x446   :  { %568 = vrot.lane.b32.xlu1 %v560_v49, %s12556_s25  ;;  %s12525_s25 = scalar_lea.vmem %s10168_s5, 32 }
 0x447   :  { %p12526_p0 = scmp.ne.s32.totalorder %s10168_s5, %s12525_s25  ;;  %p12531_p2 = scmp.lt.s32.totalorder %s12525_s25, %s12525_s25 }
 0x448   :  { %594 = vrot.lane.b32.xlu0 %v12821_v48, %s12557_s6 }
 0x449   :  { %p12532_p3 = por %p12531_p2, %p12530_p1 }
 0x44a   :  { %592 = vrot.lane.b32.xlu1 %v560_v49, %s12557_s6 }
 0x44b   :  { %p12533_p4 = pnand %p12532_p3, %p12526_p0 }
 0x49e   :  { %v575_v50 = vpop.permute.xlu0 %574 }
 0x49f   :  { %v587_v60 = vmax.f32 %v563_v37, %v575_v50 }
 0x4a0   :  { %v573_v51 = vpop.permute.xlu1 %572 }
 0x4a1   :  { %v586_v62 = vmax.f32 %v562_v39, %v573_v51 }
 0x4a2   :  { %v579_v52 = vpop.permute.xlu0 %578 }
 0x4a3   :  { %v589_v12 = vmax.f32 %v565_v41, %v579_v52 }
 0x4a4   :  { %v577_v53 = vpop.permute.xlu1 %576 }
 0x4a5   :  { %v588_v3 = vmax.f32 %v564_v43, %v577_v53 }
 0x4a6   :  { %v603_v54 = vpop.permute.xlu0 %602 }
 0x4a7   :  { %v12838_v13 = vmax.f32 %v589_v12, %v603_v54  ;;  %v625_v12 = vld [vmem:[%s17977_s10 + $0x48] sm:$0xff] }
 0x4a8   :  { %v601_v55 = vpop.permute.xlu1 %600 }
 0x4a9   :  { %v12832_v6 = vmax.f32 %v588_v3, %v601_v55  ;;  %v644_v55 = vld [vmem:[%s17977_s10 + $0xe0] sm:$0xff] }
 0x4aa   :  { %v583_v56 = vpop.permute.xlu0 %582 }
 0x4ab   :  { %v591_v14 = vmax.f32 %v567_v45, %v583_v56  ;;  %v628_v45 = vld [vmem:[%s17977_s10 + $0x60] sm:$0xff] }
 0x4ac   :  { %v581_v57 = vpop.permute.xlu1 %580 }
 0x4ad   :  { %v590_v19 = vmax.f32 %v566_v47, %v581_v57 }
 0x4ae   :  { %v607_v58 = vpop.permute.xlu0 %606 }
 0x4af   :  { %v12841_v15 = vmax.f32 %v591_v14, %v607_v58 }
 0x4b0   :  { %v605_v59 = vpop.permute.xlu1 %604 }
 0x4b1   :  { %v12848_v20 = vmax.f32 %v590_v19, %v605_v59 }
 0x4b2   :  { %v599_v61 = vpop.permute.xlu0 %598 }
 0x4b3   :  { %v12827_v63 = vmax.f32 %v587_v60, %v599_v61  ;;  %v627_v60 = vld [vmem:[%s17977_s10 + $0x58] sm:$0xff] }
 0x4b4   :  { %v597_v0 = vpop.permute.xlu1 %596 }
 0x4b5   :  { %v12829_v5 = vmax.f32 %v586_v62, %v597_v0  ;;  %760 = vperm.xlu0 %12172, %v12827_v63  }
 0x4b6   :  { %v571_v22 = vpop.permute.xlu0 %570 }
 0x4b7   :  { %755 = vperm.xlu1 %12173, %v12829_v5   ;;  %v585_v26 = vmax.f32 %v12821_v48, %v571_v22  ;;  %v629_v48 = vld [vmem:[%s17977_s10 + $0x68] sm:$0xff] }
 0x4b8   :  { %v569_v10 = vpop.permute.xlu1 %568 }
 0x4b9   :  { %765 = vperm.xlu0 %12172, %v12832_v6   ;;  %v584_v17 = vmax.f32 %v560_v49, %v569_v10  ;;  %v646_v49 = vld [vmem:[%s17977_s10 + $0xf0] sm:$0xff] }
 0x4ba   :  { %v595_v25 = vpop.permute.xlu0 %594 }
 0x4bb   :  { %12174 = vset.pattern.permute.xlu1 %v12558_v7  ;;  %v12860_v27 = vmax.f32 %v585_v26, %v595_v25 }
 0x4bc   :  { %811 = vperm.xlu1 %12174, %v12829_v5   ;;  %v593_v16 = vpop.permute.xlu1 %592 }
 0x4bd   :  { %12177 = vset.pattern.permute.xlu0 %v12558_v7  ;;  %v608_v18 = vmax.f32 %v584_v17, %v593_v16 }
 0x4be   :  { %819 = vperm.xlu0 %12177, %v12832_v6  }
 0x4c0   :  { %12175 = vset.pattern.permute.xlu1 %v17987_v2 }
 0x4c1   :  { %770 = vperm.xlu1 %12175, %v12838_v13  }
 0x4c2   :  { %12178 = vset.pattern.permute.xlu0 %v17987_v2 }
 0x4c3   :  { %780 = vperm.xlu0 %12178, %v12841_v15  }
 0x4c5   :  { %12176 = vset.pattern.permute.xlu1 %v12558_v7 }
 0x4c6   :  { %823 = vperm.xlu1 %12176, %v12838_v13  }
 0x4c7   :  { %745 = vperm.xlu0 %12178, %v608_v18  }
 0x4ca   :  { %831 = vperm.xlu1 %12176, %v12841_v15  }
 0x4cb   :  { %12182 = vset.pattern.permute.xlu0 %v12558_v7 }
 0x4cc   :  { %803 = vperm.xlu0 %12182, %v608_v18  }
 0x4ce   :  { %12179 = vset.pattern.permute.xlu1 %v17987_v2 }
 0x4cf   :  { %775 = vperm.xlu1 %12179, %v12848_v20  }
 0x4d0   :  { %12186 = vset.pattern.permute.xlu0 %v12559_v21 }
 0x4d1   :  { %2833 = vperm.xlu0 %12186, %v12832_v6  }
 0x4d3   :  { %12180 = vset.pattern.permute.xlu1 %v12558_v7 }
 0x4d4   :  { %827 = vperm.xlu1 %12180, %v12848_v20  }
 0x4d5   :  { %12187 = vset.pattern.permute.xlu0 %v12561_v24 }
 0x4d6   :  { %2797 = vperm.xlu0 %12187, %v12841_v15  }
 0x4d8   :  { %815 = vperm.xlu1 %12180, %v12827_v63  }
 0x4da   :  { %2785 = vperm.xlu0 %12187, %v12832_v6  }
 0x4dc   :  { %12181 = vset.pattern.permute.xlu1 %v17987_v2 }
 0x4dd   :  { %750 = vperm.xlu1 %12181, %v12860_v27  }
 0x4de   :  { %2781 = vperm.xlu0 %12187, %v12827_v63  }
 0x4e1   :  { %12183 = vset.pattern.permute.xlu1 %v12558_v7 }
 0x4e2   :  { %807 = vperm.xlu1 %12183, %v12860_v27   ;;  %2769 = vperm.xlu0 %12187, %v608_v18  }
 0x4e6   :  { %12184 = vset.pattern.permute.xlu1 %v12559_v21  ;;  %12194 = vset.pattern.permute.xlu0 %v12559_v21 }
 0x4e7   :  { %2845 = vperm.xlu1 %12184, %v12841_v15   ;;  %2817 = vperm.xlu0 %12194, %v608_v18  }
 0x4eb   :  { %12185 = vset.pattern.permute.xlu1 %v12561_v24  ;;  %12198 = vset.pattern.permute.xlu0 %v12563_v28 }
 0x4ec   :  { %2789 = vperm.xlu1 %12185, %v12838_v13   ;;  %4221 = vperm.xlu0 %12198, %v12832_v6  }
 0x4f0   :  { %12188 = vset.pattern.permute.xlu1 %v12559_v21  ;;  %12199 = vset.pattern.permute.xlu0 %v12564_v29 }
 0x4f1   :  { %2837 = vperm.xlu1 %12188, %v12838_v13   ;;  %4185 = vperm.xlu0 %12199, %v12841_v15  }
 0x4f5   :  { %12189 = vset.pattern.permute.xlu1 %v12561_v24  ;;  %4173 = vperm.xlu0 %12199, %v12832_v6  }
 0x4f6   :  { %2777 = vperm.xlu1 %12189, %v12829_v5  }
 0x4f9   :  { %4169 = vperm.xlu0 %12199, %v12827_v63  }
 0x4fa   :  { %12190 = vset.pattern.permute.xlu1 %v12559_v21 }
 0x4fb   :  { %2825 = vperm.xlu1 %12190, %v12829_v5  }
 0x4fd   :  { %4157 = vperm.xlu0 %12199, %v608_v18  }
 0x4ff   :  { %12191 = vset.pattern.permute.xlu1 %v12561_v24 }
 0x500   :  { %2793 = vperm.xlu1 %12191, %v12848_v20  }
 0x501   :  { %12206 = vset.pattern.permute.xlu0 %v12563_v28 }
 0x502   :  { %4205 = vperm.xlu0 %12206, %v608_v18   ;;  %v640_v18 = vld [vmem:[%s17977_s10 + $0xc0] sm:$0xff] }
 0x504   :  { %12192 = vset.pattern.permute.xlu1 %v12559_v21 }
 0x505   :  { %2841 = vperm.xlu1 %12192, %v12848_v20  }
 0x506   :  { %12209 = vset.pattern.permute.xlu0 %v17987_v2 }
 0x507   :  { %2095 = vperm.xlu0 %12209, %v631_v11   ;;  %v638_v11 = vld [vmem:[%s17977_s10 + $0xb0] sm:$0xff] }
 0x509   :  { %2829 = vperm.xlu1 %12192, %v12827_v63  }
 0x50b   :  { %2070 = vperm.xlu0 %12209, %v626_v30  }
 0x50d   :  { %12193 = vset.pattern.permute.xlu1 %v12561_v24 }
 0x50e   :  { %2773 = vperm.xlu1 %12193, %v12860_v27  }
 0x50f   :  { %2060 = vperm.xlu0 %12209, %v624_v31  }
 0x512   :  { %12195 = vset.pattern.permute.xlu1 %v12559_v21  ;;  %v623_v21 = vld [vmem:[%s17977_s10 + $0x38] sm:$0xff] }
 0x513   :  { %2821 = vperm.xlu1 %12195, %v12860_v27   ;;  %2050 = vperm.xlu0 %12209, %v622_v32   ;;  %v636_v32 = vld [vmem:[%s17977_s10 + $0xa0] sm:$0xff] }
 0x517   :  { %12196 = vset.pattern.permute.xlu1 %v12563_v28  ;;  %2040 = vperm.xlu0 %12209, %v620_v33  }
 0x518   :  { %4233 = vperm.xlu1 %12196, %v12841_v15  }
 0x51b   :  { %2030 = vperm.xlu0 %12209, %v618_v34  }
 0x51c   :  { %12197 = vset.pattern.permute.xlu1 %v12564_v29 }
 0x51d   :  { %4177 = vperm.xlu1 %12197, %v12838_v13  }
 0x51f   :  { %2020 = vperm.xlu0 %12209, %v616_v1   ;;  %v12252_v1 = vld [vmem:[%s17974_s7] sm:$0xff]  }
 0x521   :  { %12200 = vset.pattern.permute.xlu1 %v12563_v28 }
 0x522   :  { %4225 = vperm.xlu1 %12200, %v12838_v13   ;;  %v642_v13 = vld [vmem:[%s17977_s10 + $0xd0] sm:$0xff] }
 0x523   :  { %2170 = vperm.xlu0 %12209, %v646_v49  }
 0x526   :  { %12201 = vset.pattern.permute.xlu1 %v12564_v29 }
 0x527   :  { %4165 = vperm.xlu1 %12201, %v12829_v5   ;;  %2160 = vperm.xlu0 %12209, %v644_v55  }
 0x52b   :  { %12202 = vset.pattern.permute.xlu1 %v12563_v28  ;;  %2150 = vperm.xlu0 %12209, %v642_v13  }
 0x52c   :  { %4213 = vperm.xlu1 %12202, %v12829_v5  }
 0x52f   :  { %2140 = vperm.xlu0 %12209, %v640_v18   ;;  %v633_v18 = vld [vmem:[%s17977_s10 + $0x88] sm:$0xff] }
 0x530   :  { %12203 = vset.pattern.permute.xlu1 %v12564_v29  ;;  %v761_v37 = vpop.permute.xlu0 %760 }
 0x531   :  { %4181 = vperm.xlu1 %12203, %v12848_v20   ;;  %v786_v7 = vsel %vm60_vm0, %v761_v37, 0.0  ;;  %v634_v37 = vld [vmem:[%s17977_s10 + $0x90] sm:$0xff] }
 0x532   :  { %v756_v35 = vpop.permute.xlu1 %755 }
 0x533   :  { %v785_v16 = vsel %vm60_vm0, %v756_v35, 0.0  ;;  %2130 = vperm.xlu0 %12209, %v638_v11   ;;  %v619_v35 = vld [vmem:[%s17977_s10 + $0x18] sm:$0xff] }
 0x534   :  { %v766_v39 = vpop.permute.xlu0 %765 }
 0x535   :  { %12204 = vset.pattern.permute.xlu1 %v12563_v28  ;;  %v787_v3 = vsel %vm60_vm0, %v766_v39, 0.0  ;;  %v632_v39 = vld [vmem:[%s17977_s10 + $0x80] sm:$0xff] }
 0x536   :  { %4229 = vperm.xlu1 %12204, %v12848_v20  }
 0x537   :  { %v812_v36 = vpop.permute.xlu1 %811  ;;  %2120 = vperm.xlu0 %12209, %v636_v32  }
 0x538   :  { %v836_v10 = vsel %vm799_vm15, %v812_v36, 0.0  ;;  %v617_v36 = vld [vmem:[%s17977_s10 + $0x8] sm:$0xff] }
 0x539   :  { %v820_v43 = vpop.permute.xlu0 %819  ;;  %v844_v19 = vadd.f32 %v836_v10, %v785_v16 }
 0x53a   :  { %4217 = vperm.xlu1 %12204, %v12827_v63   ;;  %v838_v58 = vsel %vm799_vm15, %v820_v43, 0.0 }
 0x53b   :  { %v846_v6 = vadd.f32 %v838_v58, %v787_v3  ;;  %2110 = vperm.xlu0 %12209, %v634_v37   ;;  %v12256_v3 = vld [vmem:[%s17974_s7 + $0x20] sm:$0xff]  }
 0x53c   :  { %v771_v38 = vpop.permute.xlu1 %770  ;;  %v660_v37 = vld [vmem:[%s17977_s10 + $0x160] sm:$0xff] }
 0x53d   :  { %v788_v59 = vsel %vm60_vm0, %v771_v38, 0.0 }
 0x53e   :  { %12205 = vset.pattern.permute.xlu1 %v12564_v29  ;;  %v781_v46 = vpop.permute.xlu0 %780  ;;  %v621_v29 = vld [vmem:[%s17977_s10 + $0x28] sm:$0xff] }
 0x53f   :  { %4161 = vperm.xlu1 %12205, %v12860_v27   ;;  %v790_v51 = vsel %vm60_vm0, %v781_v46, 0.0  ;;  %2100 = vperm.xlu0 %12209, %v632_v39   ;;  %v12258_v39 = vld [vmem:[%s17974_s7 + $0x30] sm:$0xff]  }
 0x541   :  { %v824_v40 = vpop.permute.xlu1 %823 }
 0x542   :  { %v839_v52 = vsel %vm799_vm15, %v824_v40, 0.0  ;;  %v746_v62 = vpop.permute.xlu0 %745  ;;  %v12253_v40 = vld [vmem:[%s17974_s7 + $0x8] sm:$0xff]  }
 0x543   :  { %12207 = vset.pattern.permute.xlu1 %v12563_v28  ;;  %v847_v61 = vadd.f32 %v839_v52, %v788_v59  ;;  %v783_v26 = vsel %vm60_vm0, %v746_v62, 0.0  ;;  %v12255_v52 = vld [vmem:[%s17974_s7 + $0x18] sm:$0xff]  }
 0x544   :  { %4209 = vperm.xlu1 %12207, %v12860_v27  }
 0x545   :  { %v832_v41 = vpop.permute.xlu1 %831  ;;  %v977_v14 = vpack.c.bf16 %v847_v61, %v846_v6 }
 0x546   :  { %v841_v47 = vsel %vm799_vm15, %v832_v41, 0.0  ;;  %v647_v41 = vld [vmem:[%s17977_s10 + $0xf8] sm:$0xff] }
 0x547   :  { %v849_v56 = vadd.f32 %v841_v47, %v790_v51  ;;  %v804_v20 = vpop.permute.xlu0 %803  ;;  %v12254_v47 = vld [vmem:[%s17974_s7 + $0x10] sm:$0xff]  }
 0x548   :  { %12208 = vset.pattern.permute.xlu1 %v17987_v2  ;;  %v834_v24 = vsel %vm799_vm15, %v804_v20, 0.0 }
 0x549   :  { %2090 = vperm.xlu1 %12208, %v630_v42   ;;  %v842_v30 = vadd.f32 %v834_v24, %v783_v26 }
 0x54a   :  { %v776_v44 = vpop.permute.xlu1 %775 }
 0x54b   :  { %v789_v53 = vsel %vm60_vm0, %v776_v44, 0.0  ;;  %v645_v44 = vld [vmem:[%s17977_s10 + $0xe8] sm:$0xff] }
 0x54c   :  { %v2834_v42 = vpop.permute.xlu0 %2833 }
 0x54d   :  { %2080 = vperm.xlu1 %12208, %v628_v45  }
 0x54f   :  { %v828_v50 = vpop.permute.xlu1 %827 }
 0x550   :  { %v840_v54 = vsel %vm799_vm15, %v828_v50, 0.0  ;;  %v641_v50 = vld [vmem:[%s17977_s10 + $0xc8] sm:$0xff] }
 0x551   :  { %v848_v57 = vadd.f32 %v840_v54, %v789_v53  ;;  %2085 = vperm.xlu1 %12208, %v629_v48   ;;  %v2798_v46 = vpop.permute.xlu0 %2797  ;;  %v643_v48 = vld [vmem:[%s17977_s10 + $0xd8] sm:$0xff] }
 0x552   :  { %v639_v53 = vld [vmem:[%s17977_s10 + $0xb8] sm:$0xff]  ;;  %v2807_v59 = vsel %vm60_vm0, %v2798_v46, 0.0 }
 0x553   :  { %v978_v63 = vpack.c.bf16 %v849_v56, %v848_v57  ;;  %v816_v0 = vpop.permute.xlu1 %815  ;;  %v637_v56 = vld [vmem:[%s17977_s10 + $0xa8] sm:$0xff]  ;;  %v12260_v46 = vld [vmem:[%s17974_s7 + $0x38] sm:$0xff]  }
 0x554   :  { %v837_v5 = vsel %vm799_vm15, %v816_v0, 0.0 }
 0x555   :  { %11357 = vmatpush3.bf16.msra.mxu0 %v978_v63  ;;  %2075 = vperm.xlu1 %12208, %v627_v60   ;;  %v845_v15 = vadd.f32 %v837_v5, %v786_v7  ;;  %v2786_v51 = vpop.permute.xlu0 %2785  ;;  %v635_v5 = vld [vmem:[%s17977_s10 + $0x98] sm:$0xff] }
 0x556   :  { %11358 = vmatprep.subr.bf16.mxu0 %v17991_v23  ;;  %v2804_v6 = vsel %vm60_vm0, %v2786_v51, 0.0  ;;  %v654_v51 = vld [vmem:[%s17977_s10 + $0x130] sm:$0xff] }
 0x557   :  { %v976_v22 = vpack.c.bf16 %v845_v15, %v844_v19  ;;  %v2852_v15 = vsel %vm799_vm15, %v2834_v42, 0.0  ;;  %v658_v42 = vld [vmem:[%s17977_s10 + $0x150] sm:$0xff] }
 0x558   :  { %v751_v17 = vpop.permute.xlu1 %750 }
 0x559   :  { %11359 = vmatpush3.bf16.msra.mxu0 %v977_v14  ;;  %2065 = vperm.xlu1 %12208, %v625_v12   ;;  %v784_v27 = vsel %vm60_vm0, %v751_v17, 0.0  ;;  %v2782_v55 = vpop.permute.xlu0 %2781  ;;  %v2860_v17 = vadd.f32 %v2852_v15, %v2804_v6 }
 0x55a   :  { %11360 = vmatprep.subr.bf16.mxu0 %v17991_v23  ;;  %v2803_v19 = vsel %vm60_vm0, %v2782_v55, 0.0  ;;  %v12262_v55 = vld [vmem:[%s17974_s7 + $0x40] sm:$0xff]  }
 0x55d   :  { %11361 = vmatpush3.bf16.msra.mxu0 %v976_v22  ;;  %v808_v25 = vpop.permute.xlu1 %807  ;;  %2055 = vperm.xlu1 %12208, %v623_v21   ;;  %v2770_v10 = vpop.permute.xlu0 %2769 }
 0x55e   :  { %v835_v28 = vsel %vm799_vm15, %v808_v25, 0.0  ;;  %11362 = vmatprep.subr.bf16.mxu0 %v17991_v23  ;;  %v2800_v32 = vsel %vm60_vm0, %v2770_v10, 0.0 }
 0x55f   :  { %v843_v31 = vadd.f32 %v835_v28, %v784_v27  ;;  %v12257_v28 = vld [vmem:[%s17974_s7 + $0x28] sm:$0xff]  }
 0x561   :  { %v975_v33 = vpack.c.bf16 %v843_v31, %v842_v30  ;;  %2045 = vperm.xlu1 %12208, %v621_v29   ;;  %v662_v31 = vld [vmem:[%s17977_s10 + $0x170] sm:$0xff] }
 0x562   :  { %v2846_v34 = vpop.permute.xlu1 %2845  ;;  %v2818_v26 = vpop.permute.xlu0 %2817  ;;  %2250 = vperm.xlu0 %12209, %v662_v31  }
 0x563   :  { %11363 = vmatpush3.bf16.msra.mxu0 %v975_v33  ;;  %v2855_v57 = vsel %vm799_vm15, %v2846_v34, 0.0  ;;  %v2848_v11 = vsel %vm799_vm15, %v2818_v26, 0.0 }
 0x564   :  { %11876 = vmatprep.subr.bf16.mxu0 %v17991_v23  ;;  %v2863_v63 = vadd.f32 %v2855_v57, %v2807_v59  ;;  %v650_v59 = vld [vmem:[%s17977_s10 + $0x110] sm:$0xff] }
 0x565   :  { %2035 = vperm.xlu1 %12208, %v619_v35   ;;  %v2856_v35 = vadd.f32 %v2848_v11, %v2800_v32 }
 0x566   :  { %11365 = vmatmul.mubr.msk.bf16.vlgmr.msra.gmra.mxu0 %vm1292_vm1, %v12252_v1  ;;  %v663_v1 = vld [vmem:[%s17977_s10 + $0x178] sm:$0xff]  ;;  %2240 = vperm.xlu0 %12209, %v660_v37  }
 0x567   :  { %v2790_v38 = vpop.permute.xlu1 %2789  ;;  %11368 = vmatprep.mubr.msk.bf16.mxu0 %vm12562_vm14, %v17991_v23 }
 0x568   :  { %v2805_v7 = vsel %vm60_vm0, %v2790_v38, 0.0 }
 0x569   :  { %2025 = vperm.xlu1 %12208, %v617_v36  }
 0x56a   :  { %2230 = vperm.xlu0 %12209, %v658_v42  }
 0x56c   :  { %v2838_v43 = vpop.permute.xlu1 %2837 }
 0x56d   :  { %2175 = vperm.xlu1 %12208, %v647_v41   ;;  %v2853_v60 = vsel %vm799_vm15, %v2838_v43, 0.0  ;;  %v12259_v41 = vld [vmem:[%s17975_s8] sm:$0xff]   ;;  %v661_v43 = vld [vmem:[%s17977_s10 + $0x168] sm:$0xff] }
 0x56e   :  { %11369 = vmatmul.mubr.msk.bf16.gmra.mxu0 %vm1292_vm1, %v12253_v40  ;;  %v2861_v12 = vadd.f32 %v2853_v60, %v2805_v7  ;;  %v653_v60 = vld [vmem:[%s17977_s10 + $0x128] sm:$0xff] }
 0x56f   :  { %11372 = vmatprep.mubr.msk.bf16.mxu0 %vm12562_vm14, %v17991_v23  ;;  %v649_v7 = vld [vmem:[%s17977_s10 + $0x108] sm:$0xff] }
 0x570   :  { %v2991_v22 = vpack.c.bf16 %v2861_v12, %v2860_v17 }
 0x571   :  { %v2778_v45 = vpop.permute.xlu1 %2777  ;;  %2165 = vperm.xlu1 %12208, %v645_v44  }
 0x572   :  { %v2802_v24 = vsel %vm60_vm0, %v2778_v45, 0.0  ;;  %v656_v45 = vld [vmem:[%s17977_s10 + $0x140] sm:$0xff] }
 0x573   :  { %2220 = vperm.xlu0 %12209, %v656_v45  }
 0x575   :  { %2155 = vperm.xlu1 %12208, %v643_v48   ;;  %v12261_v48 = vld [vmem:[%s17975_s8 + $0x8] sm:$0xff]  }
 0x576   :  { %11373 = vmatmul.mubr.msk.bf16.gmra.mxu0 %vm1292_vm1, %v12254_v47  ;;  %v2826_v49 = vpop.permute.xlu1 %2825  ;;  %v659_v47 = vld [vmem:[%s17977_s10 + $0x158] sm:$0xff] }
 0x577   :  { %11376 = vmatprep.mubr.msk.bf16.mxu0 %vm12562_vm14, %v17991_v23  ;;  %v2850_v20 = vsel %vm799_vm15, %v2826_v49, 0.0  ;;  %v4222_v49 = vpop.permute.xlu0 %4221  ;;  %2210 = vperm.xlu0 %12209, %v654_v51   ;;  %v12273_v51 = vld [vmem:[%s17975_s8 + $0x38] sm:$0xff]  }
 0x578   :  { %v2858_v27 = vadd.f32 %v2850_v20, %v2802_v24 }
 0x579   :  { %2145 = vperm.xlu1 %12208, %v641_v50  }
 0x57b   :  { %v2794_v54 = vpop.permute.xlu1 %2793  ;;  %v4186_v57 = vpop.permute.xlu0 %4185 }
 0x57c   :  { %v2806_v61 = vsel %vm60_vm0, %v2794_v54, 0.0 }
 0x57d   :  { %2135 = vperm.xlu1 %12208, %v639_v53   ;;  %v652_v53 = vld [vmem:[%s17977_s10 + $0x120] sm:$0xff] }
 0x57e   :  { %11377 = vmatmul.mubr.msk.bf16.gmra.mxu0 %vm1292_vm1, %v12255_v52  ;;  %v657_v52 = vld [vmem:[%s17977_s10 + $0x148] sm:$0xff]  ;;  %2200 = vperm.xlu0 %12209, %v652_v53   ;;  %v12274_v53 = vld [vmem:[%s17974_s7 + $0x70] sm:$0xff]  }
 0x57f   :  { %11380 = vmatprep.mubr.msk.bf16.mxu0 %vm12562_vm14, %v17991_v23 }
 0x580   :  { %v2842_v58 = vpop.permute.xlu1 %2841 }
 0x581   :  { %v2854_v62 = vsel %vm799_vm15, %v2842_v58, 0.0  ;;  %2125 = vperm.xlu1 %12208, %v637_v56   ;;  %v655_v56 = vld [vmem:[%s17977_s10 + $0x138] sm:$0xff]  ;;  %v12263_v58 = vld [vmem:[%s17975_s8 + $0x10] sm:$0xff]  }
 0x582   :  { %v2862_v0 = vadd.f32 %v2854_v62, %v2806_v61  ;;  %2190 = vperm.xlu0 %12209, %v650_v59   ;;  %v4174_v62 = vpop.permute.xlu0 %4173  ;;  %v12276_v59 = vld [vmem:[%s17974_s7 + $0x78] sm:$0xff]  }
 0x584   :  { %v2830_v13 = vpop.permute.xlu1 %2829  ;;  %v2992_v14 = vpack.c.bf16 %v2863_v63, %v2862_v0  ;;  %v12264_v63 = vld [vmem:[%s17974_s7 + $0x48] sm:$0xff]   ;;  %v648_v0 = vld [vmem:[%s17977_s10 + $0x100] sm:$0xff] }
 0x585   :  { %v2851_v16 = vsel %vm799_vm15, %v2830_v13, 0.0  ;;  %2115 = vperm.xlu1 %12208, %v635_v5   ;;  %v12265_v5 = vld [vmem:[%s17975_s8 + $0x18] sm:$0xff]  }
 0x586   :  { %11381 = vmatmul.mubr.msk.bf16.gmra.mxu0 %vm1292_vm1, %v12256_v3  ;;  %11617 = vmatpush3.bf16.msra.mxu1 %v2992_v14  ;;  %v2859_v21 = vadd.f32 %v2851_v16, %v2803_v19  ;;  %v651_v3 = vld [vmem:[%s17977_s10 + $0x118] sm:$0xff]  ;;  %v4170_v10 = vpop.permute.xlu0 %4169  ;;  %v4195_v14 = vsel %vm60_vm0, %v4186_v57, 0.0  ;;  %v674_v57 = vld [vmem:[%s17977_s10 + $0x1d0] sm:$0xff] }
 0x587   :  { %11618 = vmatprep.subr.bf16.mxu1 %v17991_v23  ;;  %11384 = vmatprep.mubr.msk.bf16.mxu0 %vm12562_vm14, %v17991_v23  ;;  %v4191_v31 = vsel %vm60_vm0, %v4170_v10, 0.0  ;;  %v666_v10 = vld [vmem:[%s17977_s10 + $0x190] sm:$0xff] }
 0x588   :  { %v2990_v29 = vpack.c.bf16 %v2859_v21, %v2858_v27  ;;  %2180 = vperm.xlu0 %12209, %v648_v0   ;;  %v12267_v21 = vld [vmem:[%s17975_s8 + $0x20] sm:$0xff]   ;;  %v673_v0 = vld [vmem:[%s17977_s10 + $0x1c8] sm:$0xff] }
 0x589   :  { %v2774_v25 = vpop.permute.xlu1 %2773  ;;  %2105 = vperm.xlu1 %12208, %v633_v18   ;;  %v12266_v18 = vld [vmem:[%s17974_s7 + $0x50] sm:$0xff]  }
 0x58a   :  { %11619 = vmatpush3.bf16.msra.mxu1 %v2991_v22  ;;  %v2801_v33 = vsel %vm60_vm0, %v2774_v25, 0.0  ;;  %v4192_v22 = vsel %vm60_vm0, %v4174_v62, 0.0  ;;  %v4158_v25 = vpop.permute.xlu0 %4157  ;;  %v12277_v62 = vld [vmem:[%s17975_s8 + $0x48] sm:$0xff]  }
 0x58b   :  { %11620 = vmatprep.subr.bf16.mxu1 %v17991_v23 }
 0x58d   :  { %2255 = vperm.xlu1 %12208, %v663_v1  }
 0x58e   :  { %11385 = vmatmul.mubr.msk.bf16.gmra.mxu0 %vm1292_vm1, %v12257_v28  ;;  %11621 = vmatpush3.bf16.msra.mxu1 %v2990_v29  ;;  %v2822_v30 = vpop.permute.xlu1 %2821  ;;  %v4240_v29 = vsel %vm799_vm15, %v4222_v49, 0.0  ;;  %v4206_v37 = vpop.permute.xlu0 %4205 }
 0x58f   :  { %v2849_v34 = vsel %vm799_vm15, %v2822_v30, 0.0  ;;  %11622 = vmatprep.subr.bf16.mxu1 %v17991_v23  ;;  %11388 = vmatprep.mubr.msk.bf16.mxu0 %vm12562_vm14, %v17991_v23  ;;  %v4248_v30 = vadd.f32 %v4240_v29, %v4192_v22  ;;  %v692_v22 = vld [vmem:[%s17977_s10 + $0x260] sm:$0xff]  ;;  %v690_v29 = vld [vmem:[%s17977_s10 + $0x250] sm:$0xff] }
 0x590   :  { %v2857_v36 = vadd.f32 %v2849_v34, %v2801_v33 }
 0x591   :  { %2245 = vperm.xlu1 %12208, %v661_v43   ;;  %v4188_v43 = vsel %vm60_vm0, %v4158_v25, 0.0  ;;  %v12285_v25 = vld [vmem:[%s17975_s8 + $0x68] sm:$0xff]  }
 0x592   :  { %v2989_v38 = vpack.c.bf16 %v2857_v36, %v2856_v35  ;;  %v12268_v36 = vld [vmem:[%s17974_s7 + $0x58] sm:$0xff]  }
 0x593   :  { %v4234_v40 = vpop.permute.xlu1 %4233 }
 0x594   :  { %11623 = vmatpush3.bf16.msra.mxu1 %v2989_v38  ;;  %v4243_v12 = vsel %vm799_vm15, %v4234_v40, 0.0 }
 0x595   :  { %7699 = vmatprep.subr.bf16.mxu1 %v17987_v2  ;;  %2235 = vperm.xlu1 %12208, %v659_v47   ;;  %v4251_v19 = vadd.f32 %v4243_v12, %v4195_v14  ;;  %v669_v12 = vld [vmem:[%s17977_s10 + $0x1a8] sm:$0xff]  ;;  %v664_v14 = vld [vmem:[%s17977_s10 + $0x180] sm:$0xff] }
 0x596   :  { %11389 = vmatmul.mubr.msk.bf16.gmra.mxu0 %vm1292_vm1, %v12258_v39  ;;  %v12269_v39 = vld [vmem:[%s17975_s8 + $0x28] sm:$0xff]  }
 0x597   :  { %11625 = vmatmul.mubr.msk.bf16.vlgmr.msra.gmra.mxu1 %vm1292_vm1, %v12259_v41  ;;  %11392 = vmatprep.mubr.msk.bf16.mxu0 %vm12562_vm14, %v17991_v23  ;;  %v4236_v41 = vsel %vm799_vm15, %v4206_v37, 0.0  ;;  %v689_v37 = vld [vmem:[%s17977_s10 + $0x248] sm:$0xff] }
 0x598   :  { %v13133_v44 = vpop.permute.xlu1 %4177  ;;  %11628 = vmatprep.mubr.msk.bf16.mxu1 %vm12562_vm14, %v17991_v23 }
 0x599   :  { %2225 = vperm.xlu1 %12208, %v657_v52   ;;  %v4193_v24 = vsel %vm60_vm0, %v13133_v44, 0.0  ;;  %v678_v52 = vld [vmem:[%s17977_s10 + $0x1f0] sm:$0xff] }
 0x59a   :  { %2330 = vperm.xlu0 %12209, %v678_v52   ;;  %v718_v52 = vld [vmem:[%s17977_s10 + $0x330] sm:$0xff] }
 0x59d   :  { %v4226_v50 = vpop.permute.xlu1 %4225  ;;  %2215 = vperm.xlu1 %12208, %v655_v56   ;;  %v12275_v56 = vld [vmem:[%s17975_s8 + $0x40] sm:$0xff]  }
 0x59e   :  { %11393 = vmatmul.mubr.msk.bf16.gmra.mxu0 %vm1292_vm1, %v12260_v46  ;;  %v4241_v15 = vsel %vm799_vm15, %v4226_v50, 0.0  ;;  %v4244_v46 = vadd.f32 %v4236_v41, %v4188_v43  ;;  %v12272_v50 = vld [vmem:[%s17974_s7 + $0x68] sm:$0xff]   ;;  %v723_v41 = vld [vmem:[%s17977_s10 + $0x358] sm:$0xff] }
 0x59f   :  { %11629 = vmatmul.mubr.msk.bf16.gmra.mxu1 %vm1292_vm1, %v12261_v48  ;;  %11396 = vmatprep.mubr.msk.bf16.mxu0 %vm12562_vm14, %v17991_v23  ;;  %v4249_v26 = vadd.f32 %v4241_v15, %v4193_v24  ;;  %v12270_v48 = vld [vmem:[%s17974_s7 + $0x60] sm:$0xff]   ;;  %v667_v15 = vld [vmem:[%s17977_s10 + $0x198] sm:$0xff] }
 0x5a0   :  { %11632 = vmatprep.mubr.msk.bf16.mxu1 %vm12562_vm14, %v17991_v23  ;;  %v695_v24 = vld [vmem:[%s17977_s10 + $0x278] sm:$0xff] }
 0x5a1   :  { %2205 = vperm.xlu1 %12208, %v653_v60   ;;  %v4379_v33 = vpack.c.bf16 %v4249_v26, %v4248_v30  ;;  %v672_v60 = vld [vmem:[%s17977_s10 + $0x1c0] sm:$0xff]  ;;  %v726_v26 = vld [vmem:[%s17977_s10 + $0x370] sm:$0xff] }
 0x5a2   :  { %v4166_v54 = vpop.permute.xlu1 %4165  ;;  %v12287_v30 = vld [vmem:[%s17975_s8 + $0x70] sm:$0xff]  }
 0x5a3   :  { %v4190_v1 = vsel %vm60_vm0, %v4166_v54, 0.0  ;;  %v676_v54 = vld [vmem:[%s17977_s10 + $0x1e0] sm:$0xff] }
 0x5a4   :  { %2320 = vperm.xlu0 %12209, %v676_v54  }
 0x5a5   :  { %2195 = vperm.xlu1 %12208, %v651_v3   ;;  %v12278_v3 = vld [vmem:[%s17974_s7 + $0x80] sm:$0xff]  }
 0x5a6   :  { %11397 = vmatmul.mubr.msk.bf16.gmra.mxu0 %vm1292_vm1, %v12262_v55  ;;  %v679_v55 = vld [vmem:[%s17977_s10 + $0x1f8] sm:$0xff] }
 0x5a7   :  { %11633 = vmatmul.mubr.msk.bf16.gmra.mxu1 %vm1292_vm1, %v12263_v58  ;;  %v4214_v61 = vpop.permute.xlu1 %4213  ;;  %11400 = vmatprep.mubr.msk.bf16.mxu0 %vm12562_vm14, %v17991_v23  ;;  %v677_v58 = vld [vmem:[%s17977_s10 + $0x1e8] sm:$0xff] }
 0x5a8   :  { %11636 = vmatprep.mubr.msk.bf16.mxu1 %vm12562_vm14, %v17991_v23  ;;  %v4238_v32 = vsel %vm799_vm15, %v4214_v61, 0.0  ;;  %2310 = vperm.xlu0 %12209, %v674_v57   ;;  %v675_v61 = vld [vmem:[%s17977_s10 + $0x1d8] sm:$0xff]  ;;  %v682_v57 = vld [vmem:[%s17977_s10 + $0x210] sm:$0xff] }
 0x5a9   :  { %2185 = vperm.xlu1 %12208, %v649_v7   ;;  %v4246_v38 = vadd.f32 %v4238_v32, %v4190_v1  ;;  %v12279_v7 = vld [vmem:[%s17975_s8 + $0x50] sm:$0xff]   ;;  %v691_v32 = vld [vmem:[%s17977_s10 + $0x258] sm:$0xff]  ;;  %v725_v1 = vld [vmem:[%s17977_s10 + $0x368] sm:$0xff] }
 0x5ac   :  { %v4182_v6 = vpop.permute.xlu1 %4181  ;;  %2300 = vperm.xlu0 %12209, %v672_v60  }
 0x5ad   :  { %v4194_v16 = vsel %vm60_vm0, %v4182_v6, 0.0  ;;  %2335 = vperm.xlu1 %12208, %v679_v55   ;;  %v671_v6 = vld [vmem:[%s17977_s10 + $0x1b8] sm:$0xff] }
 0x5ae   :  { %11401 = vmatmul.mubr.msk.bf16.gmra.mxu0 %vm1292_vm1, %v12264_v63  ;;  %v670_v63 = vld [vmem:[%s17977_s10 + $0x1b0] sm:$0xff] }
 0x5af   :  { %11637 = vmatmul.mubr.msk.bf16.gmra.mxu1 %vm1292_vm1, %v12265_v5  ;;  %11404 = vmatprep.mubr.msk.bf16.mxu0 %vm12562_vm14, %v17991_v23  ;;  %v668_v5 = vld [vmem:[%s17977_s10 + $0x1a0] sm:$0xff] }
 0x5b0   :  { %11640 = vmatprep.mubr.msk.bf16.mxu1 %vm12562_vm14, %v17991_v23  ;;  %2290 = vperm.xlu0 %12209, %v670_v63  }
 0x5b1   :  { %v4230_v13 = vpop.permute.xlu1 %4229  ;;  %2325 = vperm.xlu1 %12208, %v677_v58   ;;  %v719_v58 = vld [vmem:[%s17977_s10 + $0x338] sm:$0xff] }
 0x5b2   :  { %v4242_v17 = vsel %vm799_vm15, %v4230_v13, 0.0  ;;  %v12280_v13 = vld [vmem:[%s17974_s7 + $0x88] sm:$0xff]  }
 0x5b3   :  { %v4250_v20 = vadd.f32 %v4242_v17, %v4194_v16  ;;  %v12281_v16 = vld [vmem:[%s17975_s8 + $0x58] sm:$0xff]   ;;  %v665_v17 = vld [vmem:[%s17977_s10 + $0x188] sm:$0xff] }
 0x5b4   :  { %2280 = vperm.xlu0 %12209, %v668_v5  }
 0x5b5   :  { %v4380_v27 = vpack.c.bf16 %v4251_v19, %v4250_v20  ;;  %v4218_v28 = vpop.permute.xlu1 %4217  ;;  %2315 = vperm.xlu1 %12208, %v675_v61   ;;  %v12283_v19 = vld [vmem:[%s17975_s8 + $0x60] sm:$0xff]   ;;  %v694_v20 = vld [vmem:[%s17977_s10 + $0x270] sm:$0xff] }
 0x5b6   :  { %v4239_v11 = vsel %vm799_vm15, %v4218_v28, 0.0  ;;  %11405 = vmatmul.mubr.msk.bf16.gmra.mxu0 %vm1292_vm1, %v12266_v18  ;;  %v12282_v18 = vld [vmem:[%s17974_s7 + $0x90] sm:$0xff]   ;;  %v12286_v28 = vld [vmem:[%s17974_s7 + $0xa0] sm:$0xff]  }
 0x5b7   :  { %11641 = vmatmul.mubr.msk.bf16.gmra.mxu1 %vm1292_vm1, %v12267_v21  ;;  %11877 = vmatpush3.bf16.msra.mxu0 %v4380_v27  ;;  %v4247_v34 = vadd.f32 %v4239_v11, %v4191_v31  ;;  %v12284_v21 = vld [vmem:[%s17974_s7 + $0x98] sm:$0xff]   ;;  %v693_v27 = vld [vmem:[%s17977_s10 + $0x268] sm:$0xff]  ;;  %v724_v31 = vld [vmem:[%s17977_s10 + $0x360] sm:$0xff] }
 0x5b8   :  { %11878 = vmatprep.subr.bf16.mxu0 %v17991_v23  ;;  %11408 = vmatprep.mubr.msk.bf16.mxu0 %vm12562_vm14, %v17991_v23  ;;  %v727_v11 = vld [vmem:[%s17977_s10 + $0x378] sm:$0xff]  ;;  %v716_v61 = vld [vmem:[%s17977_s10 + $0x320] sm:$0xff] }
 0x5b9   :  { %11644 = vmatprep.mubr.msk.bf16.mxu1 %vm12562_vm14, %v17991_v23  ;;  %v4378_v40 = vpack.c.bf16 %v4247_v34, %v4246_v38  ;;  %2305 = vperm.xlu1 %12208, %v673_v0   ;;  %v688_v34 = vld [vmem:[%s17977_s10 + $0x240] sm:$0xff] }
 0x5ba   :  { %v4162_v35 = vpop.permute.xlu1 %4161  ;;  %2270 = vperm.xlu0 %12209, %v666_v10   ;;  %v717_v10 = vld [vmem:[%s17977_s10 + $0x328] sm:$0xff] }
 0x5bb   :  { %11879 = vmatpush3.bf16.msra.mxu0 %v4379_v33  ;;  %v4189_v44 = vsel %vm60_vm0, %v4162_v35, 0.0  ;;  %v12288_v33 = vld [vmem:[%s17974_s7 + $0xa8] sm:$0xff]   ;;  %v12289_v35 = vld [vmem:[%s17975_s8 + $0x78] sm:$0xff]   ;;  %vm7695_vm0 = vcmask 1043456  }
 0x5bc   :  { %11880 = vmatprep.subr.bf16.mxu0 %v17991_v23 }
 0x5bd   :  { %2295 = vperm.xlu1 %12208, %v671_v6   ;;  %v12296_v6 = vld [vmem:[%s17974_s7 + $0xc8] sm:$0xff]  }
 0x5be   :  { %11409 = vmatmul.mubr.msk.bf16.gmra.mxu0 %vm1292_vm1, %v12268_v36  ;;  %2260 = vperm.xlu0 %12209, %v664_v14   ;;  %v722_v36 = vld [vmem:[%s17977_s10 + $0x350] sm:$0xff] }
 0x5bf   :  { %11645 = vmatmul.mubr.msk.bf16.gmra.mxu1 %vm1292_vm1, %v12269_v39  ;;  %11881 = vmatpush3.bf16.msra.mxu0 %v4378_v40  ;;  %v4210_v42 = vpop.permute.xlu1 %4209  ;;  %v12290_v39 = vld [vmem:[%s17974_s7 + $0xb0] sm:$0xff]  }
 0x5c0   :  { %v4237_v45 = vsel %vm799_vm15, %v4210_v42, 0.0  ;;  %11882 = vmatprep.subr.bf16.mxu0 %v17991_v23  ;;  %11412 = vmatprep.mubr.msk.bf16.mxu0 %vm12562_vm14, %v17991_v23  ;;  %v686_v40 = vld [vmem:[%s17977_s10 + $0x230] sm:$0xff]  ;;  %v12291_v42 = vld [vmem:[%s17975_s8 + $0x80] sm:$0xff]  }
 0x5c1   :  { %v4245_v47 = vadd.f32 %v4237_v45, %v4189_v44  ;;  %11648 = vmatprep.mubr.msk.bf16.mxu1 %vm12562_vm14, %v17991_v23  ;;  %2285 = vperm.xlu1 %12208, %v669_v12   ;;  %v13490_v44 = vpop.permute.xlu0 %2095  ;;  %v720_v45 = vld [vmem:[%s17977_s10 + $0x340] sm:$0xff]  ;;  %v12297_v12 = vld [vmem:[%s17975_s8 + $0x98] sm:$0xff]  }
 0x5c2   :  { %2410 = vperm.xlu0 %12209, %v694_v20   ;;  %v12298_v20 = vld [vmem:[%s17974_s7 + $0xd0] sm:$0xff]  }
 0x5c3   :  { %v4377_v49 = vpack.c.bf16 %v4245_v47, %v4244_v46  ;;  %v687_v46 = vld [vmem:[%s17977_s10 + $0x238] sm:$0xff] }
 0x5c4   :  { %v13469_v38 = vpop.permute.xlu1 %2090  ;;  %v12292_v47 = vld [vmem:[%s17974_s7 + $0xb8] sm:$0xff]  }
 0x5c5   :  { %11883 = vmatpush3.bf16.msra.mxu0 %v4377_v49  ;;  %2275 = vperm.xlu1 %12208, %v667_v15   ;;  %v721_v49 = vld [vmem:[%s17977_s10 + $0x348] sm:$0xff] }
 0x5c6   :  { %11413 = vmatmul.mubr.msk.bf16.gmra.mxu0 %vm1292_vm1, %v12270_v48  ;;  %8275 = vmatprep.subr.bf16.mxu0 %v17987_v2  ;;  %v684_v48 = vld [vmem:[%s17977_s10 + $0x220] sm:$0xff] }
 0x5c7   :  { %11649 = vmatmul.mubr.msk.bf16.gmra.mxu1 %vm1292_vm1, %v12271_v9  ;;  %11416 = vmatprep.mubr.msk.bf16.mxu0 %vm12562_vm14, %v17991_v23 }
 0x5c8   :  { %11652 = vmatprep.mubr.msk.bf16.mxu1 %vm12562_vm14, %v17991_v23  ;;  %2400 = vperm.xlu0 %12209, %v692_v22   ;;  %v13488_v43 = vpop.permute.xlu1 %2080  ;;  %v715_v22 = vld [vmem:[%s17977_s10 + $0x318] sm:$0xff] }
 0x5c9   :  { %2265 = vperm.xlu1 %12208, %v665_v17   ;;  %v681_v17 = vld [vmem:[%s17977_s10 + $0x208] sm:$0xff] }
 0x5cc   :  { %2570 = vperm.xlu0 %12209, %v726_v26   ;;  %v13513_v9 = vpop.permute.xlu1 %2085 }
 0x5cd   :  { %2415 = vperm.xlu1 %12208, %v695_v24  }
 0x5ce   :  { %11417 = vmatmul.mubr.msk.bf16.gmra.mxu0 %vm1292_vm1, %v12272_v50  ;;  %v12293_v50 = vld [vmem:[%s17975_s8 + $0x88] sm:$0xff]  }
 0x5cf   :  { %11653 = vmatmul.mubr.msk.bf16.gmra.mxu1 %vm1292_vm1, %v12273_v51  ;;  %11420 = vmatprep.mubr.msk.bf16.mxu0 %vm12562_vm14, %v17991_v23  ;;  %v13518_v51 = vpop.permute.xlu0 %2070 }
 0x5d0   :  { %11656 = vmatprep.mubr.msk.bf16.mxu1 %vm12562_vm14, %v17991_v23  ;;  %2390 = vperm.xlu0 %12209, %v690_v29   ;;  %v13532_v54 = vpop.permute.xlu1 %2075  ;;  %v710_v29 = vld [vmem:[%s17977_s10 + $0x2f0] sm:$0xff] }
 0x5d1   :  { %2405 = vperm.xlu1 %12208, %v693_v27  }
 0x5d3   :  { %v13534_v55 = vpop.permute.xlu0 %2060 }
 0x5d4   :  { %2560 = vperm.xlu0 %12209, %v724_v31   ;;  %v13557_v63 = vpop.permute.xlu1 %2065 }
 0x5d5   :  { %2575 = vperm.xlu1 %12208, %v727_v11   ;;  %v711_v11 = vld [vmem:[%s17977_s10 + $0x2f8] sm:$0xff] }
 0x5d6   :  { %11421 = vmatmul.mubr.msk.bf16.gmra.mxu0 %vm1292_vm1, %v12274_v53  ;;  %v685_v53 = vld [vmem:[%s17977_s10 + $0x228] sm:$0xff] }
 0x5d7   :  { %11657 = vmatmul.mubr.msk.bf16.gmra.mxu1 %vm1292_vm1, %v12275_v56  ;;  %11424 = vmatprep.mubr.msk.bf16.mxu0 %vm12562_vm14, %v17991_v23  ;;  %v12294_v56 = vld [vmem:[%s17974_s7 + $0xc0] sm:$0xff]   ;;  %v13562_v0 = vpop.permute.xlu0 %2050 }
 0x5d8   :  { %11660 = vmatprep.mubr.msk.bf16.mxu1 %vm12562_vm14, %v17991_v23  ;;  %2380 = vperm.xlu0 %12209, %v688_v34   ;;  %v13580_v14 = vpop.permute.xlu1 %2055  ;;  %v12300_v34 = vld [vmem:[%s17974_s7 + $0xd8] sm:$0xff]  }
 0x5d9   :  { %2395 = vperm.xlu1 %12208, %v691_v32  }
 0x5db   :  { %v13582_v15 = vpop.permute.xlu0 %2040 }
 0x5dc   :  { %2550 = vperm.xlu0 %12209, %v722_v36   ;;  %v13606_v24 = vpop.permute.xlu1 %2045  ;;  %v12301_v36 = vld [vmem:[%s17975_s8 + $0xa8] sm:$0xff]  }
 0x5dd   :  { %2565 = vperm.xlu1 %12208, %v725_v1   ;;  %v712_v1 = vld [vmem:[%s17977_s10 + $0x300] sm:$0xff] }
 0x5de   :  { %11425 = vmatmul.mubr.msk.bf16.gmra.mxu0 %vm1292_vm1, %v12276_v59  ;;  %v12295_v59 = vld [vmem:[%s17975_s8 + $0x90] sm:$0xff]  }
 0x5df   :  { %11661 = vmatmul.mubr.msk.bf16.gmra.mxu1 %vm1292_vm1, %v12277_v62  ;;  %11428 = vmatprep.mubr.msk.bf16.mxu0 %vm12562_vm14, %v17991_v23  ;;  %v683_v62 = vld [vmem:[%s17977_s10 + $0x218] sm:$0xff]  ;;  %v13611_v26 = vpop.permute.xlu0 %2030 }
 0x5e0   :  { %11664 = vmatprep.mubr.msk.bf16.mxu1 %vm12562_vm14, %v17991_v23  ;;  %2370 = vperm.xlu0 %12209, %v686_v40   ;;  %v13627_v31 = vpop.permute.xlu1 %2035 }
 0x5e1   :  { %2385 = vperm.xlu1 %12208, %v689_v37  }
 0x5e3   :  { %v13629_v32 = vpop.permute.xlu0 %2020 }
 0x5e4   :  { %2540 = vperm.xlu0 %12209, %v720_v45   ;;  %v13656_v45 = vpop.permute.xlu1 %2025 }
 0x5e5   :  { %2555 = vperm.xlu1 %12208, %v723_v41   ;;  %v708_v41 = vld [vmem:[%s17977_s10 + $0x2e0] sm:$0xff] }
 0x5e6   :  { %11429 = vmatmul.mubr.msk.bf16.gmra.mxu0 %vm1292_vm1, %v12278_v3 }
 0x5e7   :  { %11665 = vmatmul.mubr.msk.bf16.gmra.mxu1 %vm1292_vm1, %v12279_v7  ;;  %11432 = vmatprep.mubr.msk.bf16.mxu0 %vm12562_vm14, %v17991_v23  ;;  %v680_v7 = vld [vmem:[%s17977_s10 + $0x200] sm:$0xff]  ;;  %v13648_v40 = vpop.permute.xlu0 %2170 }
 0x5e8   :  { %11668 = vmatprep.mubr.msk.bf16.mxu1 %vm12562_vm14, %v17991_v23  ;;  %2360 = vperm.xlu0 %12209, %v684_v48   ;;  %v12302_v48 = vld [vmem:[%s17974_s7 + $0xe0] sm:$0xff]  }
 0x5e9   :  { %2375 = vperm.xlu1 %12208, %v687_v46  }
 0x5ec   :  { %2530 = vperm.xlu0 %12209, %v718_v52   ;;  %v12303_v52 = vld [vmem:[%s17975_s8 + $0xb0] sm:$0xff]  }
 0x5ed   :  { %2545 = vperm.xlu1 %12208, %v721_v49   ;;  %v740_v49 = vld [vmem:[%s17977_s10 + $0x3e0] sm:$0xff] }
 0x5ee   :  { %11433 = vmatmul.mubr.msk.bf16.gmra.mxu0 %vm1292_vm1, %v12280_v13 }
 0x5ef   :  { %11669 = vmatmul.mubr.msk.bf16.gmra.mxu1 %vm1292_vm1, %v12281_v16  ;;  %11436 = vmatprep.mubr.msk.bf16.mxu0 %vm12562_vm14, %v17991_v23 }
 0x5f0   :  { %11672 = vmatprep.mubr.msk.bf16.mxu1 %vm12562_vm14, %v17991_v23  ;;  %2350 = vperm.xlu0 %12209, %v682_v57   ;;  %v13679_v57 = vpop.permute.xlu0 %2160 }
 0x5f1   :  { %2365 = vperm.xlu1 %12208, %v685_v53   ;;  %v13677_v53 = vpop.permute.xlu1 %2175 }
 0x5f4   :  { %2520 = vperm.xlu0 %12209, %v716_v61   ;;  %v738_v61 = vld [vmem:[%s17977_s10 + $0x3d0] sm:$0xff] }
 0x5f5   :  { %2535 = vperm.xlu1 %12208, %v719_v58  }
 0x5f6   :  { %11437 = vmatmul.mubr.msk.bf16.gmra.mxu0 %vm1292_vm1, %v12282_v18 }
 0x5f7   :  { %11673 = vmatmul.mubr.msk.bf16.gmra.mxu1 %vm1292_vm1, %v12283_v19  ;;  %11440 = vmatprep.mubr.msk.bf16.mxu0 %vm12562_vm14, %v17991_v23 }
 0x5f8   :  { %11676 = vmatprep.mubr.msk.bf16.mxu1 %vm12562_vm14, %v17991_v23  ;;  %2340 = vperm.xlu0 %12209, %v680_v7   ;;  %v12304_v7 = vld [vmem:[%s17974_s7 + $0xe8] sm:$0xff]  }
 0x5f9   :  { %2355 = vperm.xlu1 %12208, %v683_v62  }
 0x5fd   :  { %2525 = vperm.xlu1 %12208, %v717_v10   ;;  %v13702_v10 = vpop.permute.xlu0 %2150 }
 0x5fe   :  { %11441 = vmatmul.mubr.msk.bf16.gmra.mxu0 %vm1292_vm1, %v12284_v21  ;;  %v714_v21 = vld [vmem:[%s17977_s10 + $0x310] sm:$0xff] }
 0x5ff   :  { %11677 = vmatmul.mubr.msk.bf16.gmra.mxu1 %vm1292_vm1, %v12285_v25  ;;  %11444 = vmatprep.mubr.msk.bf16.mxu0 %vm12562_vm14, %v17991_v23  ;;  %v12299_v25 = vld [vmem:[%s17975_s8 + $0xa0] sm:$0xff]  }
 0x600   :  { %11680 = vmatprep.mubr.msk.bf16.mxu1 %vm12562_vm14, %v17991_v23  ;;  %2510 = vperm.xlu0 %12209, %v714_v21   ;;  %v705_v21 = vld [vmem:[%s17977_s10 + $0x2c8] sm:$0xff] }
 0x601   :  { %2345 = vperm.xlu1 %12208, %v681_v17   ;;  %v12305_v17 = vld [vmem:[%s17975_s8 + $0xb8] sm:$0xff]  }
 0x604   :  { %2490 = vperm.xlu0 %12209, %v710_v29   ;;  %v13727_v29 = vpop.permute.xlu0 %2140 }
 0x605   :  { %2515 = vperm.xlu1 %12208, %v715_v22   ;;  %v736_v22 = vld [vmem:[%s17977_s10 + $0x3c0] sm:$0xff] }
 0x606   :  { %11445 = vmatmul.mubr.msk.bf16.gmra.mxu0 %vm1292_vm1, %v12286_v28 }
 0x607   :  { %11681 = vmatmul.mubr.msk.bf16.gmra.mxu1 %vm1292_vm1, %v12287_v30  ;;  %11448 = vmatprep.mubr.msk.bf16.mxu0 %vm12562_vm14, %v17991_v23 }
 0x608   :  { %11684 = vmatprep.mubr.msk.bf16.mxu1 %vm12562_vm14, %v17991_v23  ;;  %2500 = vperm.xlu0 %12209, %v712_v1   ;;  %v702_v1 = vld [vmem:[%s17977_s10 + $0x2b0] sm:$0xff] }
 0x609   :  { %2495 = vperm.xlu1 %12208, %v711_v11  }
 0x60c   :  { %2480 = vperm.xlu0 %12209, %v708_v41  }
 0x60e   :  { %11449 = vmatmul.mubr.msk.bf16.gmra.mxu0 %vm1292_vm1, %v12288_v33 }
 0x60f   :  { %11685 = vmatmul.mubr.msk.bf16.gmra.mxu1 %vm1292_vm1, %v12289_v35  ;;  %11452 = vmatprep.mubr.msk.bf16.mxu0 %vm12562_vm14, %v17991_v23  ;;  %v713_v35 = vld [vmem:[%s17977_s10 + $0x308] sm:$0xff] }
 0x610   :  { %11688 = vmatprep.mubr.msk.bf16.mxu1 %vm12562_vm14, %v17991_v23  ;;  %2505 = vperm.xlu1 %12208, %v713_v35   ;;  %v12307_v35 = vld [vmem:[%s17975_s8 + $0xc0] sm:$0xff]  }
 0x611   :  { %2640 = vperm.xlu0 %12209, %v740_v49   ;;  %v734_v49 = vld [vmem:[%s17977_s10 + $0x3b0] sm:$0xff] }
 0x616   :  { %11453 = vmatmul.mubr.msk.bf16.gmra.mxu0 %vm1292_vm1, %v12290_v39 }
 0x617   :  { %11689 = vmatmul.mubr.msk.bf16.gmra.mxu1 %vm1292_vm1, %v12291_v42  ;;  %11456 = vmatprep.mubr.msk.bf16.mxu0 %vm12562_vm14, %v17991_v23  ;;  %v709_v42 = vld [vmem:[%s17977_s10 + $0x2e8] sm:$0xff] }
 0x618   :  { %11692 = vmatprep.mubr.msk.bf16.mxu1 %vm12562_vm14, %v17991_v23  ;;  %2485 = vperm.xlu1 %12208, %v709_v42  }
 0x61e   :  { %11457 = vmatmul.mubr.msk.bf16.gmra.mxu0 %vm1292_vm1, %v12292_v47 }
 0x61f   :  { %11693 = vmatmul.mubr.msk.bf16.gmra.mxu1 %vm1292_vm1, %v12293_v50  ;;  %11460 = vmatprep.mubr.msk.bf16.mxu0 %vm12562_vm14, %v17991_v23  ;;  %v706_v50 = vld [vmem:[%s17977_s10 + $0x2d0] sm:$0xff] }
 0x620   :  { %11696 = vmatprep.mubr.msk.bf16.mxu1 %vm12562_vm14, %v17991_v23  ;;  %2470 = vperm.xlu1 %12208, %v706_v50  }
 0x624   :  { %2630 = vperm.xlu1 %12208, %v738_v61   ;;  %v12308_v61 = vld [vmem:[%s17974_s7 + $0xf8] sm:$0xff]  }
 0x626   :  { %v13548_v60 = vpop.f32.mrf.mxu0  ;;  %11461 = vmatmul.mubr.msk.bf16.gmra.mxu0 %vm1292_vm1, %v12294_v56 }
 0x627   :  { %11697 = vmatmul.mubr.msk.bf16.gmra.mxu1 %vm1292_vm1, %v12295_v59  ;;  %11464 = vmatprep.mubr.msk.bf16.mxu0 %vm12562_vm14, %v17991_v23  ;;  %v707_v59 = vld [vmem:[%s17977_s10 + $0x2d8] sm:$0xff]  ;;  %v2643_v41 = vadd.f32 %v13629_v32, %v13548_v60 }
 0x628   :  { %v11366_v3 = vpop.f32.mrf.mxu0  ;;  %11700 = vmatprep.mubr.msk.bf16.mxu1 %vm12562_vm14, %v17991_v23  ;;  %2475 = vperm.xlu0 %12209, %v707_v59  }
 0x629   :  { %v13695_v3 = vpop.permute.xlu1 %2165 }
 0x62a   :  { %v13566_v5 = vpop.f32.mrf.mxu0 }
 0x62c   :  { %v11367_v13 = vpop.f32.mrf.mxu0 }
 0x62d   :  { %v704_v13 = vld [vmem:[%s17977_s10 + $0x2c0] sm:$0xff] }
 0x62e   :  { %v13584_v16 = vpop.f32.mrf.mxu0  ;;  %11465 = vmatmul.mubr.msk.bf16.gmra.mxu0 %vm1292_vm1, %v12296_v6  ;;  %2460 = vperm.xlu1 %12208, %v704_v13  }
 0x62f   :  { %11701 = vmatmul.mubr.msk.bf16.gmra.mxu1 %vm1292_vm1, %v12297_v12  ;;  %11468 = vmatprep.mubr.msk.bf16.mxu0 %vm12562_vm14, %v17991_v23  ;;  %v739_v12 = vld [vmem:[%s17977_s10 + $0x3d8] sm:$0xff] }
 0x630   :  { %v11370_v18 = vpop.f32.mrf.mxu0  ;;  %11704 = vmatprep.mubr.msk.bf16.mxu1 %vm12562_vm14, %v17991_v23  ;;  %2635 = vperm.xlu0 %12209, %v739_v12  }
 0x632   :  { %v13595_v19 = vpop.f32.mrf.mxu0  ;;  %2620 = vperm.xlu1 %12208, %v736_v22   ;;  %v2645_v22 = vadd.f32 %v13611_v26, %v13584_v16 }
 0x634   :  { %v11371_v27 = vpop.f32.mrf.mxu0  ;;  %2465 = vperm.xlu0 %12209, %v705_v21  }
 0x636   :  { %v13613_v28 = vpop.f32.mrf.mxu0  ;;  %11469 = vmatmul.mubr.msk.bf16.gmra.mxu0 %vm1292_vm1, %v12298_v20  ;;  %2450 = vperm.xlu1 %12208, %v702_v1  }
 0x637   :  { %11705 = vmatmul.mubr.msk.bf16.gmra.mxu1 %vm1292_vm1, %v12299_v25  ;;  %11472 = vmatprep.mubr.msk.bf16.mxu0 %vm12562_vm14, %v17991_v23  ;;  %v13725_v25 = vpop.permute.xlu1 %2155 }
 0x638   :  { %v11374_v30 = vpop.f32.mrf.mxu0  ;;  %11708 = vmatprep.mubr.msk.bf16.mxu1 %vm12562_vm14, %v17991_v23 }
 0x639   :  { %v12306_v30 = vld [vmem:[%s17974_s7 + $0xf0] sm:$0xff]  }
 0x63a   :  { %v13631_v33 = vpop.f32.mrf.mxu0  ;;  %2610 = vperm.xlu1 %12208, %v734_v49  }
 0x63c   :  { %v11375_v37 = vpop.f32.mrf.mxu0 }
 0x63d   :  { %v13745_v37 = vpop.permute.xlu1 %2145 }
 0x63e   :  { %v13645_v39 = vpop.f32.mrf.mxu0  ;;  %11473 = vmatmul.mubr.msk.bf16.gmra.mxu0 %vm1292_vm1, %v12300_v34  ;;  %v737_v34 = vld [vmem:[%s17977_s10 + $0x3c8] sm:$0xff] }
 0x63f   :  { %11709 = vmatmul.mubr.msk.bf16.gmra.mxu1 %vm1292_vm1, %v12301_v36  ;;  %11476 = vmatprep.mubr.msk.bf16.mxu0 %vm12562_vm14, %v17991_v23 }
 0x640   :  { %v11378_v46 = vpop.f32.mrf.mxu0  ;;  %11712 = vmatprep.mubr.msk.bf16.mxu1 %vm12562_vm14, %v17991_v23  ;;  %2625 = vperm.xlu0 %12209, %v737_v34   ;;  %v732_v34 = vld [vmem:[%s17977_s10 + $0x3a0] sm:$0xff] }
 0x641   :  { %v13752_v46 = vpop.permute.xlu0 %2130  ;;  %v13780_v13 = vpop.permute.xlu1 %2135 }
 0x642   :  { %v13663_v47 = vpop.f32.mrf.mxu0 }
 0x644   :  { %v11379_v56 = vpop.f32.mrf.mxu0 }
 0x645   :  { %v2644_v56 = vadd.f32 %v13656_v45, %v13566_v5  ;;  %v12309_v5 = vld [vmem:[%s17975_s8 + $0xc8] sm:$0xff]  }
 0x646   :  { %v13681_v58 = vpop.f32.mrf.mxu0  ;;  %11477 = vmatmul.mubr.msk.bf16.gmra.mxu0 %vm1292_vm1, %v12302_v48  ;;  %v703_v48 = vld [vmem:[%s17977_s10 + $0x2b8] sm:$0xff] }
 0x647   :  { %11713 = vmatmul.mubr.msk.bf16.gmra.mxu1 %vm1292_vm1, %v12303_v52  ;;  %11480 = vmatprep.mubr.msk.bf16.mxu0 %vm12562_vm14, %v17991_v23 }
 0x648   :  { %v11382_v62 = vpop.f32.mrf.mxu0  ;;  %11716 = vmatprep.mubr.msk.bf16.mxu1 %vm12562_vm14, %v17991_v23  ;;  %2455 = vperm.xlu0 %12209, %v703_v48  }
 0x649   :  { %v735_v62 = vld [vmem:[%s17977_s10 + $0x3b8] sm:$0xff] }
 0x64a   :  { %v13697_v6 = vpop.f32.mrf.mxu0 }
 0x64c   :  { %v11383_v18 = vpop.f32.mrf.mxu0  ;;  %2615 = vperm.xlu0 %12209, %v735_v62  }
 0x64d   :  { %v13787_v18 = vpop.permute.xlu0 %2120 }
 0x64e   :  { %v13713_v20 = vpop.f32.mrf.mxu0  ;;  %11481 = vmatmul.mubr.msk.bf16.gmra.mxu0 %vm1292_vm1, %v12304_v7  ;;  %v700_v7 = vld [vmem:[%s17977_s10 + $0x2a0] sm:$0xff] }
 0x64f   :  { %11717 = vmatmul.mubr.msk.bf16.gmra.mxu1 %vm1292_vm1, %v12305_v17  ;;  %11484 = vmatprep.mubr.msk.bf16.mxu0 %vm12562_vm14, %v17991_v23 }
 0x650   :  { %v11386_v27 = vpop.f32.mrf.mxu0  ;;  %11720 = vmatprep.mubr.msk.bf16.mxu1 %vm12562_vm14, %v17991_v23  ;;  %2440 = vperm.xlu1 %12208, %v700_v7   ;;  %v2647_v7 = vadd.f32 %v13582_v15, %v13613_v28 }
 0x651   :  { %v13811_v48 = vpop.permute.xlu0 %2110 }
 0x652   :  { %v13731_v11 = vpop.f32.mrf.mxu0 }
 0x654   :  { %v11387_v36 = vpop.f32.mrf.mxu0  ;;  %2600 = vperm.xlu1 %12208, %v732_v34  }
 0x655   :  { %v13807_v36 = vpop.permute.xlu1 %2125  ;;  %v13845_v15 = vpop.permute.xlu0 %2100 }
 0x656   :  { %v13749_v42 = vpop.f32.mrf.mxu0  ;;  %11485 = vmatmul.mubr.msk.bf16.gmra.mxu0 %vm1292_vm1, %v12306_v30  ;;  %v701_v30 = vld [vmem:[%s17977_s10 + $0x2a8] sm:$0xff] }
 0x657   :  { %v3529_v50 = vpop.f32.mrf.mxu1  ;;  %11721 = vmatmul.mubr.msk.bf16.gmra.mxu1 %vm1292_vm1, %v12307_v35  ;;  %11488 = vmatprep.mubr.msk.bf16.mxu0 %vm12562_vm14, %v17991_v23 }
 0x658   :  { %v13763_v60 = vadd.f32 %v3529_v50, %v2643_v41  ;;  %v11390_v32 = vpop.f32.mrf.mxu0  ;;  %11724 = vmatprep.mubr.msk.bf16.mxu1 %vm12562_vm14, %v17991_v23  ;;  %2445 = vperm.xlu0 %12209, %v701_v30   ;;  %v2646_v41 = vadd.f32 %v13627_v31, %v13595_v19  ;;  %v12310_v50 = vld [vmem:[%s17974_s7 + $0x100] sm:$0xff]   ;;  %v12311_v19 = vld [vmem:[%s17975_s8 + $0xd0] sm:$0xff]  }
 0x659   :  { %v11626_v52 = vpop.f32.mrf.mxu1  ;;  %v733_v32 = vld [vmem:[%s17977_s10 + $0x3a8] sm:$0xff] }
 0x65a   :  { %18003 = vst [vmem:[#allocation6_spill] sm:$0xff] %v13763_v60  ;;  %v13769_v59 = vpop.f32.mrf.mxu0  ;;  %v698_v52 = vld [vmem:[%s17977_s10 + $0x290] sm:$0xff] }
 0x65b   :  { %v3532_v12 = vpop.f32.mrf.mxu1  ;;  %2430 = vperm.xlu1 %12208, %v698_v52   ;;  %v12313_v52 = vld [vmem:[%s17975_s8 + $0xd8] sm:$0xff]  }
 0x65c   :  { %v13785_v45 = vadd.f32 %v3532_v12, %v2644_v56  ;;  %v11391_v17 = vpop.f32.mrf.mxu0  ;;  %2605 = vperm.xlu0 %12209, %v733_v32  }
 0x65d   :  { %v11627_v21 = vpop.f32.mrf.mxu1  ;;  %v730_v17 = vld [vmem:[%s17977_s10 + $0x390] sm:$0xff] }
 0x65e   :  { %18004 = vst [vmem:[#allocation7_spill] sm:$0xff] %v13785_v45  ;;  %v13791_v27 = vpop.f32.mrf.mxu0  ;;  %11489 = vmatmul.mubr.msk.bf16.gmra.mxu0 %vm1292_vm1, %v12308_v61  ;;  %v13840_v21 = vpop.permute.xlu1 %2115 }
 0x65f   :  { %v3537_v1 = vpop.f32.mrf.mxu1  ;;  %11725 = vmatmul.mubr.msk.bf16.gmra.mxu1 %vm1292_vm1, %v12309_v5  ;;  %11492 = vmatprep.mubr.msk.bf16.mxu0 %vm12562_vm14, %v17991_v23  ;;  %v699_v5 = vld [vmem:[%s17977_s10 + $0x298] sm:$0xff] }
 0x660   :  { %v13803_v35 = vadd.f32 %v3537_v1, %v2645_v22  ;;  %v11394_v16 = vpop.f32.mrf.mxu0  ;;  %11728 = vmatprep.mubr.msk.bf16.mxu1 %vm12562_vm14, %v17991_v23  ;;  %2435 = vperm.xlu0 %12209, %v699_v5   ;;  %v2648_v1 = vadd.f32 %v13606_v24, %v13631_v33  ;;  %v697_v5 = vld [vmem:[%s17977_s10 + $0x288] sm:$0xff] }
 0x661   :  { %v11630_v26 = vpop.f32.mrf.mxu1  ;;  %2590 = vperm.xlu1 %12208, %v730_v17  }
 0x662   :  { %18005 = vst [vmem:[#allocation8_spill] sm:$0xff] %v13803_v35  ;;  %v13813_v49 = vpop.f32.mrf.mxu0  ;;  %v12312_v26 = vld [vmem:[%s17974_s7 + $0x108] sm:$0xff]  }
 0x663   :  { %v3540_v56 = vpop.f32.mrf.mxu1 }
 0x664   :  { %v13827_v31 = vadd.f32 %v3540_v56, %v2646_v41  ;;  %v11395_v61 = vpop.f32.mrf.mxu0  ;;  %v731_v41 = vld [vmem:[%s17977_s10 + $0x398] sm:$0xff]  ;;  %v13869_v56 = vpop.permute.xlu0 %2250 }
 0x665   :  { %v11631_v62 = vpop.f32.mrf.mxu1  ;;  %2595 = vperm.xlu0 %12209, %v731_v41  }
 0x666   :  { %18006 = vst [vmem:[#allocation9_spill] sm:$0xff] %v13827_v31  ;;  %v13831_v12 = vpop.f32.mrf.mxu0  ;;  %11493 = vmatmul.mubr.msk.bf16.gmra.mxu0 %vm1292_vm1, %v12310_v50  ;;  %v696_v50 = vld [vmem:[%s17977_s10 + $0x280] sm:$0xff]  ;;  %v2649_v62 = vadd.f32 %v13562_v0, %v13645_v39 }
 0x667   :  { %v3545_v22 = vpop.f32.mrf.mxu1  ;;  %11729 = vmatmul.mubr.msk.bf16.gmra.mxu1 %vm1292_vm1, %v12311_v19  ;;  %11496 = vmatprep.mubr.msk.bf16.mxu0 %vm12562_vm14, %v17991_v23  ;;  %v13871_v19 = vpop.permute.xlu1 %2105 }
 0x668   :  { %v13847_v28 = vadd.f32 %v3545_v22, %v2647_v7  ;;  %v11398_v30 = vpop.f32.mrf.mxu0  ;;  %11732 = vmatprep.mubr.msk.bf16.mxu1 %vm12562_vm14, %v17991_v23  ;;  %2420 = vperm.xlu1 %12208, %v696_v50   ;;  %v13897_v41 = vpop.permute.xlu0 %2240 }
 0x669   :  { %v11634_v34 = vpop.f32.mrf.mxu1  ;;  %2425 = vperm.xlu0 %12209, %v697_v5  }
 0x66a   :  { %18007 = vst [vmem:[#allocation10_spill] sm:$0xff] %v13847_v28  ;;  %v13853_v16 = vpop.f32.mrf.mxu0  ;;  %v2650_v34 = vadd.f32 %v13580_v14, %v13663_v47  ;;  %v2651_v14 = vadd.f32 %v13534_v55, %v13681_v58  ;;  %v2652_v58 = vadd.f32 %v13557_v63, %v13697_v6  ;;  %v2653_v63 = vadd.f32 %v13518_v51, %v13713_v20 }
 0x66b   :  { %v3548_v32 = vpop.f32.mrf.mxu1  ;;  %v13888_v39 = vpop.permute.xlu1 %2255  ;;  %v2654_v51 = vadd.f32 %v13532_v54, %v13731_v11  ;;  %v2655_v54 = vadd.f32 %v13488_v43, %v13749_v42  ;;  %v2656_v43 = vadd.f32 %v13513_v9, %v13769_v59  ;;  %v2657_v9 = vadd.f32 %v13469_v38, %v13791_v27 }
 0x66c   :  { %v13867_v24 = vadd.f32 %v3548_v32, %v2648_v1  ;;  %v11399_v33 = vpop.f32.mrf.mxu0  ;;  %v12315_v32 = vld [vmem:[%s17975_s8 + $0xe0] sm:$0xff]   ;;  %v2658_v27 = vadd.f32 %v13490_v44, %v13813_v49  ;;  %v2659_v44 = vadd.f32 %v13845_v15, %v13831_v12  ;;  %v2660_v12 = vadd.f32 %v13871_v19, %v13853_v16 }
 0x66d   :  { %v11635_v61 = vpop.f32.mrf.mxu1 }
 0x66e   :  { %18008 = vst [vmem:[#allocation11_spill] sm:$0xff] %v13867_v24  ;;  %v13875_v7 = vpop.f32.mrf.mxu0  ;;  %11497 = vmatmul.mubr.msk.bf16.gmra.mxu0 %vm1292_vm1, %v12312_v26  ;;  %v12314_v26 = vld [vmem:[%s17974_s7 + $0x110] sm:$0xff]  }
 0x66f   :  { %v3553_v17 = vpop.f32.mrf.mxu1  ;;  %11733 = vmatmul.mubr.msk.bf16.gmra.mxu1 %vm1292_vm1, %v12313_v52  ;;  %11500 = vmatprep.mubr.msk.bf16.mxu0 %vm12562_vm14, %v17991_v23  ;;  %v13912_v5 = vpop.permute.xlu1 %2245  ;;  %v2661_v16 = vadd.f32 %v13811_v48, %v13875_v7 }
 0x670   :  { %v13884_v22 = vadd.f32 %v3553_v17, %v2649_v62  ;;  %v11402_v30 = vpop.f32.mrf.mxu0  ;;  %11736 = vmatprep.mubr.msk.bf16.mxu1 %vm12562_vm14, %v17991_v23 }
 0x671   :  { %v11638_v0 = vpop.f32.mrf.mxu1 }
 0x672   :  { %18009 = vst [vmem:[#allocation12_spill] sm:$0xff] %v13884_v22  ;;  %v13892_v1 = vpop.f32.mrf.mxu0  ;;  %v13918_v0 = vpop.permute.xlu0 %2230 }
 0x673   :  { %v3556_v50 = vpop.f32.mrf.mxu1  ;;  %v2662_v7 = vadd.f32 %v13840_v21, %v13892_v1 }
 0x674   :  { %v13902_v52 = vadd.f32 %v3556_v50, %v2650_v34  ;;  %v11403_v33 = vpop.f32.mrf.mxu0 }
 0x675   :  { %v11639_v61 = vpop.f32.mrf.mxu1 }
 0x676   :  { %18010 = vst [vmem:[#allocation13_spill] sm:$0xff] %v13902_v52  ;;  %v13906_v47 = vpop.f32.mrf.mxu0  ;;  %11501 = vmatmul.mubr.msk.bf16.gmra.mxu0 %vm1292_vm1, %v12314_v26  ;;  %v12316_v26 = vld [vmem:[%s17974_s7 + $0x118] sm:$0xff]  }
 0x677   :  { %v3561_v62 = vpop.f32.mrf.mxu1  ;;  %11737 = vmatmul.mubr.msk.bf16.gmra.mxu1 %vm1292_vm1, %v12315_v32  ;;  %11504 = vmatprep.mubr.msk.bf16.mxu0 %vm12562_vm14, %v17991_v23  ;;  %v12317_v32 = vld [vmem:[%s17975_s8 + $0xe8] sm:$0xff]   ;;  %v2663_v21 = vadd.f32 %v13787_v18, %v13906_v47 }
 0x678   :  { %v13914_v17 = vadd.f32 %v3561_v62, %v2651_v14  ;;  %v11406_v30 = vpop.f32.mrf.mxu0  ;;  %11740 = vmatprep.mubr.msk.bf16.mxu1 %vm12562_vm14, %v17991_v23  ;;  %v13932_v62 = vpop.permute.xlu1 %2235 }
 0x679   :  { %v11642_v55 = vpop.f32.mrf.mxu1  ;;  %v13939_v30 = vpop.permute.xlu0 %2220 }
 0x67a   :  { %18011 = vst [vmem:[#allocation14_spill] sm:$0xff] %v13914_v17  ;;  %v13922_v34 = vpop.f32.mrf.mxu0 }
 0x67b   :  { %v3564_v50 = vpop.f32.mrf.mxu1  ;;  %v2664_v18 = vadd.f32 %v13807_v36, %v13922_v34 }
 0x67c   :  { %v13930_v33 = vadd.f32 %v3564_v50, %v2652_v58  ;;  %v11407_v61 = vpop.f32.mrf.mxu0 }
 0x67d   :  { %v11643_v14 = vpop.f32.mrf.mxu1 }
 0x67e   :  { %18012 = vst [vmem:[#allocation15_spill] sm:$0xff] %v13930_v33  ;;  %v13936_v6 = vpop.f32.mrf.mxu0  ;;  %11505 = vmatmul.mubr.msk.bf16.gmra.mxu0 %vm1292_vm1, %v12316_v26  ;;  %v12318_v26 = vld [vmem:[%s17974_s7 + $0x120] sm:$0xff]   ;;  %v12319_v14 = vld [vmem:[%s17975_s8 + $0xf0] sm:$0xff]  }
 0x67f   :  { %v3569_v55 = vpop.f32.mrf.mxu1  ;;  %11741 = vmatmul.mubr.msk.bf16.gmra.mxu1 %vm1292_vm1, %v12317_v32  ;;  %11508 = vmatprep.mubr.msk.bf16.mxu0 %vm12562_vm14, %v17991_v23 }
 0x680   :  { %v13944_v58 = vadd.f32 %v3569_v55, %v2653_v63  ;;  %v11410_v50 = vpop.f32.mrf.mxu0  ;;  %11744 = vmatprep.mubr.msk.bf16.mxu1 %vm12562_vm14, %v17991_v23  ;;  %v13958_v63 = vpop.permute.xlu1 %2225 }
 0x681   :  { %v11646_v61 = vpop.f32.mrf.mxu1 }
 0x682   :  { %18013 = vst [vmem:[#allocation16_spill] sm:$0xff] %v13944_v58  ;;  %v13950_v20 = vpop.f32.mrf.mxu0  ;;  %v13962_v61 = vpop.permute.xlu0 %2210 }
 0x683   :  { %v3572_v32 = vpop.f32.mrf.mxu1 }
 0x684   :  { %v13960_v55 = vadd.f32 %v3572_v32, %v2654_v51  ;;  %v11411_v50 = vpop.f32.mrf.mxu0  ;;  %v13976_v32 = vpop.permute.xlu1 %2215 }
 0x685   :  { %v11647_v4 = vpop.f32.mrf.mxu1  ;;  %v12321_v50 = vld [vmem:[%s17975_s8 + $0xf8] sm:$0xff]  }
 0x686   :  { %18014 = vst [vmem:[#allocation17_spill] sm:$0xff] %v13960_v55  ;;  %v13966_v11 = vpop.f32.mrf.mxu0  ;;  %11509 = vmatmul.mubr.msk.bf16.gmra.mxu0 %vm1292_vm1, %v12318_v26  ;;  %v12320_v26 = vld [vmem:[%s17974_s7 + $0x128] sm:$0xff]  }
 0x687   :  { %v3577_v2 = vpop.f32.mrf.mxu1  ;;  %11745 = vmatmul.mubr.msk.bf16.gmra.mxu1 %vm1292_vm1, %v12319_v14  ;;  %11512 = vmatprep.mubr.msk.bf16.mxu0 %vm12562_vm14, %v17991_v23  ;;  %v13985_v14 = vpop.permute.xlu0 %2200 }
 0x688   :  { %v13972_v8 = vadd.f32 %v3577_v2, %v2655_v54  ;;  %v11414_v51 = vpop.f32.mrf.mxu0  ;;  %11748 = vmatprep.mubr.msk.bf16.mxu1 %vm12562_vm14, %v17991_v23  ;;  %v14000_v55 = vpop.permute.xlu1 %2205 }
 0x689   :  { %v11650_v4 = vpop.f32.mrf.mxu1 }
 0x68a   :  { %18015 = vst [vmem:[#allocation18_spill] sm:$0xff] %v13972_v8  ;;  %v13980_v42 = vpop.f32.mrf.mxu0  ;;  %v18017_v8 = vmov 0.0  }
 0x68b   :  { %v3580_v2 = vpop.f32.mrf.mxu1 }
 0x68c   :  { %v13990_v54 = vadd.f32 %v3580_v2, %v2656_v43  ;;  %v11415_v51 = vpop.f32.mrf.mxu0  ;;  %v14006_v2 = vpop.permute.xlu0 %2190 }
 0x68d   :  { %v11651_v4 = vpop.f32.mrf.mxu1 }
 0x68e   :  { %18016 = vst [vmem:[#allocation19_spill] sm:$0xff] %v13990_v54  ;;  %v13994_v59 = vpop.f32.mrf.mxu0  ;;  %11513 = vmatmul.mubr.msk.bf16.gmra.mxu0 %vm1292_vm1, %v12320_v26 }
 0x68f   :  { %v3585_v23 = vpop.f32.mrf.mxu1  ;;  %11749 = vmatmul.mubr.msk.bf16.gmra.mxu1 %vm1292_vm1, %v12321_v50  ;;  %11516 = vmatprep.mubr.msk.bf16.mxu0 %vm12562_vm14, %v18017_v8  ;;  %v12322_v50 = vld [vmem:[%s17974_s7 + $0x130] sm:$0xff]  }
 0x690   :  { %v14002_v58 = vadd.f32 %v3585_v23, %v2657_v9  ;;  %v11418_v43 = vpop.f32.mrf.mxu0  ;;  %11752 = vmatprep.mubr.msk.bf16.mxu1 %vm12562_vm14, %v18017_v8  ;;  %v12323_v23 = vld [vmem:[%s17975_s8 + $0x100] sm:$0xff]  }
 0x691   :  { %v11654_v38 = vpop.f32.mrf.mxu1 }
 0x692   :  { %18018 = vst [vmem:[#allocation20_spill] sm:$0xff] %v14002_v58  ;;  %v14010_v26 = vpop.f32.mrf.mxu0  ;;  %v14020_v58 = vpop.permute.xlu1 %2195 }
 0x693   :  { %v3588_v51 = vpop.f32.mrf.mxu1  ;;  %v14027_v38 = vpop.permute.xlu0 %2180 }
 0x694   :  { %v14018_v4 = vadd.f32 %v3588_v51, %v2658_v27  ;;  %v11419_v9 = vpop.f32.mrf.mxu0 }
 0x695   :  { %v11655_v43 = vpop.f32.mrf.mxu1 }
 0x696   :  { %18019 = vst [vmem:[#allocation21_spill] sm:$0xff] %v14018_v4  ;;  %v14024_v49 = vpop.f32.mrf.mxu0  ;;  %11517 = vmatmul.mubr.msk.bf16.gmra.mxu0 %vm1292_vm1, %v12322_v50  ;;  %v12324_v50 = vld [vmem:[%s17974_s7 + $0x138] sm:$0xff]  }
 0x697   :  { %v3593_v54 = vpop.f32.mrf.mxu1  ;;  %11753 = vmatmul.mubr.msk.bf16.gmra.mxu1 %vm1292_vm1, %v12323_v23  ;;  %11520 = vmatprep.mubr.msk.bf16.mxu0 %vm12562_vm14, %v18017_v8  ;;  %v14043_v23 = vpop.permute.xlu0 %2330 }
 0x698   :  { %v14032_v27 = vadd.f32 %v3593_v54, %v2659_v44  ;;  %v11422_v51 = vpop.f32.mrf.mxu0  ;;  %11756 = vmatprep.mubr.msk.bf16.mxu1 %vm12562_vm14, %v18017_v8  ;;  %v12325_v54 = vld [vmem:[%s17975_s8 + $0x108] sm:$0xff]   ;;  %v14048_v44 = vpop.permute.xlu1 %2185 }
 0x699   :  { %v11658_v9 = vpop.f32.mrf.mxu1 }
 0x69a   :  { %18020 = vst [vmem:[#allocation22_spill] sm:$0xff] %v14032_v27  ;;  %v14038_v15 = vpop.f32.mrf.mxu0 }
 0x69b   :  { %v3596_v43 = vpop.f32.mrf.mxu1 }
 0x69c   :  { %v14050_v51 = vadd.f32 %v3596_v43, %v2660_v12  ;;  %v11423_v9 = vpop.f32.mrf.mxu0  ;;  %v14060_v33 = vpop.permute.xlu1 %2335  ;;  %v12326_v43 = vld [vmem:[%s17974_s7 + $0x140] sm:$0xff]  }
 0x69d   :  { %v11659_v27 = vpop.f32.mrf.mxu1 }
 0x69e   :  { %18021 = vst [vmem:[#allocation23_spill] sm:$0xff] %v14050_v51  ;;  %v14054_v19 = vpop.f32.mrf.mxu0  ;;  %11521 = vmatmul.mubr.msk.bf16.gmra.mxu0 %vm1292_vm1, %v12324_v50  ;;  %v14066_v27 = vpop.permute.xlu0 %2320 }
 0x69f   :  { %v3601_v4 = vpop.f32.mrf.mxu1  ;;  %11757 = vmatmul.mubr.msk.bf16.gmra.mxu1 %vm1292_vm1, %v12325_v54  ;;  %11524 = vmatprep.mubr.msk.bf16.mxu0 %vm12562_vm14, %v18017_v8 }
 0x6a0   :  { %v14062_v17 = vadd.f32 %v3601_v4, %v2661_v16  ;;  %v11426_v12 = vpop.f32.mrf.mxu0  ;;  %11760 = vmatprep.mubr.msk.bf16.mxu1 %vm12562_vm14, %v18017_v8  ;;  %v12327_v4 = vld [vmem:[%s17975_s8 + $0x110] sm:$0xff]  }
 0x6a1   :  { %v11662_v48 = vpop.f32.mrf.mxu1 }
 0x6a2   :  { %18022 = vst [vmem:[#allocation24_spill] sm:$0xff] %v14062_v17  ;;  %v14070_v50 = vpop.f32.mrf.mxu0  ;;  %v14080_v17 = vpop.permute.xlu1 %2325 }
 0x6a3   :  { %v3604_v54 = vpop.f32.mrf.mxu1  ;;  %v14087_v48 = vpop.permute.xlu0 %2310 }
 0x6a4   :  { %v14078_v9 = vadd.f32 %v3604_v54, %v2662_v7  ;;  %v11427_v16 = vpop.f32.mrf.mxu0 }
 0x6a5   :  { %v11663_v12 = vpop.f32.mrf.mxu1 }
 0x6a6   :  { %18023 = vst [vmem:[#allocation25_spill] sm:$0xff] %v14078_v9  ;;  %v14084_v1 = vpop.f32.mrf.mxu0  ;;  %11525 = vmatmul.mubr.msk.bf16.gmra.mxu0 %vm1292_vm1, %v12326_v43  ;;  %v12328_v43 = vld [vmem:[%s17974_s7 + $0x148] sm:$0xff]   ;;  %v14106_v12 = vpop.permute.xlu1 %2315  ;;  %v2665_v9 = vadd.f32 %v13752_v46, %v13936_v6  ;;  %v5984_v46 = vld [vmem:[%s17979_s12] sm:$0xff] }
 0x6a7   :  { %v3609_v51 = vpop.f32.mrf.mxu1  ;;  %11761 = vmatmul.mubr.msk.bf16.gmra.mxu1 %vm1292_vm1, %v12327_v4  ;;  %11528 = vmatprep.mubr.msk.bf16.mxu0 %vm12562_vm14, %v18017_v8  ;;  %v14113_v34 = vpop.permute.xlu0 %2300 }
 0x6a8   :  { %v14092_v7 = vadd.f32 %v3609_v51, %v2663_v21  ;;  %v11430_v54 = vpop.f32.mrf.mxu0  ;;  %11764 = vmatprep.mubr.msk.bf16.mxu1 %vm12562_vm14, %v18017_v8  ;;  %v12329_v51 = vld [vmem:[%s17975_s8 + $0x118] sm:$0xff]   ;;  %v729_v21 = vld [vmem:[%s17977_s10 + $0x388] sm:$0xff] }
 0x6a9   :  { %v11666_v16 = vpop.f32.mrf.mxu1  ;;  %2585 = vperm.xlu0 %12209, %v729_v21  }
 0x6aa   :  { %18024 = vst [vmem:[#allocation26_spill] sm:$0xff] %v14092_v7  ;;  %v14098_v47 = vpop.f32.mrf.mxu0  ;;  %v728_v16 = vld [vmem:[%s17977_s10 + $0x380] sm:$0xff] }
 0x6ab   :  { %v3612_v4 = vpop.f32.mrf.mxu1  ;;  %2580 = vperm.xlu1 %12208, %v728_v16   ;;  %v12331_v16 = vld [vmem:[%s17975_s8 + $0x120] sm:$0xff]  }
 0x6ac   :  { %v14111_v54 = vadd.f32 %v3612_v4, %v2664_v18  ;;  %v11431_v36 = vpop.f32.mrf.mxu0  ;;  %v5985_v18 = vld [vmem:[%s17979_s12 + $0x8] sm:$0xff] }
 0x6ad   :  { %v11667_v7 = vpop.f32.mrf.mxu1  ;;  %6054 = vperm.xlu0 %12209, %v5985_v18   ;;  %v5987_v18 = vld [vmem:[%s17979_s12 + $0x18] sm:$0xff] }
 0x6ae   :  { %18025 = vst [vmem:[#allocation27_spill] sm:$0xff] %v14111_v54  ;;  %v14120_v52 = vpop.f32.mrf.mxu0  ;;  %11529 = vmatmul.mubr.msk.bf16.gmra.mxu0 %vm1292_vm1, %v12328_v43  ;;  %v14136_v43 = vpop.permute.xlu1 %2305 }
 0x6af   :  { %v3617_v22 = vpop.f32.mrf.mxu1  ;;  %11765 = vmatmul.mubr.msk.bf16.gmra.mxu1 %vm1292_vm1, %v12329_v51  ;;  %11532 = vmatprep.mubr.msk.bf16.mxu0 %vm12562_vm14, %v18017_v8  ;;  %v2666_v51 = vadd.f32 %v13780_v13, %v13950_v20  ;;  %v5986_v20 = vld [vmem:[%s17979_s12 + $0x10] sm:$0xff] }
 0x6b0   :  { %v14129_v4 = vadd.f32 %v3617_v22, %v2665_v9  ;;  %v11434_v7 = vpop.f32.mrf.mxu0  ;;  %11768 = vmatprep.mubr.msk.bf16.mxu1 %vm12562_vm14, %v18017_v8  ;;  %6049 = vperm.xlu1 %12208, %v5984_v46   ;;  %v12330_v22 = vld [vmem:[%s17974_s7 + $0x150] sm:$0xff]   ;;  %v14145_v9 = vpop.permute.xlu0 %2290 }
 0x6b1   :  { %v11670_v6 = vpop.f32.mrf.mxu1  ;;  %6064 = vperm.xlu0 %12209, %v5987_v18  }
 0x6b2   :  { %18026 = vst [vmem:[#allocation28_spill] sm:$0xff] %v14129_v4  ;;  %v14140_v21 = vpop.f32.mrf.mxu0  ;;  %v2667_v6 = vadd.f32 %v13727_v29, %v13966_v11  ;;  %v5988_v11 = vld [vmem:[%s17979_s12 + $0x20] sm:$0xff] }
 0x6b3   :  { %v3620_v36 = vpop.f32.mrf.mxu1 }
 0x6b4   :  { %v14153_v7 = vadd.f32 %v3620_v36, %v2666_v51  ;;  %v11435_v13 = vpop.f32.mrf.mxu0  ;;  %6059 = vperm.xlu1 %12208, %v5986_v20   ;;  %v14166_v51 = vpop.permute.xlu1 %2295  ;;  %v5989_v36 = vld [vmem:[%s17979_s12 + $0x28] sm:$0xff] }
 0x6b5   :  { %v11671_v46 = vpop.f32.mrf.mxu1  ;;  %v14175_v29 = vpop.permute.xlu0 %2280  ;;  %6074 = vperm.xlu0 %12209, %v5989_v36   ;;  %v5991_v36 = vld [vmem:[%s17979_s12 + $0x38] sm:$0xff] }
 0x6b6   :  { %18027 = vst [vmem:[#allocation29_spill] sm:$0xff] %v14153_v7  ;;  %v14160_v4 = vpop.f32.mrf.mxu0  ;;  %11533 = vmatmul.mubr.msk.bf16.gmra.mxu0 %vm1292_vm1, %v12330_v22 }
 0x6b7   :  { %v3625_v54 = vpop.f32.mrf.mxu1  ;;  %11769 = vmatmul.mubr.msk.bf16.gmra.mxu1 %vm1292_vm1, %v12331_v16  ;;  %11536 = vmatprep.mubr.msk.bf16.mxu0 %vm12562_vm14, %v18017_v8  ;;  %v2668_v16 = vadd.f32 %v13745_v37, %v13980_v42  ;;  %v5990_v37 = vld [vmem:[%s17979_s12 + $0x30] sm:$0xff] }
 0x6b8   :  { %v14171_v18 = vadd.f32 %v3625_v54, %v2667_v6  ;;  %v11438_v13 = vpop.f32.mrf.mxu0  ;;  %11772 = vmatprep.mubr.msk.bf16.mxu1 %vm12562_vm14, %v18017_v8  ;;  %6069 = vperm.xlu1 %12208, %v5988_v11   ;;  %v12332_v54 = vld [vmem:[%s17974_s7 + $0x158] sm:$0xff]   ;;  %v12333_v6 = vld [vmem:[%s17975_s8 + $0x128] sm:$0xff]  }
 0x6b9   :  { %v11674_v22 = vpop.f32.mrf.mxu1  ;;  %6084 = vperm.xlu0 %12209, %v5991_v36   ;;  %v14205_v24 = vpop.permute.xlu0 %2270 }
 0x6ba   :  { %18028 = vst [vmem:[#allocation30_spill] sm:$0xff] %v14171_v18  ;;  %v14182_v20 = vpop.f32.mrf.mxu0  ;;  %v14198_v22 = vpop.permute.xlu1 %2285  ;;  %v2669_v18 = vadd.f32 %v13702_v10, %v13994_v59  ;;  %v5992_v10 = vld [vmem:[%s17979_s12 + $0x40] sm:$0xff] }
 0x6bb   :  { %v3628_v46 = vpop.f32.mrf.mxu1 }
 0x6bc   :  { %v14193_v13 = vadd.f32 %v3628_v46, %v2668_v16  ;;  %v11439_v11 = vpop.f32.mrf.mxu0  ;;  %6079 = vperm.xlu1 %12208, %v5990_v37   ;;  %v5993_v46 = vld [vmem:[%s17979_s12 + $0x48] sm:$0xff] }
 0x6bd   :  { %v11675_v42 = vpop.f32.mrf.mxu1  ;;  %6094 = vperm.xlu0 %12209, %v5993_v46   ;;  %v5995_v46 = vld [vmem:[%s17979_s12 + $0x58] sm:$0xff] }
 0x6be   :  { %18029 = vst [vmem:[#allocation31_spill] sm:$0xff] %v14193_v13  ;;  %v14202_v7 = vpop.f32.mrf.mxu0  ;;  %11537 = vmatmul.mubr.msk.bf16.gmra.mxu0 %vm1292_vm1, %v12332_v54  ;;  %v2670_v54 = vadd.f32 %v13725_v25, %v14010_v26  ;;  %v12335_v42 = vld [vmem:[%s17975_s8 + $0x130] sm:$0xff]   ;;  %v14237_v26 = vpop.permute.xlu0 %2260 }
 0x6bf   :  { %v3633_v16 = vpop.f32.mrf.mxu1  ;;  %11773 = vmatmul.mubr.msk.bf16.gmra.mxu1 %vm1292_vm1, %v12333_v6  ;;  %11540 = vmatprep.mubr.msk.bf16.mxu0 %vm12562_vm14, %v18017_v8 }
 0x6c0   :  { %v14213_v36 = vadd.f32 %v3633_v16, %v2669_v18  ;;  %v11442_v11 = vpop.f32.mrf.mxu0  ;;  %11776 = vmatprep.mubr.msk.bf16.mxu1 %vm12562_vm14, %v18017_v8  ;;  %6089 = vperm.xlu1 %12208, %v5992_v10   ;;  %v12334_v18 = vld [vmem:[%s17974_s7 + $0x160] sm:$0xff]   ;;  %v14230_v16 = vpop.permute.xlu1 %2275  ;;  %v5994_v10 = vld [vmem:[%s17979_s12 + $0x50] sm:$0xff] }
 0x6c1   :  { %v11678_v59 = vpop.f32.mrf.mxu1  ;;  %6104 = vperm.xlu0 %12209, %v5995_v46  }
 0x6c2   :  { %18030 = vst [vmem:[#allocation32_spill] sm:$0xff] %v14213_v36  ;;  %v14222_v6 = vpop.f32.mrf.mxu0  ;;  %v2671_v36 = vadd.f32 %v13679_v57, %v14024_v49  ;;  %v14257_v57 = vpop.permute.xlu0 %2410  ;;  %v5996_v49 = vld [vmem:[%s17979_s12 + $0x60] sm:$0xff] }
 0x6c3   :  { %v3636_v37 = vpop.f32.mrf.mxu1 }
 0x6c4   :  { %v14235_v11 = vadd.f32 %v3636_v37, %v2670_v54  ;;  %v11443_v25 = vpop.f32.mrf.mxu0  ;;  %6099 = vperm.xlu1 %12208, %v5994_v10   ;;  %v5997_v54 = vld [vmem:[%s17979_s12 + $0x68] sm:$0xff] }
 0x6c5   :  { %v11679_v59 = vpop.f32.mrf.mxu1  ;;  %6114 = vperm.xlu0 %12209, %v5997_v54   ;;  %v2672_v25 = vadd.f32 %v13695_v3, %v14038_v15  ;;  %v5999_v54 = vld [vmem:[%s17979_s12 + $0x78] sm:$0xff]  ;;  %v5998_v3 = vld [vmem:[%s17979_s12 + $0x70] sm:$0xff] }
 0x6c6   :  { %18031 = vst [vmem:[#allocation33_spill] sm:$0xff] %v14235_v11  ;;  %v14244_v13 = vpop.f32.mrf.mxu0  ;;  %11541 = vmatmul.mubr.msk.bf16.gmra.mxu0 %vm1292_vm1, %v12334_v18  ;;  %v12337_v59 = vld [vmem:[%s17975_s8 + $0x138] sm:$0xff]   ;;  %v14289_v31 = vpop.permute.xlu0 %2400 }
 0x6c7   :  { %v3641_v28 = vpop.f32.mrf.mxu1  ;;  %11777 = vmatmul.mubr.msk.bf16.gmra.mxu1 %vm1292_vm1, %v12335_v42  ;;  %11544 = vmatprep.mubr.msk.bf16.mxu0 %vm12562_vm14, %v18017_v8  ;;  %v14262_v42 = vpop.permute.xlu1 %2265 }
 0x6c8   :  { %v14253_v37 = vadd.f32 %v3641_v28, %v2671_v36  ;;  %v11446_v46 = vpop.f32.mrf.mxu0  ;;  %11780 = vmatprep.mubr.msk.bf16.mxu1 %vm12562_vm14, %v18017_v8  ;;  %6109 = vperm.xlu1 %12208, %v5996_v49   ;;  %v12336_v36 = vld [vmem:[%s17974_s7 + $0x168] sm:$0xff]  }
 0x6c9   :  { %v11682_v18 = vpop.f32.mrf.mxu1  ;;  %6124 = vperm.xlu0 %12209, %v5999_v54  }
 0x6ca   :  { %18032 = vst [vmem:[#allocation34_spill] sm:$0xff] %v14253_v37  ;;  %v14266_v28 = vpop.f32.mrf.mxu0  ;;  %v2673_v37 = vadd.f32 %v13648_v40, %v14054_v19  ;;  %v6014_v40 = vld [vmem:[%s17979_s12 + $0xf0] sm:$0xff] }
 0x6cb   :  { %v3644_v10 = vpop.f32.mrf.mxu1  ;;  %v14282_v18 = vpop.permute.xlu1 %2415 }
 0x6cc   :  { %v14277_v46 = vadd.f32 %v3644_v10, %v2672_v25  ;;  %v11447_v49 = vpop.f32.mrf.mxu0  ;;  %6119 = vperm.xlu1 %12208, %v5998_v3   ;;  %v6015_v10 = vld [vmem:[%s17979_s12 + $0xf8] sm:$0xff] }
 0x6cd   :  { %v11683_v15 = vpop.f32.mrf.mxu1  ;;  %6204 = vperm.xlu0 %12209, %v6015_v10   ;;  %v6030_v10 = vld [vmem:[%s17979_s12 + $0x170] sm:$0xff] }
 0x6ce   :  { %18033 = vst [vmem:[#allocation35_spill] sm:$0xff] %v14277_v46  ;;  %v14286_v11 = vpop.f32.mrf.mxu0  ;;  %11545 = vmatmul.mubr.msk.bf16.gmra.mxu0 %vm1292_vm1, %v12336_v36  ;;  %v2674_v36 = vadd.f32 %v13677_v53, %v14070_v50  ;;  %v12339_v15 = vld [vmem:[%s17975_s8 + $0x140] sm:$0xff]   ;;  %v14321_v50 = vpop.permute.xlu0 %2570 }
 0x6cf   :  { %v3649_v25 = vpop.f32.mrf.mxu1  ;;  %11781 = vmatmul.mubr.msk.bf16.gmra.mxu1 %vm1292_vm1, %v12337_v59  ;;  %11548 = vmatprep.mubr.msk.bf16.mxu0 %vm12562_vm14, %v18017_v8  ;;  %18036 = vst [vmem:[#allocation38_spill] sm:$0xff] %v14321_v50 }
 0x6d0   :  { %v14297_v54 = vadd.f32 %v3649_v25, %v2673_v37  ;;  %v11450_v49 = vpop.f32.mrf.mxu0  ;;  %11784 = vmatprep.mubr.msk.bf16.mxu1 %vm12562_vm14, %v18017_v8  ;;  %6199 = vperm.xlu1 %12208, %v6014_v40   ;;  %v12338_v37 = vld [vmem:[%s17974_s7 + $0x170] sm:$0xff]   ;;  %v14314_v25 = vpop.permute.xlu1 %2405 }
 0x6d1   :  { %v11686_v19 = vpop.f32.mrf.mxu1  ;;  %6279 = vperm.xlu0 %12209, %v6030_v10   ;;  %v6046_v40 = vld [vmem:[%s17979_s12 + $0x1f0] sm:$0xf] }
 0x6d2   :  { %18034 = vst [vmem:[#allocation36_spill] sm:$0xff] %v14297_v54  ;;  %v14306_v59 = vpop.f32.mrf.mxu0  ;;  %v2675_v54 = vadd.f32 %v14027_v38, %v14084_v1  ;;  %v6031_v38 = vld [vmem:[%s17979_s12 + $0x178] sm:$0xff] }
 0x6d3   :  { %v3652_v3 = vpop.f32.mrf.mxu1 }
 0x6d4   :  { %v14319_v49 = vadd.f32 %v3652_v3, %v2674_v36  ;;  %v11451_v53 = vpop.f32.mrf.mxu0  ;;  %6359 = vperm.xlu1 %12208, %v6046_v40   ;;  %v6012_v36 = vld [vmem:[%s17979_s12 + $0xe0] sm:$0xff] }
 0x6d5   :  { %v11687_v19 = vpop.f32.mrf.mxu1  ;;  %6189 = vperm.xlu0 %12209, %v6012_v36   ;;  %v6044_v36 = vld [vmem:[%s17979_s12 + $0x1e0] sm:$0xff] }
 0x6d6   :  { %18035 = vst [vmem:[#allocation37_spill] sm:$0xff] %v14319_v49  ;;  %v14328_v46 = vpop.f32.mrf.mxu0  ;;  %11549 = vmatmul.mubr.msk.bf16.gmra.mxu0 %vm1292_vm1, %v12338_v37  ;;  %v14344_v37 = vpop.permute.xlu1 %2575  ;;  %v12341_v19 = vld [vmem:[%s17975_s8 + $0x148] sm:$0xff]  }
 0x6d7   :  { %v3657_v35 = vpop.f32.mrf.mxu1  ;;  %11785 = vmatmul.mubr.msk.bf16.gmra.mxu1 %vm1292_vm1, %v12339_v15  ;;  %11552 = vmatprep.mubr.msk.bf16.mxu0 %vm12562_vm14, %v18017_v8  ;;  %18038 = vst [vmem:[#allocation40_spill] sm:$0xff] %v14344_v37  ;;  %v2676_v15 = vadd.f32 %v14048_v44, %v14098_v47  ;;  %v6013_v47 = vld [vmem:[%s17979_s12 + $0xe8] sm:$0xff] }
 0x6d8   :  { %v14337_v3 = vadd.f32 %v3657_v35, %v2675_v54  ;;  %v11454_v10 = vpop.f32.mrf.mxu0  ;;  %11788 = vmatprep.mubr.msk.bf16.mxu1 %vm12562_vm14, %v18017_v8  ;;  %6284 = vperm.xlu1 %12208, %v6031_v38   ;;  %v12340_v35 = vld [vmem:[%s17974_s7 + $0x178] sm:$0xff]   ;;  %v14353_v54 = vpop.permute.xlu0 %2390 }
 0x6d9   :  { %v11690_v1 = vpop.f32.mrf.mxu1  ;;  %6349 = vperm.xlu0 %12209, %v6044_v36  }
 0x6da   :  { %18037 = vst [vmem:[#allocation39_spill] sm:$0xff] %v14337_v3  ;;  %v14348_v53 = vpop.f32.mrf.mxu0  ;;  %v2677_v1 = vadd.f32 %v14006_v2, %v14120_v52  ;;  %v6045_v2 = vld [vmem:[%s17979_s12 + $0x1e8] sm:$0xff] }
 0x6db   :  { %v3660_v40 = vpop.f32.mrf.mxu1 }
 0x6dc   :  { %v14361_v10 = vadd.f32 %v3660_v40, %v2676_v15  ;;  %v11455_v44 = vpop.f32.mrf.mxu0  ;;  %6194 = vperm.xlu1 %12208, %v6013_v47   ;;  %v14374_v15 = vpop.permute.xlu1 %2395  ;;  %v6028_v40 = vld [vmem:[%s17979_s12 + $0x160] sm:$0xff] }
 0x6dd   :  { %v11691_v38 = vpop.f32.mrf.mxu1  ;;  %v14383_v52 = vpop.permute.xlu0 %2560  ;;  %6269 = vperm.xlu0 %12209, %v6028_v40   ;;  %v6010_v40 = vld [vmem:[%s17979_s12 + $0xd0] sm:$0xff] }
 0x6de   :  { %18039 = vst [vmem:[#allocation41_spill] sm:$0xff] %v14361_v10  ;;  %v14368_v3 = vpop.f32.mrf.mxu0  ;;  %11553 = vmatmul.mubr.msk.bf16.gmra.mxu0 %vm1292_vm1, %v12340_v35  ;;  %18041 = vst [vmem:[#allocation43_spill] sm:$0xff] %v14383_v52 }
 0x6df   :  { %v3665_v49 = vpop.f32.mrf.mxu1  ;;  %11789 = vmatmul.mubr.msk.bf16.gmra.mxu1 %vm1292_vm1, %v12341_v19  ;;  %11556 = vmatprep.mubr.msk.bf16.mxu0 %vm12562_vm14, %v18017_v8  ;;  %v2678_v19 = vadd.f32 %v14020_v58, %v14140_v21  ;;  %v6029_v58 = vld [vmem:[%s17979_s12 + $0x168] sm:$0xff] }
 0x6e0   :  { %v14379_v36 = vadd.f32 %v3665_v49, %v2677_v1  ;;  %v11458_v44 = vpop.f32.mrf.mxu0  ;;  %11792 = vmatprep.mubr.msk.bf16.mxu1 %vm12562_vm14, %v18017_v8  ;;  %6354 = vperm.xlu1 %12208, %v6045_v2   ;;  %v12342_v49 = vld [vmem:[%s17974_s7 + $0x180] sm:$0xff]   ;;  %v12343_v1 = vld [vmem:[%s17975_s8 + $0x150] sm:$0xff]  }
 0x6e1   :  { %v11694_v35 = vpop.f32.mrf.mxu1  ;;  %6179 = vperm.xlu0 %12209, %v6010_v40   ;;  %v14413_v45 = vpop.permute.xlu0 %2380 }
 0x6e2   :  { %18040 = vst [vmem:[#allocation42_spill] sm:$0xff] %v14379_v36  ;;  %v14390_v47 = vpop.f32.mrf.mxu0  ;;  %v14406_v35 = vpop.permute.xlu1 %2565  ;;  %v2679_v36 = vadd.f32 %v13985_v14, %v14160_v4  ;;  %v6011_v14 = vld [vmem:[%s17979_s12 + $0xd8] sm:$0xff] }
 0x6e3   :  { %v3668_v38 = vpop.f32.mrf.mxu1  ;;  %18043 = vst [vmem:[#allocation45_spill] sm:$0xff] %v14406_v35 }
 0x6e4   :  { %v14401_v44 = vadd.f32 %v3668_v38, %v2678_v19  ;;  %v11459_v2 = vpop.f32.mrf.mxu0  ;;  %6274 = vperm.xlu1 %12208, %v6029_v58   ;;  %v6042_v38 = vld [vmem:[%s17979_s12 + $0x1d0] sm:$0xff] }
 0x6e5   :  { %v11695_v21 = vpop.f32.mrf.mxu1  ;;  %6339 = vperm.xlu0 %12209, %v6042_v38   ;;  %v6026_v38 = vld [vmem:[%s17979_s12 + $0x150] sm:$0xff] }
 0x6e6   :  { %18042 = vst [vmem:[#allocation44_spill] sm:$0xff] %v14401_v44  ;;  %v14410_v10 = vpop.f32.mrf.mxu0  ;;  %11557 = vmatmul.mubr.msk.bf16.gmra.mxu0 %vm1292_vm1, %v12342_v49  ;;  %v2680_v49 = vadd.f32 %v14000_v55, %v14182_v20  ;;  %v12345_v21 = vld [vmem:[%s17975_s8 + $0x158] sm:$0xff]   ;;  %v14445_v20 = vpop.permute.xlu0 %2550 }
 0x6e7   :  { %v3673_v19 = vpop.f32.mrf.mxu1  ;;  %11793 = vmatmul.mubr.msk.bf16.gmra.mxu1 %vm1292_vm1, %v12343_v1  ;;  %11560 = vmatprep.mubr.msk.bf16.mxu0 %vm12562_vm14, %v18017_v8  ;;  %18046 = vst [vmem:[#allocation48_spill] sm:$0xff] %v14445_v20 }
 0x6e8   :  { %v14421_v40 = vadd.f32 %v3673_v19, %v2679_v36  ;;  %v11462_v2 = vpop.f32.mrf.mxu0  ;;  %11796 = vmatprep.mubr.msk.bf16.mxu1 %vm12562_vm14, %v18017_v8  ;;  %6184 = vperm.xlu1 %12208, %v6011_v14   ;;  %v12344_v36 = vld [vmem:[%s17974_s7 + $0x188] sm:$0xff]   ;;  %v14438_v19 = vpop.permute.xlu1 %2385  ;;  %v6043_v14 = vld [vmem:[%s17979_s12 + $0x1d8] sm:$0xff] }
 0x6e9   :  { %v11698_v4 = vpop.f32.mrf.mxu1  ;;  %6259 = vperm.xlu0 %12209, %v6026_v38  }
 0x6ea   :  { %18044 = vst [vmem:[#allocation46_spill] sm:$0xff] %v14421_v40  ;;  %v14430_v1 = vpop.f32.mrf.mxu0  ;;  %v2681_v40 = vadd.f32 %v13962_v61, %v14202_v7  ;;  %v6027_v61 = vld [vmem:[%s17979_s12 + $0x158] sm:$0xff] }
 0x6eb   :  { %v3676_v58 = vpop.f32.mrf.mxu1 }
 0x6ec   :  { %v14443_v2 = vadd.f32 %v3676_v58, %v2680_v49  ;;  %v11463_v55 = vpop.f32.mrf.mxu0  ;;  %6344 = vperm.xlu1 %12208, %v6043_v14   ;;  %v6008_v49 = vld [vmem:[%s17979_s12 + $0xc0] sm:$0xff] }
 0x6ed   :  { %v11699_v4 = vpop.f32.mrf.mxu1  ;;  %6169 = vperm.xlu0 %12209, %v6008_v49   ;;  %v6040_v49 = vld [vmem:[%s17979_s12 + $0x1c0] sm:$0xff] }
 0x6ee   :  { %18045 = vst [vmem:[#allocation47_spill] sm:$0xff] %v14443_v2  ;;  %v14452_v44 = vpop.f32.mrf.mxu0  ;;  %11561 = vmatmul.mubr.msk.bf16.gmra.mxu0 %vm1292_vm1, %v12344_v36  ;;  %v14468_v36 = vpop.permute.xlu1 %2555  ;;  %v12347_v4 = vld [vmem:[%s17975_s8 + $0x160] sm:$0xff]  }
 0x6ef   :  { %v3681_v60 = vpop.f32.mrf.mxu1  ;;  %11797 = vmatmul.mubr.msk.bf16.gmra.mxu1 %vm1292_vm1, %v12345_v21  ;;  %11564 = vmatprep.mubr.msk.bf16.mxu0 %vm12562_vm14, %v18017_v8  ;;  %18048 = vst [vmem:[#allocation50_spill] sm:$0xff] %v14468_v36  ;;  %v2682_v21 = vadd.f32 %v13976_v32, %v14222_v6  ;;  %v6009_v6 = vld [vmem:[%s17979_s12 + $0xc8] sm:$0xff] }
 0x6f0   :  { %v14461_v58 = vadd.f32 %v3681_v60, %v2681_v40  ;;  %v11466_v38 = vpop.f32.mrf.mxu0  ;;  %11800 = vmatprep.mubr.msk.bf16.mxu1 %vm12562_vm14, %v18017_v8  ;;  %6264 = vperm.xlu1 %12208, %v6027_v61   ;;  %v12346_v60 = vld [vmem:[%s17974_s7 + $0x190] sm:$0xff]   ;;  %v14477_v40 = vpop.permute.xlu0 %2370 }
 0x6f1   :  { %v11702_v7 = vpop.f32.mrf.mxu1  ;;  %6329 = vperm.xlu0 %12209, %v6040_v49  }
 0x6f2   :  { %18047 = vst [vmem:[#allocation49_spill] sm:$0xff] %v14461_v58  ;;  %v14472_v55 = vpop.f32.mrf.mxu0  ;;  %v2683_v7 = vadd.f32 %v13939_v30, %v14244_v13  ;;  %v6041_v13 = vld [vmem:[%s17979_s12 + $0x1c8] sm:$0xff] }
 0x6f3   :  { %v3684_v14 = vpop.f32.mrf.mxu1 }
 0x6f4   :  { %v14485_v38 = vadd.f32 %v3684_v14, %v2682_v21  ;;  %v11467_v32 = vpop.f32.mrf.mxu0  ;;  %6174 = vperm.xlu1 %12208, %v6009_v6   ;;  %v14498_v21 = vpop.permute.xlu1 %2375  ;;  %v6024_v14 = vld [vmem:[%s17979_s12 + $0x140] sm:$0xff] }
 0x6f5   :  { %v11703_v61 = vpop.f32.mrf.mxu1  ;;  %v14507_v30 = vpop.permute.xlu0 %2540  ;;  %6249 = vperm.xlu0 %12209, %v6024_v14   ;;  %v6006_v14 = vld [vmem:[%s17979_s12 + $0xb0] sm:$0xff] }
 0x6f6   :  { %18049 = vst [vmem:[#allocation51_spill] sm:$0xff] %v14485_v38  ;;  %v14492_v58 = vpop.f32.mrf.mxu0  ;;  %11565 = vmatmul.mubr.msk.bf16.gmra.mxu0 %vm1292_vm1, %v12346_v60 }
 0x6f7   :  { %v3689_v2 = vpop.f32.mrf.mxu1  ;;  %11801 = vmatmul.mubr.msk.bf16.gmra.mxu1 %vm1292_vm1, %v12347_v4  ;;  %11568 = vmatprep.mubr.msk.bf16.mxu0 %vm12562_vm14, %v18017_v8  ;;  %v2684_v4 = vadd.f32 %v13958_v63, %v14266_v28  ;;  %v6025_v63 = vld [vmem:[%s17979_s12 + $0x148] sm:$0xff] }
 0x6f8   :  { %v14503_v49 = vadd.f32 %v3689_v2, %v2683_v7  ;;  %v11470_v32 = vpop.f32.mrf.mxu0  ;;  %11804 = vmatprep.mubr.msk.bf16.mxu1 %vm12562_vm14, %v18017_v8  ;;  %6334 = vperm.xlu1 %12208, %v6041_v13   ;;  %v12348_v2 = vld [vmem:[%s17974_s7 + $0x198] sm:$0xff]   ;;  %v12349_v7 = vld [vmem:[%s17975_s8 + $0x168] sm:$0xff]  }
 0x6f9   :  { %v11706_v60 = vpop.f32.mrf.mxu1  ;;  %6159 = vperm.xlu0 %12209, %v6006_v14   ;;  %v14537_v37 = vpop.permute.xlu0 %2360 }
 0x6fa   :  { %18050 = vst [vmem:[#allocation52_spill] sm:$0xff] %v14503_v49  ;;  %v14514_v6 = vpop.f32.mrf.mxu0  ;;  %v14530_v60 = vpop.permute.xlu1 %2545  ;;  %v2685_v49 = vadd.f32 %v13918_v0, %v14286_v11  ;;  %v6007_v0 = vld [vmem:[%s17979_s12 + $0xb8] sm:$0xff] }
 0x6fb   :  { %v3692_v61 = vpop.f32.mrf.mxu1 }
 0x6fc   :  { %v14525_v32 = vadd.f32 %v3692_v61, %v2684_v4  ;;  %v11471_v13 = vpop.f32.mrf.mxu0  ;;  %6254 = vperm.xlu1 %12208, %v6025_v63   ;;  %v6038_v61 = vld [vmem:[%s17979_s12 + $0x1b0] sm:$0xff] }
 0x6fd   :  { %v11707_v28 = vpop.f32.mrf.mxu1  ;;  %6319 = vperm.xlu0 %12209, %v6038_v61   ;;  %v6022_v61 = vld [vmem:[%s17979_s12 + $0x130] sm:$0xff] }
 0x6fe   :  { %18051 = vst [vmem:[#allocation53_spill] sm:$0xff] %v14525_v32  ;;  %v14534_v38 = vpop.f32.mrf.mxu0  ;;  %11569 = vmatmul.mubr.msk.bf16.gmra.mxu0 %vm1292_vm1, %v12348_v2  ;;  %v2686_v2 = vadd.f32 %v13932_v62, %v14306_v59  ;;  %v12351_v28 = vld [vmem:[%s17975_s8 + $0x170] sm:$0xff]   ;;  %v14569_v59 = vpop.permute.xlu0 %2530 }
 0x6ff   :  { %v3697_v4 = vpop.f32.mrf.mxu1  ;;  %11805 = vmatmul.mubr.msk.bf16.gmra.mxu1 %vm1292_vm1, %v12349_v7  ;;  %11572 = vmatprep.mubr.msk.bf16.mxu0 %vm12562_vm14, %v18017_v8 }
 0x700   :  { %v14545_v14 = vadd.f32 %v3697_v4, %v2685_v49  ;;  %v11474_v13 = vpop.f32.mrf.mxu0  ;;  %11808 = vmatprep.mubr.msk.bf16.mxu1 %vm12562_vm14, %v18017_v8  ;;  %6164 = vperm.xlu1 %12208, %v6007_v0   ;;  %v12350_v49 = vld [vmem:[%s17974_s7 + $0x1a0] sm:$0xff]   ;;  %v14562_v4 = vpop.permute.xlu1 %2365  ;;  %v6039_v0 = vld [vmem:[%s17979_s12 + $0x1b8] sm:$0xff] }
 0x701   :  { %v11710_v11 = vpop.f32.mrf.mxu1  ;;  %6239 = vperm.xlu0 %12209, %v6022_v61  }
 0x702   :  { %18052 = vst [vmem:[#allocation54_spill] sm:$0xff] %v14545_v14  ;;  %v14554_v7 = vpop.f32.mrf.mxu0  ;;  %v2687_v14 = vadd.f32 %v13897_v41, %v14328_v46  ;;  %v6023_v41 = vld [vmem:[%s17979_s12 + $0x138] sm:$0xff] }
 0x703   :  { %v3700_v63 = vpop.f32.mrf.mxu1 }
 0x704   :  { %v14567_v13 = vadd.f32 %v3700_v63, %v2686_v2  ;;  %v11475_v62 = vpop.f32.mrf.mxu0  ;;  %6324 = vperm.xlu1 %12208, %v6039_v0   ;;  %v6004_v2 = vld [vmem:[%s17979_s12 + $0xa0] sm:$0xff] }
 0x705   :  { %v11711_v11 = vpop.f32.mrf.mxu1  ;;  %6149 = vperm.xlu0 %12209, %v6004_v2   ;;  %v6036_v2 = vld [vmem:[%s17979_s12 + $0x1a0] sm:$0xff] }
 0x706   :  { %18053 = vst [vmem:[#allocation55_spill] sm:$0xff] %v14567_v13  ;;  %v14576_v32 = vpop.f32.mrf.mxu0  ;;  %11573 = vmatmul.mubr.msk.bf16.gmra.mxu0 %vm1292_vm1, %v12350_v49  ;;  %v14592_v49 = vpop.permute.xlu1 %2535  ;;  %v12353_v11 = vld [vmem:[%s17975_s8 + $0x178] sm:$0xff]  }
 0x707   :  { %v3705_v50 = vpop.f32.mrf.mxu1  ;;  %11809 = vmatmul.mubr.msk.bf16.gmra.mxu1 %vm1292_vm1, %v12351_v28  ;;  %11576 = vmatprep.mubr.msk.bf16.mxu0 %vm12562_vm14, %v18017_v8  ;;  %v2688_v28 = vadd.f32 %v13912_v5, %v14348_v53  ;;  %v6005_v53 = vld [vmem:[%s17979_s12 + $0xa8] sm:$0xff] }
 0x708   :  { %v14585_v63 = vadd.f32 %v3705_v50, %v2687_v14  ;;  %v11478_v61 = vpop.f32.mrf.mxu0  ;;  %11812 = vmatprep.mubr.msk.bf16.mxu1 %vm12562_vm14, %v18017_v8  ;;  %6244 = vperm.xlu1 %12208, %v6023_v41   ;;  %v12352_v50 = vld [vmem:[%s17974_s7 + $0x1a8] sm:$0xff]   ;;  %v14601_v14 = vpop.permute.xlu0 %2350 }
 0x709   :  { %v11714_v46 = vpop.f32.mrf.mxu1  ;;  %6309 = vperm.xlu0 %12209, %v6036_v2  }
 0x70a   :  { %18054 = vst [vmem:[#allocation56_spill] sm:$0xff] %v14585_v63  ;;  %v14596_v62 = vpop.f32.mrf.mxu0  ;;  %v2689_v46 = vadd.f32 %v13869_v56, %v14368_v3  ;;  %v6037_v3 = vld [vmem:[%s17979_s12 + $0x1a8] sm:$0xff] }
 0x70b   :  { %v3708_v0 = vpop.f32.mrf.mxu1 }
 0x70c   :  { %v14609_v61 = vadd.f32 %v3708_v0, %v2688_v28  ;;  %v11479_v5 = vpop.f32.mrf.mxu0  ;;  %6154 = vperm.xlu1 %12208, %v6005_v53   ;;  %v14622_v28 = vpop.permute.xlu1 %2355  ;;  %v6020_v0 = vld [vmem:[%s17979_s12 + $0x120] sm:$0xff] }
 0x70d   :  { %v11715_v41 = vpop.f32.mrf.mxu1  ;;  %v14631_v56 = vpop.permute.xlu0 %2520  ;;  %6229 = vperm.xlu0 %12209, %v6020_v0   ;;  %v6002_v0 = vld [vmem:[%s17979_s12 + $0x90] sm:$0xff] }
 0x70e   :  { %18055 = vst [vmem:[#allocation57_spill] sm:$0xff] %v14609_v61  ;;  %v14616_v63 = vpop.f32.mrf.mxu0  ;;  %11577 = vmatmul.mubr.msk.bf16.gmra.mxu0 %vm1292_vm1, %v12352_v50 }
 0x70f   :  { %v3713_v13 = vpop.f32.mrf.mxu1  ;;  %11813 = vmatmul.mubr.msk.bf16.gmra.mxu1 %vm1292_vm1, %v12353_v11  ;;  %11580 = vmatprep.mubr.msk.bf16.mxu0 %vm12562_vm14, %v18017_v8  ;;  %v2690_v11 = vadd.f32 %v13888_v39, %v14390_v47  ;;  %v6021_v39 = vld [vmem:[%s17979_s12 + $0x128] sm:$0xff] }
 0x710   :  { %v14627_v2 = vadd.f32 %v3713_v13, %v2689_v46  ;;  %v11482_v5 = vpop.f32.mrf.mxu0  ;;  %11816 = vmatprep.mubr.msk.bf16.mxu1 %vm12562_vm14, %v18017_v8  ;;  %6314 = vperm.xlu1 %12208, %v6037_v3   ;;  %v12354_v13 = vld [vmem:[%s17974_s7 + $0x1b0] sm:$0xff]   ;;  %v12355_v46 = vld [vmem:[%s17975_s8 + $0x180] sm:$0xff]  }
 0x711   :  { %v11718_v50 = vpop.f32.mrf.mxu1  ;;  %6139 = vperm.xlu0 %12209, %v6002_v0   ;;  %v14661_v35 = vpop.permute.xlu0 %2340 }
 0x712   :  { %18056 = vst [vmem:[#allocation58_spill] sm:$0xff] %v14627_v2  ;;  %v14638_v53 = vpop.f32.mrf.mxu0  ;;  %v14654_v50 = vpop.permute.xlu1 %2525  ;;  %v2691_v2 = vadd.f32 %v14237_v26, %v14410_v10  ;;  %v6003_v26 = vld [vmem:[%s17979_s12 + $0x98] sm:$0xff] }
 0x713   :  { %v3716_v41 = vpop.f32.mrf.mxu1 }
 0x714   :  { %v14649_v5 = vadd.f32 %v3716_v41, %v2690_v11  ;;  %v11483_v3 = vpop.f32.mrf.mxu0  ;;  %6234 = vperm.xlu1 %12208, %v6021_v39   ;;  %v6034_v41 = vld [vmem:[%s17979_s12 + $0x190] sm:$0xff] }
 0x715   :  { %v11719_v47 = vpop.f32.mrf.mxu1  ;;  %6299 = vperm.xlu0 %12209, %v6034_v41   ;;  %v14683_v39 = vpop.permute.xlu0 %2510 }
 0x716   :  { %18057 = vst [vmem:[#allocation59_spill] sm:$0xff] %v14649_v5  ;;  %v14658_v61 = vpop.f32.mrf.mxu0  ;;  %11581 = vmatmul.mubr.msk.bf16.gmra.mxu0 %vm1292_vm1, %v12354_v13  ;;  %v2692_v13 = vadd.f32 %v14262_v42, %v14430_v1  ;;  %v14688_v41 = vpop.permute.xlu1 %2345 }
 0x717   :  { %v3721_v11 = vpop.f32.mrf.mxu1  ;;  %11817 = vmatmul.mubr.msk.bf16.gmra.mxu1 %vm1292_vm1, %v12355_v46  ;;  %11584 = vmatprep.mubr.msk.bf16.mxu0 %vm12562_vm14, %v18017_v8 }
 0x718   :  { %v14669_v0 = vadd.f32 %v3721_v11, %v2691_v2  ;;  %v11486_v3 = vpop.f32.mrf.mxu0  ;;  %11820 = vmatprep.mubr.msk.bf16.mxu1 %vm12562_vm14, %v18017_v8  ;;  %6144 = vperm.xlu1 %12208, %v6003_v26   ;;  %v12356_v2 = vld [vmem:[%s17974_s7 + $0x1b8] sm:$0xff]   ;;  %v12357_v11 = vld [vmem:[%s17975_s8 + $0x188] sm:$0xff]  }
 0x719   :  { %v11722_v10 = vpop.f32.mrf.mxu1  ;;  %v6018_v3 = vld [vmem:[%s17979_s12 + $0x110] sm:$0xff]  ;;  %v6035_v26 = vld [vmem:[%s17979_s12 + $0x198] sm:$0xff] }
 0x71a   :  { %18058 = vst [vmem:[#allocation60_spill] sm:$0xff] %v14669_v0  ;;  %v14678_v46 = vpop.f32.mrf.mxu0  ;;  %6219 = vperm.xlu0 %12209, %v6018_v3   ;;  %v2693_v0 = vadd.f32 %v14205_v24, %v14452_v44  ;;  %v14713_v24 = vpop.permute.xlu0 %2490  ;;  %v6019_v44 = vld [vmem:[%s17979_s12 + $0x118] sm:$0xff] }
 0x71b   :  { %v3724_v47 = vpop.f32.mrf.mxu1 }
 0x71c   :  { %v14693_v42 = vadd.f32 %v3724_v47, %v2692_v13  ;;  %v11487_v1 = vpop.f32.mrf.mxu0  ;;  %6304 = vperm.xlu1 %12208, %v6035_v26   ;;  %v6000_v13 = vld [vmem:[%s17979_s12 + $0x80] sm:$0xff] }
 0x71d   :  { %v11723_v10 = vpop.f32.mrf.mxu1  ;;  %v2694_v1 = vadd.f32 %v14230_v16, %v14472_v55  ;;  %v6001_v16 = vld [vmem:[%s17979_s12 + $0x88] sm:$0xff] }
 0x71e   :  { %18059 = vst [vmem:[#allocation61_spill] sm:$0xff] %v14693_v42  ;;  %v14700_v5 = vpop.f32.mrf.mxu0  ;;  %11585 = vmatmul.mubr.msk.bf16.gmra.mxu0 %vm1292_vm1, %v12356_v2  ;;  %6129 = vperm.xlu0 %12209, %v6000_v13   ;;  %v12359_v10 = vld [vmem:[%s17975_s8 + $0x190] sm:$0xff]   ;;  %v6032_v13 = vld [vmem:[%s17979_s12 + $0x180] sm:$0xff]  ;;  %v14743_v42 = vpop.permute.xlu0 %2500 }
 0x71f   :  { %v3729_v52 = vpop.f32.mrf.mxu1  ;;  %11821 = vmatmul.mubr.msk.bf16.gmra.mxu1 %vm1292_vm1, %v12357_v11  ;;  %11588 = vmatprep.mubr.msk.bf16.mxu0 %vm12562_vm14, %v18017_v8  ;;  %v14718_v11 = vpop.permute.xlu1 %2515 }
 0x720   :  { %v14709_v47 = vadd.f32 %v3729_v52, %v2693_v0  ;;  %v11490_v3 = vpop.f32.mrf.mxu0  ;;  %11824 = vmatprep.mubr.msk.bf16.mxu1 %vm12562_vm14, %v18017_v8  ;;  %6224 = vperm.xlu1 %12208, %v6019_v44   ;;  %v12358_v0 = vld [vmem:[%s17974_s7 + $0x1c0] sm:$0xff]  }
 0x721   :  { %v11726_v2 = vpop.f32.mrf.mxu1 }
 0x722   :  { %18060 = vst [vmem:[#allocation62_spill] sm:$0xff] %v14709_v47  ;;  %v14722_v52 = vpop.f32.mrf.mxu0  ;;  %6289 = vperm.xlu0 %12209, %v6032_v13   ;;  %v2695_v2 = vadd.f32 %v14175_v29, %v14492_v58  ;;  %v6033_v58 = vld [vmem:[%s17979_s12 + $0x188] sm:$0xff] }
 0x723   :  { %v3732_v26 = vpop.f32.mrf.mxu1 }
 0x724   :  { %v14733_v3 = vadd.f32 %v3732_v26, %v2694_v1  ;;  %v11491_v44 = vpop.f32.mrf.mxu0  ;;  %6134 = vperm.xlu1 %12208, %v6001_v16   ;;  %v14748_v1 = vpop.permute.xlu1 %2495  ;;  %v6016_v26 = vld [vmem:[%s17979_s12 + $0x100] sm:$0xff] }
 0x725   :  { %v11727_v55 = vpop.f32.mrf.mxu1 }
 0x726   :  { %18061 = vst [vmem:[#allocation63_spill] sm:$0xff] %v14733_v3  ;;  %v14740_v47 = vpop.f32.mrf.mxu0  ;;  %11589 = vmatmul.mubr.msk.bf16.gmra.mxu0 %vm1292_vm1, %v12358_v0  ;;  %6209 = vperm.xlu0 %12209, %v6016_v26   ;;  %v12361_v55 = vld [vmem:[%s17975_s8 + $0x198] sm:$0xff]  }
 0x727   :  { %v3737_v36 = vpop.f32.mrf.mxu1  ;;  %11825 = vmatmul.mubr.msk.bf16.gmra.mxu1 %vm1292_vm1, %v12359_v10  ;;  %11592 = vmatprep.mubr.msk.bf16.mxu0 %vm12562_vm14, %v18017_v8  ;;  %v2696_v10 = vadd.f32 %v14198_v22, %v14514_v6  ;;  %v6017_v22 = vld [vmem:[%s17979_s12 + $0x108] sm:$0xff] }
 0x728   :  { %v14753_v13 = vadd.f32 %v3737_v36, %v2695_v2  ;;  %v11494_v29 = vpop.f32.mrf.mxu0  ;;  %11828 = vmatprep.mubr.msk.bf16.mxu1 %vm12562_vm14, %v18017_v8  ;;  %6294 = vperm.xlu1 %12208, %v6033_v58   ;;  %v12360_v36 = vld [vmem:[%s17974_s7 + $0x1c8] sm:$0xff]   ;;  %v8996_v2 = vld [vmem:[%s17981_s14] sm:$0xff]  ;;  %v14775_v58 = vpop.permute.xlu0 %2480 }
 0x729   :  { %v11730_v0 = vpop.f32.mrf.mxu1 }
 0x72a   :  { %18062 = vst [vmem:[#allocation64_spill] sm:$0xff] %v14753_v13  ;;  %v14762_v44 = vpop.f32.mrf.mxu0  ;;  %9023 = vperm.xlu0 %12209, %v8996_v2   ;;  %v14780_v0 = vpop.permute.xlu1 %2505  ;;  %v2697_v13 = vadd.f32 %v14145_v9, %v14534_v38  ;;  %v8997_v9 = vld [vmem:[%s17981_s14 + $0x8] sm:$0xff] }
 0x72b   :  { %v3740_v16 = vpop.f32.mrf.mxu1 }
 0x72c   :  { %v14773_v26 = vadd.f32 %v3740_v16, %v2696_v10  ;;  %v11495_v29 = vpop.f32.mrf.mxu0  ;;  %6214 = vperm.xlu1 %12208, %v6017_v22   ;;  %v8998_v16 = vld [vmem:[%s17981_s14 + $0x10] sm:$0xff]  ;;  %v14807_v22 = vpop.permute.xlu0 %2640 }
 0x72d   :  { %v11731_v6 = vpop.f32.mrf.mxu1  ;;  %18065 = vst [vmem:[#allocation67_spill] sm:$0xff] %v14807_v22 }
 0x72e   :  { %18063 = vst [vmem:[#allocation65_spill] sm:$0xff] %v14773_v26  ;;  %v14784_v3 = vpop.f32.mrf.mxu0  ;;  %11593 = vmatmul.mubr.msk.bf16.gmra.mxu0 %vm1292_vm1, %v12360_v36  ;;  %9033 = vperm.xlu0 %12209, %v8998_v16   ;;  %v2698_v36 = vadd.f32 %v14166_v51, %v14554_v7  ;;  %v14812_v16 = vpop.permute.xlu1 %2485 }
 0x72f   :  { %v3745_v10 = vpop.f32.mrf.mxu1  ;;  %11829 = vmatmul.mubr.msk.bf16.gmra.mxu1 %vm1292_vm1, %v12361_v55  ;;  %11596 = vmatprep.mubr.msk.bf16.mxu0 %vm12562_vm14, %v18017_v8 }
 0x730   :  { %v14793_v2 = vadd.f32 %v3745_v10, %v2697_v13  ;;  %v11498_v29 = vpop.f32.mrf.mxu0  ;;  %11832 = vmatprep.mubr.msk.bf16.mxu1 %vm12562_vm14, %v18017_v8  ;;  %9028 = vperm.xlu1 %12208, %v8997_v9   ;;  %v12362_v13 = vld [vmem:[%s17974_s7 + $0x1d0] sm:$0xff]   ;;  %v12363_v10 = vld [vmem:[%s17975_s8 + $0x1a0] sm:$0xff]   ;;  %v8999_v9 = vld [vmem:[%s17981_s14 + $0x18] sm:$0xff] }
 0x731   :  { %v11734_v38 = vpop.f32.mrf.mxu1  ;;  %v9000_v29 = vld [vmem:[%s17981_s14 + $0x20] sm:$0xff] }
 0x732   :  { %18064 = vst [vmem:[#allocation66_spill] sm:$0xff] %v14793_v2  ;;  %v14802_v55 = vpop.f32.mrf.mxu0  ;;  %9043 = vperm.xlu0 %12209, %v9000_v29   ;;  %v2699_v2 = vadd.f32 %v14113_v34, %v14576_v32  ;;  %v14837_v34 = vpop.permute.xlu0 %2475  ;;  %v9001_v32 = vld [vmem:[%s17981_s14 + $0x28] sm:$0xff] }
 0x733   :  { %v3748_v6 = vpop.f32.mrf.mxu1 }
 0x734   :  { %v14817_v51 = vadd.f32 %v3748_v6, %v2698_v36  ;;  %v11499_v7 = vpop.f32.mrf.mxu0  ;;  %9038 = vperm.xlu1 %12208, %v8999_v9   ;;  %v9002_v36 = vld [vmem:[%s17981_s14 + $0x30] sm:$0xff] }
 0x735   :  { %v11735_v38 = vpop.f32.mrf.mxu1  ;;  %v2700_v7 = vadd.f32 %v14136_v43, %v14596_v62  ;;  %v9003_v43 = vld [vmem:[%s17981_s14 + $0x38] sm:$0xff] }
 0x736   :  { %18066 = vst [vmem:[#allocation68_spill] sm:$0xff] %v14817_v51  ;;  %v14824_v26 = vpop.f32.mrf.mxu0  ;;  %11597 = vmatmul.mubr.msk.bf16.gmra.mxu0 %vm1292_vm1, %v12362_v13  ;;  %9053 = vperm.xlu0 %12209, %v9002_v36   ;;  %v12365_v38 = vld [vmem:[%s17975_s8 + $0x1a8] sm:$0xff]   ;;  %v9004_v36 = vld [vmem:[%s17981_s14 + $0x40] sm:$0xff]  ;;  %v14867_v51 = vpop.permute.xlu0 %2635 }
 0x737   :  { %v3753_v22 = vpop.f32.mrf.mxu1  ;;  %11833 = vmatmul.mubr.msk.bf16.gmra.mxu1 %vm1292_vm1, %v12363_v10  ;;  %11600 = vmatprep.mubr.msk.bf16.mxu0 %vm12562_vm14, %v18017_v8  ;;  %v14842_v10 = vpop.permute.xlu1 %2470  ;;  %18069 = vst [vmem:[#allocation71_spill] sm:$0xff] %v14867_v51 }
 0x738   :  { %v14833_v6 = vadd.f32 %v3753_v22, %v2699_v2  ;;  %v11502_v29 = vpop.f32.mrf.mxu0  ;;  %11836 = vmatprep.mubr.msk.bf16.mxu1 %vm12562_vm14, %v18017_v8  ;;  %9048 = vperm.xlu1 %12208, %v9001_v32   ;;  %v12364_v22 = vld [vmem:[%s17974_s7 + $0x1d8] sm:$0xff]  }
 0x739   :  { %v11738_v13 = vpop.f32.mrf.mxu1 }
 0x73a   :  { %18067 = vst [vmem:[#allocation69_spill] sm:$0xff] %v14833_v6  ;;  %v14846_v2 = vpop.f32.mrf.mxu0  ;;  %9063 = vperm.xlu0 %12209, %v9004_v36   ;;  %v2701_v13 = vadd.f32 %v14087_v48, %v14616_v63  ;;  %v9005_v63 = vld [vmem:[%s17981_s14 + $0x48] sm:$0xff] }
 0x73b   :  { %v3756_v9 = vpop.f32.mrf.mxu1 }
 0x73c   :  { %v14857_v29 = vadd.f32 %v3756_v9, %v2700_v7  ;;  %v11503_v32 = vpop.f32.mrf.mxu0  ;;  %9058 = vperm.xlu1 %12208, %v9003_v43   ;;  %v14870_v7 = vpop.permute.xlu1 %2630  ;;  %v9006_v9 = vld [vmem:[%s17981_s14 + $0x50] sm:$0xff] }
 0x73d   :  { %v11739_v62 = vpop.f32.mrf.mxu1  ;;  %18070 = vst [vmem:[#allocation72_spill] sm:$0xff] %v14870_v7 }
 0x73e   :  { %18068 = vst [vmem:[#allocation70_spill] sm:$0xff] %v14857_v29  ;;  %v14864_v6 = vpop.f32.mrf.mxu0  ;;  %11601 = vmatmul.mubr.msk.bf16.gmra.mxu0 %vm1292_vm1, %v12364_v22  ;;  %9073 = vperm.xlu0 %12209, %v9006_v9   ;;  %v12367_v62 = vld [vmem:[%s17975_s8 + $0x1b0] sm:$0xff]  }
 0x73f   :  { %v3761_v20 = vpop.f32.mrf.mxu1  ;;  %11837 = vmatmul.mubr.msk.bf16.gmra.mxu1 %vm1292_vm1, %v12365_v38  ;;  %11604 = vmatprep.mubr.msk.bf16.mxu0 %vm12562_vm14, %v18017_v8  ;;  %v2702_v38 = vadd.f32 %v14106_v12, %v14638_v53  ;;  %v9007_v12 = vld [vmem:[%s17981_s14 + $0x58] sm:$0xff] }
 0x740   :  { %v14877_v36 = vadd.f32 %v3761_v20, %v2701_v13  ;;  %v11506_v48 = vpop.f32.mrf.mxu0  ;;  %11840 = vmatprep.mubr.msk.bf16.mxu1 %vm12562_vm14, %v18017_v8  ;;  %9068 = vperm.xlu1 %12208, %v9005_v63   ;;  %v12366_v20 = vld [vmem:[%s17974_s7 + $0x1e0] sm:$0xff]   ;;  %v14899_v63 = vpop.permute.xlu0 %2465 }
 0x741   :  { %v11742_v22 = vpop.f32.mrf.mxu1  ;;  %v9008_v13 = vld [vmem:[%s17981_s14 + $0x60] sm:$0xff] }
 0x742   :  { %18071 = vst [vmem:[#allocation73_spill] sm:$0xff] %v14877_v36  ;;  %v14886_v32 = vpop.f32.mrf.mxu0  ;;  %9083 = vperm.xlu0 %12209, %v9008_v13   ;;  %v14904_v22 = vpop.permute.xlu1 %2460  ;;  %v2703_v36 = vadd.f32 %v14066_v27, %v14658_v61  ;;  %v9009_v27 = vld [vmem:[%s17981_s14 + $0x68] sm:$0xff] }
 0x743   :  { %v3764_v43 = vpop.f32.mrf.mxu1 }
 0x744   :  { %v14897_v9 = vadd.f32 %v3764_v43, %v2702_v38  ;;  %v11507_v48 = vpop.f32.mrf.mxu0  ;;  %9078 = vperm.xlu1 %12208, %v9007_v12   ;;  %v9010_v43 = vld [vmem:[%s17981_s14 + $0x70] sm:$0xff]  ;;  %v14928_v12 = vpop.permute.xlu0 %2625 }
 0x745   :  { %v11743_v53 = vpop.f32.mrf.mxu1  ;;  %18074 = vst [vmem:[#allocation76_spill] sm:$0xff] %v14928_v12 }
 0x746   :  { %18072 = vst [vmem:[#allocation74_spill] sm:$0xff] %v14897_v9  ;;  %v14908_v29 = vpop.f32.mrf.mxu0  ;;  %11605 = vmatmul.mubr.msk.bf16.gmra.mxu0 %vm1292_vm1, %v12366_v20  ;;  %9093 = vperm.xlu0 %12209, %v9010_v43   ;;  %v2704_v20 = vadd.f32 %v14080_v17, %v14678_v46  ;;  %v14933_v53 = vpop.permute.xlu1 %2620  ;;  %v12369_v43 = vld [vmem:[%s17975_s8 + $0x1b8] sm:$0xff]  }
 0x747   :  { %v3769_v38 = vpop.f32.mrf.mxu1  ;;  %11841 = vmatmul.mubr.msk.bf16.gmra.mxu1 %vm1292_vm1, %v12367_v62  ;;  %11608 = vmatprep.mubr.msk.bf16.mxu0 %vm12562_vm14, %v18017_v8 }
 0x748   :  { %v14917_v13 = vadd.f32 %v3769_v38, %v2703_v36  ;;  %v11510_v48 = vpop.f32.mrf.mxu0  ;;  %11844 = vmatprep.mubr.msk.bf16.mxu1 %vm12562_vm14, %v18017_v8  ;;  %9088 = vperm.xlu1 %12208, %v9009_v27   ;;  %v12368_v36 = vld [vmem:[%s17974_s7 + $0x1e8] sm:$0xff]   ;;  %v9011_v27 = vld [vmem:[%s17981_s14 + $0x78] sm:$0xff] }
 0x749   :  { %v11746_v61 = vpop.f32.mrf.mxu1  ;;  %v9012_v48 = vld [vmem:[%s17981_s14 + $0x80] sm:$0xff] }
 0x74a   :  { %18073 = vst [vmem:[#allocation75_spill] sm:$0xff] %v14917_v13  ;;  %v14926_v62 = vpop.f32.mrf.mxu0  ;;  %9103 = vperm.xlu0 %12209, %v9012_v48   ;;  %v2705_v13 = vadd.f32 %v14043_v23, %v14700_v5  ;;  %v9013_v23 = vld [vmem:[%s17981_s14 + $0x88] sm:$0xff]  ;;  %v14966_v5 = vpop.permute.xlu1 %2450 }
 0x74b   :  { %v3772_v38 = vpop.f32.mrf.mxu1 }
 0x74c   :  { %v14941_v17 = vadd.f32 %v3772_v38, %v2704_v20  ;;  %v11511_v46 = vpop.f32.mrf.mxu0  ;;  %9098 = vperm.xlu1 %12208, %v9011_v27   ;;  %v9014_v20 = vld [vmem:[%s17981_s14 + $0x90] sm:$0xff] }
 0x74d   :  { %v11747_v61 = vpop.f32.mrf.mxu1  ;;  %v14959_v46 = vpop.permute.xlu0 %2455 }
 0x74e   :  { %18075 = vst [vmem:[#allocation77_spill] sm:$0xff] %v14941_v17  ;;  %v14948_v9 = vpop.f32.mrf.mxu0  ;;  %11609 = vmatmul.mubr.msk.bf16.gmra.mxu0 %vm1292_vm1, %v12368_v36  ;;  %9113 = vperm.xlu0 %12209, %v9014_v20   ;;  %v12371_v61 = vld [vmem:[%s17975_s8 + $0x1c0] sm:$0xff]   ;;  %v14993_v7 = vpop.permute.xlu1 %2610 }
 0x74f   :  { %v3777_v51 = vpop.f32.mrf.mxu1  ;;  %11845 = vmatmul.mubr.msk.bf16.gmra.mxu1 %vm1292_vm1, %v12369_v43  ;;  %11612 = vmatprep.mubr.msk.bf16.mxu0 %vm12562_vm14, %v18017_v8  ;;  %v2706_v43 = vadd.f32 %v14060_v33, %v14722_v52  ;;  %v9016_v20 = vld [vmem:[%s17981_s14 + $0xa0] sm:$0xff]  ;;  %v9015_v33 = vld [vmem:[%s17981_s14 + $0x98] sm:$0xff] }
 0x750   :  { %v14957_v38 = vadd.f32 %v3777_v51, %v2705_v13  ;;  %v11514_v48 = vpop.f32.mrf.mxu0  ;;  %11848 = vmatprep.mubr.msk.bf16.mxu1 %vm12562_vm14, %v18017_v8  ;;  %9108 = vperm.xlu1 %12208, %v9013_v23   ;;  %v12370_v13 = vld [vmem:[%s17974_s7 + $0x1f0] ss:$0 sps:$4 sm:$0xff]  }
 0x751   :  { %v11750_v36 = vpop.f32.mrf.mxu1 }
 0x752   :  { %18076 = vst [vmem:[#allocation78_spill] sm:$0xff] %v14957_v38  ;;  %v14970_v51 = vpop.f32.mrf.mxu0  ;;  %9123 = vperm.xlu0 %12209, %v9016_v20   ;;  %v2707_v36 = vadd.f32 %v14661_v35, %v14740_v47  ;;  %v14988_v38 = vpop.permute.xlu0 %2615  ;;  %v9017_v47 = vld [vmem:[%s17981_s14 + $0xa8] sm:$0xff] }
 0x753   :  { %v3780_v27 = vpop.f32.mrf.mxu1 }
 0x754   :  { %v14981_v48 = vadd.f32 %v3780_v27, %v2706_v43  ;;  %v11515_v23 = vpop.f32.mrf.mxu0  ;;  %9118 = vperm.xlu1 %12208, %v9015_v33   ;;  %v9018_v27 = vld [vmem:[%s17981_s14 + $0xb0] sm:$0xff]  ;;  %v12372_v33 = vld [vmem:[%s17976_s9] sm:$0xff]  }
 0x755   :  { %v11751_v52 = vpop.f32.mrf.mxu1 }
 0x756   :  { %18077 = vst [vmem:[#allocation79_spill] sm:$0xff] %v14981_v48  ;;  %v14990_v17 = vpop.f32.mrf.mxu0  ;;  %11613 = vmatmul.mubr.msk.bf16.gmra.mxu0 %vm1292_vm1, %v12370_v13  ;;  %9133 = vperm.xlu0 %12209, %v9018_v27   ;;  %v15021_v27 = vpop.permute.xlu0 %2445 }
 0x757   :  { %v3785_v43 = vpop.f32.mrf.mxu1  ;;  %11849 = vmatmul.mubr.msk.bf16.gmra.mxu1 %vm1292_vm1, %v12371_v61  ;;  %11884 = vmatprep.mubr.msk.bf16.mxu0 %vm12562_vm14, %v18017_v8  ;;  %v2708_v61 = vadd.f32 %v14688_v41, %v14762_v44  ;;  %v9019_v44 = vld [vmem:[%s17981_s14 + $0xb8] sm:$0xff] }
 0x758   :  { %v15001_v20 = vadd.f32 %v3785_v43, %v2707_v36  ;;  %v11518_v35 = vpop.f32.mrf.mxu0  ;;  %11852 = vmatprep.mubr.msk.bf16.mxu1 %vm12562_vm14, %v18017_v8  ;;  %9128 = vperm.xlu1 %12208, %v9017_v47   ;;  %v12373_v36 = vld [vmem:[%s17975_s8 + $0x1c8] sm:$0xff]   ;;  %v9020_v43 = vld [vmem:[%s17981_s14 + $0xc0] sm:$0xff]  ;;  %v15028_v47 = vpop.permute.xlu1 %2440 }
 0x759   :  { %v11754_v13 = vpop.f32.mrf.mxu1 }
 0x75a   :  { %18078 = vst [vmem:[#allocation80_spill] sm:$0xff] %v15001_v20  ;;  %v15010_v23 = vpop.f32.mrf.mxu0  ;;  %9143 = vperm.xlu0 %12209, %v9020_v43   ;;  %v2709_v20 = vadd.f32 %v14601_v14, %v14784_v3  ;;  %v2710_v14 = vadd.f32 %v14622_v28, %v14802_v55 }
 0x75b   :  { %v3788_v52 = vpop.f32.mrf.mxu1 }
 0x75c   :  { %v15023_v35 = vadd.f32 %v3788_v52, %v2708_v61  ;;  %v11519_v41 = vpop.f32.mrf.mxu0  ;;  %9138 = vperm.xlu1 %12208, %v9019_v44  }
 0x75d   :  { %v11755_v13 = vpop.f32.mrf.mxu1 }
 0x75e   :  { %v15032_v48 = vpop.f32.mrf.mxu0  ;;  %11885 = vmatmul.mubr.msk.bf16.vlgmr.msra.gmra.mxu0 %vm1292_vm1, %v12372_v33  ;;  %v12374_v33 = vld [vmem:[%s17976_s9 + $0x8] sm:$0xff]   ;;  %v2711_v13 = vadd.f32 %v14537_v37, %v14824_v26  ;;  %v2712_v37 = vadd.f32 %v14562_v4, %v14846_v2 }
 0x75f   :  { %v3793_v12 = vpop.f32.mrf.mxu1  ;;  %11853 = vmatmul.mubr.msk.bf16.gmra.mxu1 %vm1292_vm1, %v12373_v36  ;;  %11888 = vmatprep.mubr.msk.bf16.mxu0 %vm12562_vm14, %v18017_v8 }
 0x760   :  { %v15038_v61 = vadd.f32 %v3793_v12, %v2709_v20  ;;  %v11522_v52 = vpop.f32.mrf.mxu0  ;;  %11856 = vmatprep.mubr.msk.bf16.mxu1 %vm12562_vm14, %v18017_v8  ;;  %v12375_v12 = vld [vmem:[%s17975_s8 + $0x1d0] sm:$0xff]  }
 0x761   :  { %v11758_v43 = vpop.f32.mrf.mxu1 }
 0x762   :  { %v15044_v3 = vpop.f32.mrf.mxu0 }
 0x763   :  { %v3796_v36 = vpop.f32.mrf.mxu1 }
 0x764   :  { %v15052_v20 = vadd.f32 %v3796_v36, %v2710_v14  ;;  %v11523_v41 = vpop.f32.mrf.mxu0 }
 0x765   :  { %v11759_v44 = vpop.f32.mrf.mxu1 }
 0x766   :  { %v15056_v52 = vpop.f32.mrf.mxu0  ;;  %11889 = vmatmul.mubr.msk.bf16.gmra.mxu0 %vm1292_vm1, %v12374_v33  ;;  %v12376_v33 = vld [vmem:[%s17976_s9 + $0x10] sm:$0xff]  }
 0x767   :  { %v3801_v28 = vpop.f32.mrf.mxu1  ;;  %11857 = vmatmul.mubr.msk.bf16.gmra.mxu1 %vm1292_vm1, %v12375_v12  ;;  %11892 = vmatprep.mubr.msk.bf16.mxu0 %vm12562_vm14, %v18017_v8  ;;  %v12377_v12 = vld [vmem:[%s17975_s8 + $0x1d8] sm:$0xff]  }
 0x768   :  { %v15062_v55 = vadd.f32 %v3801_v28, %v2711_v13  ;;  %v11526_v43 = vpop.f32.mrf.mxu0  ;;  %11860 = vmatprep.mubr.msk.bf16.mxu1 %vm12562_vm14, %v18017_v8  ;;  %v2713_v28 = vadd.f32 %v14477_v40, %v14864_v6  ;;  %v2714_v40 = vadd.f32 %v14498_v21, %v14886_v32 }
 0x769   :  { %v11762_v14 = vpop.f32.mrf.mxu1 }
 0x76a   :  { %v15068_v26 = vpop.f32.mrf.mxu0 }
 0x76b   :  { %v3804_v36 = vpop.f32.mrf.mxu1 }
 0x76c   :  { %v15076_v41 = vadd.f32 %v3804_v36, %v2712_v37  ;;  %v11527_v44 = vpop.f32.mrf.mxu0 }
 0x76d   :  { %v11763_v13 = vpop.f32.mrf.mxu1 }
 0x76e   :  { %v15080_v43 = vpop.f32.mrf.mxu0  ;;  %11893 = vmatmul.mubr.msk.bf16.gmra.mxu0 %vm1292_vm1, %v12376_v33  ;;  %v12378_v33 = vld [vmem:[%s17976_s9 + $0x18] sm:$0xff]  }
 0x76f   :  { %v3809_v4 = vpop.f32.mrf.mxu1  ;;  %11861 = vmatmul.mubr.msk.bf16.gmra.mxu1 %vm1292_vm1, %v12377_v12  ;;  %11896 = vmatprep.mubr.msk.bf16.mxu0 %vm12562_vm14, %v18017_v8  ;;  %v12379_v12 = vld [vmem:[%s17975_s8 + $0x1e0] sm:$0xff]  }
 0x770   :  { %v15086_v2 = vadd.f32 %v3809_v4, %v2713_v28  ;;  %v11530_v14 = vpop.f32.mrf.mxu0  ;;  %11864 = vmatprep.mubr.msk.bf16.mxu1 %vm12562_vm14, %v18017_v8  ;;  %v2715_v4 = vadd.f32 %v14413_v45, %v14908_v29  ;;  %v2716_v45 = vadd.f32 %v14438_v19, %v14926_v62 }
 0x771   :  { %v11766_v37 = vpop.f32.mrf.mxu1 }
 0x772   :  { %18079 = vst [vmem:[#allocation81_spill] sm:$0xff] %v15086_v2  ;;  %v15092_v6 = vpop.f32.mrf.mxu0 }
 0x773   :  { %v3812_v36 = vpop.f32.mrf.mxu1 }
 0x774   :  { %v15100_v44 = vadd.f32 %v3812_v36, %v2714_v40  ;;  %v11531_v13 = vpop.f32.mrf.mxu0 }
 0x775   :  { %v11767_v28 = vpop.f32.mrf.mxu1 }
 0x776   :  { %18080 = vst [vmem:[#allocation82_spill] sm:$0xff] %v15100_v44  ;;  %v15104_v14 = vpop.f32.mrf.mxu0  ;;  %11897 = vmatmul.mubr.msk.bf16.gmra.mxu0 %vm1292_vm1, %v12378_v33  ;;  %v12380_v33 = vld [vmem:[%s17976_s9 + $0x20] sm:$0xff]  }
 0x777   :  { %v3817_v21 = vpop.f32.mrf.mxu1  ;;  %11865 = vmatmul.mubr.msk.bf16.gmra.mxu1 %vm1292_vm1, %v12379_v12  ;;  %11900 = vmatprep.mubr.msk.bf16.mxu0 %vm12562_vm14, %v18017_v8  ;;  %v12381_v12 = vld [vmem:[%s17975_s8 + $0x1e8] sm:$0xff]  }
 0x778   :  { %v15110_v32 = vadd.f32 %v3817_v21, %v2715_v4  ;;  %v11534_v37 = vpop.f32.mrf.mxu0  ;;  %11868 = vmatprep.mubr.msk.bf16.mxu1 %vm12562_vm14, %v18017_v8  ;;  %v2717_v21 = vadd.f32 %v14353_v54, %v14948_v9  ;;  %v2718_v54 = vadd.f32 %v14374_v15, %v14970_v51  ;;  %v2719_v15 = vadd.f32 %v14289_v31, %v14990_v17  ;;  %v12384_v31 = vld [vmem:[%s17976_s9 + $0x30] sm:$0xff]  }
 0x779   :  { %v11770_v40 = vpop.f32.mrf.mxu1 }
 0x77a   :  { %18081 = vst [vmem:[#allocation83_spill] sm:$0xff] %v15110_v32  ;;  %v15116_v29 = vpop.f32.mrf.mxu0 }
 0x77b   :  { %v3820_v36 = vpop.f32.mrf.mxu1 }
 0x77c   :  { %v15124_v13 = vadd.f32 %v3820_v36, %v2716_v45  ;;  %v11535_v28 = vpop.f32.mrf.mxu0  ;;  %v15138_v45 = vpop.permute.xlu1 %2600 }
 0x77d   :  { %v11771_v4 = vpop.f32.mrf.mxu1  ;;  %v12383_v28 = vld [vmem:[%s17975_s8 + $0x1f0] ss:$0 sps:$4 sm:$0xff]  }
 0x77e   :  { %18082 = vst [vmem:[#allocation84_spill] sm:$0xff] %v15124_v13  ;;  %v15128_v37 = vpop.f32.mrf.mxu0  ;;  %11901 = vmatmul.mubr.msk.bf16.gmra.mxu0 %vm1292_vm1, %v12380_v33  ;;  %v12382_v33 = vld [vmem:[%s17976_s9 + $0x28] sm:$0xff]  }
 0x77f   :  { %v3825_v19 = vpop.f32.mrf.mxu1  ;;  %11869 = vmatmul.mubr.msk.bf16.gmra.mxu1 %vm1292_vm1, %v12381_v12  ;;  %11904 = vmatprep.mubr.msk.bf16.mxu0 %vm12562_vm14, %v18017_v8 }
 0x780   :  { %v15134_v62 = vadd.f32 %v3825_v19, %v2717_v21  ;;  %v11538_v40 = vpop.f32.mrf.mxu0  ;;  %11872 = vmatprep.mubr.msk.bf16.mxu1 %vm12562_vm14, %v18017_v8  ;;  %v15152_v19 = vpop.permute.xlu0 %2605 }
 0x781   :  { %v11774_v36 = vpop.f32.mrf.mxu1 }
 0x782   :  { %18083 = vst [vmem:[#allocation85_spill] sm:$0xff] %v15134_v62  ;;  %v15142_v9 = vpop.f32.mrf.mxu0  ;;  %v2431_v36 = vpop.permute.xlu1 %2430 }
 0x783   :  { %v3828_v12 = vpop.f32.mrf.mxu1 }
 0x784   :  { %v15150_v4 = vadd.f32 %v3828_v12, %v2718_v54  ;;  %v11539_v21 = vpop.f32.mrf.mxu0  ;;  %v2436_v17 = vpop.permute.xlu0 %2435 }
 0x785   :  { %v11775_v40 = vpop.f32.mrf.mxu1 }
 0x786   :  { %18084 = vst [vmem:[#allocation86_spill] sm:$0xff] %v15150_v4  ;;  %v15156_v51 = vpop.f32.mrf.mxu0  ;;  %11905 = vmatmul.mubr.msk.bf16.gmra.mxu0 %vm1292_vm1, %v12382_v33  ;;  %v2720_v40 = vadd.f32 %v14314_v25, %v15010_v23  ;;  %v15173_v32 = vpop.permute.xlu1 %2590 }
 0x787   :  { %v3833_v62 = vpop.f32.mrf.mxu1  ;;  %11873 = vmatmul.mubr.msk.bf16.gmra.mxu1 %vm1292_vm1, %v12383_v28  ;;  %11908 = vmatprep.mubr.msk.bf16.mxu0 %vm12562_vm14, %v18017_v8 }
 0x788   :  { %v15162_v54 = vadd.f32 %v3833_v62, %v2719_v15  ;;  %v11542_v12 = vpop.f32.mrf.mxu0  ;;  %v2721_v15 = vadd.f32 %v14257_v57, %v15032_v48  ;;  %v12385_v57 = vld [vmem:[%s17976_s9 + $0x38] sm:$0xff]  }
 0x789   :  { %v11778_v21 = vpop.f32.mrf.mxu1 }
 0x78a   :  { %18085 = vst [vmem:[#allocation87_spill] sm:$0xff] %v15162_v54  ;;  %v15166_v4 = vpop.f32.mrf.mxu0  ;;  %v2421_v48 = vpop.permute.xlu1 %2420 }
 0x78b   :  { %v3836_v33 = vpop.f32.mrf.mxu1 }
 0x78c   :  { %v15171_v13 = vadd.f32 %v3836_v33, %v2720_v40  ;;  %v11543_v28 = vpop.f32.mrf.mxu0  ;;  %v15184_v40 = vpop.permute.xlu0 %2595 }
 0x78d   :  { %v11779_v62 = vpop.f32.mrf.mxu1  ;;  %v2722_v28 = vadd.f32 %v14282_v18, %v15044_v3 }
 0x78e   :  { %18086 = vst [vmem:[#allocation88_spill] sm:$0xff] %v15171_v13  ;;  %v15177_v12 = vpop.f32.mrf.mxu0  ;;  %11909 = vmatmul.mubr.msk.bf16.gmra.mxu0 %vm1292_vm1, %v12384_v31 }
 0x78f   :  { %v3841_v25 = vpop.f32.mrf.mxu1  ;;  %11912 = vmatprep.mubr.msk.bf16.mxu0 %vm12562_vm14, %v18017_v8 }
 0x790   :  { %v15182_v23 = vadd.f32 %v3841_v25, %v2721_v15  ;;  %v11546_v21 = vpop.f32.mrf.mxu0  ;;  %v2723_v25 = vadd.f32 %v2421_v48, %v15056_v52  ;;  %v12386_v52 = vld [vmem:[%s17976_s9 + $0x40] sm:$0xff]  }
 0x791   :  { %v11782_v33 = vpop.f32.mrf.mxu1 }
 0x792   :  { %18087 = vst [vmem:[#allocation89_spill] sm:$0xff] %v15182_v23  ;;  %v15188_v62 = vpop.f32.mrf.mxu0  ;;  %v2426_v33 = vpop.permute.xlu0 %2425 }
 0x793   :  { %v3844_v31 = vpop.f32.mrf.mxu1 }
 0x794   :  { %v15193_v13 = vadd.f32 %v3844_v31, %v2722_v28  ;;  %v11547_v54 = vpop.f32.mrf.mxu0  ;;  %v2724_v28 = vadd.f32 %v2426_v33, %v15068_v26  ;;  %v2726_v33 = vadd.f32 %v2436_v17, %v15092_v6 }
 0x795   :  { %v11783_v15 = vpop.f32.mrf.mxu1 }
 0x796   :  { %18088 = vst [vmem:[#allocation90_spill] sm:$0xff] %v15193_v13  ;;  %v15196_v21 = vpop.f32.mrf.mxu0  ;;  %11913 = vmatmul.mubr.msk.bf16.gmra.mxu0 %vm1292_vm1, %v12385_v57  ;;  %v2725_v13 = vadd.f32 %v2431_v36, %v15080_v43  ;;  %v12387_v43 = vld [vmem:[%s17976_s9 + $0x48] sm:$0xff]  }
 0x797   :  { %v3849_v18 = vpop.f32.mrf.mxu1  ;;  %11916 = vmatprep.mubr.msk.bf16.mxu0 %vm12562_vm14, %v18017_v8 }
 0x798   :  { %v15201_v3 = vadd.f32 %v3849_v18, %v2723_v25  ;;  %v11550_v23 = vpop.f32.mrf.mxu0 }
 0x799   :  { %v11786_v44 = vpop.f32.mrf.mxu1 }
 0x79a   :  { %v15204_v31 = vpop.f32.mrf.mxu0 }
 0x79b   :  { %v3852_v54 = vpop.f32.mrf.mxu1 }
 0x79c   :  { %v15209_v48 = vadd.f32 %v3852_v54, %v2724_v28  ;;  %v11551_v57 = vpop.f32.mrf.mxu0 }
 0x79d   :  { %v11787_v15 = vpop.f32.mrf.mxu1  ;;  %v2727_v57 = vadd.f32 %v15028_v47, %v15104_v14  ;;  %v12388_v47 = vld [vmem:[%s17976_s9 + $0x50] sm:$0xff]  }
 0x79e   :  { %v15212_v2 = vpop.f32.mrf.mxu0  ;;  %11917 = vmatmul.mubr.msk.bf16.gmra.mxu0 %vm1292_vm1, %v12386_v52 }
 0x79f   :  { %v3857_v44 = vpop.f32.mrf.mxu1  ;;  %11920 = vmatprep.mubr.msk.bf16.mxu0 %vm12562_vm14, %v18017_v8 }
 0x7a0   :  { %v15217_v26 = vadd.f32 %v3857_v44, %v2725_v13  ;;  %v11554_v23 = vpop.f32.mrf.mxu0 }
 0x7a1   :  { %v11790_v25 = vpop.f32.mrf.mxu1  ;;  %v2728_v23 = vadd.f32 %v15021_v27, %v15116_v29 }
 0x7a2   :  { %v15220_v18 = vpop.f32.mrf.mxu0 }
 0x7a3   :  { %v3860_v36 = vpop.f32.mrf.mxu1 }
 0x7a4   :  { %v15225_v28 = vadd.f32 %v3860_v36, %v2726_v33  ;;  %v11555_v52 = vpop.f32.mrf.mxu0 }
 0x7a5   :  { %v11791_v54 = vpop.f32.mrf.mxu1  ;;  %v2729_v52 = vadd.f32 %v14966_v5, %v15128_v37  ;;  %v12389_v5 = vld [vmem:[%s17976_s9 + $0x58] sm:$0xff]  }
 0x7a6   :  { %v15229_v13 = vpop.f32.mrf.mxu0  ;;  %11921 = vmatmul.mubr.msk.bf16.gmra.mxu0 %vm1292_vm1, %v12387_v43 }
 0x7a7   :  { %v3865_v15 = vpop.f32.mrf.mxu1  ;;  %11924 = vmatprep.mubr.msk.bf16.mxu0 %vm12562_vm14, %v18017_v8 }
 0x7a8   :  { %v15234_v6 = vadd.f32 %v3865_v15, %v2727_v57  ;;  %v11558_v17 = vpop.f32.mrf.mxu0 }
 0x7a9   :  { %v11794_v44 = vpop.f32.mrf.mxu1  ;;  %v2730_v17 = vadd.f32 %v14959_v46, %v15142_v9 }
 0x7aa   :  { %v15238_v25 = vpop.f32.mrf.mxu0 }
 0x7ab   :  { %v3868_v14 = vpop.f32.mrf.mxu1 }
 0x7ac   :  { %v15243_v33 = vadd.f32 %v3868_v14, %v2728_v23  ;;  %v11559_v43 = vpop.f32.mrf.mxu0 }
 0x7ad   :  { %v11795_v36 = vpop.f32.mrf.mxu1  ;;  %v2731_v43 = vadd.f32 %v14904_v22, %v15156_v51  ;;  %v12390_v22 = vld [vmem:[%s17976_s9 + $0x60] sm:$0xff]  }
 0x7ae   :  { %v15247_v54 = vpop.f32.mrf.mxu0  ;;  %11925 = vmatmul.mubr.msk.bf16.gmra.mxu0 %vm1292_vm1, %v12388_v47 }
 0x7af   :  { %v3873_v57 = vpop.f32.mrf.mxu1  ;;  %11928 = vmatprep.mubr.msk.bf16.mxu0 %vm12562_vm14, %v18017_v8 }
 0x7b0   :  { %v15252_v27 = vadd.f32 %v3873_v57, %v2729_v52  ;;  %v11562_v29 = vpop.f32.mrf.mxu0 }
 0x7b1   :  { %v11798_v15 = vpop.f32.mrf.mxu1  ;;  %v2732_v29 = vadd.f32 %v14899_v63, %v15166_v4 }
 0x7b2   :  { %v15256_v44 = vpop.f32.mrf.mxu0 }
 0x7b3   :  { %v3876_v37 = vpop.f32.mrf.mxu1 }
 0x7b4   :  { %v15261_v23 = vadd.f32 %v3876_v37, %v2730_v17  ;;  %v11563_v47 = vpop.f32.mrf.mxu0 }
 0x7b5   :  { %v11799_v14 = vpop.f32.mrf.mxu1  ;;  %v2733_v47 = vadd.f32 %v14842_v10, %v15177_v12  ;;  %v12391_v10 = vld [vmem:[%s17976_s9 + $0x68] sm:$0xff]  }
 0x7b6   :  { %v15265_v36 = vpop.f32.mrf.mxu0  ;;  %11929 = vmatmul.mubr.msk.bf16.gmra.mxu0 %vm1292_vm1, %v12389_v5 }
 0x7b7   :  { %v3881_v52 = vpop.f32.mrf.mxu1  ;;  %11932 = vmatprep.mubr.msk.bf16.mxu0 %vm12562_vm14, %v18017_v8 }
 0x7b8   :  { %v15270_v46 = vadd.f32 %v3881_v52, %v2731_v43  ;;  %v11566_v9 = vpop.f32.mrf.mxu0 }
 0x7b9   :  { %v11802_v57 = vpop.f32.mrf.mxu1  ;;  %v2734_v9 = vadd.f32 %v14837_v34, %v15188_v62 }
 0x7ba   :  { %v15274_v15 = vpop.f32.mrf.mxu0 }
 0x7bb   :  { %v3884_v51 = vpop.f32.mrf.mxu1 }
 0x7bc   :  { %v15279_v17 = vadd.f32 %v3884_v51, %v2732_v29  ;;  %v11567_v5 = vpop.f32.mrf.mxu0 }
 0x7bd   :  { %v11803_v37 = vpop.f32.mrf.mxu1  ;;  %v2735_v5 = vadd.f32 %v14775_v58, %v15196_v21  ;;  %v12392_v58 = vld [vmem:[%s17976_s9 + $0x70] sm:$0xff]  }
 0x7be   :  { %v15283_v14 = vpop.f32.mrf.mxu0  ;;  %11933 = vmatmul.mubr.msk.bf16.gmra.mxu0 %vm1292_vm1, %v12390_v22 }
 0x7bf   :  { %v3889_v43 = vpop.f32.mrf.mxu1  ;;  %11936 = vmatprep.mubr.msk.bf16.mxu0 %vm12562_vm14, %v18017_v8 }
 0x7c0   :  { %v15288_v63 = vadd.f32 %v3889_v43, %v2733_v47  ;;  %v11570_v4 = vpop.f32.mrf.mxu0 }
 0x7c1   :  { %v11806_v52 = vpop.f32.mrf.mxu1  ;;  %v2736_v4 = vadd.f32 %v14812_v16, %v15204_v31 }
 0x7c2   :  { %v15292_v57 = vpop.f32.mrf.mxu0 }
 0x7c3   :  { %v3892_v12 = vpop.f32.mrf.mxu1 }
 0x7c4   :  { %v15297_v29 = vadd.f32 %v3892_v12, %v2734_v9  ;;  %v11571_v22 = vpop.f32.mrf.mxu0 }
 0x7c5   :  { %v11807_v51 = vpop.f32.mrf.mxu1  ;;  %v2737_v22 = vadd.f32 %v14713_v24, %v15212_v2  ;;  %v12393_v24 = vld [vmem:[%s17976_s9 + $0x78] sm:$0xff]  }
 0x7c6   :  { %v15301_v37 = vpop.f32.mrf.mxu0  ;;  %11937 = vmatmul.mubr.msk.bf16.gmra.mxu0 %vm1292_vm1, %v12391_v10 }
 0x7c7   :  { %v3897_v47 = vpop.f32.mrf.mxu1  ;;  %11940 = vmatprep.mubr.msk.bf16.mxu0 %vm12562_vm14, %v18017_v8 }
 0x7c8   :  { %v15306_v34 = vadd.f32 %v3897_v47, %v2735_v5  ;;  %v11574_v62 = vpop.f32.mrf.mxu0 }
 0x7c9   :  { %v11810_v43 = vpop.f32.mrf.mxu1  ;;  %v2738_v62 = vadd.f32 %v14748_v1, %v15220_v18 }
 0x7ca   :  { %v15310_v52 = vpop.f32.mrf.mxu0 }
 0x7cb   :  { %v3900_v21 = vpop.f32.mrf.mxu1 }
 0x7cc   :  { %v15315_v9 = vadd.f32 %v3900_v21, %v2736_v4  ;;  %v11575_v10 = vpop.f32.mrf.mxu0 }
 0x7cd   :  { %v11811_v12 = vpop.f32.mrf.mxu1  ;;  %v2739_v10 = vadd.f32 %v14743_v42, %v15229_v13  ;;  %v12394_v42 = vld [vmem:[%s17976_s9 + $0x80] sm:$0xff]  }
 0x7ce   :  { %v15319_v51 = vpop.f32.mrf.mxu0  ;;  %11941 = vmatmul.mubr.msk.bf16.gmra.mxu0 %vm1292_vm1, %v12392_v58 }
 0x7cf   :  { %v3905_v5 = vpop.f32.mrf.mxu1  ;;  %11944 = vmatprep.mubr.msk.bf16.mxu0 %vm12562_vm14, %v18017_v8 }
 0x7d0   :  { %v15324_v16 = vadd.f32 %v3905_v5, %v2737_v22  ;;  %v11578_v31 = vpop.f32.mrf.mxu0 }
 0x7d1   :  { %v11814_v47 = vpop.f32.mrf.mxu1  ;;  %v2740_v31 = vadd.f32 %v14780_v0, %v15238_v25 }
 0x7d2   :  { %v15328_v43 = vpop.f32.mrf.mxu0 }
 0x7d3   :  { %v3908_v2 = vpop.f32.mrf.mxu1 }
 0x7d4   :  { %v15333_v4 = vadd.f32 %v3908_v2, %v2738_v62  ;;  %v11579_v58 = vpop.f32.mrf.mxu0 }
 0x7d5   :  { %v11815_v21 = vpop.f32.mrf.mxu1  ;;  %v2741_v58 = vadd.f32 %v14683_v39, %v15247_v54  ;;  %v12395_v39 = vld [vmem:[%s17976_s9 + $0x88] sm:$0xff]  }
 0x7d6   :  { %v15337_v12 = vpop.f32.mrf.mxu0  ;;  %11945 = vmatmul.mubr.msk.bf16.gmra.mxu0 %vm1292_vm1, %v12393_v24 }
 0x7d7   :  { %v3913_v22 = vpop.f32.mrf.mxu1  ;;  %11948 = vmatprep.mubr.msk.bf16.mxu0 %vm12562_vm14, %v18017_v8 }
 0x7d8   :  { %v15342_v1 = vadd.f32 %v3913_v22, %v2739_v10  ;;  %v11582_v18 = vpop.f32.mrf.mxu0 }
 0x7d9   :  { %v11818_v5 = vpop.f32.mrf.mxu1  ;;  %v2742_v18 = vadd.f32 %v14718_v11, %v15256_v44 }
 0x7da   :  { %v15346_v47 = vpop.f32.mrf.mxu0 }
 0x7db   :  { %v3916_v13 = vpop.f32.mrf.mxu1 }
 0x7dc   :  { %v15351_v62 = vadd.f32 %v3916_v13, %v2740_v31  ;;  %v11583_v24 = vpop.f32.mrf.mxu0 }
 0x7dd   :  { %v11819_v2 = vpop.f32.mrf.mxu1  ;;  %v2743_v24 = vadd.f32 %v14631_v56, %v15265_v36  ;;  %v12396_v56 = vld [vmem:[%s17976_s9 + $0x90] sm:$0xff]  }
 0x7de   :  { %v15355_v21 = vpop.f32.mrf.mxu0  ;;  %11949 = vmatmul.mubr.msk.bf16.gmra.mxu0 %vm1292_vm1, %v12394_v42 }
 0x7df   :  { %v3921_v10 = vpop.f32.mrf.mxu1  ;;  %11952 = vmatprep.mubr.msk.bf16.mxu0 %vm12562_vm14, %v18017_v8 }
 0x7e0   :  { %v15360_v0 = vadd.f32 %v3921_v10, %v2741_v58  ;;  %v11586_v25 = vpop.f32.mrf.mxu0 }
 0x7e1   :  { %v11822_v22 = vpop.f32.mrf.mxu1  ;;  %v2744_v25 = vadd.f32 %v14654_v50, %v15274_v15 }
 0x7e2   :  { %v15364_v5 = vpop.f32.mrf.mxu0 }
 0x7e3   :  { %v3924_v54 = vpop.f32.mrf.mxu1 }
 0x7e4   :  { %v15369_v31 = vadd.f32 %v3924_v54, %v2742_v18  ;;  %v11587_v42 = vpop.f32.mrf.mxu0 }
 0x7e5   :  { %v11823_v13 = vpop.f32.mrf.mxu1  ;;  %v2745_v42 = vadd.f32 %v14569_v59, %v15283_v14  ;;  %v12397_v59 = vld [vmem:[%s17976_s9 + $0x98] sm:$0xff]  }
 0x7e6   :  { %v15373_v2 = vpop.f32.mrf.mxu0  ;;  %11953 = vmatmul.mubr.msk.bf16.gmra.mxu0 %vm1292_vm1, %v12395_v39 }
 0x7e7   :  { %v3929_v58 = vpop.f32.mrf.mxu1  ;;  %11956 = vmatprep.mubr.msk.bf16.mxu0 %vm12562_vm14, %v18017_v8 }
 0x7e8   :  { %v15378_v11 = vadd.f32 %v3929_v58, %v2743_v24  ;;  %v11590_v44 = vpop.f32.mrf.mxu0 }
 0x7e9   :  { %v11826_v10 = vpop.f32.mrf.mxu1  ;;  %v2746_v44 = vadd.f32 %v14592_v49, %v15292_v57 }
 0x7ea   :  { %v15382_v22 = vpop.f32.mrf.mxu0 }
 0x7eb   :  { %v3932_v36 = vpop.f32.mrf.mxu1 }
 0x7ec   :  { %v15387_v18 = vadd.f32 %v3932_v36, %v2744_v25  ;;  %v11591_v39 = vpop.f32.mrf.mxu0 }
 0x7ed   :  { %v11827_v54 = vpop.f32.mrf.mxu1  ;;  %v2747_v39 = vadd.f32 %v14507_v30, %v15301_v37  ;;  %v12398_v30 = vld [vmem:[%s17976_s9 + $0xa0] sm:$0xff]  }
 0x7ee   :  { %v15391_v13 = vpop.f32.mrf.mxu0  ;;  %11957 = vmatmul.mubr.msk.bf16.gmra.mxu0 %vm1292_vm1, %v12396_v56 }
 0x7ef   :  { %v3937_v24 = vpop.f32.mrf.mxu1  ;;  %11960 = vmatprep.mubr.msk.bf16.mxu0 %vm12562_vm14, %v18017_v8 }
 0x7f0   :  { %v15396_v50 = vadd.f32 %v3937_v24, %v2745_v42  ;;  %v11594_v15 = vpop.f32.mrf.mxu0 }
 0x7f1   :  { %v11830_v58 = vpop.f32.mrf.mxu1  ;;  %v2748_v15 = vadd.f32 %v14530_v60, %v15310_v52 }
 0x7f2   :  { %v15400_v10 = vpop.f32.mrf.mxu0 }
 0x7f3   :  { %v3940_v14 = vpop.f32.mrf.mxu1 }
 0x7f4   :  { %v15405_v25 = vadd.f32 %v3940_v14, %v2746_v44  ;;  %v11595_v56 = vpop.f32.mrf.mxu0 }
 0x7f5   :  { %v11831_v36 = vpop.f32.mrf.mxu1  ;;  %v18090_v56 = vld [vmem:[#allocation48_spill] sm:$0xff] }
 0x7f6   :  { %v15409_v54 = vpop.f32.mrf.mxu0  ;;  %11961 = vmatmul.mubr.msk.bf16.gmra.mxu0 %vm1292_vm1, %v12397_v59  ;;  %v2749_v36 = vadd.f32 %v18090_v56, %v15319_v51  ;;  %v12399_v51 = vld [vmem:[%s17976_s9 + $0xa8] sm:$0xff]  }
 0x7f7   :  { %v3945_v42 = vpop.f32.mrf.mxu1  ;;  %11964 = vmatprep.mubr.msk.bf16.mxu0 %vm12562_vm14, %v18017_v8 }
 0x7f8   :  { %v15414_v49 = vadd.f32 %v3945_v42, %v2747_v39  ;;  %v11598_v57 = vpop.f32.mrf.mxu0 }
 0x7f9   :  { %v11834_v24 = vpop.f32.mrf.mxu1 }
 0x7fa   :  { %v15418_v58 = vpop.f32.mrf.mxu0  ;;  %v18092_v24 = vld [vmem:[#allocation50_spill] sm:$0xff] }
 0x7fb   :  { %v3948_v37 = vpop.f32.mrf.mxu1 }
 0x7fc   :  { %v15423_v44 = vadd.f32 %v3948_v37, %v2748_v15  ;;  %v11599_v59 = vpop.f32.mrf.mxu0  ;;  %v2750_v15 = vadd.f32 %v18092_v24, %v15328_v43 }
 0x7fd   :  { %v11835_v14 = vpop.f32.mrf.mxu1 }
 0x7fe   :  { %18089 = vst [vmem:[#allocation91_spill] sm:$0xff] %v15423_v44  ;;  %v15427_v39 = vpop.f32.mrf.mxu0  ;;  %11965 = vmatmul.mubr.msk.bf16.gmra.mxu0 %vm1292_vm1, %v12398_v30  ;;  %v18094_v44 = vld [vmem:[#allocation43_spill] sm:$0xff] }
 0x7ff   :  { %v3953_v42 = vpop.f32.mrf.mxu1  ;;  %11968 = vmatprep.mubr.msk.bf16.mxu0 %vm12562_vm14, %v18017_v8 }
 0x800   :  { %v15432_v60 = vadd.f32 %v3953_v42, %v2749_v36  ;;  %v11602_v52 = vpop.f32.mrf.mxu0  ;;  %v2751_v36 = vadd.f32 %v18094_v44, %v15337_v12  ;;  %v12400_v12 = vld [vmem:[%s17976_s9 + $0xb0] sm:$0xff]  }
 0x801   :  { %v11838_v57 = vpop.f32.mrf.mxu1 }
 0x802   :  { %18091 = vst [vmem:[#allocation48_spill] sm:$0xff] %v15432_v60  ;;  %v15436_v37 = vpop.f32.mrf.mxu0  ;;  %v18098_v60 = vld [vmem:[#allocation38_spill] sm:$0xff] }
 0x803   :  { %v3956_v59 = vpop.f32.mrf.mxu1 }
 0x804   :  { %v15441_v14 = vadd.f32 %v3956_v59, %v2750_v15  ;;  %v11603_v30 = vpop.f32.mrf.mxu0  ;;  %v18096_v15 = vld [vmem:[#allocation45_spill] sm:$0xff] }
 0x805   :  { %v11839_v56 = vpop.f32.mrf.mxu1  ;;  %v2752_v59 = vadd.f32 %v18096_v15, %v15346_v47 }
 0x806   :  { %18093 = vst [vmem:[#allocation50_spill] sm:$0xff] %v15441_v14  ;;  %v15445_v42 = vpop.f32.mrf.mxu0  ;;  %11969 = vmatmul.mubr.msk.bf16.gmra.mxu0 %vm1292_vm1, %v12399_v51 }
 0x807   :  { %v3961_v52 = vpop.f32.mrf.mxu1  ;;  %11972 = vmatprep.mubr.msk.bf16.mxu0 %vm12562_vm14, %v18017_v8 }
 0x808   :  { %v15450_v43 = vadd.f32 %v3961_v52, %v2751_v36  ;;  %v11606_v57 = vpop.f32.mrf.mxu0  ;;  %v2753_v36 = vadd.f32 %v18098_v60, %v15355_v21  ;;  %v12401_v21 = vld [vmem:[%s17976_s9 + $0xb8] sm:$0xff]  }
 0x809   :  { %v11842_v24 = vpop.f32.mrf.mxu1 }
 0x80a   :  { %18095 = vst [vmem:[#allocation43_spill] sm:$0xff] %v15450_v43  ;;  %v15454_v30 = vpop.f32.mrf.mxu0 }
 0x80b   :  { %v3964_v44 = vpop.f32.mrf.mxu1 }
 0x80c   :  { %v15459_v56 = vadd.f32 %v3964_v44, %v2752_v59  ;;  %v11607_v51 = vpop.f32.mrf.mxu0  ;;  %v18100_v59 = vld [vmem:[#allocation40_spill] sm:$0xff] }
 0x80d   :  { %v11843_v14 = vpop.f32.mrf.mxu1  ;;  %v2754_v44 = vadd.f32 %v18100_v59, %v15364_v5  ;;  %v2586_v59 = vpop.permute.xlu0 %2585 }
 0x80e   :  { %18097 = vst [vmem:[#allocation45_spill] sm:$0xff] %v15459_v56  ;;  %v15463_v52 = vpop.f32.mrf.mxu0  ;;  %11973 = vmatmul.mubr.msk.bf16.gmra.mxu0 %vm1292_vm1, %v12400_v12  ;;  %v2581_v56 = vpop.permute.xlu1 %2580 }
 0x80f   :  { %v3969_v57 = vpop.f32.mrf.mxu1  ;;  %11976 = vmatprep.mubr.msk.bf16.mxu0 %vm12562_vm14, %v18017_v8 }
 0x810   :  { %v15468_v47 = vadd.f32 %v3969_v57, %v2753_v36  ;;  %v11610_v24 = vpop.f32.mrf.mxu0  ;;  %v2755_v36 = vadd.f32 %v2581_v56, %v15373_v2  ;;  %v12402_v2 = vld [vmem:[%s17976_s9 + $0xc0] sm:$0xff]  }
 0x811   :  { %v11846_v15 = vpop.f32.mrf.mxu1 }
 0x812   :  { %18099 = vst [vmem:[#allocation38_spill] sm:$0xff] %v15468_v47  ;;  %v15472_v51 = vpop.f32.mrf.mxu0 }
 0x813   :  { %v3972_v60 = vpop.f32.mrf.mxu1 }
 0x814   :  { %v15477_v14 = vadd.f32 %v3972_v60, %v2754_v44  ;;  %v11611_v12 = vpop.f32.mrf.mxu0  ;;  %v2756_v44 = vadd.f32 %v2586_v59, %v15382_v22 }
 0x815   :  { %v11847_v43 = vpop.f32.mrf.mxu1 }
 0x816   :  { %18101 = vst [vmem:[#allocation40_spill] sm:$0xff] %v15477_v14  ;;  %v15480_v57 = vpop.f32.mrf.mxu0  ;;  %11977 = vmatmul.mubr.msk.bf16.gmra.mxu0 %vm1292_vm1, %v12401_v21  ;;  %v2757_v14 = vadd.f32 %v15173_v32, %v15391_v13  ;;  %v12403_v32 = vld [vmem:[%s17976_s9 + $0xc8] sm:$0xff]   ;;  %v18105_v13 = vld [vmem:[#allocation7_spill] sm:$0xff] }
 0x817   :  { %v3977_v24 = vpop.f32.mrf.mxu1  ;;  %11980 = vmatprep.mubr.msk.bf16.mxu0 %vm12562_vm14, %v18017_v8 }
 0x818   :  { %v15485_v5 = vadd.f32 %v3977_v24, %v2755_v36  ;;  %v11614_v15 = vpop.f32.mrf.mxu0  ;;  %v18103_v24 = vld [vmem:[#allocation6_spill] sm:$0xff] }
 0x819   :  { %v11850_v47 = vpop.f32.mrf.mxu1 }
 0x81a   :  { %v2015_v60 = vpop.f32.mrf.mxu0 }
 0x81b   :  { %v3980_v43 = vpop.f32.mrf.mxu1 }
 0x81c   :  { %v15491_v56 = vadd.f32 %v3980_v43, %v2756_v44  ;;  %v11615_v21 = vpop.f32.mrf.mxu0  ;;  %v2758_v44 = vadd.f32 %v15184_v40, %v15400_v10  ;;  %v18106_v10 = vld [vmem:[#allocation8_spill] sm:$0xff] }
 0x81d   :  { %v11851_v12 = vpop.f32.mrf.mxu1 }
 0x81e   :  { %18102 = vst [vmem:[#allocation92_spill] sm:$0xff] %v15491_v56  ;;  %v4917_v36 = vpop.f32.mrf.mxu0  ;;  %11981 = vmatmul.mubr.msk.bf16.gmra.mxu0 %vm1292_vm1, %v12402_v2 }
 0x81f   :  { %v5419_v47 = vadd.f32 %v4917_v36, %v18103_v24  ;;  %v3985_v15 = vpop.f32.mrf.mxu1  ;;  %11984 = vmatprep.mubr.msk.bf16.mxu0 %vm12562_vm14, %v18017_v8 }
 0x820   :  { %v15499_v22 = vadd.f32 %v3985_v15, %v2757_v14  ;;  %v11886_v59 = vpop.f32.mrf.mxu0  ;;  %v2759_v15 = vadd.f32 %v15138_v45, %v15409_v54  ;;  %v12404_v45 = vld [vmem:[%s17976_s9 + $0xd0] sm:$0xff]   ;;  %v18107_v54 = vld [vmem:[#allocation9_spill] sm:$0xff] }
 0x821   :  { %v11854_v60 = vpop.f32.mrf.mxu1  ;;  %v5544_v24 = vmax.f32 %v5419_v47, 0.0 }
 0x822   :  { %18104 = vst [vmem:[#allocation6_spill] sm:$0xff] %v15499_v22  ;;  %v4920_v43 = vpop.f32.mrf.mxu0 }
 0x823   :  { %v5420_v2 = vadd.f32 %v4920_v43, %v18105_v13  ;;  %v3988_v21 = vpop.f32.mrf.mxu1  ;;  %v2760_v13 = vadd.f32 %v15152_v19, %v15418_v58  ;;  %v18108_v58 = vld [vmem:[#allocation10_spill] sm:$0xff] }
 0x824   :  { %v15507_v12 = vadd.f32 %v3988_v21, %v2758_v44  ;;  %v11887_v36 = vpop.f32.mrf.mxu0 }
 0x825   :  { %v5545_v56 = vmax.f32 %v5420_v2, 0.0  ;;  %v11855_v14 = vpop.f32.mrf.mxu1 }
 0x826   :  { %v4925_v59 = vpop.f32.mrf.mxu0  ;;  %11985 = vmatmul.mubr.msk.bf16.gmra.mxu0 %vm1292_vm1, %v12403_v32 }
 0x827   :  { %v15512_v40 = vpack.c.bf16 %v5545_v56, %v5544_v24  ;;  %v5421_v60 = vadd.f32 %v4925_v59, %v18106_v10  ;;  %v3993_v22 = vpop.f32.mrf.mxu1  ;;  %11988 = vmatprep.mubr.msk.bf16.mxu0 %vm12562_vm14, %v18017_v8 }
 0x828   :  { %v15517_v44 = vadd.f32 %v3993_v22, %v2759_v15  ;;  %v11890_v43 = vpop.f32.mrf.mxu0  ;;  %v2761_v15 = vadd.f32 %v14993_v7, %v15427_v39  ;;  %v12405_v7 = vld [vmem:[%s17976_s9 + $0xd8] sm:$0xff]  }
 0x829   :  { %v11858_v47 = vpop.f32.mrf.mxu1  ;;  %v5546_v24 = vmax.f32 %v5421_v60, 0.0  ;;  %v18109_v39 = vld [vmem:[#allocation11_spill] sm:$0xff] }
 0x82a   :  { %v4928_v2 = vpop.f32.mrf.mxu0 }
 0x82b   :  { %v5422_v56 = vadd.f32 %v4928_v2, %v18107_v54  ;;  %v3996_v32 = vpop.f32.mrf.mxu1  ;;  %v2762_v2 = vadd.f32 %v14988_v38, %v15436_v37 }
 0x82c   :  { %v15525_v21 = vadd.f32 %v3996_v32, %v2760_v13  ;;  %v11891_v36 = vpop.f32.mrf.mxu0 }
 0x82d   :  { %v5547_v14 = vmax.f32 %v5422_v56, 0.0  ;;  %v11859_v22 = vpop.f32.mrf.mxu1 }
 0x82e   :  { %v4933_v59 = vpop.f32.mrf.mxu0  ;;  %11989 = vmatmul.mubr.msk.bf16.gmra.mxu0 %vm1292_vm1, %v12404_v45 }
 0x82f   :  { %v15530_v19 = vpack.c.bf16 %v5547_v14, %v5546_v24  ;;  %v5423_v10 = vadd.f32 %v4933_v59, %v18108_v58  ;;  %v4001_v43 = vpop.f32.mrf.mxu1  ;;  %11992 = vmatprep.mubr.msk.bf16.mxu0 %vm12562_vm14, %v18017_v8 }
 0x830   :  { %v15535_v47 = vadd.f32 %v4001_v43, %v2761_v15  ;;  %v11894_v13 = vpop.f32.mrf.mxu0  ;;  %v2763_v15 = vadd.f32 %v14933_v53, %v15445_v42  ;;  %v12406_v53 = vld [vmem:[%s17976_s9 + $0xe0] sm:$0xff]  }
 0x831   :  { %v11862_v60 = vpop.f32.mrf.mxu1  ;;  %v5548_v24 = vmax.f32 %v5423_v10, 0.0  ;;  %v18112_v13 = vld [vmem:[#allocation12_spill] sm:$0xff]  ;;  %v18114_v42 = vld [vmem:[#allocation13_spill] sm:$0xff] }
 0x832   :  { %v4936_v54 = vpop.f32.mrf.mxu0 }
 0x833   :  { %v5424_v45 = vadd.f32 %v4936_v54, %v18109_v39  ;;  %v4004_v56 = vpop.f32.mrf.mxu1 }
 0x834   :  { %v15543_v32 = vadd.f32 %v4004_v56, %v2762_v2  ;;  %v11895_v36 = vpop.f32.mrf.mxu0  ;;  %v18113_v2 = vld [vmem:[#allocation76_spill] sm:$0xff] }
 0x835   :  { %v5549_v14 = vmax.f32 %v5424_v45, 0.0  ;;  %v11863_v22 = vpop.f32.mrf.mxu1  ;;  %v2764_v54 = vadd.f32 %v18113_v2, %v15454_v30  ;;  %v15571_v30 = vld [vmem:[%s17978_s11 + $0x20] sm:$0xff] }
 0x836   :  { %18110 = vst [vmem:[#allocation7_spill] sm:$0xff] %v15543_v32  ;;  %v4941_v59 = vpop.f32.mrf.mxu0  ;;  %11993 = vmatmul.mubr.msk.bf16.gmra.mxu0 %vm1292_vm1, %v12405_v7 }
 0x837   :  { %v15548_v38 = vpack.c.bf16 %v5549_v14, %v5548_v24  ;;  %v4009_v37 = vpop.f32.mrf.mxu1  ;;  %11996 = vmatprep.mubr.msk.bf16.mxu0 %vm12562_vm14, %v18017_v8  ;;  %v5425_v60 = vadd.f32 %v4941_v59, %v18112_v13  ;;  %v15566_v24 = vld [vmem:[%s17978_s11] sm:$0xff] }
 0x838   :  { %v15552_v58 = vadd.f32 %v4009_v37, %v2763_v15  ;;  %v11898_v43 = vpop.f32.mrf.mxu0  ;;  %v10566_v59 = vcombine.high %v15566_v24, %v15571_v30  ;;  %v18116_v37 = vld [vmem:[#allocation72_spill] sm:$0xff] }
 0x839   :  { %v11866_v10 = vpop.f32.mrf.mxu1  ;;  %v5550_v14 = vmax.f32 %v5425_v60, 0.0  ;;  %v2765_v43 = vadd.f32 %v18116_v37, %v15463_v52  ;;  %v18119_v52 = vld [vmem:[#allocation71_spill] sm:$0xff] }
 0x83a   :  { %18111 = vst [vmem:[#allocation8_spill] sm:$0xff] %v15552_v58  ;;  %v4944_v39 = vpop.f32.mrf.mxu0  ;;  %7731 = vmatprep.mubr.bf16.mxu1 %v10566_v59 }
 0x83b   :  { %v5426_v7 = vadd.f32 %v4944_v39, %v18114_v42  ;;  %v4012_v45 = vpop.f32.mrf.mxu1  ;;  %v18118_v42 = vld [vmem:[#allocation14_spill] sm:$0xff] }
 0x83c   :  { %v15561_v56 = vadd.f32 %v4012_v45, %v2764_v54  ;;  %v11899_v36 = vpop.f32.mrf.mxu0 }
 0x83d   :  { %v5551_v22 = vmax.f32 %v5426_v7, 0.0  ;;  %v11867_v15 = vpop.f32.mrf.mxu1  ;;  %v2766_v36 = vadd.f32 %v18119_v52, %v15472_v51 }
 0x83e   :  { %18115 = vst [vmem:[#allocation9_spill] sm:$0xff] %v15561_v56  ;;  %v4949_v13 = vpop.f32.mrf.mxu0  ;;  %11997 = vmatmul.mubr.msk.bf16.gmra.mxu0 %vm1292_vm1, %v12406_v53 }
 0x83f   :  { %v15580_v2 = vpack.c.bf16 %v5551_v22, %v5550_v14  ;;  %v4017_v54 = vpop.f32.mrf.mxu1  ;;  %12000 = vmatprep.mubr.msk.bf16.mxu0 %vm12562_vm14, %v18017_v8  ;;  %v5427_v7 = vadd.f32 %v4949_v13, %v18118_v42  ;;  %v12407_v14 = vld [vmem:[%s17976_s9 + $0xe8] sm:$0xff]   ;;  %v18120_v22 = vld [vmem:[#allocation15_spill] sm:$0xff] }
 0x840   :  { %v15584_v60 = vadd.f32 %v4017_v54, %v2765_v43  ;;  %v11902_v39 = vpop.f32.mrf.mxu0  ;;  %v18122_v13 = vld [vmem:[#allocation67_spill] sm:$0xff] }
 0x841   :  { %v11870_v45 = vpop.f32.mrf.mxu1  ;;  %v5552_v43 = vmax.f32 %v5427_v7, 0.0  ;;  %v2767_v42 = vadd.f32 %v18122_v13, %v15480_v57  ;;  %v12408_v57 = vld [vmem:[%s17976_s9 + $0xf0] sm:$0xff]  }
 0x842   :  { %18117 = vst [vmem:[#allocation10_spill] sm:$0xff] %v15584_v60  ;;  %v4952_v53 = vpop.f32.mrf.mxu0 }
 0x843   :  { %v5428_v15 = vadd.f32 %v4952_v53, %v18120_v22  ;;  %v4020_v37 = vpop.f32.mrf.mxu1  ;;  %v18124_v22 = vld [vmem:[#allocation16_spill] sm:$0xff] }
 0x844   :  { %v15593_v10 = vadd.f32 %v4020_v37, %v2766_v36  ;;  %v11903_v59 = vpop.f32.mrf.mxu0 }
 0x845   :  { %v5553_v54 = vmax.f32 %v5428_v15, 0.0  ;;  %v11871_v39 = vpop.f32.mrf.mxu1  ;;  %v18125_v59 = vld [vmem:[#allocation17_spill] sm:$0xff] }
 0x846   :  { %18121 = vst [vmem:[#allocation11_spill] sm:$0xff] %v15593_v10  ;;  %v4957_v45 = vpop.f32.mrf.mxu0  ;;  %12001 = vmatmul.mubr.msk.bf16.gmra.mxu0 %vm1292_vm1, %v12407_v14 }
 0x847   :  { %v15598_v51 = vpack.c.bf16 %v5553_v54, %v5552_v43  ;;  %v4025_v52 = vpop.f32.mrf.mxu1  ;;  %12004 = vmatprep.mubr.msk.bf16.mxu0 %vm12562_vm14, %v18017_v8  ;;  %v5429_v37 = vadd.f32 %v4957_v45, %v18124_v22 }
 0x848   :  { %v15602_v53 = vadd.f32 %v4025_v52, %v2767_v42  ;;  %v11906_v36 = vpop.f32.mrf.mxu0  ;;  %v18126_v52 = vld [vmem:[#allocation18_spill] sm:$0xff] }
 0x849   :  { %v11874_v7 = vpop.f32.mrf.mxu1  ;;  %v5554_v54 = vmax.f32 %v5429_v37, 0.0 }
 0x84a   :  { %18123 = vst [vmem:[#allocation12_spill] sm:$0xff] %v15602_v53  ;;  %v4960_v15 = vpop.f32.mrf.mxu0  ;;  %v12409_v7 = vld [vmem:[%s17976_s9 + $0xf8] sm:$0xff]   ;;  %v18146_v53 = vld [vmem:[#allocation37_spill] sm:$0xff] }
 0x84b   :  { %v5430_v39 = vadd.f32 %v4960_v15, %v18125_v59  ;;  %v4028_v14 = vpop.f32.mrf.mxu1  ;;  %v18127_v15 = vld [vmem:[#allocation19_spill] sm:$0xff] }
 0x84c   :  { %v11907_v43 = vpop.f32.mrf.mxu0 }
 0x84d   :  { %v5555_v13 = vmax.f32 %v5430_v39, 0.0  ;;  %v11875_v10 = vpop.f32.mrf.mxu1 }
 0x84e   :  { %v4965_v60 = vpop.f32.mrf.mxu0  ;;  %12005 = vmatmul.mubr.msk.bf16.gmra.mxu0 %vm1292_vm1, %v12408_v57 }
 0x84f   :  { %v5926_v42 = vpack.c.bf16 %v5555_v13, %v5554_v54  ;;  %12008 = vmatprep.mubr.msk.bf16.mxu0 %vm12562_vm14, %v18017_v8  ;;  %v5431_v36 = vadd.f32 %v4965_v60, %v18126_v52  ;;  %v18128_v54 = vld [vmem:[#allocation20_spill] sm:$0xff]  ;;  %v18129_v52 = vld [vmem:[#allocation21_spill] sm:$0xff] }
 0x850   :  { %v11910_v45 = vpop.f32.mrf.mxu0 }
 0x851   :  { %v5556_v39 = vmax.f32 %v5431_v36, 0.0  ;;  %v12410_v45 = vld [vmem:[%s17976_s9 + $0x100] sm:$0xff]  }
 0x852   :  { %v4968_v22 = vpop.f32.mrf.mxu0 }
 0x853   :  { %v5432_v59 = vadd.f32 %v4968_v22, %v18127_v15 }
 0x854   :  { %v11911_v37 = vpop.f32.mrf.mxu0 }
 0x855   :  { %v5557_v10 = vmax.f32 %v5432_v59, 0.0 }
 0x856   :  { %v4973_v14 = vpop.f32.mrf.mxu0  ;;  %12009 = vmatmul.mubr.msk.bf16.gmra.mxu0 %vm1292_vm1, %v12409_v7 }
 0x857   :  { %v5927_v57 = vpack.c.bf16 %v5557_v10, %v5556_v39  ;;  %12012 = vmatprep.mubr.msk.bf16.mxu0 %vm12562_vm14, %v18017_v8  ;;  %v5433_v60 = vadd.f32 %v4973_v14, %v18128_v54  ;;  %v18130_v39 = vld [vmem:[#allocation22_spill] sm:$0xff]  ;;  %v18131_v54 = vmov 0  }
 0x858   :  { %v11914_v43 = vpop.f32.mrf.mxu0 }
 0x859   :  { %v5558_v36 = vmax.f32 %v5433_v60, 0.0  ;;  %v18132_v60 = vld [vmem:[#allocation23_spill] sm:$0xff] }
 0x85a   :  { %v4976_v13 = vpop.f32.mrf.mxu0 }
 0x85b   :  { %v5434_v22 = vadd.f32 %v4976_v13, %v18129_v52  ;;  %v12411_v13 = vld [vmem:[%s17976_s9 + $0x108] sm:$0xff]  }
 0x85c   :  { %v11915_v15 = vpop.f32.mrf.mxu0 }
 0x85d   :  { %v5559_v59 = vmax.f32 %v5434_v22, 0.0 }
 0x85e   :  { %v4981_v37 = vpop.f32.mrf.mxu0  ;;  %12013 = vmatmul.mubr.msk.bf16.gmra.mxu0 %vm1292_vm1, %v12410_v45 }
 0x85f   :  { %v5928_v7 = vpack.c.bf16 %v5559_v59, %v5558_v36  ;;  %v5435_v10 = vadd.f32 %v4981_v37, %v18130_v39  ;;  %12016 = vmatprep.mubr.msk.bf16.mxu0 %vm12562_vm14, %v18017_v8  ;;  %v18133_v37 = vld [vmem:[#allocation24_spill] sm:$0xff] }
 0x860   :  { %v11918_v14 = vpop.f32.mrf.mxu0 }
 0x861   :  { %7700 = vmatpush1.bf16.msra.mxu1 %v5928_v7  ;;  %v5560_v15 = vmax.f32 %v5435_v10, 0.0  ;;  %v18134_v10 = vld [vmem:[#allocation25_spill] sm:$0xff] }
 0x862   :  { %v4984_v43 = vpop.f32.mrf.mxu0  ;;  %7701 = vmatprep.subr.bf16.mxu1 %v18131_v54 }
 0x863   :  { %v5436_v52 = vadd.f32 %v4984_v43, %v18132_v60 }
 0x864   :  { %v11919_v22 = vpop.f32.mrf.mxu0 }
 0x865   :  { %v5561_v45 = vmax.f32 %v5436_v52, 0.0  ;;  %7702 = vmatpush1.bf16.msra.mxu1 %v5927_v57  ;;  %v12412_v57 = vld [vmem:[%s17976_s9 + $0x110] sm:$0xff]  }
 0x866   :  { %v4989_v36 = vpop.f32.mrf.mxu0  ;;  %12017 = vmatmul.mubr.msk.bf16.gmra.mxu0 %vm1292_vm1, %v12411_v13  ;;  %7703 = vmatprep.subr.bf16.mxu1 %v18131_v54 }
 0x867   :  { %v15636_v59 = vpack.c.bf16 %v5561_v45, %v5560_v15  ;;  %v5437_v7 = vadd.f32 %v4989_v36, %v18133_v37  ;;  %12020 = vmatprep.mubr.msk.bf16.mxu0 %vm12562_vm14, %v18017_v8  ;;  %v18135_v15 = vld [vmem:[#allocation26_spill] sm:$0xff] }
 0x868   :  { %v11922_v39 = vpop.f32.mrf.mxu0 }
 0x869   :  { %7704 = vmatpush1.bf16.msra.mxu1 %v5926_v42  ;;  %v5562_v60 = vmax.f32 %v5437_v7, 0.0  ;;  %v18136_v7 = vld [vmem:[#allocation27_spill] sm:$0xff] }
 0x86a   :  { %v4992_v14 = vpop.f32.mrf.mxu0  ;;  %7705 = vmatprep.subr.bf16.mxu1 %v18131_v54 }
 0x86b   :  { %v5438_v43 = vadd.f32 %v4992_v14, %v18134_v10 }
 0x86c   :  { %v11923_v13 = vpop.f32.mrf.mxu0 }
 0x86d   :  { %v5563_v52 = vmax.f32 %v5438_v43, 0.0  ;;  %7706 = vmatpush1.bf16.msra.mxu1 %v15598_v51  ;;  %v12413_v51 = vld [vmem:[%s17976_s9 + $0x118] sm:$0xff]  }
 0x86e   :  { %v4997_v22 = vpop.f32.mrf.mxu0  ;;  %12021 = vmatmul.mubr.msk.bf16.gmra.mxu0 %vm1292_vm1, %v12412_v57  ;;  %7707 = vmatprep.subr.bf16.mxu1 %v18131_v54 }
 0x86f   :  { %v15649_v42 = vpack.c.bf16 %v5563_v52, %v5562_v60  ;;  %v5439_v45 = vadd.f32 %v4997_v22, %v18135_v15  ;;  %12024 = vmatprep.mubr.msk.bf16.mxu0 %vm12562_vm14, %v18017_v8  ;;  %v18137_v60 = vld [vmem:[#allocation28_spill] sm:$0xff]  ;;  %v18138_v15 = vld [vmem:[#allocation29_spill] sm:$0xff] }
 0x870   :  { %v11926_v36 = vpop.f32.mrf.mxu0 }
 0x871   :  { %7708 = vmatpush1.bf16.msra.mxu1 %v15580_v2  ;;  %v5564_v57 = vmax.f32 %v5439_v45, 0.0 }
 0x872   :  { %v5000_v37 = vpop.f32.mrf.mxu0  ;;  %7709 = vmatprep.subr.bf16.mxu1 %v18131_v54 }
 0x873   :  { %v5440_v39 = vadd.f32 %v5000_v37, %v18136_v7 }
 0x874   :  { %v11927_v14 = vpop.f32.mrf.mxu0 }
 0x875   :  { %v5565_v10 = vmax.f32 %v5440_v39, 0.0  ;;  %7710 = vmatpush1.bf16.msra.mxu1 %v15548_v38  ;;  %v12414_v38 = vld [vmem:[%s17976_s9 + $0x120] sm:$0xff]   ;;  %v18139_v14 = vld [vmem:[#allocation30_spill] sm:$0xff] }
 0x876   :  { %v5005_v43 = vpop.f32.mrf.mxu0  ;;  %12025 = vmatmul.mubr.msk.bf16.gmra.mxu0 %vm1292_vm1, %v12413_v51  ;;  %7711 = vmatprep.subr.bf16.mxu1 %v18131_v54 }
 0x877   :  { %v15663_v2 = vpack.c.bf16 %v5565_v10, %v5564_v57  ;;  %12028 = vmatprep.mubr.msk.bf16.mxu0 %vm12562_vm14, %v18017_v8  ;;  %v5441_v52 = vadd.f32 %v5005_v43, %v18137_v60  ;;  %v12415_v43 = vld [vmem:[%s17976_s9 + $0x128] sm:$0xff]  }
 0x878   :  { %v11930_v13 = vpop.f32.mrf.mxu0 }
 0x879   :  { %7712 = vmatpush1.bf16.msra.mxu1 %v15530_v19  ;;  %v5566_v37 = vmax.f32 %v5441_v52, 0.0  ;;  %v18140_v13 = vld [vmem:[#allocation31_spill] sm:$0xff] }
 0x87a   :  { %v5008_v22 = vpop.f32.mrf.mxu0  ;;  %7713 = vmatprep.subr.bf16.mxu1 %v18131_v54 }
 0x87b   :  { %v5442_v45 = vadd.f32 %v5008_v22, %v18138_v15 }
 0x87c   :  { %v11931_v36 = vpop.f32.mrf.mxu0 }
 0x87d   :  { %v5567_v51 = vmax.f32 %v5442_v45, 0.0  ;;  %7714 = vmatpush1.bf16.msra.mxu1 %v15512_v40  ;;  %v18141_v36 = vld [vmem:[#allocation32_spill] sm:$0xff] }
 0x87e   :  { %v5013_v7 = vpop.f32.mrf.mxu0  ;;  %12029 = vmatmul.mubr.msk.bf16.gmra.mxu0 %vm1292_vm1, %v12414_v38  ;;  %7715 = vmatprep.subr.bf16.mxu1 %v18131_v54 }
 0x87f   :  { %v15677_v19 = vpack.c.bf16 %v5567_v51, %v5566_v37  ;;  %12032 = vmatprep.mubr.msk.bf16.mxu0 %vm12562_vm14, %v18017_v8  ;;  %v5443_v57 = vadd.f32 %v5013_v7, %v18139_v14  ;;  %v12416_v7 = vld [vmem:[%s17976_s9 + $0x130] sm:$0xff]  }
 0x880   :  { %v11934_v39 = vpop.f32.mrf.mxu0 }
 0x881   :  { %v5568_v52 = vmax.f32 %v5443_v57, 0.0  ;;  %v18142_v39 = vld [vmem:[#allocation33_spill] sm:$0xff] }
 0x882   :  { %v5016_v10 = vpop.f32.mrf.mxu0 }
 0x883   :  { %v5444_v40 = vadd.f32 %v5016_v10, %v18140_v13 }
 0x884   :  { %v11935_v60 = vpop.f32.mrf.mxu0 }
 0x885   :  { %v5569_v22 = vmax.f32 %v5444_v40, 0.0 }
 0x886   :  { %v5021_v38 = vpop.f32.mrf.mxu0  ;;  %12033 = vmatmul.mubr.msk.bf16.gmra.mxu0 %vm1292_vm1, %v12415_v43 }
 0x887   :  { %v15687_v15 = vpack.c.bf16 %v5569_v22, %v5568_v52  ;;  %12036 = vmatprep.mubr.msk.bf16.mxu0 %vm12562_vm14, %v18017_v8  ;;  %v5445_v37 = vadd.f32 %v5021_v38, %v18141_v36  ;;  %v18143_v52 = vld [vmem:[#allocation34_spill] sm:$0xff]  ;;  %v18144_v36 = vld [vmem:[#allocation35_spill] sm:$0xff] }
 0x888   :  { %v11938_v45 = vpop.f32.mrf.mxu0 }
 0x889   :  { %v5570_v10 = vmax.f32 %v5445_v37, 0.0  ;;  %v12417_v45 = vld [vmem:[%s17976_s9 + $0x138] sm:$0xff]  }
 0x88a   :  { %v5024_v51 = vpop.f32.mrf.mxu0 }
 0x88b   :  { %v5446_v14 = vadd.f32 %v5024_v51, %v18142_v39 }
 0x88c   :  { %v11939_v57 = vpop.f32.mrf.mxu0 }
 0x88d   :  { %v5571_v13 = vmax.f32 %v5446_v14, 0.0 }
 0x88e   :  { %v5029_v40 = vpop.f32.mrf.mxu0  ;;  %12037 = vmatmul.mubr.msk.bf16.gmra.mxu0 %vm1292_vm1, %v12416_v7 }
 0x88f   :  { %v5934_v43 = vpack.c.bf16 %v5571_v13, %v5570_v10  ;;  %12040 = vmatprep.mubr.msk.bf16.mxu0 %vm12562_vm14, %v18017_v8  ;;  %v5447_v22 = vadd.f32 %v5029_v40, %v18143_v52  ;;  %v18145_v13 = vld [vmem:[#allocation36_spill] sm:$0xff] }
 0x890   :  { %v11942_v60 = vpop.f32.mrf.mxu0  ;;  %v12418_v52 = vld [vmem:[%s17976_s9 + $0x140] sm:$0xff]  }
 0x891   :  { %v5572_v37 = vmax.f32 %v5447_v22, 0.0 }
 0x892   :  { %v5032_v38 = vpop.f32.mrf.mxu0 }
 0x893   :  { %v5448_v51 = vadd.f32 %v5032_v38, %v18144_v36 }
 0x894   :  { %v11943_v39 = vpop.f32.mrf.mxu0 }
 0x895   :  { %v5573_v14 = vmax.f32 %v5448_v51, 0.0 }
 0x896   :  { %v5037_v57 = vpop.f32.mrf.mxu0  ;;  %12041 = vmatmul.mubr.msk.bf16.gmra.mxu0 %vm1292_vm1, %v12417_v45 }
 0x897   :  { %v5935_v7 = vpack.c.bf16 %v5573_v14, %v5572_v37  ;;  %12044 = vmatprep.mubr.msk.bf16.mxu0 %vm12562_vm14, %v18017_v8  ;;  %v5449_v40 = vadd.f32 %v5037_v57, %v18145_v13  ;;  %v18147_v37 = vld [vmem:[#allocation39_spill] sm:$0xff]  ;;  %v18148_v13 = vld [vmem:[#allocation41_spill] sm:$0xff] }
 0x898   :  { %v11946_v10 = vpop.f32.mrf.mxu0 }
 0x899   :  { %v5574_v22 = vmax.f32 %v5449_v40, 0.0 }
 0x89a   :  { %v5040_v60 = vpop.f32.mrf.mxu0 }
 0x89b   :  { %v5450_v38 = vadd.f32 %v5040_v60, %v18146_v53  ;;  %v12419_v53 = vld [vmem:[%s17976_s9 + $0x148] sm:$0xff]  }
 0x89c   :  { %v11947_v36 = vpop.f32.mrf.mxu0 }
 0x89d   :  { %v5575_v51 = vmax.f32 %v5450_v38, 0.0 }
 0x89e   :  { %v5045_v39 = vpop.f32.mrf.mxu0  ;;  %12045 = vmatmul.mubr.msk.bf16.gmra.mxu0 %vm1292_vm1, %v12418_v52 }
 0x89f   :  { %v5936_v45 = vpack.c.bf16 %v5575_v51, %v5574_v22  ;;  %v5451_v14 = vadd.f32 %v5045_v39, %v18147_v37  ;;  %12048 = vmatprep.mubr.msk.bf16.mxu0 %vm12562_vm14, %v18017_v8  ;;  %v18149_v51 = vld [vmem:[#allocation42_spill] sm:$0xff] }
 0x8a0   :  { %v11950_v57 = vpop.f32.mrf.mxu0 }
 0x8a1   :  { %7716 = vmatpush2.bf16.msra.mxu1 %v5936_v45  ;;  %v5576_v38 = vmax.f32 %v5451_v14, 0.0  ;;  %v18150_v14 = vld [vmem:[#allocation44_spill] sm:$0xff] }
 0x8a2   :  { %v5048_v10 = vpop.f32.mrf.mxu0  ;;  %7717 = vmatprep.subr.bf16.mxu1 %v18131_v54 }
 0x8a3   :  { %v5452_v40 = vadd.f32 %v5048_v10, %v18148_v13 }
 0x8a4   :  { %v11951_v60 = vpop.f32.mrf.mxu0 }
 0x8a5   :  { %v5577_v52 = vmax.f32 %v5452_v40, 0.0  ;;  %7718 = vmatpush2.bf16.msra.mxu1 %v5935_v7  ;;  %v12420_v7 = vld [vmem:[%s17976_s9 + $0x150] sm:$0xff]  }
 0x8a6   :  { %v5053_v36 = vpop.f32.mrf.mxu0  ;;  %12049 = vmatmul.mubr.msk.bf16.gmra.mxu0 %vm1292_vm1, %v12419_v53  ;;  %7719 = vmatprep.subr.bf16.mxu1 %v18131_v54  ;;  %v18151_v60 = vld [vmem:[#allocation46_spill] sm:$0xff] }
 0x8a7   :  { %v15723_v22 = vpack.c.bf16 %v5577_v52, %v5576_v38  ;;  %v5453_v39 = vadd.f32 %v5053_v36, %v18149_v51  ;;  %12052 = vmatprep.mubr.msk.bf16.mxu0 %vm12562_vm14, %v18017_v8  ;;  %v18152_v51 = vld [vmem:[#allocation47_spill] sm:$0xff] }
 0x8a8   :  { %v11954_v45 = vpop.f32.mrf.mxu0 }
 0x8a9   :  { %7720 = vmatpush2.bf16.msra.mxu1 %v5934_v43  ;;  %v5578_v53 = vmax.f32 %v5453_v39, 0.0 }
 0x8aa   :  { %v5056_v37 = vpop.f32.mrf.mxu0  ;;  %7721 = vmatprep.subr.bf16.mxu1 %v18131_v54 }
 0x8ab   :  { %v5454_v57 = vadd.f32 %v5056_v37, %v18150_v14 }
 0x8ac   :  { %v11955_v10 = vpop.f32.mrf.mxu0 }
 0x8ad   :  { %v5579_v13 = vmax.f32 %v5454_v57, 0.0  ;;  %7722 = vmatpush2.bf16.msra.mxu1 %v15687_v15  ;;  %v12421_v15 = vld [vmem:[%s17976_s9 + $0x158] sm:$0xff]   ;;  %v18153_v10 = vld [vmem:[#allocation49_spill] sm:$0xff] }
 0x8ae   :  { %v5061_v40 = vpop.f32.mrf.mxu0  ;;  %12053 = vmatmul.mubr.msk.bf16.gmra.mxu0 %vm1292_vm1, %v12420_v7  ;;  %7723 = vmatprep.subr.bf16.mxu1 %v18131_v54 }
 0x8af   :  { %v15736_v43 = vpack.c.bf16 %v5579_v13, %v5578_v53  ;;  %v5455_v38 = vadd.f32 %v5061_v40, %v18151_v60  ;;  %12056 = vmatprep.mubr.msk.bf16.mxu0 %vm12562_vm14, %v18017_v8  ;;  %v5677_v40 = vld [vmem:[%s17978_s11 + $0x40] sm:$0xff] }
 0x8b0   :  { %v11958_v52 = vpop.f32.mrf.mxu0  ;;  %v5681_v60 = vld [vmem:[%s17978_s11 + $0x60] sm:$0xff] }
 0x8b1   :  { %7724 = vmatpush2.bf16.msra.mxu1 %v15677_v19  ;;  %v5580_v37 = vmax.f32 %v5455_v38, 0.0  ;;  %v18154_v38 = vld [vmem:[#allocation51_spill] sm:$0xff] }
 0x8b2   :  { %v5064_v36 = vpop.f32.mrf.mxu0  ;;  %7725 = vmatprep.subr.bf16.mxu1 %v18131_v54 }
 0x8b3   :  { %v5456_v39 = vadd.f32 %v5064_v36, %v18152_v51  ;;  %v10574_v51 = vcombine.high %v5677_v40, %v5681_v60 }
 0x8b4   :  { %v11959_v45 = vpop.f32.mrf.mxu0 }
 0x8b5   :  { %v5581_v7 = vmax.f32 %v5456_v39, 0.0  ;;  %7726 = vmatpush2.bf16.msra.mxu1 %v15663_v2  ;;  %v12422_v2 = vld [vmem:[%s17976_s9 + $0x160] sm:$0xff]  }
 0x8b6   :  { %v5069_v14 = vpop.f32.mrf.mxu0  ;;  %12057 = vmatmul.mubr.msk.bf16.gmra.mxu0 %vm1292_vm1, %v12421_v15  ;;  %7727 = vmatprep.subr.bf16.mxu1 %v18131_v54 }
 0x8b7   :  { %v15750_v19 = vpack.c.bf16 %v5581_v7, %v5580_v37  ;;  %12060 = vmatprep.mubr.msk.bf16.mxu0 %vm12562_vm14, %v18017_v8  ;;  %v5457_v53 = vadd.f32 %v5069_v14, %v18153_v10  ;;  %v18155_v7 = vcombine.low %v15566_v24, %v15571_v30  ;;  %v18156_v14 = vld [vmem:[#allocation52_spill] sm:$0xff]  ;;  %v12423_v10 = vld [vmem:[%s17976_s9 + $0x168] sm:$0xff]   ;;  %v10573_v30 = vcombine.low %v5677_v40, %v5681_v60  ;;  %v12424_v40 = vld [vmem:[%s17976_s9 + $0x170] sm:$0xff]  }
 0x8b8   :  { %v11962_v57 = vpop.f32.mrf.mxu0  ;;  %v5693_v60 = vld [vmem:[%s17978_s11 + $0xc0] sm:$0xff] }
 0x8b9   :  { %7728 = vmatpush2.bf16.msra.mxu1 %v15649_v42  ;;  %v5582_v15 = vmax.f32 %v5457_v53, 0.0  ;;  %v5685_v53 = vld [vmem:[%s17978_s11 + $0x80] sm:$0xff] }
 0x8ba   :  { %v5072_v13 = vpop.f32.mrf.mxu0  ;;  %7729 = vmatprep.subr.bf16.mxu1 %v18131_v54 }
 0x8bb   :  { %v5458_v52 = vadd.f32 %v5072_v13, %v18154_v38  ;;  %v5689_v13 = vld [vmem:[%s17978_s11 + $0xa0] sm:$0xff] }
 0x8bc   :  { %v11963_v36 = vpop.f32.mrf.mxu0 }
 0x8bd   :  { %v5583_v42 = vmax.f32 %v5458_v52, 0.0  ;;  %7730 = vmatpush2.bf16.msra.mxu1 %v15636_v59 }
 0x8be   :  { %v5077_v39 = vpop.f32.mrf.mxu0  ;;  %12061 = vmatmul.mubr.msk.bf16.gmra.mxu0 %vm1292_vm1, %v12422_v2  ;;  %7987 = vmatprep.subr.bf16.mxu1 %v18131_v54  ;;  %v18157_v2 = vld [vmem:[#allocation53_spill] sm:$0xff] }
 0x8bf   :  { %v15770_v45 = vpack.c.bf16 %v5583_v42, %v5582_v15  ;;  %12064 = vmatprep.mubr.msk.bf16.mxu0 %vm12562_vm14, %v18017_v8  ;;  %v5459_v57 = vadd.f32 %v5077_v39, %v18156_v14  ;;  %v10582_v15 = vcombine.high %v5685_v53, %v5689_v13 }
 0x8c0   :  { %v11966_v37 = vpop.f32.mrf.mxu0  ;;  %7732 = vmatmul.mubr.bf16.vlgmr.msra.gmra.mxu1 %v18155_v7 }
 0x8c1   :  { %7739 = vmatprep.mubr.bf16.mxu1 %v10574_v51  ;;  %v5584_v52 = vmax.f32 %v5459_v57, 0.0  ;;  %v18158_v37 = vld [vmem:[#allocation54_spill] sm:$0xff]  ;;  %v5697_v57 = vld [vmem:[%s17978_s11 + $0xe0] sm:$0xff] }
 0x8c2   :  { %v5080_v59 = vpop.f32.mrf.mxu0 }
 0x8c3   :  { %v5460_v38 = vadd.f32 %v5080_v59, %v18157_v2  ;;  %v18159_v59 = vld [vmem:[#allocation55_spill] sm:$0xff] }
 0x8c4   :  { %v11967_v24 = vpop.f32.mrf.mxu0 }
 0x8c5   :  { %v5585_v36 = vmax.f32 %v5460_v38, 0.0  ;;  %v10581_v38 = vcombine.low %v5685_v53, %v5689_v13  ;;  %v12425_v53 = vld [vmem:[%s17976_s9 + $0x178] sm:$0xff]   ;;  %v5701_v13 = vld [vmem:[%s17978_s11 + $0x100] sm:$0xff] }
 0x8c6   :  { %v5085_v42 = vpop.f32.mrf.mxu0  ;;  %12065 = vmatmul.mubr.msk.bf16.gmra.mxu0 %vm1292_vm1, %v12423_v10 }
 0x8c7   :  { %v15789_v51 = vpack.c.bf16 %v5585_v36, %v5584_v52  ;;  %12068 = vmatprep.mubr.msk.bf16.mxu0 %vm12562_vm14, %v18017_v8  ;;  %v5461_v7 = vadd.f32 %v5085_v42, %v18158_v37  ;;  %v10590_v52 = vcombine.high %v5693_v60, %v5697_v57 }
 0x8c8   :  { %v11970_v39 = vpop.f32.mrf.mxu0  ;;  %7740 = vmatmul.mubr.bf16.gmra.mxu1 %v10573_v30 }
 0x8c9   :  { %7747 = vmatprep.mubr.bf16.mxu1 %v10582_v15  ;;  %v5586_v24 = vmax.f32 %v5461_v7, 0.0  ;;  %v18160_v39 = vld [vmem:[#allocation56_spill] sm:$0xff] }
 0x8ca   :  { %v5088_v14 = vpop.f32.mrf.mxu0  ;;  %v5705_v7 = vld [vmem:[%s17978_s11 + $0x120] sm:$0xff] }
 0x8cb   :  { %v5462_v10 = vadd.f32 %v5088_v14, %v18159_v59  ;;  %v18161_v14 = vld [vmem:[#allocation57_spill] sm:$0xff] }
 0x8cc   :  { %v11971_v2 = vpop.f32.mrf.mxu0 }
 0x8cd   :  { %v5587_v30 = vmax.f32 %v5462_v10, 0.0  ;;  %v10589_v10 = vcombine.low %v5693_v60, %v5697_v57  ;;  %v5709_v60 = vld [vmem:[%s17978_s11 + $0x140] sm:$0xff] }
 0x8ce   :  { %v5093_v36 = vpop.f32.mrf.mxu0  ;;  %12069 = vmatmul.mubr.msk.bf16.gmra.mxu0 %vm1292_vm1, %v12424_v40  ;;  %v5713_v57 = vld [vmem:[%s17978_s11 + $0x160] sm:$0xff] }
 0x8cf   :  { %v5942_v15 = vpack.c.bf16 %v5587_v30, %v5586_v24  ;;  %12072 = vmatprep.mubr.msk.bf16.mxu0 %vm12562_vm14, %v18017_v8  ;;  %v5463_v37 = vadd.f32 %v5093_v36, %v18160_v39  ;;  %v10598_v24 = vcombine.high %v5701_v13, %v5705_v7 }
 0x8d0   :  { %v11974_v42 = vpop.f32.mrf.mxu0  ;;  %7748 = vmatmul.mubr.bf16.gmra.mxu1 %v10581_v38 }
 0x8d1   :  { %7755 = vmatprep.mubr.bf16.mxu1 %v10590_v52  ;;  %v5588_v2 = vmax.f32 %v5463_v37, 0.0  ;;  %v18162_v42 = vld [vmem:[#allocation58_spill] sm:$0xff]  ;;  %v18163_v37 = vld [vmem:[#allocation59_spill] sm:$0xff] }
 0x8d2   :  { %v5096_v56 = vpop.f32.mrf.mxu0 }
 0x8d3   :  { %v5464_v40 = vadd.f32 %v5096_v56, %v18161_v14  ;;  %v12426_v56 = vld [vmem:[%s17976_s9 + $0x180] sm:$0xff]  }
 0x8d4   :  { %v11975_v59 = vpop.f32.mrf.mxu0 }
 0x8d5   :  { %v5589_v38 = vmax.f32 %v5464_v40, 0.0  ;;  %v10597_v40 = vcombine.low %v5701_v13, %v5705_v7  ;;  %v5717_v13 = vld [vmem:[%s17978_s11 + $0x180] sm:$0xff] }
 0x8d6   :  { %v5101_v30 = vpop.f32.mrf.mxu0  ;;  %12073 = vmatmul.mubr.msk.bf16.gmra.mxu0 %vm1292_vm1, %v12425_v53  ;;  %v5721_v7 = vld [vmem:[%s17978_s11 + $0x1a0] sm:$0xff] }
 0x8d7   :  { %v5943_v52 = vpack.c.bf16 %v5589_v38, %v5588_v2  ;;  %12076 = vmatprep.mubr.msk.bf16.mxu0 %vm12562_vm14, %v18017_v8  ;;  %v5465_v39 = vadd.f32 %v5101_v30, %v18162_v42  ;;  %v10606_v2 = vcombine.high %v5709_v60, %v5713_v57  ;;  %v18164_v30 = vld [vmem:[#allocation60_spill] sm:$0xff] }
 0x8d8   :  { %v11978_v36 = vpop.f32.mrf.mxu0  ;;  %7756 = vmatmul.mubr.bf16.gmra.mxu1 %v10589_v10 }
 0x8d9   :  { %7763 = vmatprep.mubr.bf16.mxu1 %v10598_v24  ;;  %v5590_v59 = vmax.f32 %v5465_v39, 0.0  ;;  %v18165_v39 = vld [vmem:[#allocation61_spill] sm:$0xff] }
 0x8da   :  { %v5104_v58 = vpop.f32.mrf.mxu0 }
 0x8db   :  { %v5466_v53 = vadd.f32 %v5104_v58, %v18163_v37  ;;  %v12427_v58 = vld [vmem:[%s17976_s9 + $0x188] sm:$0xff]  }
 0x8dc   :  { %v11979_v14 = vpop.f32.mrf.mxu0 }
 0x8dd   :  { %v5591_v10 = vmax.f32 %v5466_v53, 0.0  ;;  %v10605_v53 = vcombine.low %v5709_v60, %v5713_v57  ;;  %v5725_v60 = vld [vmem:[%s17978_s11 + $0x1c0] sm:$0xff] }
 0x8de   :  { %v5109_v38 = vpop.f32.mrf.mxu0  ;;  %12077 = vmatmul.mubr.msk.bf16.gmra.mxu0 %vm1292_vm1, %v12426_v56  ;;  %v5729_v57 = vld [vmem:[%s17978_s11 + $0x1e0] sm:$0xff] }
 0x8df   :  { %v5944_v24 = vpack.c.bf16 %v5591_v10, %v5590_v59  ;;  %v5467_v36 = vadd.f32 %v5109_v38, %v18164_v30  ;;  %12080 = vmatprep.mubr.msk.bf16.mxu0 %vm12562_vm14, %v18017_v8  ;;  %v10614_v59 = vcombine.high %v5717_v13, %v5721_v7  ;;  %v18166_v38 = vld [vmem:[#allocation62_spill] sm:$0xff] }
 0x8e0   :  { %v11982_v42 = vpop.f32.mrf.mxu0  ;;  %7764 = vmatmul.mubr.bf16.gmra.mxu1 %v10597_v40 }
 0x8e1   :  { %7988 = vmatpush1.bf16.msra.mxu1 %v5944_v24  ;;  %7771 = vmatprep.mubr.bf16.mxu1 %v10606_v2  ;;  %v5592_v14 = vmax.f32 %v5467_v36, 0.0  ;;  %v18167_v36 = vld [vmem:[#allocation63_spill] sm:$0xff] }
 0x8e2   :  { %v5112_v32 = vpop.f32.mrf.mxu0  ;;  %7989 = vmatprep.subr.bf16.mxu1 %v18131_v54 }
 0x8e3   :  { %v5468_v56 = vadd.f32 %v5112_v32, %v18165_v39 }
 0x8e4   :  { %v11983_v37 = vpop.f32.mrf.mxu0 }
 0x8e5   :  { %v5593_v40 = vmax.f32 %v5468_v56, 0.0  ;;  %7990 = vmatpush1.bf16.msra.mxu1 %v5943_v52  ;;  %v12428_v52 = vld [vmem:[%s17976_s9 + $0x190] sm:$0xff]   ;;  %v10622_v37 = vcombine.high %v5725_v60, %v5729_v57 }
 0x8e6   :  { %v5117_v10 = vpop.f32.mrf.mxu0  ;;  %12081 = vmatmul.mubr.msk.bf16.gmra.mxu0 %vm1292_vm1, %v12427_v58  ;;  %7991 = vmatprep.subr.bf16.mxu1 %v18131_v54 }
 0x8e7   :  { %v15849_v2 = vpack.c.bf16 %v5593_v40, %v5592_v14  ;;  %v5469_v24 = vadd.f32 %v5117_v10, %v18166_v38  ;;  %12084 = vmatprep.mubr.msk.bf16.mxu0 %vm12562_vm14, %v18017_v8  ;;  %v18168_v40 = vld [vmem:[#allocation64_spill] sm:$0xff] }
 0x8e8   :  { %v11986_v30 = vpop.f32.mrf.mxu0  ;;  %7772 = vmatmul.mubr.bf16.gmra.mxu1 %v10605_v53  ;;  %v5737_v38 = vld [vmem:[%s17978_s11 + $0x220] sm:$0xff] }
 0x8e9   :  { %7992 = vmatpush1.bf16.msra.mxu1 %v5942_v15  ;;  %7779 = vmatprep.mubr.bf16.mxu1 %v10614_v59  ;;  %v10613_v15 = vcombine.low %v5717_v13, %v5721_v7  ;;  %v5594_v39 = vmax.f32 %v5469_v24, 0.0  ;;  %v5733_v7 = vld [vmem:[%s17978_s11 + $0x200] sm:$0xff] }
 0x8ea   :  { %v5120_v32 = vpop.f32.mrf.mxu0  ;;  %7993 = vmatprep.subr.bf16.mxu1 %v18131_v54  ;;  %v18169_v24 = vld [vmem:[#allocation65_spill] sm:$0xff] }
 0x8eb   :  { %v5470_v42 = vadd.f32 %v5120_v32, %v18167_v36 }
 0x8ec   :  { %v11987_v58 = vpop.f32.mrf.mxu0 }
 0x8ed   :  { %v5595_v56 = vmax.f32 %v5470_v42, 0.0  ;;  %7994 = vmatpush1.bf16.msra.mxu1 %v15789_v51  ;;  %v12429_v51 = vld [vmem:[%s17976_s9 + $0x198] sm:$0xff]   ;;  %v10630_v42 = vcombine.high %v5733_v7, %v5737_v38 }
 0x8ee   :  { %v5125_v53 = vpop.f32.mrf.mxu0  ;;  %12085 = vmatmul.mubr.msk.bf16.gmra.mxu0 %vm1292_vm1, %v12428_v52  ;;  %7995 = vmatprep.subr.bf16.mxu1 %v18131_v54 }
 0x8ef   :  { %v15868_v14 = vpack.c.bf16 %v5595_v56, %v5594_v39  ;;  %v5471_v59 = vadd.f32 %v5125_v53, %v18168_v40  ;;  %12088 = vmatprep.mubr.msk.bf16.mxu0 %vm12562_vm14, %v18017_v8  ;;  %v18170_v56 = vld [vmem:[#allocation66_spill] sm:$0xff]  ;;  %v5745_v53 = vld [vmem:[%s17978_s11 + $0x260] sm:$0xff] }
 0x8f0   :  { %v11990_v10 = vpop.f32.mrf.mxu0  ;;  %7780 = vmatmul.mubr.bf16.gmra.mxu1 %v10613_v15  ;;  %v18171_v40 = vld [vmem:[#allocation68_spill] sm:$0xff] }
 0x8f1   :  { %7996 = vmatpush1.bf16.msra.mxu1 %v15770_v45  ;;  %7787 = vmatprep.mubr.bf16.mxu1 %v10622_v37  ;;  %v10621_v45 = vcombine.low %v5725_v60, %v5729_v57  ;;  %v5596_v52 = vmax.f32 %v5471_v59, 0.0  ;;  %v5741_v57 = vld [vmem:[%s17978_s11 + $0x240] sm:$0xff] }
 0x8f2   :  { %v5128_v13 = vpop.f32.mrf.mxu0  ;;  %7997 = vmatprep.subr.bf16.mxu1 %v18131_v54 }
 0x8f3   :  { %v5472_v30 = vadd.f32 %v5128_v13, %v18169_v24  ;;  %v10638_v24 = vcombine.high %v5741_v57, %v5745_v53 }
 0x8f4   :  { %v11991_v32 = vpop.f32.mrf.mxu0 }
 0x8f5   :  { %v5597_v36 = vmax.f32 %v5472_v30, 0.0  ;;  %7998 = vmatpush1.bf16.msra.mxu1 %v15750_v19  ;;  %v12430_v19 = vld [vmem:[%s17976_s9 + $0x1a0] sm:$0xff]  }
 0x8f6   :  { %v5133_v58 = vpop.f32.mrf.mxu0  ;;  %12089 = vmatmul.mubr.msk.bf16.gmra.mxu0 %vm1292_vm1, %v12429_v51  ;;  %7999 = vmatprep.subr.bf16.mxu1 %v18131_v54 }
 0x8f7   :  { %v15888_v15 = vpack.c.bf16 %v5597_v36, %v5596_v52  ;;  %12092 = vmatprep.mubr.msk.bf16.mxu0 %vm12562_vm14, %v18017_v8  ;;  %v5473_v37 = vadd.f32 %v5133_v58, %v18170_v56  ;;  %v18172_v52 = vld [vmem:[#allocation69_spill] sm:$0xff]  ;;  %v18173_v58 = vld [vmem:[#allocation70_spill] sm:$0xff] }
 0x8f8   :  { %v11994_v39 = vpop.f32.mrf.mxu0  ;;  %7788 = vmatmul.mubr.bf16.gmra.mxu1 %v10621_v45 }
 0x8f9   :  { %8000 = vmatpush1.bf16.msra.mxu1 %v15736_v43  ;;  %7795 = vmatprep.mubr.bf16.mxu1 %v10630_v42  ;;  %v10629_v43 = vcombine.low %v5733_v7, %v5737_v38  ;;  %v5598_v13 = vmax.f32 %v5473_v37, 0.0  ;;  %v5749_v38 = vld [vmem:[%s17978_s11 + $0x280] sm:$0xff]  ;;  %v10637_v37 = vcombine.low %v5741_v57, %v5745_v53  ;;  %v12432_v57 = vld [vmem:[%s17976_s9 + $0x1b0] sm:$0xff]  }
 0x8fa   :  { %v5136_v60 = vpop.f32.mrf.mxu0  ;;  %8001 = vmatprep.subr.bf16.mxu1 %v18131_v54  ;;  %v5753_v42 = vld [vmem:[%s17978_s11 + $0x2a0] sm:$0xff] }
 0x8fb   :  { %v5474_v59 = vadd.f32 %v5136_v60, %v18171_v40  ;;  %v10646_v40 = vcombine.high %v5749_v38, %v5753_v42  ;;  %v5757_v53 = vld [vmem:[%s17978_s11 + $0x2c0] sm:$0xff] }
 0x8fc   :  { %v11995_v10 = vpop.f32.mrf.mxu0 }
 0x8fd   :  { %v5599_v51 = vmax.f32 %v5474_v59, 0.0  ;;  %8002 = vmatpush1.bf16.msra.mxu1 %v15723_v22  ;;  %v12431_v22 = vld [vmem:[%s17976_s9 + $0x1a8] sm:$0xff]  }
 0x8fe   :  { %v5141_v30 = vpop.f32.mrf.mxu0  ;;  %12093 = vmatmul.mubr.msk.bf16.gmra.mxu0 %vm1292_vm1, %v12430_v19  ;;  %8003 = vmatprep.subr.bf16.mxu1 %v18131_v54 }
 0x8ff   :  { %v15908_v32 = vpack.c.bf16 %v5599_v51, %v5598_v13  ;;  %12096 = vmatprep.mubr.msk.bf16.mxu0 %vm12562_vm14, %v18017_v8  ;;  %v5475_v36 = vadd.f32 %v5141_v30, %v18172_v52  ;;  %v18174_v13 = vld [vmem:[#allocation73_spill] sm:$0xff] }
 0x900   :  { %v11998_v45 = vpop.f32.mrf.mxu0  ;;  %7796 = vmatmul.mubr.bf16.gmra.mxu1 %v10629_v43  ;;  %v5761_v30 = vld [vmem:[%s17978_s11 + $0x2e0] sm:$0xff] }
 0x901   :  { %7803 = vmatprep.mubr.bf16.mxu1 %v10638_v24  ;;  %v5600_v60 = vmax.f32 %v5475_v36, 0.0  ;;  %v18175_v45 = vld [vmem:[#allocation74_spill] sm:$0xff] }
 0x902   :  { %v5144_v7 = vpop.f32.mrf.mxu0 }
 0x903   :  { %v5476_v39 = vadd.f32 %v5144_v7, %v18173_v58  ;;  %v10645_v7 = vcombine.low %v5749_v38, %v5753_v42  ;;  %v12433_v38 = vld [vmem:[%s17976_s9 + $0x1b8] sm:$0xff]   ;;  %v5765_v42 = vld [vmem:[%s17978_s11 + $0x300] sm:$0xff] }
 0x904   :  { %v11999_v56 = vpop.f32.mrf.mxu0 }
 0x905   :  { %v5601_v19 = vmax.f32 %v5476_v39, 0.0  ;;  %v10654_v39 = vcombine.high %v5757_v53, %v5761_v30 }
 0x906   :  { %v5149_v59 = vpop.f32.mrf.mxu0  ;;  %12097 = vmatmul.mubr.msk.bf16.gmra.mxu0 %vm1292_vm1, %v12431_v22 }
 0x907   :  { %v15924_v10 = vpack.c.bf16 %v5601_v19, %v5600_v60  ;;  %12100 = vmatprep.mubr.msk.bf16.mxu0 %vm12562_vm14, %v18017_v8  ;;  %v5477_v51 = vadd.f32 %v5149_v59, %v18174_v13  ;;  %v18176_v19 = vld [vmem:[#allocation75_spill] sm:$0xff]  ;;  %v18177_v13 = vld [vmem:[#allocation77_spill] sm:$0xff] }
 0x908   :  { %v12002_v43 = vpop.f32.mrf.mxu0  ;;  %7804 = vmatmul.mubr.bf16.gmra.mxu1 %v10637_v37 }
 0x909   :  { %7811 = vmatprep.mubr.bf16.mxu1 %v10646_v40  ;;  %v5602_v22 = vmax.f32 %v5477_v51, 0.0  ;;  %v5769_v43 = vld [vmem:[%s17978_s11 + $0x320] sm:$0xff] }
 0x90a   :  { %v5152_v24 = vpop.f32.mrf.mxu0 }
 0x90b   :  { %v5478_v52 = vadd.f32 %v5152_v24, %v18175_v45 }
 0x90c   :  { %v12003_v36 = vpop.f32.mrf.mxu0 }
 0x90d   :  { %v5603_v58 = vmax.f32 %v5478_v52, 0.0  ;;  %v10662_v36 = vcombine.high %v5765_v42, %v5769_v43 }
 0x90e   :  { %v5157_v56 = vpop.f32.mrf.mxu0  ;;  %12101 = vmatmul.mubr.msk.bf16.gmra.mxu0 %vm1292_vm1, %v12432_v57  ;;  %v10653_v57 = vcombine.low %v5757_v53, %v5761_v30  ;;  %v12434_v53 = vld [vmem:[%s17976_s9 + $0x1c0] sm:$0xff]  }
 0x90f   :  { %v5950_v37 = vpack.c.bf16 %v5603_v58, %v5602_v22  ;;  %12104 = vmatprep.mubr.msk.bf16.mxu0 %vm12562_vm14, %v18017_v8  ;;  %v5479_v40 = vadd.f32 %v5157_v56, %v18176_v19  ;;  %v5773_v30 = vld [vmem:[%s17978_s11 + $0x340] sm:$0xff] }
 0x910   :  { %v12006_v60 = vpop.f32.mrf.mxu0  ;;  %7812 = vmatmul.mubr.bf16.gmra.mxu1 %v10645_v7  ;;  %v5777_v19 = vld [vmem:[%s17978_s11 + $0x360] sm:$0xff] }
 0x911   :  { %7819 = vmatprep.mubr.bf16.mxu1 %v10654_v39  ;;  %v5604_v45 = vmax.f32 %v5479_v40, 0.0  ;;  %v18178_v39 = vld [vmem:[#allocation78_spill] sm:$0xff]  ;;  %v18179_v40 = vld [vmem:[#allocation79_spill] sm:$0xff] }
 0x912   :  { %v5160_v59 = vpop.f32.mrf.mxu0 }
 0x913   :  { %v5480_v51 = vadd.f32 %v5160_v59, %v18177_v13  ;;  %v10661_v13 = vcombine.low %v5765_v42, %v5769_v43  ;;  %v12435_v42 = vld [vmem:[%s17976_s9 + $0x1c8] sm:$0xff]   ;;  %v5781_v43 = vld [vmem:[%s17978_s11 + $0x380] sm:$0xff] }
 0x914   :  { %v12007_v24 = vpop.f32.mrf.mxu0 }
 0x915   :  { %v5605_v52 = vmax.f32 %v5480_v51, 0.0 }
 0x916   :  { %v5165_v7 = vpop.f32.mrf.mxu0  ;;  %12105 = vmatmul.mubr.msk.bf16.gmra.mxu0 %vm1292_vm1, %v12433_v38 }
 0x917   :  { %v5951_v22 = vpack.c.bf16 %v5605_v52, %v5604_v45  ;;  %12108 = vmatprep.mubr.msk.bf16.mxu0 %vm12562_vm14, %v18017_v8  ;;  %v5481_v56 = vadd.f32 %v5165_v7, %v18178_v39 }
 0x918   :  { %v12010_v58 = vpop.f32.mrf.mxu0  ;;  %7820 = vmatmul.mubr.bf16.gmra.mxu1 %v10653_v57  ;;  %v10670_v57 = vcombine.high %v5773_v30, %v5777_v19 }
 0x919   :  { %7827 = vmatprep.mubr.bf16.mxu1 %v10662_v36  ;;  %v5606_v51 = vmax.f32 %v5481_v56, 0.0  ;;  %v18180_v36 = vld [vmem:[#allocation80_spill] sm:$0xff] }
 0x91a   :  { %v5168_v60 = vpop.f32.mrf.mxu0  ;;  %v5785_v56 = vld [vmem:[%s17978_s11 + $0x3a0] sm:$0xff] }
 0x91b   :  { %v5482_v59 = vadd.f32 %v5168_v60, %v18179_v40  ;;  %v10669_v40 = vcombine.low %v5773_v30, %v5777_v19  ;;  %v5789_v30 = vld [vmem:[%s17978_s11 + $0x3c0] sm:$0xff] }
 0x91c   :  { %v12011_v38 = vpop.f32.mrf.mxu0 }
 0x91d   :  { %v5607_v24 = vmax.f32 %v5482_v59, 0.0 }
 0x91e   :  { %v5173_v45 = vpop.f32.mrf.mxu0  ;;  %12109 = vmatmul.mubr.msk.bf16.gmra.mxu0 %vm1292_vm1, %v12434_v53 }
 0x91f   :  { %v5952_v52 = vpack.c.bf16 %v5607_v24, %v5606_v51  ;;  %v5483_v7 = vadd.f32 %v5173_v45, %v18180_v36  ;;  %12112 = vmatprep.mubr.msk.bf16.mxu0 %vm12562_vm14, %v18017_v8 }
 0x920   :  { %v12014_v58 = vpop.f32.mrf.mxu0  ;;  %7828 = vmatmul.mubr.bf16.gmra.mxu1 %v10661_v13  ;;  %v10678_v13 = vcombine.high %v5781_v43, %v5785_v56 }
 0x921   :  { %8004 = vmatpush2.bf16.msra.mxu1 %v5952_v52  ;;  %7835 = vmatprep.mubr.bf16.mxu1 %v10670_v57  ;;  %v5608_v59 = vmax.f32 %v5483_v7, 0.0 }
 0x922   :  { %v5176_v39 = vpop.f32.mrf.mxu0  ;;  %8005 = vmatprep.subr.bf16.mxu1 %v18131_v54 }
 0x923   :  { %v5484_v60 = vadd.f32 %v5176_v39, %v15023_v35 }
 0x924   :  { %v12015_v53 = vpop.f32.mrf.mxu0 }
 0x925   :  { %v5609_v38 = vmax.f32 %v5484_v60, 0.0  ;;  %8006 = vmatpush2.bf16.msra.mxu1 %v5951_v22  ;;  %v12436_v22 = vld [vmem:[%s17976_s9 + $0x1d0] sm:$0xff]  }
 0x926   :  { %v5181_v51 = vpop.f32.mrf.mxu0  ;;  %12113 = vmatmul.mubr.msk.bf16.gmra.mxu0 %vm1292_vm1, %v12435_v42  ;;  %8007 = vmatprep.subr.bf16.mxu1 %v18131_v54 }
 0x927   :  { %v15984_v24 = vpack.c.bf16 %v5609_v38, %v5608_v59  ;;  %v5485_v57 = vadd.f32 %v5181_v51, %v15038_v61  ;;  %12116 = vmatprep.mubr.msk.bf16.mxu0 %vm12562_vm14, %v18017_v8  ;;  %v5793_v61 = vld [vmem:[%s17978_s11 + $0x3e0] sm:$0xff] }
 0x928   :  { %v12018_v45 = vpop.f32.mrf.mxu0  ;;  %7836 = vmatmul.mubr.bf16.gmra.mxu1 %v10669_v40  ;;  %v10686_v58 = vcombine.high %v5789_v30, %v5793_v61 }
 0x929   :  { %8008 = vmatpush2.bf16.msra.mxu1 %v5950_v37  ;;  %7843 = vmatprep.mubr.bf16.mxu1 %v10678_v13  ;;  %v10677_v37 = vcombine.low %v5781_v43, %v5785_v56  ;;  %v5610_v36 = vmax.f32 %v5485_v57, 0.0  ;;  %v5797_v56 = vld [vmem:[%s17978_s11 + $0x400] sm:$0xff] }
 0x92a   :  { %v5184_v35 = vpop.f32.mrf.mxu0  ;;  %8009 = vmatprep.subr.bf16.mxu1 %v18131_v54 }
 0x92b   :  { %v5486_v19 = vadd.f32 %v5184_v35, %v15052_v20 }
 0x92c   :  { %v12019_v52 = vpop.f32.mrf.mxu0 }
 0x92d   :  { %v5611_v7 = vmax.f32 %v5486_v19, 0.0  ;;  %8010 = vmatpush2.bf16.msra.mxu1 %v15924_v10  ;;  %v12437_v10 = vld [vmem:[%s17976_s9 + $0x1d8] sm:$0xff]   ;;  %v18182_v19 = vld [vmem:[#allocation82_spill] sm:$0xff] }
 0x92e   :  { %v5189_v39 = vpop.f32.mrf.mxu0  ;;  %12117 = vmatmul.mubr.msk.bf16.gmra.mxu0 %vm1292_vm1, %v12436_v22  ;;  %8011 = vmatprep.subr.bf16.mxu1 %v18131_v54 }
 0x92f   :  { %v16003_v42 = vpack.c.bf16 %v5611_v7, %v5610_v36  ;;  %v5487_v60 = vadd.f32 %v5189_v39, %v15062_v55  ;;  %12120 = vmatprep.mubr.msk.bf16.mxu0 %vm12562_vm14, %v18017_v8  ;;  %v5801_v55 = vld [vmem:[%s17978_s11 + $0x420] sm:$0xff] }
 0x930   :  { %v12022_v20 = vpop.f32.mrf.mxu0  ;;  %7844 = vmatmul.mubr.bf16.gmra.mxu1 %v10677_v37  ;;  %v10694_v13 = vcombine.high %v5797_v56, %v5801_v55 }
 0x931   :  { %8012 = vmatpush2.bf16.msra.mxu1 %v15908_v32  ;;  %7851 = vmatprep.mubr.bf16.mxu1 %v10686_v58  ;;  %v10685_v32 = vcombine.low %v5789_v30, %v5793_v61  ;;  %v5612_v59 = vmax.f32 %v5487_v60, 0.0  ;;  %v5805_v30 = vld [vmem:[%s17978_s11 + $0x440] sm:$0xff]  ;;  %v16045_v60 = vld [vmem:[%s17978_s11 + $0x10] sm:$0xff] }
 0x932   :  { %v5192_v43 = vpop.f32.mrf.mxu0  ;;  %8013 = vmatprep.subr.bf16.mxu1 %v18131_v54  ;;  %v5809_v61 = vld [vmem:[%s17978_s11 + $0x460] sm:$0xff]  ;;  %v16050_v20 = vld [vmem:[%s17978_s11 + $0x30] sm:$0xff] }
 0x933   :  { %v5488_v53 = vadd.f32 %v5192_v43, %v15076_v41  ;;  %v18181_v41 = vld [vmem:[#allocation81_spill] sm:$0xff]  ;;  %v10702_v58 = vcombine.high %v5805_v30, %v5809_v61 }
 0x934   :  { %v12023_v40 = vpop.f32.mrf.mxu0 }
 0x935   :  { %v5613_v38 = vmax.f32 %v5488_v53, 0.0  ;;  %8014 = vmatpush2.bf16.msra.mxu1 %v15888_v15  ;;  %v12438_v15 = vld [vmem:[%s17976_s9 + $0x1e0] sm:$0xff]   ;;  %v12439_v40 = vld [vmem:[%s17976_s9 + $0x1e8] sm:$0xff]  }
 0x936   :  { %v5197_v51 = vpop.f32.mrf.mxu0  ;;  %12121 = vmatmul.mubr.msk.bf16.gmra.mxu0 %vm1292_vm1, %v12437_v10  ;;  %8015 = vmatprep.subr.bf16.mxu1 %v18131_v54  ;;  %v10569_v10 = vcombine.low %v16045_v60, %v16050_v20 }
 0x937   :  { %v16023_v57 = vpack.c.bf16 %v5613_v38, %v5612_v59  ;;  %12124 = vmatprep.mubr.msk.bf16.mxu0 %vm12562_vm14, %v18017_v8  ;;  %v5489_v35 = vadd.f32 %v5197_v51, %v18181_v41  ;;  %v5817_v59 = vld [vmem:[%s17978_s11 + $0x4a0] sm:$0xff] }
 0x938   :  { %v12026_v45 = vpop.f32.mrf.mxu0  ;;  %7852 = vmatmul.mubr.bf16.gmra.mxu1 %v10685_v32  ;;  %v5813_v32 = vld [vmem:[%s17978_s11 + $0x480] sm:$0xff] }
 0x939   :  { %8016 = vmatpush2.bf16.msra.mxu1 %v15868_v14  ;;  %7859 = vmatprep.mubr.bf16.mxu1 %v10694_v13  ;;  %v10693_v14 = vcombine.low %v5797_v56, %v5801_v55  ;;  %v5614_v36 = vmax.f32 %v5489_v35, 0.0  ;;  %v18183_v56 = vld [vmem:[#allocation83_spill] sm:$0xff]  ;;  %v18184_v38 = vld [vmem:[#allocation84_spill] sm:$0xff]  ;;  %v10701_v45 = vcombine.low %v5805_v30, %v5809_v61  ;;  %v12440_v30 = vld [vmem:[%s17976_s9 + $0x1f0] ss:$0 sps:$4 sm:$0xff]  }
 0x93a   :  { %v5200_v22 = vpop.f32.mrf.mxu0  ;;  %8017 = vmatprep.subr.bf16.mxu1 %v18131_v54  ;;  %v5821_v61 = vld [vmem:[%s17978_s11 + $0x4c0] sm:$0xff] }
 0x93b   :  { %v5490_v52 = vadd.f32 %v5200_v22, %v18182_v19  ;;  %v10710_v22 = vcombine.high %v5813_v32, %v5817_v59 }
 0x93c   :  { %v12027_v37 = vpop.f32.mrf.mxu0 }
 0x93d   :  { %v5615_v7 = vmax.f32 %v5490_v52, 0.0  ;;  %8018 = vmatpush2.bf16.msra.mxu1 %v15849_v2  ;;  %v18185_v37 = vld [vmem:[#allocation85_spill] sm:$0xff] }
 0x93e   :  { %v5205_v39 = vpop.f32.mrf.mxu0  ;;  %12125 = vmatmul.mubr.msk.bf16.gmra.mxu0 %vm1292_vm1, %v12438_v15  ;;  %8563 = vmatprep.subr.bf16.mxu1 %v18131_v54 }
 0x93f   :  { %v16053_v43 = vpack.c.bf16 %v5615_v7, %v5614_v36  ;;  %12128 = vmatprep.mubr.msk.bf16.mxu0 %vm12562_vm14, %v18017_v8  ;;  %v5491_v55 = vadd.f32 %v5205_v39, %v18183_v56  ;;  %v5825_v7 = vld [vmem:[%s17978_s11 + $0x4e0] sm:$0xff]  ;;  %v10570_v39 = vcombine.high %v16045_v60, %v16050_v20  ;;  %v10709_v56 = vcombine.low %v5813_v32, %v5817_v59  ;;  %v18191_v60 = vld [vmem:[#allocation91_spill] sm:$0xff] }
 0x940   :  { %v12030_v2 = vpop.f32.mrf.mxu0  ;;  %7860 = vmatmul.mubr.bf16.gmra.mxu1 %v10693_v14  ;;  %v5833_v32 = vld [vmem:[%s17978_s11 + $0x520] sm:$0xff] }
 0x941   :  { %7867 = vmatprep.mubr.bf16.mxu1 %v10702_v58  ;;  %v5616_v41 = vmax.f32 %v5491_v55, 0.0  ;;  %v18186_v58 = vld [vmem:[#allocation86_spill] sm:$0xff]  ;;  %v18188_v59 = vld [vmem:[#allocation88_spill] sm:$0xff] }
 0x942   :  { %v5208_v53 = vpop.f32.mrf.mxu0 }
 0x943   :  { %v5492_v13 = vadd.f32 %v5208_v53, %v18184_v38 }
 0x944   :  { %v12031_v51 = vpop.f32.mrf.mxu0 }
 0x945   :  { %v5617_v35 = vmax.f32 %v5492_v13, 0.0 }
 0x946   :  { %v5213_v15 = vpop.f32.mrf.mxu0  ;;  %12129 = vmatmul.mubr.msk.bf16.gmra.mxu0 %vm1292_vm1, %v12439_v40  ;;  %v10718_v40 = vcombine.high %v5821_v61, %v5825_v7 }
 0x947   :  { %v16071_v19 = vpack.c.bf16 %v5617_v35, %v5616_v41  ;;  %12132 = vmatprep.mubr.msk.bf16.mxu0 %vm12562_vm14, %v18017_v8  ;;  %v5493_v14 = vadd.f32 %v5213_v15, %v18185_v37  ;;  %v10717_v37 = vcombine.low %v5821_v61, %v5825_v7  ;;  %v18190_v61 = vld [vmem:[#allocation90_spill] sm:$0xff] }
 0x948   :  { %v12034_v52 = vpop.f32.mrf.mxu0  ;;  %7868 = vmatmul.mubr.bf16.gmra.mxu1 %v10701_v45  ;;  %v18187_v45 = vld [vmem:[#allocation87_spill] sm:$0xff] }
 0x949   :  { %7875 = vmatprep.mubr.bf16.mxu1 %v10710_v22  ;;  %v5618_v55 = vmax.f32 %v5493_v14, 0.0  ;;  %v5829_v22 = vld [vmem:[%s17978_s11 + $0x500] sm:$0xff] }
 0x94a   :  { %v5216_v36 = vpop.f32.mrf.mxu0 }
 0x94b   :  { %v5494_v8 = vadd.f32 %v5216_v36, %v18186_v58 }
 0x94c   :  { %v12035_v2 = vpop.f32.mrf.mxu0 }
 0x94d   :  { %v5619_v53 = vmax.f32 %v5494_v8, 0.0  ;;  %v18189_v2 = vld [vmem:[#allocation89_spill] sm:$0xff] }
 0x94e   :  { %v5221_v38 = vpop.f32.mrf.mxu0  ;;  %12133 = vmatmul.mubr.msk.bf16.gmra.mxu0 %vm1292_vm1, %v12440_v30  ;;  %v10726_v30 = vcombine.high %v5829_v22, %v5833_v32 }
 0x94f   :  { %v5958_v13 = vpack.c.bf16 %v5619_v53, %v5618_v55  ;;  %8307 = vmatprep.mubr.bf16.mxu0 %v10570_v39  ;;  %v5495_v41 = vadd.f32 %v5221_v38, %v18187_v45  ;;  %v5837_v53 = vld [vmem:[%s17978_s11 + $0x540] sm:$0xff] }
 0x950   :  { %v12038_v51 = vpop.f32.mrf.mxu0  ;;  %7876 = vmatmul.mubr.bf16.gmra.mxu1 %v10709_v56 }
 0x951   :  { %7883 = vmatprep.mubr.bf16.mxu1 %v10718_v40  ;;  %v5620_v14 = vmax.f32 %v5495_v41, 0.0  ;;  %v5841_v40 = vld [vmem:[%s17978_s11 + $0x560] sm:$0xff]  ;;  %v10725_v51 = vcombine.low %v5829_v22, %v5833_v32 }
 0x952   :  { %v5224_v35 = vpop.f32.mrf.mxu0  ;;  %v5849_v22 = vld [vmem:[%s17978_s11 + $0x5a0] sm:$0xff] }
 0x953   :  { %v5496_v15 = vadd.f32 %v5224_v35, %v18188_v59  ;;  %v10734_v35 = vcombine.high %v5837_v53, %v5841_v40 }
 0x954   :  { %v12039_v52 = vpop.f32.mrf.mxu0 }
 0x955   :  { %v5621_v36 = vmax.f32 %v5496_v15, 0.0 }
 0x956   :  { %v5229_v58 = vpop.f32.mrf.mxu0 }
 0x957   :  { %v5959_v8 = vpack.c.bf16 %v5621_v36, %v5620_v14  ;;  %v5497_v56 = vadd.f32 %v5229_v58, %v18189_v2  ;;  %v5845_v36 = vld [vmem:[%s17978_s11 + $0x580] sm:$0xff]  ;;  %v10733_v58 = vcombine.low %v5837_v53, %v5841_v40 }
 0x958   :  { %v12042_v39 = vpop.f32.mrf.mxu0  ;;  %7884 = vmatmul.mubr.bf16.gmra.mxu1 %v10717_v37  ;;  %v10742_v2 = vcombine.high %v5845_v36, %v5849_v22 }
 0x959   :  { %7891 = vmatprep.mubr.bf16.mxu1 %v10726_v30  ;;  %v5622_v45 = vmax.f32 %v5497_v56, 0.0 }
 0x95a   :  { %v5232_v55 = vpop.f32.mrf.mxu0 }
 0x95b   :  { %v5498_v7 = vadd.f32 %v5232_v55, %v18190_v61 }
 0x95c   :  { %v12043_v38 = vpop.f32.mrf.mxu0 }
 0x95d   :  { %v5623_v41 = vmax.f32 %v5498_v7, 0.0 }
 0x95e   :  { %v5237_v59 = vpop.f32.mrf.mxu0 }
 0x95f   :  { %v5960_v15 = vpack.c.bf16 %v5623_v41, %v5622_v45  ;;  %v5499_v52 = vadd.f32 %v5237_v59, %v15201_v3 }
 0x960   :  { %v12046_v37 = vpop.f32.mrf.mxu0  ;;  %7892 = vmatmul.mubr.bf16.gmra.mxu1 %v10725_v51  ;;  %v10741_v51 = vcombine.low %v5845_v36, %v5849_v22 }
 0x961   :  { %8276 = vmatpush1.bf16.msra.mxu0 %v5960_v15  ;;  %7899 = vmatprep.mubr.bf16.mxu1 %v10734_v35  ;;  %v5624_v3 = vmax.f32 %v5499_v52, 0.0  ;;  %v5865_v52 = vld [vmem:[%s17978_s11 + $0x620] sm:$0xff] }
 0x962   :  { %v5240_v14 = vpop.f32.mrf.mxu0  ;;  %8277 = vmatprep.subr.bf16.mxu0 %v18131_v54 }
 0x963   :  { %v5500_v32 = vadd.f32 %v5240_v14, %v15209_v48  ;;  %v5853_v48 = vld [vmem:[%s17978_s11 + $0x5c0] sm:$0xff] }
 0x964   :  { %v12047_v30 = vpop.f32.mrf.mxu0 }
 0x965   :  { %v5625_v39 = vmax.f32 %v5500_v32, 0.0  ;;  %8278 = vmatpush1.bf16.msra.mxu0 %v5959_v8  ;;  %v5857_v8 = vld [vmem:[%s17978_s11 + $0x5e0] sm:$0xff] }
 0x966   :  { %v5245_v56 = vpop.f32.mrf.mxu0  ;;  %8279 = vmatprep.subr.bf16.mxu0 %v18131_v54 }
 0x967   :  { %v16115_v55 = vpack.c.bf16 %v5625_v39, %v5624_v3  ;;  %v5501_v61 = vadd.f32 %v5245_v56, %v15217_v26  ;;  %v5873_v39 = vld [vmem:[%s17978_s11 + $0x660] sm:$0xff] }
 0x968   :  { %v12050_v7 = vpop.f32.mrf.mxu0  ;;  %7900 = vmatmul.mubr.bf16.gmra.mxu1 %v10733_v58 }
 0x969   :  { %8280 = vmatpush1.bf16.msra.mxu0 %v5958_v13  ;;  %7907 = vmatprep.mubr.bf16.mxu1 %v10742_v2  ;;  %v5626_v26 = vmax.f32 %v5501_v61, 0.0  ;;  %v10750_v13 = vcombine.high %v5853_v48, %v5857_v8 }
 0x96a   :  { %v5248_v38 = vpop.f32.mrf.mxu0  ;;  %8281 = vmatprep.subr.bf16.mxu0 %v18131_v54 }
 0x96b   :  { %v5502_v53 = vadd.f32 %v5248_v38, %v15225_v28 }
 0x96c   :  { %v12051_v40 = vpop.f32.mrf.mxu0 }
 0x96d   :  { %v5627_v45 = vmax.f32 %v5502_v53, 0.0  ;;  %8282 = vmatpush1.bf16.msra.mxu0 %v16071_v19  ;;  %v5861_v19 = vld [vmem:[%s17978_s11 + $0x600] sm:$0xff] }
 0x96e   :  { %v5253_v41 = vpop.f32.mrf.mxu0  ;;  %8283 = vmatprep.subr.bf16.mxu0 %v18131_v54  ;;  %v10757_v61 = vcombine.low %v5861_v19, %v5865_v52 }
 0x96f   :  { %v16128_v35 = vpack.c.bf16 %v5627_v45, %v5626_v26  ;;  %v5503_v59 = vadd.f32 %v5253_v41, %v15234_v6  ;;  %v10749_v6 = vcombine.low %v5853_v48, %v5857_v8  ;;  %v5877_v26 = vld [vmem:[%s17978_s11 + $0x680] sm:$0xff] }
 0x970   :  { %v12054_v15 = vpop.f32.mrf.mxu0  ;;  %7908 = vmatmul.mubr.bf16.gmra.mxu1 %v10741_v51 }
 0x971   :  { %8284 = vmatpush1.bf16.msra.mxu0 %v16053_v43  ;;  %7915 = vmatprep.mubr.bf16.mxu1 %v10750_v13  ;;  %v5628_v36 = vmax.f32 %v5503_v59, 0.0  ;;  %v10758_v43 = vcombine.high %v5861_v19, %v5865_v52 }
 0x972   :  { %v5256_v28 = vpop.f32.mrf.mxu0  ;;  %8285 = vmatprep.subr.bf16.mxu0 %v18131_v54 }
 0x973   :  { %v5504_v37 = vadd.f32 %v5256_v28, %v15243_v33 }
 0x974   :  { %v12055_v14 = vpop.f32.mrf.mxu0 }
 0x975   :  { %v5629_v22 = vmax.f32 %v5504_v37, 0.0  ;;  %8286 = vmatpush1.bf16.msra.mxu0 %v16023_v57  ;;  %v5869_v57 = vld [vmem:[%s17978_s11 + $0x640] sm:$0xff] }
 0x976   :  { %v5261_v32 = vpop.f32.mrf.mxu0  ;;  %8287 = vmatprep.subr.bf16.mxu0 %v18131_v54  ;;  %v10765_v59 = vcombine.low %v5869_v57, %v5873_v39 }
 0x977   :  { %v16142_v30 = vpack.c.bf16 %v5629_v22, %v5628_v36  ;;  %v5505_v3 = vadd.f32 %v5261_v32, %v15252_v27  ;;  %v5889_v32 = vld [vmem:[%s17978_s11 + $0x6e0] sm:$0xff] }
 0x978   :  { %v12058_v58 = vpop.f32.mrf.mxu0  ;;  %7916 = vmatmul.mubr.bf16.gmra.mxu1 %v10749_v6 }
 0x979   :  { %8288 = vmatpush1.bf16.msra.mxu0 %v16003_v42  ;;  %7923 = vmatprep.mubr.bf16.mxu1 %v10758_v43  ;;  %v5630_v7 = vmax.f32 %v5505_v3, 0.0  ;;  %v10766_v42 = vcombine.high %v5869_v57, %v5873_v39  ;;  %v5885_v43 = vld [vmem:[%s17978_s11 + $0x6c0] sm:$0xff] }
 0x97a   :  { %v5264_v33 = vpop.f32.mrf.mxu0  ;;  %8289 = vmatprep.subr.bf16.mxu0 %v18131_v54 }
 0x97b   :  { %v5506_v2 = vadd.f32 %v5264_v33, %v15261_v23 }
 0x97c   :  { %v12059_v56 = vpop.f32.mrf.mxu0 }
 0x97d   :  { %v5631_v27 = vmax.f32 %v5506_v2, 0.0  ;;  %8290 = vmatpush1.bf16.msra.mxu0 %v15984_v24  ;;  %v5881_v24 = vld [vmem:[%s17978_s11 + $0x6a0] sm:$0xff] }
 0x97e   :  { %v5269_v38 = vpop.f32.mrf.mxu0  ;;  %8291 = vmatprep.subr.bf16.mxu0 %v18131_v54  ;;  %v10773_v57 = vcombine.low %v5877_v26, %v5881_v24 }
 0x97f   :  { %v16156_v48 = vpack.c.bf16 %v5631_v27, %v5630_v7  ;;  %v5507_v40 = vadd.f32 %v5269_v38, %v15270_v46  ;;  %v10774_v46 = vcombine.high %v5877_v26, %v5881_v24 }
 0x980   :  { %v12062_v8 = vpop.f32.mrf.mxu0  ;;  %v16158_v53 = vpop.f32.mrf.mxu1  ;;  %7924 = vmatmul.mubr.bf16.gmra.mxu1 %v10757_v61 }
 0x981   :  { %7931 = vmatprep.mubr.bf16.mxu1 %v10766_v42  ;;  %v5632_v15 = vmax.f32 %v5507_v40, 0.0  ;;  %v5893_v40 = vld [vmem:[%s17978_s11 + $0x700] sm:$0xff] }
 0x982   :  { %v5272_v23 = vpop.f32.mrf.mxu0  ;;  %v7735_v51 = vpop.f32.mrf.mxu1 }
 0x983   :  { %v5508_v45 = vadd.f32 %v5272_v23, %v15279_v17  ;;  %v5897_v23 = vld [vmem:[%s17978_s11 + $0x720] sm:$0xff] }
 0x984   :  { %v12063_v13 = vpop.f32.mrf.mxu0  ;;  %v16168_v41 = vpop.f32.mrf.mxu1 }
 0x985   :  { %v5633_v28 = vmax.f32 %v5508_v45, 0.0  ;;  %v10781_v45 = vcombine.low %v5885_v43, %v5889_v32 }
 0x986   :  { %v5277_v19 = vpop.f32.mrf.mxu0  ;;  %v7738_v52 = vpop.f32.mrf.mxu1 }
 0x987   :  { %v16170_v37 = vpack.c.bf16 %v5633_v28, %v5632_v15  ;;  %v5509_v36 = vadd.f32 %v5277_v19, %v15288_v63  ;;  %v10782_v63 = vcombine.high %v5885_v43, %v5889_v32 }
 0x988   :  { %v12066_v14 = vpop.f32.mrf.mxu0  ;;  %v16172_v6 = vpop.f32.mrf.mxu1  ;;  %7932 = vmatmul.mubr.bf16.gmra.mxu1 %v10765_v59 }
 0x989   :  { %7939 = vmatprep.mubr.bf16.mxu1 %v10774_v46  ;;  %v5634_v39 = vmax.f32 %v5509_v36, 0.0 }
 0x98a   :  { %v5280_v22 = vpop.f32.mrf.mxu0  ;;  %v7743_v17 = vpop.f32.mrf.mxu1 }
 0x98b   :  { %v5510_v58 = vadd.f32 %v5280_v22, %v15297_v29  ;;  %v5905_v17 = vld [vmem:[%s17978_s11 + $0x760] sm:$0xff] }
 0x98c   :  { %v12067_v3 = vpop.f32.mrf.mxu0  ;;  %v16182_v33 = vpop.f32.mrf.mxu1 }
 0x98d   :  { %v5635_v2 = vmax.f32 %v5510_v58, 0.0  ;;  %v10789_v3 = vcombine.low %v5893_v40, %v5897_v23 }
 0x98e   :  { %v5285_v56 = vpop.f32.mrf.mxu0  ;;  %v7746_v61 = vpop.f32.mrf.mxu1 }
 0x98f   :  { %v16184_v7 = vpack.c.bf16 %v5635_v2, %v5634_v39  ;;  %v5511_v38 = vadd.f32 %v5285_v56, %v15306_v34  ;;  %v10790_v34 = vcombine.high %v5893_v40, %v5897_v23  ;;  %v5913_v40 = vld [vmem:[%s17978_s11 + $0x7a0] sm:$0xff] }
 0x990   :  { %v12070_v27 = vpop.f32.mrf.mxu0  ;;  %v16186_v42 = vpop.f32.mrf.mxu1  ;;  %7940 = vmatmul.mubr.bf16.gmra.mxu1 %v10773_v57 }
 0x991   :  { %7947 = vmatprep.mubr.bf16.mxu1 %v10782_v63  ;;  %v5636_v13 = vmax.f32 %v5511_v38, 0.0 }
 0x992   :  { %v5288_v8 = vpop.f32.mrf.mxu0  ;;  %v7751_v29 = vpop.f32.mrf.mxu1 }
 0x993   :  { %v5512_v51 = vadd.f32 %v5288_v8, %v15315_v9  ;;  %v5901_v9 = vld [vmem:[%s17978_s11 + $0x740] sm:$0xff] }
 0x994   :  { %v12071_v26 = vpop.f32.mrf.mxu0  ;;  %v16196_v24 = vpop.f32.mrf.mxu1  ;;  %v5909_v29 = vld [vmem:[%s17978_s11 + $0x780] sm:$0xff] }
 0x995   :  { %v5637_v59 = vmax.f32 %v5512_v51, 0.0  ;;  %v10797_v26 = vcombine.low %v5901_v9, %v5905_v17 }
 0x996   :  { %v5293_v15 = vpop.f32.mrf.mxu0  ;;  %v7754_v28 = vpop.f32.mrf.mxu1 }
 0x997   :  { %v5967_v46 = vpack.c.bf16 %v5637_v59, %v5636_v13  ;;  %v5513_v14 = vadd.f32 %v5293_v15, %v15324_v16  ;;  %v10798_v16 = vcombine.high %v5901_v9, %v5905_v17  ;;  %v10806_v59 = vcombine.high %v5909_v29, %v5913_v40 }
 0x998   :  { %v12074_v19 = vpop.f32.mrf.mxu0  ;;  %v16198_v52 = vpop.f32.mrf.mxu1  ;;  %7948 = vmatmul.mubr.bf16.gmra.mxu1 %v10781_v45 }
 0x999   :  { %7955 = vmatprep.mubr.bf16.mxu1 %v10790_v34  ;;  %v5638_v57 = vmax.f32 %v5513_v14, 0.0 }
 0x99a   :  { %v5296_v36 = vpop.f32.mrf.mxu0  ;;  %v7759_v22 = vpop.f32.mrf.mxu1 }
 0x99b   :  { %v5514_v43 = vadd.f32 %v5296_v36, %v15333_v4 }
 0x99c   :  { %v12075_v32 = vpop.f32.mrf.mxu0  ;;  %v16208_v58 = vpop.f32.mrf.mxu1 }
 0x99d   :  { %v5639_v39 = vmax.f32 %v5514_v43, 0.0 }
 0x99e   :  { %v5301_v2 = vpop.f32.mrf.mxu0  ;;  %v7762_v63 = vpop.f32.mrf.mxu1 }
 0x99f   :  { %v5968_v56 = vpack.c.bf16 %v5639_v39, %v5638_v57  ;;  %v5515_v61 = vadd.f32 %v5301_v2, %v15342_v1 }
 0x9a0   :  { %v12078_v27 = vpop.f32.mrf.mxu0  ;;  %v16211_v38 = vpop.f32.mrf.mxu1  ;;  %7956 = vmatmul.mubr.bf16.gmra.mxu1 %v10789_v3 }
 0x9a1   :  { %8292 = vmatpush2.bf16.msra.mxu0 %v5968_v56  ;;  %7963 = vmatprep.mubr.bf16.mxu1 %v10798_v16  ;;  %v5640_v45 = vmax.f32 %v5515_v61, 0.0  ;;  %v5674_v27 = vld [vmem:[%s17978_s11 + $0x28] sm:$0xff] }
 0x9a2   :  { %v5304_v8 = vpop.f32.mrf.mxu0  ;;  %v7767_v4 = vpop.f32.mrf.mxu1  ;;  %8293 = vmatprep.subr.bf16.mxu0 %v18131_v54 }
 0x9a3   :  { %v5516_v1 = vadd.f32 %v5304_v8, %v15351_v62 }
 0x9a4   :  { %v12079_v23 = vpop.f32.mrf.mxu0  ;;  %v16221_v51 = vpop.f32.mrf.mxu1 }
 0x9a5   :  { %v5641_v13 = vmax.f32 %v5516_v1, 0.0  ;;  %8294 = vmatpush2.bf16.msra.mxu0 %v5967_v46  ;;  %v5917_v46 = vld [vmem:[%s17978_s11 + $0x7c0] sm:$0x33] }
 0x9a6   :  { %v5309_v34 = vpop.f32.mrf.mxu0  ;;  %v7770_v15 = vpop.f32.mrf.mxu1  ;;  %8295 = vmatprep.subr.bf16.mxu0 %v18131_v54 }
 0x9a7   :  { %v16224_v28 = vpack.c.bf16 %v5641_v13, %v5640_v45  ;;  %v5517_v19 = vadd.f32 %v5309_v34, %v15360_v0  ;;  %v10805_v0 = vcombine.low %v5909_v29, %v5913_v40  ;;  %v10813_v29 = vcombine.low %v5917_v46, %v5917_v46 }
 0x9a8   :  { %v12082_v14 = vpop.f32.mrf.mxu0  ;;  %v16227_v36 = vpop.f32.mrf.mxu1  ;;  %7964 = vmatmul.mubr.bf16.gmra.mxu1 %v10797_v26 }
 0x9a9   :  { %8296 = vmatpush2.bf16.msra.mxu0 %v16184_v7  ;;  %7971 = vmatprep.mubr.bf16.mxu1 %v10806_v59  ;;  %v5642_v32 = vmax.f32 %v5517_v19, 0.0  ;;  %v10814_v7 = vcombine.high %v5917_v46, %v5917_v46  ;;  %v5682_v19 = vld [vmem:[%s17978_s11 + $0x68] sm:$0xff]  ;;  %v5679_v14 = vld [vmem:[%s17978_s11 + $0x50] sm:$0xff] }
 0x9aa   :  { %v5312_v62 = vpop.f32.mrf.mxu0  ;;  %v7775_v22 = vpop.f32.mrf.mxu1  ;;  %8297 = vmatprep.subr.bf16.mxu0 %v18131_v54 }
 0x9ab   :  { %v5518_v9 = vadd.f32 %v5312_v62, %v15369_v31 }
 0x9ac   :  { %v12083_v17 = vpop.f32.mrf.mxu0  ;;  %v16235_v43 = vpop.f32.mrf.mxu1 }
 0x9ad   :  { %v5643_v3 = vmax.f32 %v5518_v9, 0.0  ;;  %8298 = vmatpush2.bf16.msra.mxu0 %v16170_v37  ;;  %v5670_v37 = vld [vmem:[%s17978_s11 + $0x8] sm:$0xff] }
 0x9ae   :  { %v5317_v57 = vpop.f32.mrf.mxu0  ;;  %v7778_v39 = vpop.f32.mrf.mxu1  ;;  %8299 = vmatprep.subr.bf16.mxu0 %v18131_v54  ;;  %v10568_v1 = vcombine.high %v5670_v37, %v5674_v27  ;;  %v10567_v46 = vcombine.low %v5670_v37, %v5674_v27  ;;  %v5687_v37 = vld [vmem:[%s17978_s11 + $0x90] sm:$0xff] }
 0x9af   :  { %v16239_v16 = vpack.c.bf16 %v5643_v3, %v5642_v32  ;;  %v5519_v2 = vadd.f32 %v5317_v57, %v15378_v11 }
 0x9b0   :  { %v12086_v63 = vpop.f32.mrf.mxu0  ;;  %v16242_v56 = vpop.f32.mrf.mxu1  ;;  %7972 = vmatmul.mubr.bf16.gmra.mxu1 %v10805_v0 }
 0x9b1   :  { %8300 = vmatpush2.bf16.msra.mxu0 %v16156_v48  ;;  %7979 = vmatprep.mubr.bf16.mxu1 %v10814_v7  ;;  %v5644_v48 = vmax.f32 %v5519_v2, 0.0 }
 0x9b2   :  { %v5320_v31 = vpop.f32.mrf.mxu0  ;;  %v7783_v61 = vpop.f32.mrf.mxu1  ;;  %8301 = vmatprep.subr.bf16.mxu0 %v18131_v54 }
 0x9b3   :  { %v5520_v11 = vadd.f32 %v5320_v31, %v15387_v18  ;;  %v5690_v61 = vld [vmem:[%s17978_s11 + $0xa8] sm:$0xff] }
 0x9b4   :  { %v12087_v8 = vpop.f32.mrf.mxu0  ;;  %v16253_v4 = vpop.f32.mrf.mxu1 }
 0x9b5   :  { %v5645_v40 = vmax.f32 %v5520_v11, 0.0  ;;  %8302 = vmatpush2.bf16.msra.mxu0 %v16142_v30  ;;  %v5678_v30 = vld [vmem:[%s17978_s11 + $0x48] sm:$0xff] }
 0x9b6   :  { %v5325_v23 = vpop.f32.mrf.mxu0  ;;  %v7786_v26 = vpop.f32.mrf.mxu1  ;;  %8303 = vmatprep.subr.bf16.mxu0 %v18131_v54  ;;  %v10576_v0 = vcombine.high %v5678_v30, %v5682_v19  ;;  %v10575_v11 = vcombine.low %v5678_v30, %v5682_v19  ;;  %v5694_v30 = vld [vmem:[%s17978_s11 + $0xc8] sm:$0xff] }
 0x9b7   :  { %v16257_v45 = vpack.c.bf16 %v5645_v40, %v5644_v48  ;;  %v5521_v18 = vadd.f32 %v5325_v23, %v15396_v50  ;;  %v5683_v50 = vld [vmem:[%s17978_s11 + $0x70] sm:$0xff] }
 0x9b8   :  { %v12090_v13 = vpop.f32.mrf.mxu0  ;;  %v16259_v59 = vpop.f32.mrf.mxu1  ;;  %7980 = vmatmul.mubr.bf16.gmra.mxu1 %v10813_v29  ;;  %v10578_v32 = vcombine.high %v5679_v14, %v5683_v50  ;;  %v10577_v8 = vcombine.low %v5679_v14, %v5683_v50  ;;  %v5698_v50 = vld [vmem:[%s17978_s11 + $0xe8] sm:$0xff] }
 0x9b9   :  { %8304 = vmatpush2.bf16.msra.mxu0 %v16128_v35  ;;  %8019 = vmatprep.mubr.bf16.mxu1 %v10568_v1  ;;  %v5646_v9 = vmax.f32 %v5521_v18, 0.0 }
 0x9ba   :  { %v5328_v34 = vpop.f32.mrf.mxu0  ;;  %v7791_v15 = vpop.f32.mrf.mxu1  ;;  %8305 = vmatprep.subr.bf16.mxu0 %v18131_v54 }
 0x9bb   :  { %v5522_v35 = vadd.f32 %v5328_v34, %v15405_v25  ;;  %v18192_v15 = vld [vmem:[#allocation48_spill] sm:$0xff] }
 0x9bc   :  { %v12091_v62 = vpop.f32.mrf.mxu0  ;;  %v16277_v22 = vpop.f32.mrf.mxu1 }
 0x9bd   :  { %v5647_v17 = vmax.f32 %v5522_v35, 0.0  ;;  %8306 = vmatpush2.bf16.msra.mxu0 %v16115_v55  ;;  %v5686_v55 = vld [vmem:[%s17978_s11 + $0x88] sm:$0xff]  ;;  %v5695_v62 = vld [vmem:[%s17978_s11 + $0xd0] sm:$0xff] }
 0x9be   :  { %v5333_v3 = vpop.f32.mrf.mxu0  ;;  %v7794_v7 = vpop.f32.mrf.mxu1  ;;  %v10584_v40 = vcombine.high %v5686_v55, %v5690_v61 }
 0x9bf   :  { %v16280_v57 = vpack.c.bf16 %v5647_v17, %v5646_v9  ;;  %v5523_v25 = vadd.f32 %v5333_v3, %v15414_v49  ;;  %v5691_v49 = vld [vmem:[%s17978_s11 + $0xb0] sm:$0xff]  ;;  %v10583_v3 = vcombine.low %v5686_v55, %v5690_v61  ;;  %v5702_v55 = vld [vmem:[%s17978_s11 + $0x108] sm:$0xff] }
 0x9c0   :  { %v12094_v39 = vpop.f32.mrf.mxu0  ;;  %v16282_v2 = vpop.f32.mrf.mxu1  ;;  %8020 = vmatmul.mubr.bf16.vlgmr.msra.gmra.mxu1 %v10567_v46  ;;  %8308 = vmatmul.mubr.bf16.vlgmr.msra.gmra.mxu0 %v10569_v10  ;;  %v10586_v1 = vcombine.high %v5687_v37, %v5691_v49  ;;  %v5699_v46 = vld [vmem:[%s17978_s11 + $0xf0] sm:$0xff]  ;;  %v10585_v7 = vcombine.low %v5687_v37, %v5691_v49  ;;  %v5706_v49 = vld [vmem:[%s17978_s11 + $0x128] sm:$0xff] }
 0x9c1   :  { %8027 = vmatprep.mubr.bf16.mxu1 %v10576_v0  ;;  %8315 = vmatprep.mubr.bf16.mxu0 %v10578_v32  ;;  %v5648_v29 = vmax.f32 %v5523_v25, 0.0  ;;  %v18193_v9 = vld [vmem:[#allocation50_spill] sm:$0xff] }
 0x9c2   :  { %v5336_v63 = vpop.f32.mrf.mxu0  ;;  %v7799_v31 = vpop.f32.mrf.mxu1 }
 0x9c3   :  { %v5524_v20 = vadd.f32 %v5336_v63, %v18191_v60  ;;  %v10592_v63 = vcombine.high %v5694_v30, %v5698_v50  ;;  %v10594_v31 = vcombine.high %v5695_v62, %v5699_v46 }
 0x9c4   :  { %v12095_v10 = vpop.f32.mrf.mxu0  ;;  %v16301_v27 = vpop.f32.mrf.mxu1 }
 0x9c5   :  { %v5649_v48 = vmax.f32 %v5524_v20, 0.0 }
 0x9c6   :  { %v5341_v23 = vpop.f32.mrf.mxu0  ;;  %v7802_v26 = vpop.f32.mrf.mxu1 }
 0x9c7   :  { %v16303_v13 = vpack.c.bf16 %v5649_v48, %v5648_v29  ;;  %v5525_v35 = vadd.f32 %v5341_v23, %v18192_v15  ;;  %v18194_v29 = vld [vmem:[#allocation43_spill] sm:$0xff]  ;;  %v18195_v23 = vld [vmem:[#allocation45_spill] sm:$0xff] }
 0x9c8   :  { %v12098_v18 = vpop.f32.mrf.mxu0  ;;  %v16305_v34 = vpop.f32.mrf.mxu1  ;;  %8028 = vmatmul.mubr.bf16.gmra.mxu1 %v10575_v11  ;;  %8316 = vmatmul.mubr.bf16.gmra.mxu0 %v10577_v8 }
 0x9c9   :  { %8035 = vmatprep.mubr.bf16.mxu1 %v10584_v40  ;;  %8323 = vmatprep.mubr.bf16.mxu0 %v10586_v1  ;;  %v5650_v39 = vmax.f32 %v5525_v35, 0.0  ;;  %v5703_v40 = vld [vmem:[%s17978_s11 + $0x110] sm:$0xff]  ;;  %v10591_v35 = vcombine.low %v5694_v30, %v5698_v50  ;;  %v5710_v30 = vld [vmem:[%s17978_s11 + $0x148] sm:$0xff] }
 0x9ca   :  { %v5344_v19 = vpop.f32.mrf.mxu0  ;;  %v7807_v14 = vpop.f32.mrf.mxu1  ;;  %v5707_v1 = vld [vmem:[%s17978_s11 + $0x130] sm:$0xff]  ;;  %v5714_v50 = vld [vmem:[%s17978_s11 + $0x168] sm:$0xff] }
 0x9cb   :  { %v5526_v17 = vadd.f32 %v5344_v19, %v18193_v9  ;;  %v10593_v19 = vcombine.low %v5695_v62, %v5699_v46  ;;  %v18197_v62 = vld [vmem:[#allocation40_spill] sm:$0xff] }
 0x9cc   :  { %v12099_v0 = vpop.f32.mrf.mxu0  ;;  %v16321_v32 = vpop.f32.mrf.mxu1 }
 0x9cd   :  { %v5651_v25 = vmax.f32 %v5526_v17, 0.0  ;;  %v10600_v17 = vcombine.high %v5702_v55, %v5706_v49  ;;  %v10602_v0 = vcombine.high %v5703_v40, %v5707_v1 }
 0x9ce   :  { %v5349_v60 = vpop.f32.mrf.mxu0  ;;  %v7810_v20 = vpop.f32.mrf.mxu1 }
 0x9cf   :  { %v16323_v10 = vpack.c.bf16 %v5651_v25, %v5650_v39  ;;  %v5527_v48 = vadd.f32 %v5349_v60, %v18194_v29  ;;  %v5711_v29 = vld [vmem:[%s17978_s11 + $0x150] sm:$0xff] }
 0x9d0   :  { %v12102_v11 = vpop.f32.mrf.mxu0  ;;  %v16325_v8 = vpop.f32.mrf.mxu1  ;;  %8036 = vmatmul.mubr.bf16.gmra.mxu1 %v10583_v3  ;;  %8324 = vmatmul.mubr.bf16.gmra.mxu0 %v10585_v7 }
 0x9d1   :  { %8043 = vmatprep.mubr.bf16.mxu1 %v10592_v63  ;;  %8331 = vmatprep.mubr.bf16.mxu0 %v10594_v31  ;;  %v5652_v14 = vmax.f32 %v5527_v48, 0.0  ;;  %v18196_v31 = vld [vmem:[#allocation38_spill] sm:$0xff] }
 0x9d2   :  { %v5352_v61 = vpop.f32.mrf.mxu0  ;;  %v7815_v37 = vpop.f32.mrf.mxu1  ;;  %v5715_v48 = vld [vmem:[%s17978_s11 + $0x170] sm:$0xff] }
 0x9d3   :  { %v5528_v26 = vadd.f32 %v5352_v61, %v18195_v23  ;;  %v10599_v23 = vcombine.low %v5702_v55, %v5706_v49  ;;  %v5718_v55 = vld [vmem:[%s17978_s11 + $0x188] sm:$0xff]  ;;  %v18199_v49 = vld [vmem:[#allocation92_spill] sm:$0xff] }
 0x9d4   :  { %v12103_v18 = vpop.f32.mrf.mxu0  ;;  %v16341_v15 = vpop.f32.mrf.mxu1 }
 0x9d5   :  { %v5653_v9 = vmax.f32 %v5528_v26, 0.0  ;;  %v10601_v26 = vcombine.low %v5703_v40, %v5707_v1  ;;  %v5719_v1 = vld [vmem:[%s17978_s11 + $0x190] sm:$0xff] }
 0x9d6   :  { %v5357_v3 = vpop.f32.mrf.mxu0  ;;  %v7818_v7 = vpop.f32.mrf.mxu1 }
 0x9d7   :  { %v5975_v39 = vpack.c.bf16 %v5653_v9, %v5652_v14  ;;  %v5529_v60 = vadd.f32 %v5357_v3, %v18196_v31 }
 0x9d8   :  { %v12106_v25 = vpop.f32.mrf.mxu0  ;;  %v16343_v63 = vpop.f32.mrf.mxu1  ;;  %8044 = vmatmul.mubr.bf16.gmra.mxu1 %v10591_v35  ;;  %8332 = vmatmul.mubr.bf16.gmra.mxu0 %v10593_v19  ;;  %v10608_v19 = vcombine.high %v5710_v30, %v5714_v50 }
 0x9d9   :  { %8051 = vmatprep.mubr.bf16.mxu1 %v10600_v17  ;;  %8339 = vmatprep.mubr.bf16.mxu0 %v10602_v0  ;;  %v5654_v18 = vmax.f32 %v5529_v60, 0.0  ;;  %v10610_v17 = vcombine.high %v5711_v29, %v5715_v48  ;;  %v5723_v60 = vld [vmem:[%s17978_s11 + $0x1b0] sm:$0xff] }
 0x9da   :  { %v5360_v20 = vpop.f32.mrf.mxu0  ;;  %v7823_v11 = vpop.f32.mrf.mxu1 }
 0x9db   :  { %v5530_v46 = vadd.f32 %v5360_v20, %v18197_v62 }
 0x9dc   :  { %v12107_v61 = vpop.f32.mrf.mxu0  ;;  %v16359_v37 = vpop.f32.mrf.mxu1 }
 0x9dd   :  { %v5655_v35 = vmax.f32 %v5530_v46, 0.0  ;;  %v10607_v46 = vcombine.low %v5710_v30, %v5714_v50  ;;  %v10609_v61 = vcombine.low %v5711_v29, %v5715_v48  ;;  %v5726_v50 = vld [vmem:[%s17978_s11 + $0x1c8] sm:$0xff] }
 0x9de   :  { %v5365_v14 = vpop.f32.mrf.mxu0  ;;  %v7826_v9 = vpop.f32.mrf.mxu1  ;;  %v5730_v29 = vld [vmem:[%s17978_s11 + $0x1e8] sm:$0xff] }
 0x9df   :  { %v5976_v0 = vpack.c.bf16 %v5655_v35, %v5654_v18  ;;  %v5531_v3 = vadd.f32 %v5365_v14, %v15485_v5  ;;  %v5722_v5 = vld [vmem:[%s17978_s11 + $0x1a8] sm:$0xff]  ;;  %v10618_v14 = vcombine.high %v5719_v1, %v5723_v60 }
 0x9e0   :  { %v12110_v7 = vpop.f32.mrf.mxu0  ;;  %v16362_v25 = vpop.f32.mrf.mxu1  ;;  %8052 = vmatmul.mubr.bf16.gmra.mxu1 %v10599_v23  ;;  %8340 = vmatmul.mubr.bf16.gmra.mxu0 %v10601_v26  ;;  %v10616_v18 = vcombine.high %v5718_v55, %v5722_v5 }
 0x9e1   :  { %18198 = vst [vmem:[#allocation76_spill] sm:$0xff] %v16362_v25  ;;  %8564 = vmatpush1.bf16.msra.mxu1 %v5976_v0  ;;  %8059 = vmatprep.mubr.bf16.mxu1 %v10608_v19  ;;  %v5656_v23 = vmax.f32 %v5531_v3, 0.0  ;;  %v18202_v7 = vld [vmem:[#allocation6_spill] sm:$0xff] }
 0x9e2   :  { %v5368_v31 = vpop.f32.mrf.mxu0  ;;  %v7831_v20 = vpop.f32.mrf.mxu1  ;;  %8565 = vmatprep.subr.bf16.mxu1 %v18131_v54  ;;  %8347 = vmatprep.mubr.bf16.mxu0 %v10610_v17  ;;  %v5731_v3 = vld [vmem:[%s17978_s11 + $0x1f0] sm:$0xff] }
 0x9e3   :  { %v5532_v40 = vadd.f32 %v5368_v31, %v18199_v49 }
 0x9e4   :  { %v12111_v11 = vpop.f32.mrf.mxu0  ;;  %v16378_v62 = vpop.f32.mrf.mxu1 }
 0x9e5   :  { %18200 = vst [vmem:[#allocation13_spill] sm:$0xff] %v16378_v62  ;;  %v5657_v26 = vmax.f32 %v5532_v40, 0.0  ;;  %8566 = vmatpush1.bf16.msra.mxu1 %v5975_v39  ;;  %v10615_v40 = vcombine.low %v5718_v55, %v5722_v5  ;;  %v10617_v11 = vcombine.low %v5719_v1, %v5723_v60  ;;  %v5734_v1 = vld [vmem:[%s17978_s11 + $0x208] sm:$0xff] }
 0x9e6   :  { %v5373_v35 = vpop.f32.mrf.mxu0  ;;  %v7834_v19 = vpop.f32.mrf.mxu1  ;;  %8567 = vmatprep.subr.bf16.mxu1 %v18131_v54  ;;  %v5738_v60 = vld [vmem:[%s17978_s11 + $0x228] sm:$0xff] }
 0x9e7   :  { %v16381_v9 = vpack.c.bf16 %v5657_v26, %v5656_v23  ;;  %v5533_v31 = vadd.f32 %v5373_v35, %v18202_v7  ;;  %v10624_v23 = vcombine.high %v5726_v50, %v5730_v29 }
 0x9e8   :  { %v12114_v17 = vpop.f32.mrf.mxu0  ;;  %v16383_v0 = vpop.f32.mrf.mxu1  ;;  %8060 = vmatmul.mubr.bf16.gmra.mxu1 %v10607_v46  ;;  %8348 = vmatmul.mubr.bf16.gmra.mxu0 %v10609_v61 }
 0x9e9   :  { %18201 = vst [vmem:[#allocation72_spill] sm:$0xff] %v16383_v0  ;;  %8568 = vmatpush1.bf16.msra.mxu1 %v16323_v10  ;;  %8067 = vmatprep.mubr.bf16.mxu1 %v10616_v18  ;;  %v5727_v10 = vld [vmem:[%s17978_s11 + $0x1d0] sm:$0xff]  ;;  %v5658_v46 = vmax.f32 %v5533_v31, 0.0 }
 0x9ea   :  { %v5376_v30 = vpop.f32.mrf.mxu0  ;;  %v7839_v39 = vpop.f32.mrf.mxu1  ;;  %8569 = vmatprep.subr.bf16.mxu1 %v18131_v54  ;;  %8355 = vmatprep.mubr.bf16.mxu0 %v10618_v14  ;;  %v10626_v18 = vcombine.high %v5727_v10, %v5731_v3 }
 0x9eb   :  { %v5534_v48 = vadd.f32 %v5376_v30, %v15507_v12  ;;  %v10623_v30 = vcombine.low %v5726_v50, %v5730_v29  ;;  %v10625_v39 = vcombine.low %v5727_v10, %v5731_v3  ;;  %v5746_v3 = vld [vmem:[%s17978_s11 + $0x268] sm:$0xff] }
 0x9ec   :  { %v12115_v20 = vpop.f32.mrf.mxu0  ;;  %v16401_v49 = vpop.f32.mrf.mxu1 }
 0x9ed   :  { %18203 = vst [vmem:[#allocation14_spill] sm:$0xff] %v16401_v49  ;;  %v5659_v61 = vmax.f32 %v5534_v48, 0.0  ;;  %8570 = vmatpush1.bf16.msra.mxu1 %v16303_v13 }
 0x9ee   :  { %v5381_v26 = vpop.f32.mrf.mxu0  ;;  %v7842_v12 = vpop.f32.mrf.mxu1  ;;  %8571 = vmatprep.subr.bf16.mxu1 %v18131_v54 }
 0x9ef   :  { %v16405_v35 = vpack.c.bf16 %v5659_v61, %v5658_v46  ;;  %v5535_v55 = vadd.f32 %v5381_v26, %v15517_v44  ;;  %v5735_v44 = vld [vmem:[%s17978_s11 + $0x210] sm:$0xff] }
 0x9f0   :  { %v12118_v19 = vpop.f32.mrf.mxu0  ;;  %v16407_v14 = vpop.f32.mrf.mxu1  ;;  %8068 = vmatmul.mubr.bf16.gmra.mxu1 %v10615_v40  ;;  %8356 = vmatmul.mubr.bf16.gmra.mxu0 %v10617_v11  ;;  %v10632_v40 = vcombine.high %v5734_v1, %v5738_v60  ;;  %v18207_v12 = vld [vmem:[#allocation7_spill] sm:$0xff] }
 0x9f1   :  { %18204 = vst [vmem:[#allocation71_spill] sm:$0xff] %v16407_v14  ;;  %8572 = vmatpush1.bf16.msra.mxu1 %v16280_v57  ;;  %8075 = vmatprep.mubr.bf16.mxu1 %v10624_v23  ;;  %v5739_v57 = vld [vmem:[%s17978_s11 + $0x230] sm:$0xff]  ;;  %v5660_v48 = vmax.f32 %v5535_v55, 0.0  ;;  %v5854_v14 = vld [vmem:[%s17978_s11 + $0x5c8] sm:$0xff] }
 0x9f2   :  { %v5384_v5 = vpop.f32.mrf.mxu0  ;;  %v7847_v13 = vpop.f32.mrf.mxu1  ;;  %8573 = vmatprep.subr.bf16.mxu1 %v18131_v54  ;;  %8363 = vmatprep.mubr.bf16.mxu0 %v10626_v18  ;;  %v10634_v46 = vcombine.high %v5735_v44, %v5739_v57 }
 0x9f3   :  { %v5536_v17 = vadd.f32 %v5384_v5, %v15525_v21  ;;  %v10631_v5 = vcombine.low %v5734_v1, %v5738_v60  ;;  %v10633_v13 = vcombine.low %v5735_v44, %v5739_v57  ;;  %v5754_v57 = vld [vmem:[%s17978_s11 + $0x2a8] sm:$0xff] }
 0x9f4   :  { %v12119_v7 = vpop.f32.mrf.mxu0  ;;  %v16425_v31 = vpop.f32.mrf.mxu1 }
 0x9f5   :  { %18205 = vst [vmem:[#allocation15_spill] sm:$0xff] %v16425_v31  ;;  %v5661_v20 = vmax.f32 %v5536_v17, 0.0  ;;  %8574 = vmatpush1.bf16.msra.mxu1 %v16257_v45  ;;  %v5742_v45 = vld [vmem:[%s17978_s11 + $0x248] sm:$0xff] }
 0x9f6   :  { %v5389_v11 = vpop.f32.mrf.mxu0  ;;  %v7850_v21 = vpop.f32.mrf.mxu1  ;;  %8575 = vmatprep.subr.bf16.mxu1 %v18131_v54  ;;  %v5838_v31 = vld [vmem:[%s17978_s11 + $0x548] sm:$0xff] }
 0x9f7   :  { %v16429_v61 = vpack.c.bf16 %v5661_v20, %v5660_v48  ;;  %v5537_v50 = vadd.f32 %v5389_v11, %v15535_v47  ;;  %v5743_v47 = vld [vmem:[%s17978_s11 + $0x250] sm:$0xff] }
 0x9f8   :  { %v12122_v23 = vpop.f32.mrf.mxu0  ;;  %v16431_v26 = vpop.f32.mrf.mxu1  ;;  %8076 = vmatmul.mubr.bf16.gmra.mxu1 %v10623_v30  ;;  %8364 = vmatmul.mubr.bf16.gmra.mxu0 %v10625_v39  ;;  %v10640_v30 = vcombine.high %v5742_v45, %v5746_v3 }
 0x9f9   :  { %18206 = vst [vmem:[#allocation67_spill] sm:$0xff] %v16431_v26  ;;  %8576 = vmatpush1.bf16.msra.mxu1 %v16239_v16  ;;  %8083 = vmatprep.mubr.bf16.mxu1 %v10632_v40  ;;  %v5747_v16 = vld [vmem:[%s17978_s11 + $0x270] sm:$0xff]  ;;  %v5662_v17 = vmax.f32 %v5537_v50, 0.0 }
 0x9fa   :  { %v5392_v29 = vpop.f32.mrf.mxu0  ;;  %v7855_v10 = vpop.f32.mrf.mxu1  ;;  %8577 = vmatprep.subr.bf16.mxu1 %v18131_v54  ;;  %8371 = vmatprep.mubr.bf16.mxu0 %v10634_v46  ;;  %v10642_v39 = vcombine.high %v5743_v47, %v5747_v16  ;;  %v18210_v46 = vld [vmem:[#allocation8_spill] sm:$0xff]  ;;  %v5751_v23 = vld [vmem:[%s17978_s11 + $0x290] sm:$0xff] }
 0x9fb   :  { %v5538_v18 = vadd.f32 %v5392_v29, %v18207_v12  ;;  %v5755_v50 = vld [vmem:[%s17978_s11 + $0x2b0] sm:$0xff]  ;;  %v18211_v29 = vld [vmem:[#allocation9_spill] sm:$0xff] }
 0x9fc   :  { %v12123_v19 = vpop.f32.mrf.mxu0  ;;  %v16449_v55 = vpop.f32.mrf.mxu1 }
 0x9fd   :  { %18208 = vst [vmem:[#allocation16_spill] sm:$0xff] %v16449_v55  ;;  %v5663_v7 = vmax.f32 %v5538_v18, 0.0  ;;  %8578 = vmatpush1.bf16.msra.mxu1 %v16224_v28  ;;  %v5750_v28 = vld [vmem:[%s17978_s11 + $0x288] sm:$0xff]  ;;  %v10639_v19 = vcombine.low %v5742_v45, %v5746_v3 }
 0x9fe   :  { %v5397_v48 = vpop.f32.mrf.mxu0  ;;  %v7858_v20 = vpop.f32.mrf.mxu1  ;;  %8581 = vmatprep.subr.bf16.mxu1 %v18131_v54  ;;  %v5758_v45 = vld [vmem:[%s17978_s11 + $0x2c8] sm:$0xff] }
 0x9ff   :  { %v16453_v40 = vpack.c.bf16 %v5663_v7, %v5662_v17  ;;  %v5539_v1 = vadd.f32 %v5397_v48, %v18210_v46  ;;  %v10648_v7 = vcombine.high %v5750_v28, %v5754_v57 }
 0xa00   :  { %v12126_v11 = vpop.f32.mrf.mxu0  ;;  %v16455_v21 = vpop.f32.mrf.mxu1  ;;  %8084 = vmatmul.mubr.bf16.gmra.mxu1 %v10631_v5  ;;  %8372 = vmatmul.mubr.bf16.gmra.mxu0 %v10633_v13  ;;  %v10641_v5 = vcombine.low %v5743_v47, %v5747_v16  ;;  %v5762_v16 = vld [vmem:[%s17978_s11 + $0x2e8] sm:$0xff] }
 0xa01   :  { %18209 = vst [vmem:[#allocation17_spill] sm:$0xff] %v16455_v21  ;;  %8091 = vmatprep.mubr.bf16.mxu1 %v10640_v30  ;;  %8379 = vmatprep.mubr.bf16.mxu0 %v10642_v39  ;;  %v5664_v13 = vmax.f32 %v5539_v1, 0.0  ;;  %v10650_v30 = vcombine.high %v5751_v23, %v5755_v50  ;;  %v5759_v1 = vld [vmem:[%s17978_s11 + $0x2d0] sm:$0xff] }
 0xa02   :  { %v5400_v60 = vpop.f32.mrf.mxu0  ;;  %v7863_v44 = vpop.f32.mrf.mxu1 }
 0xa03   :  { %v5540_v10 = vadd.f32 %v5400_v60, %v18211_v29  ;;  %v18214_v44 = vld [vmem:[#allocation10_spill] sm:$0xff] }
 0xa04   :  { %v12127_v12 = vpop.f32.mrf.mxu0  ;;  %v16471_v18 = vpop.f32.mrf.mxu1  ;;  %v5763_v29 = vld [vmem:[%s17978_s11 + $0x2f0] sm:$0xff] }
 0xa05   :  { %18212 = vst [vmem:[#allocation18_spill] sm:$0xff] %v16471_v18  ;;  %v5665_v17 = vmax.f32 %v5540_v10, 0.0  ;;  %v18215_v10 = vld [vmem:[#allocation11_spill] sm:$0xff] }
 0xa06   :  { %v5405_v39 = vpop.f32.mrf.mxu0  ;;  %v7866_v48 = vpop.f32.mrf.mxu1 }
 0xa07   :  { %v16473_v20 = vpack.c.bf16 %v5665_v17, %v5664_v13  ;;  %v5541_v60 = vadd.f32 %v5405_v39, %v18214_v44  ;;  %v10647_v13 = vcombine.low %v5750_v28, %v5754_v57  ;;  %v10649_v17 = vcombine.low %v5751_v23, %v5755_v50  ;;  %v5766_v28 = vld [vmem:[%s17978_s11 + $0x308] sm:$0xff]  ;;  %v5767_v50 = vld [vmem:[%s17978_s11 + $0x310] sm:$0xff] }
 0xa08   :  { %v12130_v11 = vpop.f32.mrf.mxu0  ;;  %v16475_v46 = vpop.f32.mrf.mxu1  ;;  %8092 = vmatmul.mubr.bf16.gmra.mxu1 %v10639_v19  ;;  %8380 = vmatmul.mubr.bf16.gmra.mxu0 %v10641_v5  ;;  %v10656_v39 = vcombine.high %v5758_v45, %v5762_v16  ;;  %v10658_v48 = vcombine.high %v5759_v1, %v5763_v29  ;;  %v5770_v23 = vld [vmem:[%s17978_s11 + $0x328] sm:$0xff] }
 0xa09   :  { %18213 = vst [vmem:[#allocation19_spill] sm:$0xff] %v16475_v46  ;;  %8099 = vmatprep.mubr.bf16.mxu1 %v10648_v7  ;;  %8387 = vmatprep.mubr.bf16.mxu0 %v10650_v30  ;;  %v5666_v7 = vmax.f32 %v5541_v60, 0.0  ;;  %v18217_v46 = vld [vmem:[#allocation12_spill] sm:$0xff] }
 0xa0a   :  { %v5408_v3 = vpop.f32.mrf.mxu0  ;;  %v7871_v47 = vpop.f32.mrf.mxu1 }
 0xa0b   :  { %v5542_v12 = vadd.f32 %v5408_v3, %v18215_v10 }
 0xa0c   :  { %v12131_v19 = vpop.f32.mrf.mxu0  ;;  %v16491_v5 = vpop.f32.mrf.mxu1 }
 0xa0d   :  { %18216 = vst [vmem:[#allocation20_spill] sm:$0xff] %v16491_v5  ;;  %v5667_v30 = vmax.f32 %v5542_v12, 0.0  ;;  %v10655_v12 = vcombine.low %v5758_v45, %v5762_v16  ;;  %v10657_v19 = vcombine.low %v5759_v1, %v5763_v29  ;;  %v5774_v45 = vld [vmem:[%s17978_s11 + $0x348] sm:$0xff]  ;;  %v5775_v29 = vld [vmem:[%s17978_s11 + $0x350] sm:$0xff] }
 0xa0e   :  { %v5413_v11 = vpop.f32.mrf.mxu0  ;;  %v7874_v44 = vpop.f32.mrf.mxu1  ;;  %v5778_v1 = vld [vmem:[%s17978_s11 + $0x368] sm:$0xff] }
 0xa0f   :  { %v5982_v47 = vpack.c.bf16 %v5667_v30, %v5666_v7  ;;  %v5543_v18 = vadd.f32 %v5413_v11, %v18217_v46  ;;  %v16508_v46 = vpop.permute.xlu1 %6049  ;;  %v10664_v30 = vcombine.high %v5766_v28, %v5770_v23 }
 0xa10   :  { %v16494_v21 = vpop.f32.mrf.mxu1  ;;  %8100 = vmatmul.mubr.bf16.gmra.mxu1 %v10647_v13  ;;  %8388 = vmatmul.mubr.bf16.gmra.mxu0 %v10649_v17  ;;  %v12134_v55 = vpop.f32.mrf.mxu0  ;;  %v7734_v49 = vadd.f32 %v16158_v53, %v16508_v46  ;;  %v5879_v53 = vld [vmem:[%s17978_s11 + $0x690] sm:$0xff] }
 0xa11   :  { %18218 = vst [vmem:[#allocation21_spill] sm:$0xff] %v16494_v21  ;;  %v5668_v3 = vmax.f32 %v5543_v18, 0.0  ;;  %8107 = vmatprep.mubr.bf16.mxu1 %v10656_v39  ;;  %8395 = vmatprep.mubr.bf16.mxu0 %v10658_v48  ;;  %v5771_v55 = vld [vmem:[%s17978_s11 + $0x330] sm:$0xff]  ;;  %v16512_v17 = vpop.permute.xlu0 %6054  ;;  %v5814_v21 = vld [vmem:[%s17978_s11 + $0x488] sm:$0xff] }
 0xa12   :  { %v7879_v57 = vpop.f32.mrf.mxu1  ;;  %v5416_v18 = vpop.f32.mrf.mxu0  ;;  %v10666_v39 = vcombine.high %v5767_v50, %v5771_v55 }
 0xa13   :  { %v5983_v60 = vpack.c.bf16 %v5668_v3, %v5668_v3  ;;  %v16517_v44 = vpop.permute.xlu1 %6059  ;;  %v5779_v3 = vld [vmem:[%s17978_s11 + $0x370] sm:$0xff] }
 0xa14   :  { %v16510_v10 = vpop.f32.mrf.mxu1  ;;  %v12135_v13 = vpop.f32.mrf.mxu0 }
 0xa15   :  { %18219 = vst [vmem:[#allocation22_spill] sm:$0xff] %v16510_v10  ;;  %v7697_v7 = vsel %vm7695_vm0, %v5983_v60, 0  ;;  %v16531_v57 = vpop.permute.xlu0 %6064  ;;  %v10663_v60 = vcombine.low %v5766_v28, %v5770_v23  ;;  %v5782_v28 = vld [vmem:[%s17978_s11 + $0x388] sm:$0xff] }
 0xa16   :  { %v7882_v48 = vpop.f32.mrf.mxu1  ;;  %8582 = vmatpush2.bf16.msra.mxu1 %v7697_v7 }
 0xa17   :  { %8583 = vmatprep.subr.bf16.mxu1 %v18131_v54  ;;  %v16537_v7 = vpop.permute.xlu1 %6069 }
 0xa18   :  { %v16515_v11 = vpop.f32.mrf.mxu1  ;;  %8108 = vmatmul.mubr.bf16.gmra.mxu1 %v10655_v12  ;;  %8396 = vmatmul.mubr.bf16.gmra.mxu0 %v10657_v19  ;;  %v10672_v12 = vcombine.high %v5774_v45, %v5778_v1  ;;  %v10674_v19 = vcombine.high %v5775_v29, %v5779_v3 }
 0xa19   :  { %18220 = vst [vmem:[#allocation23_spill] sm:$0xff] %v16515_v11  ;;  %8115 = vmatprep.mubr.bf16.mxu1 %v10664_v30  ;;  %8403 = vmatprep.mubr.bf16.mxu0 %v10666_v39  ;;  %v16542_v39 = vpop.permute.xlu0 %6074  ;;  %v5806_v11 = vld [vmem:[%s17978_s11 + $0x448] sm:$0xff] }
 0xa1a   :  { %v7887_v16 = vpop.f32.mrf.mxu1  ;;  %8584 = vmatpush2.bf16.msra.mxu1 %v5982_v47  ;;  %v10665_v47 = vcombine.low %v5767_v50, %v5771_v55  ;;  %v5783_v50 = vld [vmem:[%s17978_s11 + $0x390] sm:$0xff] }
 0xa1b   :  { %8585 = vmatprep.subr.bf16.mxu1 %v18131_v54  ;;  %v5787_v55 = vld [vmem:[%s17978_s11 + $0x3b0] sm:$0xff]  ;;  %v10671_v16 = vcombine.low %v5774_v45, %v5778_v1  ;;  %v5790_v45 = vld [vmem:[%s17978_s11 + $0x3c8] sm:$0xff] }
 0xa1c   :  { %v16534_v18 = vpop.f32.mrf.mxu1 }
 0xa1d   :  { %18221 = vst [vmem:[#allocation24_spill] sm:$0xff] %v16534_v18 }
 0xa1e   :  { %v7890_v13 = vpop.f32.mrf.mxu1  ;;  %8586 = vmatpush2.bf16.msra.mxu1 %v16473_v20  ;;  %v5786_v20 = vld [vmem:[%s17978_s11 + $0x3a8] sm:$0xff] }
 0xa1f   :  { %8587 = vmatprep.subr.bf16.mxu1 %v18131_v54  ;;  %v16563_v13 = vpop.permute.xlu0 %6084 }
 0xa20   :  { %v16540_v30 = vpop.f32.mrf.mxu1  ;;  %8116 = vmatmul.mubr.bf16.gmra.mxu1 %v10663_v60  ;;  %8404 = vmatmul.mubr.bf16.gmra.mxu0 %v10665_v47  ;;  %v10673_v60 = vcombine.low %v5775_v29, %v5779_v3  ;;  %v16560_v47 = vpop.permute.xlu1 %6079  ;;  %v5791_v29 = vld [vmem:[%s17978_s11 + $0x3d0] sm:$0xff] }
 0xa21   :  { %18222 = vst [vmem:[#allocation25_spill] sm:$0xff] %v16540_v30  ;;  %8123 = vmatprep.mubr.bf16.mxu1 %v10672_v12  ;;  %8411 = vmatprep.mubr.bf16.mxu0 %v10674_v19  ;;  %v10682_v12 = vcombine.high %v5783_v50, %v5787_v55  ;;  %v5795_v3 = vld [vmem:[%s17978_s11 + $0x3f0] sm:$0xff] }
 0xa22   :  { %v7895_v23 = vpop.f32.mrf.mxu1  ;;  %8588 = vmatpush2.bf16.msra.mxu1 %v16453_v40  ;;  %v10680_v40 = vcombine.high %v5782_v28, %v5786_v20 }
 0xa23   :  { %8589 = vmatprep.subr.bf16.mxu1 %v18131_v54 }
 0xa24   :  { %v16558_v48 = vpop.f32.mrf.mxu1 }
 0xa25   :  { %18223 = vst [vmem:[#allocation26_spill] sm:$0xff] %v16558_v48 }
 0xa26   :  { %v7898_v19 = vpop.f32.mrf.mxu1  ;;  %8590 = vmatpush2.bf16.msra.mxu1 %v16429_v61  ;;  %v5794_v61 = vld [vmem:[%s17978_s11 + $0x3e8] sm:$0xff] }
 0xa27   :  { %8591 = vmatprep.subr.bf16.mxu1 %v18131_v54  ;;  %v10688_v19 = vcombine.high %v5790_v45, %v5794_v61 }
 0xa28   :  { %v16566_v23 = vpop.f32.mrf.mxu1  ;;  %8124 = vmatmul.mubr.bf16.gmra.mxu1 %v10671_v16  ;;  %8412 = vmatmul.mubr.bf16.gmra.mxu0 %v10673_v60  ;;  %v16581_v16 = vpop.permute.xlu1 %6089 }
 0xa29   :  { %18224 = vst [vmem:[#allocation27_spill] sm:$0xff] %v16566_v23  ;;  %8131 = vmatprep.mubr.bf16.mxu1 %v10680_v40  ;;  %8419 = vmatprep.mubr.bf16.mxu0 %v10682_v12  ;;  %v10679_v40 = vcombine.low %v5782_v28, %v5786_v20  ;;  %v16586_v12 = vpop.permute.xlu0 %6094  ;;  %v5798_v28 = vld [vmem:[%s17978_s11 + $0x408] sm:$0xff] }
 0xa2a   :  { %v7903_v1 = vpop.f32.mrf.mxu1  ;;  %8592 = vmatpush2.bf16.msra.mxu1 %v16405_v35  ;;  %v10681_v35 = vcombine.low %v5783_v50, %v5787_v55  ;;  %v5802_v50 = vld [vmem:[%s17978_s11 + $0x428] sm:$0xff]  ;;  %v5803_v55 = vld [vmem:[%s17978_s11 + $0x430] sm:$0xff] }
 0xa2b   :  { %8593 = vmatprep.subr.bf16.mxu1 %v18131_v54  ;;  %v10690_v1 = vcombine.high %v5791_v29, %v5795_v3 }
 0xa2c   :  { %v16584_v60 = vpop.f32.mrf.mxu1  ;;  %v16591_v30 = vpop.permute.xlu1 %6099 }
 0xa2d   :  { %18225 = vst [vmem:[#allocation28_spill] sm:$0xff] %v16584_v60 }
 0xa2e   :  { %v7906_v23 = vpop.f32.mrf.mxu1  ;;  %8594 = vmatpush2.bf16.msra.mxu1 %v16381_v9  ;;  %v5799_v9 = vld [vmem:[%s17978_s11 + $0x410] sm:$0xff] }
 0xa2f   :  { %v16605_v23 = vpop.permute.xlu0 %6104 }
 0xa30   :  { %v16589_v48 = vpop.f32.mrf.mxu1  ;;  %8132 = vmatmul.mubr.bf16.gmra.mxu1 %v10679_v40  ;;  %8420 = vmatmul.mubr.bf16.gmra.mxu0 %v10681_v35  ;;  %v10687_v35 = vcombine.low %v5790_v45, %v5794_v61  ;;  %v5810_v45 = vld [vmem:[%s17978_s11 + $0x468] sm:$0xff]  ;;  %v5811_v61 = vld [vmem:[%s17978_s11 + $0x470] sm:$0xff] }
 0xa31   :  { %18226 = vst [vmem:[#allocation29_spill] sm:$0xff] %v16589_v48  ;;  %8139 = vmatprep.mubr.bf16.mxu1 %v10688_v19  ;;  %8427 = vmatprep.mubr.bf16.mxu0 %v10690_v1  ;;  %v10689_v19 = vcombine.low %v5791_v29, %v5795_v3  ;;  %v10696_v1 = vcombine.high %v5798_v28, %v5802_v50  ;;  %v16609_v48 = vpop.permute.xlu1 %6109 }
 0xa32   :  { %v7911_v20 = vpop.f32.mrf.mxu1  ;;  %v10695_v3 = vcombine.low %v5798_v28, %v5802_v50  ;;  %v5818_v28 = vld [vmem:[%s17978_s11 + $0x4a8] sm:$0xff]  ;;  %v5815_v50 = vld [vmem:[%s17978_s11 + $0x490] sm:$0xff] }
 0xa33   :  { %v10698_v20 = vcombine.high %v5799_v9, %v5803_v55  ;;  %v16613_v18 = vpop.permute.xlu0 %6114 }
 0xa34   :  { %v16607_v40 = vpop.f32.mrf.mxu1 }
 0xa35   :  { %18227 = vst [vmem:[#allocation30_spill] sm:$0xff] %v16607_v40 }
 0xa36   :  { %v7914_v54 = vpop.f32.mrf.mxu1 }
 0xa37   :  { %v5807_v54 = vld [vmem:[%s17978_s11 + $0x450] sm:$0xff] }
 0xa38   :  { %v16611_v60 = vpop.f32.mrf.mxu1  ;;  %8140 = vmatmul.mubr.bf16.gmra.mxu1 %v10687_v35  ;;  %8428 = vmatmul.mubr.bf16.gmra.mxu0 %v10689_v19  ;;  %v10697_v35 = vcombine.low %v5799_v9, %v5803_v55  ;;  %v16629_v19 = vpop.permute.xlu1 %6119  ;;  %v5819_v9 = vld [vmem:[%s17978_s11 + $0x4b0] sm:$0xff] }
 0xa39   :  { %18228 = vst [vmem:[#allocation31_spill] sm:$0xff] %v16611_v60  ;;  %8147 = vmatprep.mubr.bf16.mxu1 %v10696_v1  ;;  %8435 = vmatprep.mubr.bf16.mxu0 %v10698_v20  ;;  %v10704_v1 = vcombine.high %v5806_v11, %v5810_v45  ;;  %v16631_v60 = vpop.permute.xlu0 %6124 }
 0xa3a   :  { %v7919_v40 = vpop.f32.mrf.mxu1 }
 0xa3b   :  { %v10706_v40 = vcombine.high %v5807_v54, %v5811_v61 }
 0xa3c   :  { %v16627_v29 = vpop.f32.mrf.mxu1  ;;  %v16647_v55 = vpop.permute.xlu1 %6199 }
 0xa3d   :  { %18229 = vst [vmem:[#allocation32_spill] sm:$0xff] %v16627_v29  ;;  %18231 = vst [vmem:[#allocation34_spill] sm:$0xff] %v16647_v55  ;;  %v5822_v55 = vld [vmem:[%s17978_s11 + $0x4c8] sm:$0xff] }
 0xa3e   :  { %v7922_v20 = vpop.f32.mrf.mxu1 }
 0xa3f   :  { %v10714_v20 = vcombine.high %v5815_v50, %v5819_v9 }
 0xa40   :  { %v16633_v10 = vpop.f32.mrf.mxu1  ;;  %8148 = vmatmul.mubr.bf16.gmra.mxu1 %v10695_v3  ;;  %8436 = vmatmul.mubr.bf16.gmra.mxu0 %v10697_v35  ;;  %v10703_v35 = vcombine.low %v5806_v11, %v5810_v45  ;;  %v16655_v26 = vpop.permute.xlu1 %6359  ;;  %v5826_v11 = vld [vmem:[%s17978_s11 + $0x4e8] sm:$0xff]  ;;  %v5827_v45 = vld [vmem:[%s17978_s11 + $0x4f0] sm:$0xff] }
 0xa41   :  { %18230 = vst [vmem:[#allocation33_spill] sm:$0xff] %v16633_v10  ;;  %8155 = vmatprep.mubr.bf16.mxu1 %v10704_v1  ;;  %8443 = vmatprep.mubr.bf16.mxu0 %v10706_v40  ;;  %v10705_v1 = vcombine.low %v5807_v54, %v5811_v61  ;;  %v16651_v40 = vpop.permute.xlu0 %6204  ;;  %18235 = vst [vmem:[#allocation39_spill] sm:$0xff] %v16655_v26 }
 0xa42   :  { %v7927_v29 = vpop.f32.mrf.mxu1  ;;  %18233 = vst [vmem:[#allocation36_spill] sm:$0xff] %v16651_v40 }
 0xa43   :  { %v10712_v29 = vcombine.high %v5814_v21, %v5818_v28 }
 0xa44   :  { %v16649_v3 = vpop.f32.mrf.mxu1  ;;  %v16673_v26 = vpop.permute.xlu1 %6284 }
 0xa45   :  { %18232 = vst [vmem:[#allocation35_spill] sm:$0xff] %v16649_v3  ;;  %v16669_v54 = vpop.permute.xlu0 %6279  ;;  %18238 = vst [vmem:[#allocation44_spill] sm:$0xff] %v16673_v26 }
 0xa46   :  { %v7930_v10 = vpop.f32.mrf.mxu1  ;;  %18236 = vst [vmem:[#allocation41_spill] sm:$0xff] %v16669_v54  ;;  %v5830_v54 = vld [vmem:[%s17978_s11 + $0x508] sm:$0xff] }
 0xa47   :  { %v5823_v10 = vld [vmem:[%s17978_s11 + $0x4d0] sm:$0xff] }
 0xa48   :  { %v16653_v5 = vpop.f32.mrf.mxu1  ;;  %8156 = vmatmul.mubr.bf16.gmra.mxu1 %v10703_v35  ;;  %8444 = vmatmul.mubr.bf16.gmra.mxu0 %v10705_v1  ;;  %v10711_v35 = vcombine.low %v5814_v21, %v5818_v28  ;;  %v10713_v1 = vcombine.low %v5815_v50, %v5819_v9  ;;  %v5834_v21 = vld [vmem:[%s17978_s11 + $0x528] sm:$0xff]  ;;  %v5831_v28 = vld [vmem:[%s17978_s11 + $0x510] sm:$0xff] }
 0xa49   :  { %18234 = vst [vmem:[#allocation37_spill] sm:$0xff] %v16653_v5  ;;  %8163 = vmatprep.mubr.bf16.mxu1 %v10712_v29  ;;  %8451 = vmatprep.mubr.bf16.mxu0 %v10714_v20  ;;  %v10720_v29 = vcombine.high %v5822_v55, %v5826_v11  ;;  %v16677_v40 = vpop.permute.xlu0 %6189  ;;  %v5835_v50 = vld [vmem:[%s17978_s11 + $0x530] sm:$0xff] }
 0xa4a   :  { %v7935_v3 = vpop.f32.mrf.mxu1  ;;  %18240 = vst [vmem:[#allocation47_spill] sm:$0xff] %v16677_v40  ;;  %v5862_v40 = vld [vmem:[%s17978_s11 + $0x608] sm:$0xff] }
 0xa4b   :  { %v10722_v3 = vcombine.high %v5823_v10, %v5827_v45 }
 0xa4c   :  { %v16671_v61 = vpop.f32.mrf.mxu1 }
 0xa4d   :  { %18237 = vst [vmem:[#allocation42_spill] sm:$0xff] %v16671_v61 }
 0xa4e   :  { %v7938_v20 = vpop.f32.mrf.mxu1 }
 0xa50   :  { %v16675_v5 = vpop.f32.mrf.mxu1  ;;  %8164 = vmatmul.mubr.bf16.gmra.mxu1 %v10711_v35  ;;  %8452 = vmatmul.mubr.bf16.gmra.mxu0 %v10713_v1  ;;  %v10719_v35 = vcombine.low %v5822_v55, %v5826_v11  ;;  %v10721_v1 = vcombine.low %v5823_v10, %v5827_v45  ;;  %v5842_v55 = vld [vmem:[%s17978_s11 + $0x568] sm:$0xff]  ;;  %v5839_v11 = vld [vmem:[%s17978_s11 + $0x550] sm:$0xff] }
 0xa51   :  { %18239 = vst [vmem:[#allocation46_spill] sm:$0xff] %v16675_v5  ;;  %8171 = vmatprep.mubr.bf16.mxu1 %v10720_v29  ;;  %8459 = vmatprep.mubr.bf16.mxu0 %v10722_v3  ;;  %v16693_v29 = vpop.permute.xlu1 %6194  ;;  %v10728_v3 = vcombine.high %v5830_v54, %v5834_v21  ;;  %v16695_v5 = vpop.permute.xlu0 %6349  ;;  %v5843_v10 = vld [vmem:[%s17978_s11 + $0x570] sm:$0xff] }
 0xa52   :  { %v7943_v61 = vpop.f32.mrf.mxu1  ;;  %18242 = vst [vmem:[#allocation51_spill] sm:$0xff] %v16693_v29  ;;  %18243 = vst [vmem:[#allocation52_spill] sm:$0xff] %v16695_v5 }
 0xa53   :  { %v10730_v61 = vcombine.high %v5831_v28, %v5835_v50 }
 0xa54   :  { %v16691_v9 = vpop.f32.mrf.mxu1 }
 0xa55   :  { %18241 = vst [vmem:[#allocation49_spill] sm:$0xff] %v16691_v9  ;;  %v16711_v45 = vpop.permute.xlu1 %6354 }
 0xa56   :  { %v7946_v20 = vpop.f32.mrf.mxu1  ;;  %18245 = vst [vmem:[#allocation54_spill] sm:$0xff] %v16711_v45  ;;  %v5846_v45 = vld [vmem:[%s17978_s11 + $0x588] sm:$0xff] }
 0xa57   :  { %v10738_v20 = vcombine.high %v5839_v11, %v5843_v10 }
 0xa58   :  { %v16697_v26 = vpop.f32.mrf.mxu1  ;;  %8172 = vmatmul.mubr.bf16.gmra.mxu1 %v10719_v35  ;;  %8460 = vmatmul.mubr.bf16.gmra.mxu0 %v10721_v1  ;;  %v10727_v1 = vcombine.low %v5830_v54, %v5834_v21  ;;  %v5850_v54 = vld [vmem:[%s17978_s11 + $0x5a8] sm:$0xff]  ;;  %v5851_v21 = vld [vmem:[%s17978_s11 + $0x5b0] sm:$0xff] }
 0xa59   :  { %18244 = vst [vmem:[#allocation53_spill] sm:$0xff] %v16697_v26  ;;  %8179 = vmatprep.mubr.bf16.mxu1 %v10728_v3  ;;  %8467 = vmatprep.mubr.bf16.mxu0 %v10730_v61  ;;  %v10729_v3 = vcombine.low %v5831_v28, %v5835_v50  ;;  %v16715_v61 = vpop.permute.xlu0 %6269  ;;  %v16719_v29 = vpop.permute.xlu1 %6274 }
 0xa5a   :  { %v7951_v9 = vpop.f32.mrf.mxu1  ;;  %18247 = vst [vmem:[#allocation56_spill] sm:$0xff] %v16715_v61  ;;  %18249 = vst [vmem:[#allocation58_spill] sm:$0xff] %v16719_v29 }
 0xa5b   :  { %v10736_v9 = vcombine.high %v5838_v31, %v5842_v55 }
 0xa5c   :  { %v16713_v35 = vpop.f32.mrf.mxu1 }
 0xa5d   :  { %18246 = vst [vmem:[#allocation55_spill] sm:$0xff] %v16713_v35  ;;  %v16733_v28 = vpop.permute.xlu0 %6179 }
 0xa5e   :  { %v7954_v5 = vpop.f32.mrf.mxu1  ;;  %18250 = vst [vmem:[#allocation59_spill] sm:$0xff] %v16733_v28 }
 0xa5f   :  { %v5847_v5 = vld [vmem:[%s17978_s11 + $0x590] sm:$0xff] }
 0xa60   :  { %v16717_v26 = vpop.f32.mrf.mxu1  ;;  %8180 = vmatmul.mubr.bf16.gmra.mxu1 %v10727_v1  ;;  %8468 = vmatmul.mubr.bf16.gmra.mxu0 %v10729_v3  ;;  %v10735_v1 = vcombine.low %v5838_v31, %v5842_v55  ;;  %v10737_v3 = vcombine.low %v5839_v11, %v5843_v10  ;;  %v5858_v31 = vld [vmem:[%s17978_s11 + $0x5e8] sm:$0xff]  ;;  %v5855_v55 = vld [vmem:[%s17978_s11 + $0x5d0] sm:$0xff] }
 0xa61   :  { %18248 = vst [vmem:[#allocation57_spill] sm:$0xff] %v16717_v26  ;;  %8187 = vmatprep.mubr.bf16.mxu1 %v10736_v9  ;;  %8475 = vmatprep.mubr.bf16.mxu0 %v10738_v20  ;;  %v10744_v9 = vcombine.high %v5846_v45, %v5850_v54  ;;  %v16737_v26 = vpop.permute.xlu1 %6184  ;;  %v16741_v61 = vpop.permute.xlu0 %6339  ;;  %v5859_v11 = vld [vmem:[%s17978_s11 + $0x5f0] sm:$0xff] }
 0xa62   :  { %v7959_v35 = vpop.f32.mrf.mxu1  ;;  %18252 = vst [vmem:[#allocation61_spill] sm:$0xff] %v16737_v26  ;;  %18254 = vst [vmem:[#allocation63_spill] sm:$0xff] %v16741_v61 }
 0xa63   :  { %v10746_v35 = vcombine.high %v5847_v5, %v5851_v21 }
 0xa64   :  { %v16735_v50 = vpop.f32.mrf.mxu1 }
 0xa65   :  { %18251 = vst [vmem:[#allocation60_spill] sm:$0xff] %v16735_v50 }
 0xa66   :  { %v7962_v20 = vpop.f32.mrf.mxu1 }
 0xa68   :  { %v16739_v29 = vpop.f32.mrf.mxu1  ;;  %8188 = vmatmul.mubr.bf16.gmra.mxu1 %v10735_v1  ;;  %8476 = vmatmul.mubr.bf16.gmra.mxu0 %v10737_v3  ;;  %v10743_v1 = vcombine.low %v5846_v45, %v5850_v54  ;;  %v10745_v3 = vcombine.low %v5847_v5, %v5851_v21  ;;  %v5866_v45 = vld [vmem:[%s17978_s11 + $0x628] sm:$0xff]  ;;  %v5863_v54 = vld [vmem:[%s17978_s11 + $0x610] sm:$0xff] }
 0xa69   :  { %18253 = vst [vmem:[#allocation62_spill] sm:$0xff] %v16739_v29  ;;  %8195 = vmatprep.mubr.bf16.mxu1 %v10744_v9  ;;  %8483 = vmatprep.mubr.bf16.mxu0 %v10746_v35  ;;  %v16757_v9 = vpop.permute.xlu1 %6344  ;;  %v10752_v35 = vcombine.high %v5854_v14, %v5858_v31  ;;  %v16759_v29 = vpop.permute.xlu0 %6259  ;;  %v5867_v5 = vld [vmem:[%s17978_s11 + $0x630] sm:$0xff] }
 0xa6a   :  { %v7967_v50 = vpop.f32.mrf.mxu1  ;;  %18256 = vst [vmem:[#allocation65_spill] sm:$0xff] %v16757_v9  ;;  %18257 = vst [vmem:[#allocation66_spill] sm:$0xff] %v16759_v29 }
 0xa6b   :  { %v10754_v50 = vcombine.high %v5855_v55, %v5859_v11 }
 0xa6c   :  { %v16755_v10 = vpop.f32.mrf.mxu1 }
 0xa6d   :  { %18255 = vst [vmem:[#allocation64_spill] sm:$0xff] %v16755_v10  ;;  %v16775_v21 = vpop.permute.xlu1 %6264 }
 0xa6e   :  { %v7970_v20 = vpop.f32.mrf.mxu1  ;;  %18259 = vst [vmem:[#allocation69_spill] sm:$0xff] %v16775_v21  ;;  %v5870_v21 = vld [vmem:[%s17978_s11 + $0x648] sm:$0xff] }
 0xa6f   :  { %v10762_v20 = vcombine.high %v5863_v54, %v5867_v5 }
 0xa70   :  { %v16761_v61 = vpop.f32.mrf.mxu1  ;;  %8196 = vmatmul.mubr.bf16.gmra.mxu1 %v10743_v1  ;;  %8484 = vmatmul.mubr.bf16.gmra.mxu0 %v10745_v3  ;;  %v10751_v3 = vcombine.low %v5854_v14, %v5858_v31  ;;  %v5874_v14 = vld [vmem:[%s17978_s11 + $0x668] sm:$0xff]  ;;  %v5875_v31 = vld [vmem:[%s17978_s11 + $0x670] sm:$0xff] }
 0xa71   :  { %18258 = vst [vmem:[#allocation68_spill] sm:$0xff] %v16761_v61  ;;  %8203 = vmatprep.mubr.bf16.mxu1 %v10752_v35  ;;  %8491 = vmatprep.mubr.bf16.mxu0 %v10754_v50  ;;  %v10753_v35 = vcombine.low %v5855_v55, %v5859_v11  ;;  %v16779_v50 = vpop.permute.xlu0 %6169  ;;  %v16783_v29 = vpop.permute.xlu1 %6174 }
 0xa72   :  { %v7975_v10 = vpop.f32.mrf.mxu1  ;;  %18262 = vst [vmem:[#allocation74_spill] sm:$0xff] %v16783_v29  ;;  %v7742_v29 = vadd.f32 %v16172_v6, %v16517_v44  ;;  %v5887_v6 = vld [vmem:[%s17978_s11 + $0x6d0] sm:$0xff] }
 0xa73   :  { %v10760_v10 = vcombine.high %v5862_v40, %v5866_v45  ;;  %v5891_v44 = vld [vmem:[%s17978_s11 + $0x6f0] sm:$0xff] }
 0xa74   :  { %v16777_v1 = vpop.f32.mrf.mxu1 }
 0xa75   :  { %18260 = vst [vmem:[#allocation70_spill] sm:$0xff] %v16777_v1  ;;  %v16797_v55 = vpop.permute.xlu0 %6329 }
 0xa76   :  { %v7978_v61 = vpop.f32.mrf.mxu1  ;;  %18263 = vst [vmem:[#allocation75_spill] sm:$0xff] %v16797_v55 }
 0xa77   :  { %v5871_v61 = vld [vmem:[%s17978_s11 + $0x650] sm:$0xff] }
 0xa78   :  { %v16781_v9 = vpop.f32.mrf.mxu1  ;;  %8204 = vmatmul.mubr.bf16.gmra.mxu1 %v10751_v3  ;;  %8492 = vmatmul.mubr.bf16.gmra.mxu0 %v10753_v35  ;;  %v10759_v3 = vcombine.low %v5862_v40, %v5866_v45  ;;  %v10761_v35 = vcombine.low %v5863_v54, %v5867_v5  ;;  %v5878_v40 = vld [vmem:[%s17978_s11 + $0x688] sm:$0xff] }
 0xa79   :  { %18261 = vst [vmem:[#allocation73_spill] sm:$0xff] %v16781_v9  ;;  %8211 = vmatprep.mubr.bf16.mxu1 %v10760_v10  ;;  %8499 = vmatprep.mubr.bf16.mxu0 %v10762_v20  ;;  %v10768_v10 = vcombine.high %v5870_v21, %v5874_v14  ;;  %v10770_v20 = vcombine.high %v5871_v61, %v5875_v31  ;;  %v16799_v9 = vpop.permute.xlu1 %6334  ;;  %v16803_v28 = vpop.permute.xlu0 %6249  ;;  %v5882_v5 = vld [vmem:[%s17978_s11 + $0x6a8] sm:$0xff] }
 0xa7a   :  { %v7983_v1 = vpop.f32.mrf.mxu1  ;;  %18264 = vst [vmem:[#allocation77_spill] sm:$0xff] %v16799_v9  ;;  %18265 = vst [vmem:[#allocation78_spill] sm:$0xff] %v16803_v28 }
 0xa7c   :  { %v7984_v11 = vpop.f32.mrf.mxu1 }
 0xa7d   :  { %v16823_v28 = vpop.permute.xlu0 %6159 }
 0xa7e   :  { %v7985_v1 = vpop.f32.mrf.mxu1 }
 0xa80   :  { %v8021_v26 = vpop.f32.mrf.mxu1  ;;  %8212 = vmatmul.mubr.bf16.gmra.mxu1 %v10759_v3  ;;  %v8309_v0 = vpop.f32.mrf.mxu0  ;;  %8500 = vmatmul.mubr.bf16.gmra.mxu0 %v10761_v35  ;;  %v10767_v35 = vcombine.low %v5870_v21, %v5874_v14  ;;  %v5890_v14 = vld [vmem:[%s17978_s11 + $0x6e8] sm:$0xff] }
 0xa81   :  { %v8022_v62 = vadd.f32 %v8021_v26, %v7734_v49  ;;  %8219 = vmatprep.mubr.bf16.mxu1 %v10768_v10  ;;  %8507 = vmatprep.mubr.bf16.mxu0 %v10770_v20  ;;  %v5883_v49 = vld [vmem:[%s17978_s11 + $0x6b0] sm:$0xff]  ;;  %v7737_v26 = vadd.f32 %v16168_v41, %v16512_v17  ;;  %v10769_v10 = vcombine.low %v5871_v61, %v5875_v31  ;;  %v16821_v20 = vpop.permute.xlu1 %6254  ;;  %v5886_v17 = vld [vmem:[%s17978_s11 + $0x6c8] sm:$0xff] }
 0xa82   :  { %v8023_v45 = vpop.f32.mrf.mxu1  ;;  %v8311_v54 = vpop.f32.mrf.mxu0  ;;  %v7745_v61 = vadd.f32 %v16182_v33, %v16531_v57 }
 0xa83   :  { %v16819_v46 = vadd.f32 %v8309_v0, %v8022_v62  ;;  %v10776_v45 = vcombine.high %v5878_v40, %v5882_v5  ;;  %v10778_v54 = vcombine.high %v5879_v53, %v5883_v49 }
 0xa84   :  { %v8024_v11 = vpop.f32.mrf.mxu1  ;;  %v8312_v3 = vpop.f32.mrf.mxu0 }
 0xa85   :  { %v8025_v1 = vadd.f32 %v8024_v11, %v7737_v26  ;;  %v10775_v11 = vcombine.low %v5878_v40, %v5882_v5  ;;  %v5894_v5 = vld [vmem:[%s17978_s11 + $0x708] sm:$0xff] }
 0xa86   :  { %v8026_v9 = vpop.f32.mrf.mxu1  ;;  %v8314_v55 = vpop.f32.mrf.mxu0 }
 0xa87   :  { %v16827_v25 = vadd.f32 %v8312_v3, %v8025_v1  ;;  %v10777_v3 = vcombine.low %v5879_v53, %v5883_v49  ;;  %v10784_v1 = vcombine.high %v5886_v17, %v5890_v14 }
 0xa88   :  { %v8029_v41 = vpop.f32.mrf.mxu1  ;;  %8220 = vmatmul.mubr.bf16.gmra.mxu1 %v10767_v35  ;;  %v8317_v62 = vpop.f32.mrf.mxu0  ;;  %8508 = vmatmul.mubr.bf16.gmra.mxu0 %v10769_v10 }
 0xa89   :  { %18266 = vst [vmem:[#allocation79_spill] sm:$0xff] %v16827_v25  ;;  %v8030_v0 = vadd.f32 %v8029_v41, %v7742_v29  ;;  %8227 = vmatprep.mubr.bf16.mxu1 %v10776_v45  ;;  %8515 = vmatprep.mubr.bf16.mxu0 %v10778_v54  ;;  %v16841_v29 = vpop.permute.xlu1 %6164  ;;  %v16847_v35 = vpop.permute.xlu0 %6319  ;;  %v10786_v45 = vcombine.high %v5887_v6, %v5891_v44 }
 0xa8a   :  { %v8031_v9 = vpop.f32.mrf.mxu1  ;;  %v8319_v21 = vpop.f32.mrf.mxu0 }
 0xa8b   :  { %v16845_v31 = vadd.f32 %v8317_v62, %v8030_v0  ;;  %v7750_v9 = vadd.f32 %v16186_v42, %v16537_v7  ;;  %v5898_v42 = vld [vmem:[%s17978_s11 + $0x728] sm:$0xff]  ;;  %v5895_v7 = vld [vmem:[%s17978_s11 + $0x710] sm:$0xff]  ;;  %v7753_v0 = vadd.f32 %v16196_v24, %v16542_v39 }
 0xa8c   :  { %v8032_v55 = vpop.f32.mrf.mxu1  ;;  %v8320_v26 = vpop.f32.mrf.mxu0 }
 0xa8d   :  { %v8033_v10 = vadd.f32 %v8032_v55, %v7745_v61  ;;  %v16853_v57 = vpop.permute.xlu1 %6324  ;;  %v16867_v62 = vpop.permute.xlu0 %6239 }
 0xa8e   :  { %v8034_v54 = vpop.f32.mrf.mxu1  ;;  %v8322_v41 = vpop.f32.mrf.mxu0 }
 0xa8f   :  { %v16851_v21 = vadd.f32 %v8320_v26, %v8033_v10 }
 0xa90   :  { %v8037_v25 = vpop.f32.mrf.mxu1  ;;  %8228 = vmatmul.mubr.bf16.gmra.mxu1 %v10775_v11  ;;  %v8325_v33 = vpop.f32.mrf.mxu0  ;;  %8516 = vmatmul.mubr.bf16.gmra.mxu0 %v10777_v3  ;;  %v10783_v11 = vcombine.low %v5886_v17, %v5890_v14  ;;  %v10785_v3 = vcombine.low %v5887_v6, %v5891_v44  ;;  %v5902_v14 = vld [vmem:[%s17978_s11 + $0x748] sm:$0xff] }
 0xa91   :  { %18267 = vst [vmem:[#allocation80_spill] sm:$0xff] %v16851_v21  ;;  %v8038_v40 = vadd.f32 %v8037_v25, %v7750_v9  ;;  %8235 = vmatprep.mubr.bf16.mxu1 %v10784_v1  ;;  %8523 = vmatprep.mubr.bf16.mxu0 %v10786_v45  ;;  %v5899_v25 = vld [vmem:[%s17978_s11 + $0x730] sm:$0xff]  ;;  %v10792_v1 = vcombine.high %v5894_v5, %v5898_v42  ;;  %v16873_v9 = vpop.permute.xlu1 %6244  ;;  %v16879_v39 = vpop.permute.xlu0 %6149 }
 0xa92   :  { %v8039_v53 = vpop.f32.mrf.mxu1  ;;  %v8327_v49 = vpop.f32.mrf.mxu0  ;;  %v10794_v45 = vcombine.high %v5895_v7, %v5899_v25 }
 0xa93   :  { %v16871_v61 = vadd.f32 %v8325_v33, %v8038_v40  ;;  %v7758_v53 = vadd.f32 %v16198_v52, %v16560_v47  ;;  %v5906_v52 = vld [vmem:[%s17978_s11 + $0x768] sm:$0xff]  ;;  %v5903_v47 = vld [vmem:[%s17978_s11 + $0x750] sm:$0xff]  ;;  %v7761_v33 = vadd.f32 %v16208_v58, %v16563_v13 }
 0xa94   :  { %v8040_v55 = vpop.f32.mrf.mxu1  ;;  %v8328_v26 = vpop.f32.mrf.mxu0 }
 0xa95   :  { %v8041_v10 = vadd.f32 %v8040_v55, %v7753_v0 }
 0xa96   :  { %v8042_v54 = vpop.f32.mrf.mxu1  ;;  %v8330_v41 = vpop.f32.mrf.mxu0 }
 0xa97   :  { %v16877_v49 = vadd.f32 %v8328_v26, %v8041_v10  ;;  %v10791_v26 = vcombine.low %v5894_v5, %v5898_v42  ;;  %v5910_v42 = vld [vmem:[%s17978_s11 + $0x788] sm:$0xff] }
 0xa98   :  { %v8045_v21 = vpop.f32.mrf.mxu1  ;;  %8236 = vmatmul.mubr.bf16.gmra.mxu1 %v10783_v11  ;;  %v8333_v24 = vpop.f32.mrf.mxu0  ;;  %8524 = vmatmul.mubr.bf16.gmra.mxu0 %v10785_v3  ;;  %v10793_v11 = vcombine.low %v5895_v7, %v5899_v25 }
 0xa99   :  { %v8046_v17 = vadd.f32 %v8045_v21, %v7758_v53  ;;  %8243 = vmatprep.mubr.bf16.mxu1 %v10792_v1  ;;  %8531 = vmatprep.mubr.bf16.mxu0 %v10794_v45  ;;  %v5907_v21 = vld [vmem:[%s17978_s11 + $0x770] sm:$0xff]  ;;  %v16897_v3 = vpop.permute.xlu1 %6154  ;;  %v10800_v1 = vcombine.high %v5902_v14, %v5906_v52  ;;  %v16899_v53 = vpop.permute.xlu0 %6309 }
 0xa9a   :  { %v8047_v6 = vpop.f32.mrf.mxu1  ;;  %v8335_v44 = vpop.f32.mrf.mxu0  ;;  %v10802_v45 = vcombine.high %v5903_v47, %v5907_v21 }
 0xa9b   :  { %v16895_v40 = vadd.f32 %v8333_v24, %v8046_v17  ;;  %v7766_v6 = vadd.f32 %v16211_v38, %v16581_v16  ;;  %v5914_v24 = vld [vmem:[%s17978_s11 + $0x7a8] sm:$0xff]  ;;  %v5911_v38 = vld [vmem:[%s17978_s11 + $0x790] sm:$0xff] }
 0xa9c   :  { %v8048_v0 = vpop.f32.mrf.mxu1  ;;  %v8336_v55 = vpop.f32.mrf.mxu0  ;;  %v5915_v16 = vld [vmem:[%s17978_s11 + $0x7b0] sm:$0xff] }
 0xa9d   :  { %v8049_v10 = vadd.f32 %v8048_v0, %v7761_v33  ;;  %v16917_v17 = vpop.permute.xlu1 %6314  ;;  %v7769_v33 = vadd.f32 %v16221_v51, %v16586_v12 }
 0xa9e   :  { %v8050_v54 = vpop.f32.mrf.mxu1  ;;  %v8338_v41 = vpop.f32.mrf.mxu0 }
 0xa9f   :  { %v16903_v44 = vadd.f32 %v8336_v55, %v8049_v10  ;;  %v10801_v10 = vcombine.low %v5903_v47, %v5907_v21  ;;  %v10808_v54 = vcombine.high %v5910_v42, %v5914_v24  ;;  %v10810_v41 = vcombine.high %v5911_v38, %v5915_v16  ;;  %v5918_v21 = vld [vmem:[%s17978_s11 + $0x7c8] sm:$0x33] }
 0xaa0   :  { %v8053_v58 = vpop.f32.mrf.mxu1  ;;  %8244 = vmatmul.mubr.bf16.gmra.mxu1 %v10791_v26  ;;  %v8341_v13 = vpop.f32.mrf.mxu0  ;;  %8532 = vmatmul.mubr.bf16.gmra.mxu0 %v10793_v11  ;;  %v10799_v11 = vcombine.low %v5902_v14, %v5906_v52 }
 0xaa1   :  { %18268 = vst [vmem:[#allocation81_spill] sm:$0xff] %v16903_v44  ;;  %v8054_v5 = vadd.f32 %v8053_v58, %v7766_v6  ;;  %8251 = vmatprep.mubr.bf16.mxu1 %v10800_v1  ;;  %8539 = vmatprep.mubr.bf16.mxu0 %v10802_v45  ;;  %v16923_v1 = vpop.permute.xlu0 %6229  ;;  %v16929_v12 = vpop.permute.xlu1 %6234 }
 0xaa2   :  { %v8055_v7 = vpop.f32.mrf.mxu1  ;;  %v8343_v25 = vpop.f32.mrf.mxu0 }
 0xaa3   :  { %v16921_v0 = vadd.f32 %v8341_v13, %v8054_v5  ;;  %v7774_v7 = vadd.f32 %v16227_v36, %v16591_v30  ;;  %v5919_v36 = vld [vmem:[%s17978_s11 + $0x7d0] sm:$0x33]  ;;  %v7777_v13 = vadd.f32 %v16235_v43, %v16605_v23 }
 0xaa4   :  { %v8056_v55 = vpop.f32.mrf.mxu1  ;;  %v8344_v26 = vpop.f32.mrf.mxu0 }
 0xaa5   :  { %v8057_v45 = vadd.f32 %v8056_v55, %v7769_v33  ;;  %v16937_v30 = vpop.permute.xlu0 %6139  ;;  %v10807_v55 = vcombine.low %v5910_v42, %v5914_v24 }
 0xaa6   :  { %v8058_v6 = vpop.f32.mrf.mxu1  ;;  %v8346_v58 = vpop.f32.mrf.mxu0 }
 0xaa7   :  { %v16927_v25 = vadd.f32 %v8344_v26, %v8057_v45  ;;  %v10809_v26 = vcombine.low %v5911_v38, %v5915_v16  ;;  %v10818_v45 = vcombine.high %v5919_v36, %v5919_v36  ;;  %v16943_v6 = vpop.permute.xlu1 %6144  ;;  %v7782_v58 = vadd.f32 %v16242_v56, %v16609_v48  ;;  %v5672_v16 = vld [vmem:[%s17978_s11 + $0x18] sm:$0xff] }
 0xaa8   :  { %v8061_v44 = vpop.f32.mrf.mxu1  ;;  %8252 = vmatmul.mubr.bf16.gmra.mxu1 %v10799_v11  ;;  %v8349_v51 = vpop.f32.mrf.mxu0  ;;  %8540 = vmatmul.mubr.bf16.gmra.mxu0 %v10801_v10  ;;  %v10816_v10 = vcombine.high %v5918_v21, %v5918_v21  ;;  %v5676_v56 = vld [vmem:[%s17978_s11 + $0x38] sm:$0xff]  ;;  %v7785_v48 = vadd.f32 %v16253_v4, %v16613_v18 }
 0xaa9   :  { %v8062_v14 = vadd.f32 %v8061_v44, %v7774_v7  ;;  %8259 = vmatprep.mubr.bf16.mxu1 %v10808_v54  ;;  %8547 = vmatprep.mubr.bf16.mxu0 %v10810_v41  ;;  %v16949_v23 = vpop.permute.xlu0 %6299 }
 0xaaa   :  { %v8063_v52 = vpop.f32.mrf.mxu1  ;;  %v8351_v47 = vpop.f32.mrf.mxu0 }
 0xaab   :  { %v16941_v5 = vadd.f32 %v8349_v51, %v8062_v14 }
 0xaac   :  { %v8064_v44 = vpop.f32.mrf.mxu1  ;;  %v8352_v33 = vpop.f32.mrf.mxu0 }
 0xaad   :  { %v8065_v11 = vadd.f32 %v8064_v44, %v7777_v13  ;;  %v10815_v13 = vcombine.low %v5918_v21, %v5918_v21  ;;  %v10817_v44 = vcombine.low %v5919_v36, %v5919_v36 }
 0xaae   :  { %v8066_v54 = vpop.f32.mrf.mxu1  ;;  %v8354_v41 = vpop.f32.mrf.mxu0 }
 0xaaf   :  { %v16947_v7 = vadd.f32 %v8352_v33, %v8065_v11  ;;  %v16961_v33 = vpop.permute.xlu1 %6304  ;;  %v7790_v54 = vadd.f32 %v16259_v59, %v16629_v19  ;;  %v7793_v19 = vadd.f32 %v16277_v22, %v16631_v60 }
 0xab0   :  { %v8069_v52 = vpop.f32.mrf.mxu1  ;;  %8260 = vmatmul.mubr.bf16.gmra.mxu1 %v10807_v55  ;;  %v8357_v43 = vpop.f32.mrf.mxu0  ;;  %8548 = vmatmul.mubr.bf16.gmra.mxu0 %v10809_v26  ;;  %v10572_v26 = vcombine.high %v5672_v16, %v5676_v56 }
 0xab1   :  { %v8070_v42 = vadd.f32 %v8069_v52, %v7782_v58  ;;  %8267 = vmatprep.mubr.bf16.mxu1 %v10816_v10  ;;  %8555 = vmatprep.mubr.bf16.mxu0 %v10818_v45  ;;  %v16963_v45 = vpop.permute.xlu0 %6219  ;;  %v5680_v52 = vld [vmem:[%s17978_s11 + $0x58] sm:$0xff] }
 0xab2   :  { %v8071_v24 = vpop.f32.mrf.mxu1  ;;  %v8359_v38 = vpop.f32.mrf.mxu0 }
 0xab3   :  { %v16959_v51 = vadd.f32 %v8357_v43, %v8070_v42  ;;  %v5684_v43 = vld [vmem:[%s17978_s11 + $0x78] sm:$0xff]  ;;  %v16976_v59 = vpop.permute.xlu1 %6224 }
 0xab4   :  { %v8072_v14 = vpop.f32.mrf.mxu1  ;;  %v8360_v47 = vpop.f32.mrf.mxu0 }
 0xab5   :  { %v8073_v55 = vadd.f32 %v8072_v14, %v7785_v48  ;;  %v10571_v48 = vcombine.low %v5672_v16, %v5676_v56  ;;  %v6130_v14 = vpop.permute.xlu0 %6129  ;;  %v5688_v16 = vld [vmem:[%s17978_s11 + $0x98] sm:$0xff] }
 0xab6   :  { %v8074_v11 = vpop.f32.mrf.mxu1  ;;  %v8362_v10 = vpop.f32.mrf.mxu0  ;;  %v5692_v56 = vld [vmem:[%s17978_s11 + $0xb8] sm:$0xff] }
 0xab7   :  { %v16967_v41 = vadd.f32 %v8360_v47, %v8073_v55 }
 0xab8   :  { %v8077_v4 = vpop.f32.mrf.mxu1  ;;  %8268 = vmatmul.mubr.bf16.gmra.mxu1 %v10815_v13  ;;  %v8365_v18 = vpop.f32.mrf.mxu0  ;;  %8556 = vmatmul.mubr.bf16.gmra.mxu0 %v10817_v44  ;;  %v10580_v13 = vcombine.high %v5680_v52, %v5684_v43 }
 0xab9   :  { %v8078_v21 = vadd.f32 %v8077_v4, %v7790_v54  ;;  %10821 = vmatprep.mubr.msk.bf16.mxu1 %vm7598_vm2, %v10572_v26  ;;  %v7798_v26 = vadd.f32 %v16282_v2, %v6130_v14  ;;  %v6135_v4 = vpop.permute.xlu1 %6134 }
 0xaba   :  { %v8079_v36 = vpop.f32.mrf.mxu1  ;;  %v8367_v58 = vpop.f32.mrf.mxu0  ;;  %v7801_v2 = vadd.f32 %v16301_v27, %v6135_v4 }
 0xabb   :  { %v16980_v42 = vadd.f32 %v8365_v18, %v8078_v21 }
 0xabc   :  { %v8080_v24 = vpop.f32.mrf.mxu1  ;;  %v8368_v38 = vpop.f32.mrf.mxu0 }
 0xabd   :  { %v8081_v47 = vadd.f32 %v8080_v24, %v7793_v19  ;;  %v10579_v19 = vcombine.low %v5680_v52, %v5684_v43  ;;  %v5696_v52 = vld [vmem:[%s17978_s11 + $0xd8] sm:$0xff] }
 0xabe   :  { %v8082_v44 = vpop.f32.mrf.mxu1  ;;  %v8370_v55 = vpop.f32.mrf.mxu0  ;;  %v5700_v43 = vld [vmem:[%s17978_s11 + $0xf8] sm:$0xff] }
 0xabf   :  { %v16983_v11 = vadd.f32 %v8368_v38, %v8081_v47  ;;  %v10588_v38 = vcombine.high %v5688_v16, %v5692_v56  ;;  %v7806_v47 = vadd.f32 %v16305_v34, %v16937_v30  ;;  %v7809_v34 = vadd.f32 %v16321_v32, %v16943_v6 }
 0xac0   :  { %v8085_v10 = vpop.f32.mrf.mxu1  ;;  %8596 = vmatmul.mubr.bf16.vlgmr.msra.gmra.mxu1 %v10571_v48  ;;  %v8373_v54 = vpop.f32.mrf.mxu0 }
 0xac1   :  { %v8086_v36 = vadd.f32 %v8085_v10, %v7798_v26  ;;  %10822 = vmatprep.mubr.msk.bf16.mxu1 %vm7598_vm2, %v10580_v13 }
 0xac2   :  { %v8087_v22 = vpop.f32.mrf.mxu1  ;;  %v8375_v60 = vpop.f32.mrf.mxu0 }
 0xac3   :  { %v16993_v18 = vadd.f32 %v8373_v54, %v8086_v36  ;;  %v10587_v36 = vcombine.low %v5688_v16, %v5692_v56  ;;  %v10596_v60 = vcombine.high %v5696_v52, %v5700_v43  ;;  %v5704_v16 = vld [vmem:[%s17978_s11 + $0x118] sm:$0xff] }
 0xac4   :  { %v8088_v21 = vpop.f32.mrf.mxu1  ;;  %v8376_v58 = vpop.f32.mrf.mxu0  ;;  %v5708_v56 = vld [vmem:[%s17978_s11 + $0x138] sm:$0xff] }
 0xac5   :  { %v8089_v24 = vadd.f32 %v8088_v21, %v7801_v2 }
 0xac6   :  { %v8090_v48 = vpop.f32.mrf.mxu1  ;;  %v8378_v14 = vpop.f32.mrf.mxu0 }
 0xac7   :  { %v16997_v13 = vadd.f32 %v8376_v58, %v8089_v24  ;;  %v7814_v58 = vadd.f32 %v16325_v8, %v16879_v39  ;;  %v7817_v8 = vadd.f32 %v16341_v15, %v16897_v3 }
 0xac8   :  { %v8093_v44 = vpop.f32.mrf.mxu1  ;;  %8604 = vmatmul.mubr.bf16.gmra.mxu1 %v10579_v19  ;;  %v8381_v55 = vpop.f32.mrf.mxu0 }
 0xac9   :  { %v8094_v26 = vadd.f32 %v8093_v44, %v7806_v47  ;;  %10823 = vmatprep.mubr.msk.bf16.mxu1 %vm7598_vm2, %v10588_v38  ;;  %v10595_v44 = vcombine.low %v5696_v52, %v5700_v43  ;;  %v5712_v52 = vld [vmem:[%s17978_s11 + $0x158] sm:$0xff] }
 0xaca   :  { %v8095_v27 = vpop.f32.mrf.mxu1  ;;  %v8383_v10 = vpop.f32.mrf.mxu0  ;;  %v5716_v43 = vld [vmem:[%s17978_s11 + $0x178] sm:$0xff] }
 0xacb   :  { %v17008_v30 = vadd.f32 %v8381_v55, %v8094_v26  ;;  %v10604_v26 = vcombine.high %v5704_v16, %v5708_v56 }
 0xacc   :  { %v8096_v54 = vpop.f32.mrf.mxu1  ;;  %v8384_v4 = vpop.f32.mrf.mxu0 }
 0xacd   :  { %v8097_v22 = vadd.f32 %v8096_v54, %v7809_v34  ;;  %v7822_v34 = vadd.f32 %v16343_v63, %v16823_v28  ;;  %v7825_v63 = vadd.f32 %v16359_v37, %v16841_v29 }
 0xace   :  { %v8098_v2 = vpop.f32.mrf.mxu1  ;;  %v8386_v21 = vpop.f32.mrf.mxu0 }
 0xacf   :  { %v17012_v19 = vadd.f32 %v8384_v4, %v8097_v22  ;;  %v10603_v21 = vcombine.low %v5704_v16, %v5708_v56  ;;  %v5720_v16 = vld [vmem:[%s17978_s11 + $0x198] sm:$0xff] }
 0xad0   :  { %v8101_v24 = vpop.f32.mrf.mxu1  ;;  %8612 = vmatmul.mubr.bf16.gmra.mxu1 %v10587_v36  ;;  %v8389_v38 = vpop.f32.mrf.mxu0  ;;  %v5724_v56 = vld [vmem:[%s17978_s11 + $0x1b8] sm:$0xff] }
 0xad1   :  { %v8102_v48 = vadd.f32 %v8101_v24, %v7814_v58  ;;  %10824 = vmatprep.mubr.msk.bf16.mxu1 %vm7598_vm2, %v10596_v60  ;;  %v10612_v24 = vcombine.high %v5712_v52, %v5716_v43 }
 0xad2   :  { %v8103_v32 = vpop.f32.mrf.mxu1  ;;  %v8391_v6 = vpop.f32.mrf.mxu0 }
 0xad3   :  { %v17023_v39 = vadd.f32 %v8389_v38, %v8102_v48  ;;  %v18269_v32 = vld [vmem:[#allocation76_spill] sm:$0xff] }
 0xad4   :  { %v8104_v14 = vpop.f32.mrf.mxu1  ;;  %v8392_v47 = vpop.f32.mrf.mxu0  ;;  %v7830_v6 = vadd.f32 %v18269_v32, %v16779_v50  ;;  %v18271_v50 = vld [vmem:[#allocation13_spill] sm:$0xff] }
 0xad5   :  { %v8105_v55 = vadd.f32 %v8104_v14, %v7817_v8 }
 0xad6   :  { %v8106_v27 = vpop.f32.mrf.mxu1  ;;  %v8394_v10 = vpop.f32.mrf.mxu0 }
 0xad7   :  { %v17027_v54 = vadd.f32 %v8392_v47, %v8105_v55  ;;  %v18270_v55 = vld [vmem:[#allocation74_spill] sm:$0xff] }
 0xad8   :  { %v8109_v4 = vpop.f32.mrf.mxu1  ;;  %8620 = vmatmul.mubr.bf16.gmra.mxu1 %v10595_v44  ;;  %v8397_v36 = vpop.f32.mrf.mxu0 }
 0xad9   :  { %v8110_v22 = vadd.f32 %v8109_v4, %v7822_v34  ;;  %10825 = vmatprep.mubr.msk.bf16.mxu1 %vm7598_vm2, %v10604_v26  ;;  %v7833_v26 = vadd.f32 %v18271_v50, %v18270_v55  ;;  %v10611_v4 = vcombine.low %v5712_v52, %v5716_v43  ;;  %v5728_v52 = vld [vmem:[%s17978_s11 + $0x1d8] sm:$0xff]  ;;  %v10619_v55 = vcombine.low %v5720_v16, %v5724_v56 }
 0xada   :  { %v8111_v15 = vpop.f32.mrf.mxu1  ;;  %v8399_v3 = vpop.f32.mrf.mxu0  ;;  %v5732_v43 = vld [vmem:[%s17978_s11 + $0x1f8] sm:$0xff] }
 0xadb   :  { %v17038_v28 = vadd.f32 %v8397_v36, %v8110_v22  ;;  %v10620_v22 = vcombine.high %v5720_v16, %v5724_v56  ;;  %v5736_v16 = vld [vmem:[%s17978_s11 + $0x218] sm:$0xff] }
 0xadc   :  { %v8112_v60 = vpop.f32.mrf.mxu1  ;;  %v8400_v2 = vpop.f32.mrf.mxu0  ;;  %v5740_v56 = vld [vmem:[%s17978_s11 + $0x238] sm:$0xff] }
 0xadd   :  { %v8113_v58 = vadd.f32 %v8112_v60, %v7825_v63  ;;  %v18272_v63 = vld [vmem:[#allocation59_spill] sm:$0xff]  ;;  %v18273_v60 = vld [vmem:[#allocation72_spill] sm:$0xff] }
 0xade   :  { %v8114_v38 = vpop.f32.mrf.mxu1  ;;  %v8402_v48 = vpop.f32.mrf.mxu0 }
 0xadf   :  { %v17042_v8 = vadd.f32 %v8400_v2, %v8113_v58  ;;  %v7838_v2 = vadd.f32 %v18273_v60, %v18272_v63 }
 0xae0   :  { %v8117_v14 = vpop.f32.mrf.mxu1  ;;  %8628 = vmatmul.mubr.bf16.gmra.mxu1 %v10603_v21  ;;  %v8405_v47 = vpop.f32.mrf.mxu0 }
 0xae1   :  { %v8118_v44 = vadd.f32 %v8117_v14, %v7830_v6  ;;  %10826 = vmatprep.mubr.msk.bf16.mxu1 %vm7598_vm2, %v10612_v24  ;;  %v18274_v6 = vld [vmem:[#allocation61_spill] sm:$0xff]  ;;  %v18275_v14 = vld [vmem:[#allocation14_spill] sm:$0xff] }
 0xae2   :  { %v8119_v37 = vpop.f32.mrf.mxu1  ;;  %v8407_v29 = vpop.f32.mrf.mxu0 }
 0xae3   :  { %v17053_v27 = vadd.f32 %v8405_v47, %v8118_v44  ;;  %v7841_v47 = vadd.f32 %v18275_v14, %v18274_v6 }
 0xae4   :  { %v8120_v10 = vpop.f32.mrf.mxu1  ;;  %v8408_v34 = vpop.f32.mrf.mxu0 }
 0xae5   :  { %v8121_v36 = vadd.f32 %v8120_v10, %v7833_v26  ;;  %v10628_v26 = vcombine.high %v5728_v52, %v5732_v43 }
 0xae6   :  { %v8122_v15 = vpop.f32.mrf.mxu1  ;;  %v8410_v3 = vpop.f32.mrf.mxu0 }
 0xae7   :  { %v17057_v21 = vadd.f32 %v8408_v34, %v8121_v36  ;;  %v18277_v36 = vld [vmem:[#allocation71_spill] sm:$0xff] }
 0xae8   :  { %v8125_v58 = vpop.f32.mrf.mxu1  ;;  %8636 = vmatmul.mubr.bf16.gmra.mxu1 %v10611_v4  ;;  %v8413_v24 = vpop.f32.mrf.mxu0  ;;  %v18276_v4 = vld [vmem:[#allocation47_spill] sm:$0xff] }
 0xae9   :  { %v8126_v38 = vadd.f32 %v8125_v58, %v7838_v2  ;;  %10827 = vmatprep.mubr.msk.bf16.mxu1 %vm7598_vm2, %v10620_v22  ;;  %v7846_v22 = vadd.f32 %v18277_v36, %v18276_v4 }
 0xaea   :  { %v8127_v48 = vpop.f32.mrf.mxu1  ;;  %v8415_v32 = vpop.f32.mrf.mxu0 }
 0xaeb   :  { %v17068_v44 = vadd.f32 %v8413_v24, %v8126_v38  ;;  %v18279_v24 = vld [vmem:[#allocation51_spill] sm:$0xff] }
 0xaec   :  { %v8128_v37 = vpop.f32.mrf.mxu1  ;;  %v8416_v29 = vpop.f32.mrf.mxu0  ;;  %v18280_v38 = vld [vmem:[#allocation15_spill] sm:$0xff] }
 0xaed   :  { %v8129_v50 = vadd.f32 %v8128_v37, %v7841_v47  ;;  %v7849_v48 = vadd.f32 %v18280_v38, %v18279_v24  ;;  %v10627_v47 = vcombine.low %v5728_v52, %v5732_v43  ;;  %v5744_v52 = vld [vmem:[%s17978_s11 + $0x258] sm:$0xff] }
 0xaee   :  { %v8130_v10 = vpop.f32.mrf.mxu1  ;;  %v8418_v34 = vpop.f32.mrf.mxu0  ;;  %v5748_v43 = vld [vmem:[%s17978_s11 + $0x278] sm:$0xff] }
 0xaef   :  { %v17072_v15 = vadd.f32 %v8416_v29, %v8129_v50  ;;  %v10636_v29 = vcombine.high %v5736_v16, %v5740_v56  ;;  %v18282_v10 = vld [vmem:[#allocation34_spill] sm:$0xff]  ;;  %v18283_v34 = vld [vmem:[#allocation67_spill] sm:$0xff]  ;;  %v18285_v24 = vld [vmem:[#allocation36_spill] sm:$0xff] }
 0xaf0   :  { %v8133_v3 = vpop.f32.mrf.mxu1  ;;  %8644 = vmatmul.mubr.bf16.gmra.mxu1 %v10619_v55  ;;  %v8421_v63 = vpop.f32.mrf.mxu0  ;;  %v7854_v4 = vadd.f32 %v18283_v34, %v18282_v10  ;;  %v18286_v38 = vld [vmem:[#allocation16_spill] sm:$0xff] }
 0xaf1   :  { %18278 = vst [vmem:[#allocation82_spill] sm:$0xff] %v17072_v15  ;;  %v8134_v60 = vadd.f32 %v8133_v3, %v7846_v22  ;;  %10828 = vmatprep.mubr.msk.bf16.mxu1 %vm7598_vm2, %v10628_v26  ;;  %v17085_v26 = vpop.permute.xlu0 %6289 }
 0xaf2   :  { %v8135_v2 = vpop.f32.mrf.mxu1  ;;  %v8423_v58 = vpop.f32.mrf.mxu0 }
 0xaf3   :  { %v17083_v32 = vadd.f32 %v8421_v63, %v8134_v60  ;;  %v17098_v58 = vpop.permute.xlu1 %6294 }
 0xaf4   :  { %v8136_v6 = vpop.f32.mrf.mxu1  ;;  %v8424_v14 = vpop.f32.mrf.mxu0 }
 0xaf5   :  { %18281 = vst [vmem:[#allocation83_spill] sm:$0xff] %v17083_v32  ;;  %v8137_v37 = vadd.f32 %v8136_v6, %v7849_v48  ;;  %v7857_v48 = vadd.f32 %v18286_v38, %v18285_v24  ;;  %v18288_v24 = vld [vmem:[#allocation18_spill] sm:$0xff] }
 0xaf6   :  { %v8138_v55 = vpop.f32.mrf.mxu1  ;;  %v8426_v50 = vpop.f32.mrf.mxu0 }
 0xaf7   :  { %v17089_v36 = vadd.f32 %v8424_v14, %v8137_v37  ;;  %v10635_v37 = vcombine.low %v5736_v16, %v5740_v56  ;;  %v10644_v50 = vcombine.high %v5744_v52, %v5748_v43  ;;  %v6215_v32 = vpop.permute.xlu1 %6214  ;;  %v5752_v16 = vld [vmem:[%s17978_s11 + $0x298] sm:$0xff] }
 0xaf8   :  { %v8141_v22 = vpop.f32.mrf.mxu1  ;;  %8652 = vmatmul.mubr.bf16.gmra.mxu1 %v10627_v47  ;;  %v8429_v3 = vpop.f32.mrf.mxu0  ;;  %v5756_v56 = vld [vmem:[%s17978_s11 + $0x2b8] sm:$0xff]  ;;  %v7865_v38 = vadd.f32 %v18288_v24, %v6215_v32 }
 0xaf9   :  { %18284 = vst [vmem:[#allocation84_spill] sm:$0xff] %v17089_v36  ;;  %v8142_v2 = vadd.f32 %v8141_v22, %v7854_v4  ;;  %10829 = vmatprep.mubr.msk.bf16.mxu1 %vm7598_vm2, %v10636_v29  ;;  %v6210_v29 = vpop.permute.xlu0 %6209  ;;  %v18287_v4 = vld [vmem:[#allocation17_spill] sm:$0xff] }
 0xafa   :  { %v8143_v63 = vpop.f32.mrf.mxu1  ;;  %v8431_v60 = vpop.f32.mrf.mxu0  ;;  %v7862_v22 = vadd.f32 %v18287_v4, %v6210_v29 }
 0xafb   :  { %v17102_v6 = vadd.f32 %v8429_v3, %v8142_v2 }
 0xafc   :  { %v8144_v14 = vpop.f32.mrf.mxu1  ;;  %v8432_v47 = vpop.f32.mrf.mxu0 }
 0xafd   :  { %v8145_v55 = vadd.f32 %v8144_v14, %v7857_v48 }
 0xafe   :  { %v8146_v10 = vpop.f32.mrf.mxu1  ;;  %v8434_v34 = vpop.f32.mrf.mxu0 }
 0xaff   :  { %v17105_v63 = vadd.f32 %v8432_v47, %v8145_v55  ;;  %v10652_v55 = vcombine.high %v5752_v16, %v5756_v56  ;;  %v18289_v34 = vld [vmem:[#allocation19_spill] sm:$0xff] }
 0xb00   :  { %v8149_v60 = vpop.f32.mrf.mxu1  ;;  %8660 = vmatmul.mubr.bf16.gmra.mxu1 %v10635_v37  ;;  %v8437_v36 = vpop.f32.mrf.mxu0  ;;  %v10643_v37 = vcombine.low %v5744_v52, %v5748_v43  ;;  %v7870_v4 = vadd.f32 %v18289_v34, %v16963_v45  ;;  %v5764_v52 = vld [vmem:[%s17978_s11 + $0x2f8] sm:$0xff] }
 0xb01   :  { %v8150_v15 = vadd.f32 %v8149_v60, %v7862_v22  ;;  %10830 = vmatprep.mubr.msk.bf16.mxu1 %vm7598_vm2, %v10644_v50  ;;  %v18290_v45 = vld [vmem:[#allocation20_spill] sm:$0xff] }
 0xb02   :  { %v8151_v3 = vpop.f32.mrf.mxu1  ;;  %v8439_v2 = vpop.f32.mrf.mxu0  ;;  %v7873_v43 = vadd.f32 %v18290_v45, %v16976_v59 }
 0xb03   :  { %v17115_v48 = vadd.f32 %v8437_v36, %v8150_v15  ;;  %v5760_v36 = vld [vmem:[%s17978_s11 + $0x2d8] sm:$0xff] }
 0xb04   :  { %v8152_v14 = vpop.f32.mrf.mxu1  ;;  %v8440_v47 = vpop.f32.mrf.mxu0 }
 0xb05   :  { %v8153_v29 = vadd.f32 %v8152_v14, %v7865_v38 }
 0xb06   :  { %v8154_v50 = vpop.f32.mrf.mxu1  ;;  %v8442_v10 = vpop.f32.mrf.mxu0 }
 0xb07   :  { %v17119_v22 = vadd.f32 %v8440_v47, %v8153_v29  ;;  %v10651_v47 = vcombine.low %v5752_v16, %v5756_v56  ;;  %v10660_v29 = vcombine.high %v5760_v36, %v5764_v52  ;;  %v18291_v10 = vld [vmem:[#allocation21_spill] sm:$0xff]  ;;  %v5768_v16 = vld [vmem:[%s17978_s11 + $0x318] sm:$0xff] }
 0xb08   :  { %v8157_v60 = vpop.f32.mrf.mxu1  ;;  %8668 = vmatmul.mubr.bf16.gmra.mxu1 %v10643_v37  ;;  %v8445_v3 = vpop.f32.mrf.mxu0  ;;  %v7878_v34 = vadd.f32 %v18291_v10, %v16923_v1  ;;  %v5772_v56 = vld [vmem:[%s17978_s11 + $0x338] sm:$0xff]  ;;  %v18292_v1 = vld [vmem:[#allocation22_spill] sm:$0xff] }
 0xb09   :  { %v8158_v2 = vadd.f32 %v8157_v60, %v7870_v4  ;;  %10831 = vmatprep.mubr.msk.bf16.mxu1 %vm7598_vm2, %v10652_v55 }
 0xb0a   :  { %v8159_v15 = vpop.f32.mrf.mxu1  ;;  %v8447_v32 = vpop.f32.mrf.mxu0 }
 0xb0b   :  { %v17130_v24 = vadd.f32 %v8445_v3, %v8158_v2  ;;  %v7881_v2 = vadd.f32 %v18292_v1, %v16929_v12 }
 0xb0c   :  { %v8160_v38 = vpop.f32.mrf.mxu1  ;;  %v8448_v14 = vpop.f32.mrf.mxu0 }
 0xb0d   :  { %v8161_v37 = vadd.f32 %v8160_v38, %v7873_v43 }
 0xb0e   :  { %v8162_v55 = vpop.f32.mrf.mxu1  ;;  %v8450_v50 = vpop.f32.mrf.mxu0 }
 0xb0f   :  { %v17134_v4 = vadd.f32 %v8448_v14, %v8161_v37  ;;  %v10659_v14 = vcombine.low %v5760_v36, %v5764_v52  ;;  %v10668_v37 = vcombine.high %v5768_v16, %v5772_v56  ;;  %v18293_v50 = vld [vmem:[#allocation23_spill] sm:$0xff] }
 0xb10   :  { %v8165_v60 = vpop.f32.mrf.mxu1  ;;  %8676 = vmatmul.mubr.bf16.gmra.mxu1 %v10651_v47  ;;  %v8453_v15 = vpop.f32.mrf.mxu0  ;;  %v7886_v10 = vadd.f32 %v18293_v50, %v16867_v62  ;;  %v5776_v36 = vld [vmem:[%s17978_s11 + $0x358] sm:$0xff]  ;;  %v18297_v50 = vld [vmem:[#allocation25_spill] sm:$0xff] }
 0xb11   :  { %v8166_v32 = vadd.f32 %v8165_v60, %v7878_v34  ;;  %10832 = vmatprep.mubr.msk.bf16.mxu1 %vm7598_vm2, %v10660_v29  ;;  %v5780_v52 = vld [vmem:[%s17978_s11 + $0x378] sm:$0xff] }
 0xb12   :  { %v8167_v59 = vpop.f32.mrf.mxu1  ;;  %v8455_v3 = vpop.f32.mrf.mxu0  ;;  %v18295_v62 = vld [vmem:[#allocation24_spill] sm:$0xff] }
 0xb13   :  { %v17145_v45 = vadd.f32 %v8453_v15, %v8166_v32  ;;  %v7889_v32 = vadd.f32 %v18295_v62, %v16873_v9 }
 0xb14   :  { %v8168_v43 = vpop.f32.mrf.mxu1  ;;  %v8456_v38 = vpop.f32.mrf.mxu0 }
 0xb15   :  { %v8169_v47 = vadd.f32 %v8168_v43, %v7881_v2 }
 0xb16   :  { %v8170_v29 = vpop.f32.mrf.mxu1  ;;  %v8458_v55 = vpop.f32.mrf.mxu0 }
 0xb17   :  { %v17149_v34 = vadd.f32 %v8456_v38, %v8169_v47  ;;  %v10667_v38 = vcombine.low %v5768_v16, %v5772_v56  ;;  %v10676_v47 = vcombine.high %v5776_v36, %v5780_v52  ;;  %v18296_v55 = vld [vmem:[#allocation78_spill] sm:$0xff]  ;;  %v5784_v16 = vld [vmem:[%s17978_s11 + $0x398] sm:$0xff] }
 0xb18   :  { %v8173_v60 = vpop.f32.mrf.mxu1  ;;  %8684 = vmatmul.mubr.bf16.gmra.mxu1 %v10659_v14  ;;  %v8461_v59 = vpop.f32.mrf.mxu0  ;;  %v5788_v56 = vld [vmem:[%s17978_s11 + $0x3b8] sm:$0xff] }
 0xb19   :  { %18294 = vst [vmem:[#allocation85_spill] sm:$0xff] %v17149_v34  ;;  %v8174_v3 = vadd.f32 %v8173_v60, %v7886_v10  ;;  %10833 = vmatprep.mubr.msk.bf16.mxu1 %vm7598_vm2, %v10668_v37  ;;  %v7894_v10 = vadd.f32 %v18297_v50, %v18296_v55  ;;  %v18301_v55 = vld [vmem:[#allocation66_spill] sm:$0xff]  ;;  %v18302_v50 = vld [vmem:[#allocation27_spill] sm:$0xff] }
 0xb1a   :  { %v8175_v12 = vpop.f32.mrf.mxu1  ;;  %v8463_v15 = vpop.f32.mrf.mxu0 }
 0xb1b   :  { %v17160_v1 = vadd.f32 %v8461_v59, %v8174_v3  ;;  %v18299_v3 = vld [vmem:[#allocation26_spill] sm:$0xff] }
 0xb1c   :  { %v8176_v2 = vpop.f32.mrf.mxu1  ;;  %v8464_v43 = vpop.f32.mrf.mxu0  ;;  %v7897_v62 = vadd.f32 %v18299_v3, %v16821_v20  ;;  %v18305_v3 = vld [vmem:[#allocation28_spill] sm:$0xff] }
 0xb1d   :  { %v8177_v14 = vadd.f32 %v8176_v2, %v7889_v32 }
 0xb1e   :  { %v8178_v37 = vpop.f32.mrf.mxu1  ;;  %v8466_v29 = vpop.f32.mrf.mxu0 }
 0xb1f   :  { %v17164_v60 = vadd.f32 %v8464_v43, %v8177_v14 }
 0xb20   :  { %v8181_v12 = vpop.f32.mrf.mxu1  ;;  %8692 = vmatmul.mubr.bf16.gmra.mxu1 %v10667_v38  ;;  %v8469_v15 = vpop.f32.mrf.mxu0  ;;  %v10675_v38 = vcombine.low %v5776_v36, %v5780_v52  ;;  %v5792_v36 = vld [vmem:[%s17978_s11 + $0x3d8] sm:$0xff] }
 0xb21   :  { %18298 = vst [vmem:[#allocation86_spill] sm:$0xff] %v17164_v60  ;;  %v8182_v34 = vadd.f32 %v8181_v12, %v7894_v10  ;;  %10834 = vmatprep.mubr.msk.bf16.mxu1 %vm7598_vm2, %v10676_v47  ;;  %v10684_v47 = vcombine.high %v5784_v16, %v5788_v56  ;;  %v7902_v10 = vadd.f32 %v18302_v50, %v18301_v55  ;;  %v5796_v52 = vld [vmem:[%s17978_s11 + $0x3f8] sm:$0xff] }
 0xb22   :  { %v8183_v9 = vpop.f32.mrf.mxu1  ;;  %v8471_v59 = vpop.f32.mrf.mxu0  ;;  %v18307_v50 = vld [vmem:[#allocation56_spill] sm:$0xff] }
 0xb23   :  { %v17175_v32 = vadd.f32 %v8469_v15, %v8182_v34  ;;  %v18304_v15 = vld [vmem:[#allocation69_spill] sm:$0xff] }
 0xb24   :  { %v8184_v2 = vpop.f32.mrf.mxu1  ;;  %v8472_v43 = vpop.f32.mrf.mxu0 }
 0xb25   :  { %18300 = vst [vmem:[#allocation87_spill] sm:$0xff] %v17175_v32  ;;  %v8185_v14 = vadd.f32 %v8184_v2, %v7897_v62  ;;  %v7905_v62 = vadd.f32 %v18305_v3, %v18304_v15  ;;  %v18310_v15 = vld [vmem:[#allocation58_spill] sm:$0xff] }
 0xb26   :  { %v8186_v37 = vpop.f32.mrf.mxu1  ;;  %v8474_v29 = vpop.f32.mrf.mxu0  ;;  %v18311_v3 = vld [vmem:[#allocation30_spill] sm:$0xff] }
 0xb27   :  { %v17179_v12 = vadd.f32 %v8472_v43, %v8185_v14  ;;  %v10683_v14 = vcombine.low %v5784_v16, %v5788_v56  ;;  %v5800_v16 = vld [vmem:[%s17978_s11 + $0x418] sm:$0xff] }
 0xb28   :  { %v8189_v9 = vpop.f32.mrf.mxu1  ;;  %8700 = vmatmul.mubr.bf16.gmra.mxu1 %v10675_v38  ;;  %v8477_v59 = vpop.f32.mrf.mxu0  ;;  %v5804_v56 = vld [vmem:[%s17978_s11 + $0x438] sm:$0xff] }
 0xb29   :  { %18303 = vst [vmem:[#allocation88_spill] sm:$0xff] %v17179_v12  ;;  %v8190_v60 = vadd.f32 %v8189_v9, %v7902_v10  ;;  %10835 = vmatprep.mubr.msk.bf16.mxu1 %vm7598_vm2, %v10684_v47  ;;  %v10692_v47 = vcombine.high %v5792_v36, %v5796_v52  ;;  %v18308_v10 = vld [vmem:[#allocation29_spill] sm:$0xff] }
 0xb2a   :  { %v8191_v20 = vpop.f32.mrf.mxu1  ;;  %v8479_v34 = vpop.f32.mrf.mxu0  ;;  %v7910_v9 = vadd.f32 %v18308_v10, %v18307_v50  ;;  %v18312_v10 = vld [vmem:[#allocation41_spill] sm:$0xff] }
 0xb2b   :  { %v17190_v2 = vadd.f32 %v8477_v59, %v8190_v60 }
 0xb2c   :  { %v8192_v43 = vpop.f32.mrf.mxu1  ;;  %v8480_v38 = vpop.f32.mrf.mxu0 }
 0xb2d   :  { %18306 = vst [vmem:[#allocation89_spill] sm:$0xff] %v17190_v2  ;;  %v8193_v37 = vadd.f32 %v8192_v43, %v7905_v62  ;;  %v7913_v62 = vadd.f32 %v18311_v3, %v18310_v15  ;;  %v18315_v15 = vld [vmem:[#allocation44_spill] sm:$0xff] }
 0xb2e   :  { %v8194_v29 = vpop.f32.mrf.mxu1  ;;  %v8482_v55 = vpop.f32.mrf.mxu0  ;;  %v18316_v3 = vld [vmem:[#allocation32_spill] sm:$0xff] }
 0xb2f   :  { %v17194_v20 = vadd.f32 %v8480_v38, %v8193_v37  ;;  %v10691_v37 = vcombine.low %v5792_v36, %v5796_v52  ;;  %v5808_v36 = vld [vmem:[%s17978_s11 + $0x458] sm:$0xff] }
 0xb30   :  { %v8197_v34 = vpop.f32.mrf.mxu1  ;;  %8708 = vmatmul.mubr.bf16.gmra.mxu1 %v10683_v14  ;;  %v8485_v12 = vpop.f32.mrf.mxu0  ;;  %v5812_v52 = vld [vmem:[%s17978_s11 + $0x478] sm:$0xff] }
 0xb31   :  { %18309 = vst [vmem:[#allocation90_spill] sm:$0xff] %v17194_v20  ;;  %v8198_v32 = vadd.f32 %v8197_v34, %v7910_v9  ;;  %10836 = vmatprep.mubr.msk.bf16.mxu1 %vm7598_vm2, %v10692_v47  ;;  %v10700_v47 = vcombine.high %v5800_v16, %v5804_v56  ;;  %v18313_v9 = vld [vmem:[#allocation31_spill] sm:$0xff] }
 0xb32   :  { %v8199_v60 = vpop.f32.mrf.mxu1  ;;  %v8487_v59 = vpop.f32.mrf.mxu0  ;;  %v7918_v34 = vadd.f32 %v18313_v9, %v18312_v10  ;;  %v18317_v9 = vld [vmem:[#allocation33_spill] sm:$0xff] }
 0xb33   :  { %v17205_v43 = vadd.f32 %v8485_v12, %v8198_v32 }
 0xb34   :  { %v8200_v38 = vpop.f32.mrf.mxu1  ;;  %v8488_v14 = vpop.f32.mrf.mxu0 }
 0xb35   :  { %v8201_v29 = vadd.f32 %v8200_v38, %v7913_v62  ;;  %v7921_v62 = vadd.f32 %v18316_v3, %v18315_v15 }
 0xb36   :  { %v8202_v55 = vpop.f32.mrf.mxu1  ;;  %v8490_v50 = vpop.f32.mrf.mxu0 }
 0xb37   :  { %v17209_v60 = vadd.f32 %v8488_v14, %v8201_v29  ;;  %v10699_v29 = vcombine.low %v5800_v16, %v5804_v56  ;;  %v5816_v16 = vld [vmem:[%s17978_s11 + $0x498] sm:$0xff] }
 0xb38   :  { %v8205_v59 = vpop.f32.mrf.mxu1  ;;  %8716 = vmatmul.mubr.bf16.gmra.mxu1 %v10691_v37  ;;  %v8493_v20 = vpop.f32.mrf.mxu0  ;;  %v5820_v56 = vld [vmem:[%s17978_s11 + $0x4b8] sm:$0xff] }
 0xb39   :  { %18314 = vst [vmem:[#allocation91_spill] sm:$0xff] %v17209_v60  ;;  %v8206_v2 = vadd.f32 %v8205_v59, %v7918_v34  ;;  %10837 = vmatprep.mubr.msk.bf16.mxu1 %vm7598_vm2, %v10700_v47  ;;  %v10708_v47 = vcombine.high %v5808_v36, %v5812_v52  ;;  %v7926_v34 = vadd.f32 %v18317_v9, %v17085_v26  ;;  %v18318_v26 = vld [vmem:[#allocation35_spill] sm:$0xff] }
 0xb3a   :  { %v8207_v32 = vpop.f32.mrf.mxu1  ;;  %v8495_v12 = vpop.f32.mrf.mxu0  ;;  %v7929_v15 = vadd.f32 %v18318_v26, %v17098_v58 }
 0xb3b   :  { %v17220_v38 = vadd.f32 %v8493_v20, %v8206_v2 }
 0xb3c   :  { %v8208_v14 = vpop.f32.mrf.mxu1  ;;  %v8496_v37 = vpop.f32.mrf.mxu0 }
 0xb3d   :  { %v8209_v55 = vadd.f32 %v8208_v14, %v7921_v62 }
 0xb3e   :  { %v8210_v50 = vpop.f32.mrf.mxu1  ;;  %v8498_v10 = vpop.f32.mrf.mxu0 }
 0xb3f   :  { %v17224_v59 = vadd.f32 %v8496_v37, %v8209_v55  ;;  %v10707_v37 = vcombine.low %v5808_v36, %v5812_v52  ;;  %v10716_v55 = vcombine.high %v5816_v16, %v5820_v56  ;;  %v18319_v10 = vld [vmem:[#allocation37_spill] sm:$0xff]  ;;  %v5824_v36 = vld [vmem:[%s17978_s11 + $0x4d8] sm:$0xff] }
 0xb40   :  { %v8213_v32 = vpop.f32.mrf.mxu1  ;;  %8724 = vmatmul.mubr.bf16.gmra.mxu1 %v10699_v29  ;;  %v8501_v12 = vpop.f32.mrf.mxu0  ;;  %v7934_v9 = vadd.f32 %v18319_v10, %v16949_v23  ;;  %v5828_v52 = vld [vmem:[%s17978_s11 + $0x4f8] sm:$0xff]  ;;  %v18320_v23 = vld [vmem:[#allocation42_spill] sm:$0xff] }
 0xb41   :  { %v8214_v60 = vadd.f32 %v8213_v32, %v7926_v34  ;;  %10838 = vmatprep.mubr.msk.bf16.mxu1 %vm7598_vm2, %v10708_v47 }
 0xb42   :  { %v8215_v2 = vpop.f32.mrf.mxu1  ;;  %v8503_v20 = vpop.f32.mrf.mxu0 }
 0xb43   :  { %v17235_v3 = vadd.f32 %v8501_v12, %v8214_v60  ;;  %v7937_v12 = vadd.f32 %v18320_v23, %v16961_v33 }
 0xb44   :  { %v8216_v62 = vpop.f32.mrf.mxu1  ;;  %v8504_v14 = vpop.f32.mrf.mxu0 }
 0xb45   :  { %v8217_v29 = vadd.f32 %v8216_v62, %v7929_v15 }
 0xb46   :  { %v8218_v47 = vpop.f32.mrf.mxu1  ;;  %v8506_v50 = vpop.f32.mrf.mxu0 }
 0xb47   :  { %v17239_v34 = vadd.f32 %v8504_v14, %v8217_v29  ;;  %v10715_v14 = vcombine.low %v5816_v16, %v5820_v56  ;;  %v10724_v29 = vcombine.high %v5824_v36, %v5828_v52  ;;  %v18321_v50 = vld [vmem:[#allocation46_spill] sm:$0xff]  ;;  %v5832_v16 = vld [vmem:[%s17978_s11 + $0x518] sm:$0xff] }
 0xb48   :  { %v8221_v32 = vpop.f32.mrf.mxu1  ;;  %8732 = vmatmul.mubr.bf16.gmra.mxu1 %v10707_v37  ;;  %v8509_v2 = vpop.f32.mrf.mxu0  ;;  %v7942_v10 = vadd.f32 %v18321_v50, %v16899_v53  ;;  %v5836_v56 = vld [vmem:[%s17978_s11 + $0x538] sm:$0xff]  ;;  %v18322_v53 = vld [vmem:[#allocation49_spill] sm:$0xff] }
 0xb49   :  { %v8222_v20 = vadd.f32 %v8221_v32, %v7934_v9  ;;  %10839 = vmatprep.mubr.msk.bf16.mxu1 %vm7598_vm2, %v10716_v55 }
 0xb4a   :  { %v8223_v58 = vpop.f32.mrf.mxu1  ;;  %v8511_v60 = vpop.f32.mrf.mxu0 }
 0xb4b   :  { %v17250_v26 = vadd.f32 %v8509_v2, %v8222_v20  ;;  %v7945_v20 = vadd.f32 %v18322_v53, %v16917_v17 }
 0xb4c   :  { %v8224_v15 = vpop.f32.mrf.mxu1  ;;  %v8512_v62 = vpop.f32.mrf.mxu0 }
 0xb4d   :  { %v8225_v37 = vadd.f32 %v8224_v15, %v7937_v12 }
 0xb4e   :  { %v8226_v55 = vpop.f32.mrf.mxu1  ;;  %v8514_v47 = vpop.f32.mrf.mxu0 }
 0xb4f   :  { %v17254_v9 = vadd.f32 %v8512_v62, %v8225_v37  ;;  %v10723_v62 = vcombine.low %v5824_v36, %v5828_v52  ;;  %v10732_v37 = vcombine.high %v5832_v16, %v5836_v56  ;;  %v18323_v47 = vld [vmem:[#allocation53_spill] sm:$0xff]  ;;  %v5840_v36 = vld [vmem:[%s17978_s11 + $0x558] sm:$0xff] }
 0xb50   :  { %v8229_v32 = vpop.f32.mrf.mxu1  ;;  %8740 = vmatmul.mubr.bf16.gmra.mxu1 %v10715_v14  ;;  %v8517_v58 = vpop.f32.mrf.mxu0  ;;  %v7950_v50 = vadd.f32 %v18323_v47, %v16847_v35  ;;  %v5844_v52 = vld [vmem:[%s17978_s11 + $0x578] sm:$0xff]  ;;  %v18328_v47 = vld [vmem:[#allocation57_spill] sm:$0xff] }
 0xb51   :  { %v8230_v60 = vadd.f32 %v8229_v32, %v7942_v10  ;;  %10840 = vmatprep.mubr.msk.bf16.mxu1 %vm7598_vm2, %v10724_v29  ;;  %v18325_v35 = vld [vmem:[#allocation55_spill] sm:$0xff] }
 0xb52   :  { %v8231_v33 = vpop.f32.mrf.mxu1  ;;  %v8519_v2 = vpop.f32.mrf.mxu0 }
 0xb53   :  { %v17265_v23 = vadd.f32 %v8517_v58, %v8230_v60  ;;  %v7953_v60 = vadd.f32 %v18325_v35, %v16853_v57  ;;  %v18331_v35 = vld [vmem:[#allocation60_spill] sm:$0xff] }
 0xb54   :  { %v8232_v12 = vpop.f32.mrf.mxu1  ;;  %v8520_v15 = vpop.f32.mrf.mxu0 }
 0xb55   :  { %v8233_v14 = vadd.f32 %v8232_v12, %v7945_v20 }
 0xb56   :  { %v8234_v29 = vpop.f32.mrf.mxu1  ;;  %v8522_v55 = vpop.f32.mrf.mxu0 }
 0xb57   :  { %v17269_v10 = vadd.f32 %v8520_v15, %v8233_v14  ;;  %v10731_v15 = vcombine.low %v5832_v16, %v5836_v56  ;;  %v10740_v14 = vcombine.high %v5840_v36, %v5844_v52  ;;  %v18327_v55 = vld [vmem:[#allocation75_spill] sm:$0xff] }
 0xb58   :  { %v8237_v32 = vpop.f32.mrf.mxu1  ;;  %8748 = vmatmul.mubr.bf16.gmra.mxu1 %v10723_v62  ;;  %v8525_v33 = vpop.f32.mrf.mxu0  ;;  %v5848_v16 = vld [vmem:[%s17978_s11 + $0x598] sm:$0xff] }
 0xb59   :  { %18324 = vst [vmem:[#allocation48_spill] sm:$0xff] %v17269_v10  ;;  %v8238_v2 = vadd.f32 %v8237_v32, %v7950_v50  ;;  %10841 = vmatprep.mubr.msk.bf16.mxu1 %vm7598_vm2, %v10732_v37  ;;  %v7958_v50 = vadd.f32 %v18328_v47, %v18327_v55  ;;  %v5852_v56 = vld [vmem:[%s17978_s11 + $0x5b8] sm:$0xff] }
 0xb5a   :  { %v8239_v17 = vpop.f32.mrf.mxu1  ;;  %v8527_v58 = vpop.f32.mrf.mxu0  ;;  %v18333_v47 = vld [vmem:[#allocation63_spill] sm:$0xff] }
 0xb5b   :  { %v17280_v53 = vadd.f32 %v8525_v33, %v8238_v2  ;;  %v18330_v2 = vld [vmem:[#allocation77_spill] sm:$0xff] }
 0xb5c   :  { %v8240_v20 = vpop.f32.mrf.mxu1  ;;  %v8528_v12 = vpop.f32.mrf.mxu0 }
 0xb5d   :  { %18326 = vst [vmem:[#allocation50_spill] sm:$0xff] %v17280_v53  ;;  %v8241_v62 = vadd.f32 %v8240_v20, %v7953_v60  ;;  %v7961_v60 = vadd.f32 %v18331_v35, %v18330_v2  ;;  %v18336_v2 = vld [vmem:[#allocation65_spill] sm:$0xff]  ;;  %v18337_v35 = vld [vmem:[#allocation64_spill] sm:$0xff] }
 0xb5e   :  { %v8242_v37 = vpop.f32.mrf.mxu1  ;;  %v8530_v29 = vpop.f32.mrf.mxu0 }
 0xb5f   :  { %v17284_v32 = vadd.f32 %v8528_v12, %v8241_v62  ;;  %v10739_v62 = vcombine.low %v5840_v36, %v5844_v52  ;;  %v5856_v36 = vld [vmem:[%s17978_s11 + $0x5d8] sm:$0xff] }
 0xb60   :  { %v8245_v17 = vpop.f32.mrf.mxu1  ;;  %8756 = vmatmul.mubr.bf16.gmra.mxu1 %v10731_v15  ;;  %v8533_v58 = vpop.f32.mrf.mxu0  ;;  %v5860_v52 = vld [vmem:[%s17978_s11 + $0x5f8] sm:$0xff] }
 0xb61   :  { %18329 = vst [vmem:[#allocation43_spill] sm:$0xff] %v17284_v32  ;;  %v8246_v10 = vadd.f32 %v8245_v17, %v7958_v50  ;;  %10842 = vmatprep.mubr.msk.bf16.mxu1 %vm7598_vm2, %v10740_v14  ;;  %v10748_v14 = vcombine.high %v5848_v16, %v5852_v56  ;;  %v18334_v50 = vld [vmem:[#allocation62_spill] sm:$0xff] }
 0xb62   :  { %v8247_v57 = vpop.f32.mrf.mxu1  ;;  %v8535_v33 = vpop.f32.mrf.mxu0  ;;  %v7966_v17 = vadd.f32 %v18334_v50, %v18333_v47  ;;  %v18339_v50 = vld [vmem:[#allocation52_spill] sm:$0xff] }
 0xb63   :  { %v17295_v20 = vadd.f32 %v8533_v58, %v8246_v10 }
 0xb64   :  { %v8248_v12 = vpop.f32.mrf.mxu1  ;;  %v8536_v15 = vpop.f32.mrf.mxu0 }
 0xb65   :  { %18332 = vst [vmem:[#allocation45_spill] sm:$0xff] %v17295_v20  ;;  %v8249_v37 = vadd.f32 %v8248_v12, %v7961_v60  ;;  %v7969_v60 = vadd.f32 %v18337_v35, %v18336_v2  ;;  %v18342_v2 = vld [vmem:[#allocation54_spill] sm:$0xff] }
 0xb66   :  { %v8250_v29 = vpop.f32.mrf.mxu1  ;;  %v8538_v55 = vpop.f32.mrf.mxu0  ;;  %v18343_v35 = vld [vmem:[#allocation70_spill] sm:$0xff] }
 0xb67   :  { %v17299_v57 = vadd.f32 %v8536_v15, %v8249_v37  ;;  %v10747_v37 = vcombine.low %v5848_v16, %v5852_v56  ;;  %v5864_v16 = vld [vmem:[%s17978_s11 + $0x618] sm:$0xff] }
 0xb68   :  { %v8253_v33 = vpop.f32.mrf.mxu1  ;;  %8764 = vmatmul.mubr.bf16.gmra.mxu1 %v10739_v62  ;;  %v8541_v32 = vpop.f32.mrf.mxu0  ;;  %v5868_v56 = vld [vmem:[%s17978_s11 + $0x638] sm:$0xff] }
 0xb69   :  { %18335 = vst [vmem:[#allocation38_spill] sm:$0xff] %v17299_v57  ;;  %v8254_v53 = vadd.f32 %v8253_v33, %v7966_v17  ;;  %10843 = vmatprep.mubr.msk.bf16.mxu1 %vm7598_vm2, %v10748_v14  ;;  %v10756_v14 = vcombine.high %v5856_v36, %v5860_v52  ;;  %v18340_v17 = vld [vmem:[#allocation68_spill] sm:$0xff] }
 0xb6a   :  { %v8255_v10 = vpop.f32.mrf.mxu1  ;;  %v8543_v58 = vpop.f32.mrf.mxu0  ;;  %v7974_v33 = vadd.f32 %v18340_v17, %v18339_v50  ;;  %v18344_v17 = vld [vmem:[#allocation39_spill] sm:$0xff] }
 0xb6b   :  { %v17310_v12 = vadd.f32 %v8541_v32, %v8254_v53 }
 0xb6c   :  { %v8256_v15 = vpop.f32.mrf.mxu1  ;;  %v8544_v62 = vpop.f32.mrf.mxu0 }
 0xb6d   :  { %18338 = vst [vmem:[#allocation40_spill] sm:$0xff] %v17310_v12  ;;  %v8257_v29 = vadd.f32 %v8256_v15, %v7969_v60  ;;  %v7977_v60 = vadd.f32 %v18343_v35, %v18342_v2 }
 0xb6e   :  { %v8258_v55 = vpop.f32.mrf.mxu1  ;;  %v8546_v47 = vpop.f32.mrf.mxu0 }
 0xb6f   :  { %v17314_v10 = vadd.f32 %v8544_v62, %v8257_v29  ;;  %v10755_v29 = vcombine.low %v5856_v36, %v5860_v52  ;;  %v5876_v36 = vld [vmem:[%s17978_s11 + $0x678] sm:$0xff] }
 0xb70   :  { %v8261_v58 = vpop.f32.mrf.mxu1  ;;  %8772 = vmatmul.mubr.bf16.gmra.mxu1 %v10747_v37  ;;  %v8549_v57 = vpop.f32.mrf.mxu0 }
 0xb71   :  { %18341 = vst [vmem:[#allocation92_spill] sm:$0xff] %v17314_v10  ;;  %v8262_v20 = vadd.f32 %v8261_v58, %v7974_v33  ;;  %10844 = vmatprep.mubr.msk.bf16.mxu1 %vm7598_vm2, %v10756_v14  ;;  %v10764_v14 = vcombine.high %v5864_v16, %v5868_v56  ;;  %v18345_v33 = vld [vmem:[#allocation73_spill] sm:$0xff] }
 0xb72   :  { %v8263_v53 = vpop.f32.mrf.mxu1  ;;  %v8551_v32 = vpop.f32.mrf.mxu0  ;;  %v7982_v58 = vadd.f32 %v18345_v33, %v18344_v17  ;;  %v5880_v17 = vld [vmem:[%s17978_s11 + $0x698] sm:$0xff] }
 0xb73   :  { %v17325_v15 = vadd.f32 %v8549_v57, %v8262_v20  ;;  %v5872_v57 = vld [vmem:[%s17978_s11 + $0x658] sm:$0xff] }
 0xb74   :  { %v8264_v62 = vpop.f32.mrf.mxu1  ;;  %v8552_v37 = vpop.f32.mrf.mxu0 }
 0xb75   :  { %v8265_v55 = vadd.f32 %v8264_v62, %v7977_v60  ;;  %v10763_v60 = vcombine.low %v5864_v16, %v5868_v56  ;;  %v10771_v16 = vcombine.low %v5872_v57, %v5876_v36  ;;  %v18346_v56 = vld [vmem:[#allocation79_spill] sm:$0xff] }
 0xb76   :  { %v8266_v47 = vpop.f32.mrf.mxu1  ;;  %v8554_v50 = vpop.f32.mrf.mxu0 }
 0xb77   :  { %v17329_v53 = vadd.f32 %v8552_v37, %v8265_v55  ;;  %v10772_v37 = vcombine.high %v5872_v57, %v5876_v36  ;;  %v5892_v57 = vld [vmem:[%s17978_s11 + $0x6f8] sm:$0xff] }
 0xb78   :  { %v8269_v32 = vpop.f32.mrf.mxu1  ;;  %8780 = vmatmul.mubr.bf16.gmra.mxu1 %v10755_v29  ;;  %v8557_v10 = vpop.f32.mrf.mxu0 }
 0xb79   :  { %v8270_v12 = vadd.f32 %v8269_v32, %v7982_v58  ;;  %10845 = vmatprep.mubr.msk.bf16.mxu1 %vm7598_vm2, %v10764_v14 }
 0xb7a   :  { %v8271_v20 = vpop.f32.mrf.mxu1  ;;  %v8559_v52 = vpop.f32.mrf.mxu0 }
 0xb7b   :  { %v17338_v2 = vadd.f32 %v8557_v10, %v8270_v12  ;;  %v5884_v12 = vld [vmem:[%s17978_s11 + $0x6b8] sm:$0xff] }
 0xb7c   :  { %v8272_v35 = vpop.f32.mrf.mxu1  ;;  %v8560_v62 = vpop.f32.mrf.mxu0  ;;  %v10780_v58 = vcombine.high %v5880_v17, %v5884_v12 }
 0xb7e   :  { %v8273_v29 = vpop.f32.mrf.mxu1  ;;  %v8561_v55 = vpop.f32.mrf.mxu0 }
 0xb7f   :  { %v10779_v29 = vcombine.low %v5880_v17, %v5884_v12  ;;  %v18347_v55 = vld [vmem:[#allocation80_spill] sm:$0xff] }
 0xb80   :  { %v8597_v47 = vpop.f32.mrf.mxu1  ;;  %8788 = vmatmul.mubr.bf16.gmra.mxu1 %v10763_v60  ;;  %v5900_v17 = vld [vmem:[%s17978_s11 + $0x738] sm:$0xff] }
 0xb81   :  { %v8598_v14 = vadd.f32 %v8597_v47, %v16819_v46  ;;  %10846 = vmatprep.mubr.msk.bf16.mxu1 %vm7598_vm2, %v10772_v37  ;;  %v5888_v37 = vld [vmem:[%s17978_s11 + $0x6d8] sm:$0xff] }
 0xb82   :  { %v8599_v50 = vpop.f32.mrf.mxu1 }
 0xb83   :  { %v8851_v20 = vmax.f32 %v8598_v14, 0.0  ;;  %v10788_v14 = vcombine.high %v5888_v37, %v5892_v57 }
 0xb84   :  { %v8600_v10 = vpop.f32.mrf.mxu1 }
 0xb85   :  { %v8601_v33 = vadd.f32 %v8600_v10, %v18346_v56 }
 0xb86   :  { %v8602_v32 = vpop.f32.mrf.mxu1 }
 0xb87   :  { %v8852_v52 = vmax.f32 %v8601_v33, 0.0  ;;  %v5896_v32 = vld [vmem:[%s17978_s11 + $0x718] sm:$0xff] }
 0xb88   :  { %v8605_v46 = vpop.f32.mrf.mxu1  ;;  %8796 = vmatmul.mubr.bf16.gmra.mxu1 %v10771_v16 }
 0xb89   :  { %v17349_v35 = vpack.c.bf16 %v8852_v52, %v8851_v20  ;;  %v8606_v60 = vadd.f32 %v8605_v46, %v16845_v31  ;;  %10847 = vmatprep.mubr.msk.bf16.mxu1 %vm7598_vm2, %v10780_v58  ;;  %v10787_v20 = vcombine.low %v5888_v37, %v5892_v57  ;;  %v10796_v46 = vcombine.high %v5896_v32, %v5900_v17 }
 0xb8a   :  { %v8607_v62 = vpop.f32.mrf.mxu1  ;;  %v10795_v57 = vcombine.low %v5896_v32, %v5900_v17  ;;  %v5912_v32 = vld [vmem:[%s17978_s11 + $0x798] sm:$0xff] }
 0xb8b   :  { %v8853_v10 = vmax.f32 %v8606_v60, 0.0  ;;  %v5916_v17 = vld [vmem:[%s17978_s11 + $0x7b8] sm:$0xff] }
 0xb8c   :  { %v8608_v36 = vpop.f32.mrf.mxu1 }
 0xb8d   :  { %v8609_v47 = vadd.f32 %v8608_v36, %v18347_v55 }
 0xb8e   :  { %v8610_v50 = vpop.f32.mrf.mxu1 }
 0xb8f   :  { %v8854_v16 = vmax.f32 %v8609_v47, 0.0  ;;  %v18348_v50 = vld [vmem:[#allocation81_spill] sm:$0xff] }
 0xb90   :  { %v8613_v31 = vpop.f32.mrf.mxu1  ;;  %8804 = vmatmul.mubr.bf16.gmra.mxu1 %v10779_v29 }
 0xb91   :  { %v17360_v56 = vpack.c.bf16 %v8854_v16, %v8853_v10  ;;  %v8614_v33 = vadd.f32 %v8613_v31, %v16871_v61  ;;  %10848 = vmatprep.mubr.msk.bf16.mxu1 %vm7598_vm2, %v10788_v14  ;;  %v5904_v14 = vld [vmem:[%s17978_s11 + $0x758] sm:$0xff] }
 0xb92   :  { %v8615_v58 = vpop.f32.mrf.mxu1 }
 0xb93   :  { %v8855_v62 = vmax.f32 %v8614_v33, 0.0 }
 0xb94   :  { %v8616_v12 = vpop.f32.mrf.mxu1 }
 0xb95   :  { %v8617_v52 = vadd.f32 %v8616_v12, %v16877_v49  ;;  %v5908_v49 = vld [vmem:[%s17978_s11 + $0x778] sm:$0xff]  ;;  %v12451_v12 = vld [vmem:[%s17980_s13 + $0x4] ss:$16 sps:$4 sm:$0xff]  }
 0xb96   :  { %v8618_v60 = vpop.f32.mrf.mxu1  ;;  %v10804_v16 = vcombine.high %v5904_v14, %v5908_v49  ;;  %9463 = vmatprep.mubr.bf16.mxu0 %v12451_v12 }
 0xb97   :  { %v8856_v36 = vmax.f32 %v8617_v52, 0.0 }
 0xb98   :  { %v8621_v61 = vpop.f32.mrf.mxu1  ;;  %8812 = vmatmul.mubr.bf16.gmra.mxu1 %v10787_v20 }
 0xb99   :  { %v17371_v29 = vpack.c.bf16 %v8856_v36, %v8855_v62  ;;  %v8622_v55 = vadd.f32 %v8621_v61, %v16895_v40  ;;  %10849 = vmatprep.mubr.msk.bf16.mxu1 %vm7598_vm2, %v10796_v46  ;;  %v10803_v62 = vcombine.low %v5904_v14, %v5908_v49  ;;  %v10812_v61 = vcombine.high %v5912_v32, %v5916_v17 }
 0xb9a   :  { %v8623_v47 = vpop.f32.mrf.mxu1  ;;  %v10811_v49 = vcombine.low %v5912_v32, %v5916_v17 }
 0xb9b   :  { %v8857_v33 = vmax.f32 %v8622_v55, 0.0 }
 0xb9c   :  { %v8624_v37 = vpop.f32.mrf.mxu1 }
 0xb9d   :  { %v8625_v10 = vadd.f32 %v8624_v37, %v18348_v50 }
 0xb9e   :  { %v8626_v31 = vpop.f32.mrf.mxu1 }
 0xb9f   :  { %v8858_v58 = vmax.f32 %v8625_v10, 0.0 }
 0xba0   :  { %v8629_v40 = vpop.f32.mrf.mxu1  ;;  %8820 = vmatmul.mubr.bf16.gmra.mxu1 %v10795_v57 }
 0xba1   :  { %v17385_v20 = vpack.c.bf16 %v8858_v58, %v8857_v33  ;;  %v8630_v52 = vadd.f32 %v8629_v40, %v16921_v0  ;;  %10850 = vmatprep.mubr.msk.bf16.mxu1 %vm7598_vm2, %v10804_v16  ;;  %v5920_v16 = vld [vmem:[%s17978_s11 + $0x7d8] sm:$0x33] }
 0xba2   :  { %v8631_v46 = vpop.f32.mrf.mxu1  ;;  %v10820_v31 = vcombine.high %v5920_v16, %v5920_v16 }
 0xba3   :  { %v8859_v47 = vmax.f32 %v8630_v52, 0.0 }
 0xba4   :  { %v8632_v60 = vpop.f32.mrf.mxu1 }
 0xba5   :  { %v8633_v36 = vadd.f32 %v8632_v60, %v16927_v25 }
 0xba6   :  { %v8634_v55 = vpop.f32.mrf.mxu1 }
 0xba7   :  { %v8860_v0 = vmax.f32 %v8633_v36, 0.0 }
 0xba8   :  { %v8637_v37 = vpop.f32.mrf.mxu1  ;;  %8828 = vmatmul.mubr.bf16.gmra.mxu1 %v10803_v62  ;;  %v10819_v62 = vcombine.low %v5920_v16, %v5920_v16 }
 0xba9   :  { %v17396_v57 = vpack.c.bf16 %v8860_v0, %v8859_v47  ;;  %v8638_v50 = vadd.f32 %v8637_v37, %v16941_v5  ;;  %10851 = vmatprep.mubr.msk.bf16.mxu1 %vm7598_vm2, %v10812_v61 }
 0xbaa   :  { %v8639_v10 = vpop.f32.mrf.mxu1 }
 0xbab   :  { %v8861_v58 = vmax.f32 %v8638_v50, 0.0 }
 0xbac   :  { %v8640_v14 = vpop.f32.mrf.mxu1 }
 0xbad   :  { %v8641_v25 = vadd.f32 %v8640_v14, %v16947_v7 }
 0xbae   :  { %v8642_v33 = vpop.f32.mrf.mxu1 }
 0xbaf   :  { %v8862_v40 = vmax.f32 %v8641_v25, 0.0 }
 0xbb0   :  { %v8645_v12 = vpop.f32.mrf.mxu1  ;;  %8836 = vmatmul.mubr.bf16.gmra.mxu1 %v10811_v49 }
 0xbb1   :  { %v17404_v52 = vpack.c.bf16 %v8862_v40, %v8861_v58  ;;  %v8646_v5 = vadd.f32 %v8645_v12, %v16959_v51  ;;  %10852 = vmatprep.mubr.msk.bf16.mxu1 %vm7598_vm2, %v10820_v31 }
 0xbb2   :  { %v8647_v46 = vpop.f32.mrf.mxu1 }
 0xbb3   :  { %v8863_v17 = vmax.f32 %v8646_v5, 0.0 }
 0xbb4   :  { %v8648_v60 = vpop.f32.mrf.mxu1 }
 0xbb5   :  { %v8649_v36 = vadd.f32 %v8648_v60, %v16967_v41 }
 0xbb6   :  { %v8650_v32 = vpop.f32.mrf.mxu1 }
 0xbb7   :  { %v8864_v7 = vmax.f32 %v8649_v36, 0.0 }
 0xbb8   :  { %v8653_v61 = vpop.f32.mrf.mxu1  ;;  %8844 = vmatmul.mubr.bf16.gmra.mxu1 %v10819_v62 }
 0xbb9   :  { %v17409_v55 = vpack.c.bf16 %v8864_v7, %v8863_v17  ;;  %v8654_v47 = vadd.f32 %v8653_v61, %v16980_v42 }
 0xbba   :  { %v8655_v0 = vpop.f32.mrf.mxu1 }
 0xbbb   :  { %v8865_v10 = vmax.f32 %v8654_v47, 0.0 }
 0xbbc   :  { %v8656_v37 = vpop.f32.mrf.mxu1 }
 0xbbd   :  { %v8657_v51 = vadd.f32 %v8656_v37, %v16983_v11 }
 0xbbe   :  { %v8658_v50 = vpop.f32.mrf.mxu1 }
 0xbbf   :  { %v8866_v14 = vmax.f32 %v8657_v51, 0.0 }
 0xbc0   :  { %v8661_v49 = vpop.f32.mrf.mxu1 }
 0xbc1   :  { %v17413_v16 = vpack.c.bf16 %v8866_v14, %v8865_v10  ;;  %v8662_v41 = vadd.f32 %v8661_v49, %v16993_v18 }
 0xbc2   :  { %v8663_v25 = vpop.f32.mrf.mxu1 }
 0xbc3   :  { %v8867_v40 = vmax.f32 %v8662_v41, 0.0 }
 0xbc4   :  { %v8664_v31 = vpop.f32.mrf.mxu1 }
 0xbc5   :  { %v8665_v33 = vadd.f32 %v8664_v31, %v16997_v13 }
 0xbc6   :  { %v8666_v58 = vpop.f32.mrf.mxu1 }
 0xbc7   :  { %v8868_v12 = vmax.f32 %v8665_v33, 0.0 }
 0xbc8   :  { %v8669_v42 = vpop.f32.mrf.mxu1 }
 0xbc9   :  { %v17417_v5 = vpack.c.bf16 %v8868_v12, %v8867_v40  ;;  %v8670_v11 = vadd.f32 %v8669_v42, %v17008_v30 }
 0xbca   :  { %v8671_v46 = vpop.f32.mrf.mxu1 }
 0xbcb   :  { %v8869_v32 = vmax.f32 %v8670_v11, 0.0 }
 0xbcc   :  { %v8672_v60 = vpop.f32.mrf.mxu1 }
 0xbcd   :  { %v8673_v62 = vadd.f32 %v8672_v60, %v17012_v19 }
 0xbce   :  { %v8674_v36 = vpop.f32.mrf.mxu1 }
 0xbcf   :  { %v8870_v17 = vmax.f32 %v8673_v62, 0.0 }
 0xbd0   :  { %v8677_v18 = vpop.f32.mrf.mxu1 }
 0xbd1   :  { %v17421_v7 = vpack.c.bf16 %v8870_v17, %v8869_v32  ;;  %v8678_v13 = vadd.f32 %v8677_v18, %v17023_v39  ;;  %v18349_v17 = vld [vmem:[#allocation82_spill] sm:$0xff] }
 0xbd2   :  { %v8679_v61 = vpop.f32.mrf.mxu1 }
 0xbd3   :  { %v8871_v51 = vmax.f32 %v8678_v13, 0.0 }
 0xbd4   :  { %v8680_v47 = vpop.f32.mrf.mxu1 }
 0xbd5   :  { %v8681_v0 = vadd.f32 %v8680_v47, %v17027_v54 }
 0xbd6   :  { %v8682_v37 = vpop.f32.mrf.mxu1 }
 0xbd7   :  { %v8872_v50 = vmax.f32 %v8681_v0, 0.0 }
 0xbd8   :  { %v8685_v30 = vpop.f32.mrf.mxu1 }
 0xbd9   :  { %v17425_v10 = vpack.c.bf16 %v8872_v50, %v8871_v51  ;;  %v8686_v19 = vadd.f32 %v8685_v30, %v17038_v28  ;;  %v18350_v51 = vld [vmem:[#allocation83_spill] sm:$0xff]  ;;  %v18351_v30 = vld [vmem:[#allocation84_spill] sm:$0xff] }
 0xbda   :  { %v8687_v14 = vpop.f32.mrf.mxu1 }
 0xbdb   :  { %v8873_v31 = vmax.f32 %v8686_v19, 0.0 }
 0xbdc   :  { %v8688_v49 = vpop.f32.mrf.mxu1 }
 0xbdd   :  { %v8689_v41 = vadd.f32 %v8688_v49, %v17042_v8 }
 0xbde   :  { %v8690_v25 = vpop.f32.mrf.mxu1 }
 0xbdf   :  { %v8874_v33 = vmax.f32 %v8689_v41, 0.0 }
 0xbe0   :  { %v8693_v58 = vpop.f32.mrf.mxu1 }
 0xbe1   :  { %v17429_v39 = vpack.c.bf16 %v8874_v33, %v8873_v31  ;;  %v8694_v54 = vadd.f32 %v8693_v58, %v17053_v27 }
 0xbe2   :  { %v8695_v40 = vpop.f32.mrf.mxu1 }
 0xbe3   :  { %v8875_v46 = vmax.f32 %v8694_v54, 0.0 }
 0xbe4   :  { %v8696_v12 = vpop.f32.mrf.mxu1 }
 0xbe5   :  { %v8697_v42 = vadd.f32 %v8696_v12, %v17057_v21 }
 0xbe6   :  { %v8698_v11 = vpop.f32.mrf.mxu1 }
 0xbe7   :  { %v8876_v60 = vmax.f32 %v8697_v42, 0.0 }
 0xbe8   :  { %v8701_v62 = vpop.f32.mrf.mxu1 }
 0xbe9   :  { %v8976_v28 = vpack.c.bf16 %v8876_v60, %v8875_v46  ;;  %v8702_v8 = vadd.f32 %v8701_v62, %v17068_v44 }
 0xbea   :  { %v8703_v36 = vpop.f32.mrf.mxu1 }
 0xbeb   :  { %v8877_v13 = vmax.f32 %v8702_v8, 0.0 }
 0xbec   :  { %v8704_v32 = vpop.f32.mrf.mxu1 }
 0xbed   :  { %v8705_v18 = vadd.f32 %v8704_v32, %v18349_v17 }
 0xbee   :  { %v8706_v61 = vpop.f32.mrf.mxu1 }
 0xbef   :  { %v8878_v47 = vmax.f32 %v8705_v18, 0.0 }
 0xbf0   :  { %v8709_v0 = vpop.f32.mrf.mxu1 }
 0xbf1   :  { %v8977_v37 = vpack.c.bf16 %v8878_v47, %v8877_v13  ;;  %v8710_v50 = vadd.f32 %v8709_v0, %v18350_v51 }
 0xbf2   :  { %v8711_v27 = vpop.f32.mrf.mxu1 }
 0xbf3   :  { %v8879_v49 = vmax.f32 %v8710_v50, 0.0 }
 0xbf4   :  { %v8712_v21 = vpop.f32.mrf.mxu1 }
 0xbf5   :  { %v8713_v14 = vadd.f32 %v8712_v21, %v18351_v30 }
 0xbf6   :  { %v8714_v19 = vpop.f32.mrf.mxu1 }
 0xbf7   :  { %v8880_v41 = vmax.f32 %v8713_v14, 0.0 }
 0xbf8   :  { %v8717_v25 = vpop.f32.mrf.mxu1 }
 0xbf9   :  { %v8978_v31 = vpack.c.bf16 %v8880_v41, %v8879_v49  ;;  %v8718_v33 = vadd.f32 %v8717_v25, %v17102_v6 }
 0xbfa   :  { %v8719_v44 = vpop.f32.mrf.mxu1 }
 0xbfb   :  { %v8881_v12 = vmax.f32 %v8718_v33, 0.0 }
 0xbfc   :  { %v8720_v58 = vpop.f32.mrf.mxu1 }
 0xbfd   :  { %v8721_v40 = vadd.f32 %v8720_v58, %v17105_v63  ;;  %v18355_v58 = vld [vmem:[#allocation88_spill] sm:$0xff] }
 0xbfe   :  { %v8722_v54 = vpop.f32.mrf.mxu1 }
 0xbff   :  { %v8882_v42 = vmax.f32 %v8721_v40, 0.0 }
 0xc00   :  { %v8725_v11 = vpop.f32.mrf.mxu1 }
 0xc01   :  { %v8979_v46 = vpack.c.bf16 %v8882_v42, %v8881_v12  ;;  %v8726_v60 = vadd.f32 %v8725_v11, %v17115_v48 }
 0xc02   :  { %v8727_v62 = vpop.f32.mrf.mxu1 }
 0xc03   :  { %11138 = vmatprep.subr.bf16.mxu0 %v8979_v46  ;;  %v8883_v6 = vmax.f32 %v8726_v60, 0.0  ;;  %v12457_v46 = vld [vmem:[%s17980_s13 + $0x44] ss:$16 sps:$4 sm:$0xff]  }
 0xc04   :  { %v8728_v36 = vpop.f32.mrf.mxu1  ;;  %11139 = vmatpush3.bf16.msra.mxu0 %v17413_v16  ;;  %v18356_v62 = vld [vmem:[#allocation89_spill] sm:$0xff] }
 0xc05   :  { %v8729_v8 = vadd.f32 %v8728_v36, %v17119_v22  ;;  %11140 = vmatprep.subr.bf16.mxu0 %v8978_v31  ;;  %v18354_v31 = vld [vmem:[#allocation87_spill] sm:$0xff] }
 0xc06   :  { %v8730_v32 = vpop.f32.mrf.mxu1 }
 0xc07   :  { %v8884_v17 = vmax.f32 %v8729_v8, 0.0 }
 0xc08   :  { %v8733_v18 = vpop.f32.mrf.mxu1  ;;  %11141 = vmatpush3.bf16.msra.mxu0 %v17409_v55 }
 0xc09   :  { %v17443_v63 = vpack.c.bf16 %v8884_v17, %v8883_v6  ;;  %v8734_v61 = vadd.f32 %v8733_v18, %v17130_v24  ;;  %11142 = vmatprep.subr.bf16.mxu0 %v8977_v37  ;;  %v18357_v6 = vld [vmem:[#allocation90_spill] sm:$0xff] }
 0xc0a   :  { %v8735_v48 = vpop.f32.mrf.mxu1 }
 0xc0b   :  { %v8885_v47 = vmax.f32 %v8734_v61, 0.0 }
 0xc0c   :  { %v8736_v13 = vpop.f32.mrf.mxu1  ;;  %11143 = vmatpush3.bf16.msra.mxu0 %v17404_v52  ;;  %v18352_v52 = vld [vmem:[#allocation85_spill] sm:$0xff] }
 0xc0d   :  { %v8737_v16 = vadd.f32 %v8736_v13, %v17134_v4  ;;  %11144 = vmatprep.subr.bf16.mxu0 %v8976_v28  ;;  %v12455_v13 = vld [vmem:[%s17980_s13 + $0x40] ss:$16 sps:$4 sm:$0xff]  }
 0xc0e   :  { %v8738_v22 = vpop.f32.mrf.mxu1 }
 0xc0f   :  { %v8886_v0 = vmax.f32 %v8737_v16, 0.0  ;;  %v12460_v22 = vld [vmem:[%s17980_s13 + $0x64] ss:$16 sps:$4 sm:$0xff]  }
 0xc10   :  { %v8741_v27 = vpop.f32.mrf.mxu1  ;;  %11145 = vmatpush3.bf16.msra.mxu0 %v17396_v57 }
 0xc11   :  { %v17449_v51 = vpack.c.bf16 %v8886_v0, %v8885_v47  ;;  %v8742_v55 = vadd.f32 %v8741_v27, %v17145_v45  ;;  %11146 = vmatprep.subr.bf16.mxu0 %v17429_v39 }
 0xc12   :  { %v8743_v24 = vpop.f32.mrf.mxu1 }
 0xc13   :  { %v8887_v28 = vmax.f32 %v8742_v55, 0.0  ;;  %v18358_v24 = vld [vmem:[#allocation91_spill] sm:$0xff] }
 0xc14   :  { %v8744_v37 = vpop.f32.mrf.mxu1  ;;  %11147 = vmatpush3.bf16.msra.mxu0 %v17385_v20  ;;  %v12489_v20 = vld [vmem:[%s17980_s13 + $0xc] ss:$16 sps:$4 sm:$0xff]  }
 0xc15   :  { %v8745_v50 = vadd.f32 %v8744_v37, %v18352_v52  ;;  %11148 = vmatprep.subr.bf16.mxu0 %v17425_v10  ;;  %v18353_v10 = vld [vmem:[#allocation86_spill] sm:$0xff]  ;;  %10905 = vmatprep.mubr.msk.bf16.mxu1 %vm9387_vm3, %v12489_v20 }
 0xc16   :  { %v8746_v4 = vpop.f32.mrf.mxu1 }
 0xc17   :  { %v8888_v21 = vmax.f32 %v8745_v50, 0.0 }
 0xc18   :  { %v8749_v30 = vpop.f32.mrf.mxu1  ;;  %11149 = vmatpush3.bf16.msra.mxu0 %v17371_v29 }
 0xc19   :  { %v17457_v57 = vpack.c.bf16 %v8888_v21, %v8887_v28  ;;  %v8750_v45 = vadd.f32 %v8749_v30, %v17160_v1  ;;  %11150 = vmatprep.subr.bf16.mxu0 %v17421_v7  ;;  %v12449_v7 = vld [vmem:[%s17980_s13] ss:$16 sps:$4 sm:$0xff]   ;;  %v12463_v30 = vld [vmem:[%s17980_s13 + $0x84] ss:$16 sps:$4 sm:$0xff]  }
 0xc1a   :  { %v8751_v39 = vpop.f32.mrf.mxu1  ;;  %v12458_v28 = vld [vmem:[%s17980_s13 + $0x60] ss:$16 sps:$4 sm:$0xff]  }
 0xc1b   :  { %v8889_v49 = vmax.f32 %v8750_v45, 0.0 }
 0xc1c   :  { %v8752_v14 = vpop.f32.mrf.mxu1  ;;  %11151 = vmatpush3.bf16.msra.mxu0 %v17360_v56  ;;  %v12454_v56 = vld [vmem:[%s17980_s13 + $0x24] ss:$16 sps:$4 sm:$0xff]  }
 0xc1d   :  { %v8753_v19 = vadd.f32 %v8752_v14, %v18353_v10  ;;  %11152 = vmatprep.subr.bf16.mxu0 %v17417_v5 }
 0xc1e   :  { %v8754_v29 = vpop.f32.mrf.mxu1 }
 0xc1f   :  { %v8890_v1 = vmax.f32 %v8753_v19, 0.0 }
 0xc20   :  { %v8757_v41 = vpop.f32.mrf.mxu1  ;;  %11153 = vmatpush3.bf16.msra.mxu0 %v17349_v35  ;;  %v12452_v35 = vld [vmem:[%s17980_s13 + $0x20] ss:$16 sps:$4 sm:$0xff]  }
 0xc21   :  { %v17475_v25 = vpack.c.bf16 %v8890_v1, %v8889_v49  ;;  %v8758_v5 = vadd.f32 %v8757_v41, %v18354_v31  ;;  %v12461_v49 = vld [vmem:[%s17980_s13 + $0x80] ss:$16 sps:$4 sm:$0xff]  }
 0xc22   :  { %v8759_v44 = vpop.f32.mrf.mxu1 }
 0xc23   :  { %9464 = vmatmul.mubr.bf16.vlgmr.msra.gmra.mxu0 %v12449_v7  ;;  %v8891_v12 = vmax.f32 %v8758_v5, 0.0  ;;  %v12466_v7 = vld [vmem:[%s17980_s13 + $0xa4] ss:$16 sps:$4 sm:$0xff]  }
 0xc24   :  { %v8760_v33 = vpop.f32.mrf.mxu1  ;;  %9471 = vmatprep.mubr.bf16.mxu0 %v12454_v56 }
 0xc25   :  { %v8761_v40 = vadd.f32 %v8760_v33, %v18355_v58  ;;  %v12464_v58 = vld [vmem:[%s17980_s13 + $0xa0] ss:$16 sps:$4 sm:$0xff]  }
 0xc26   :  { %v8762_v54 = vpop.f32.mrf.mxu1 }
 0xc27   :  { %v8892_v42 = vmax.f32 %v8761_v40, 0.0  ;;  %v12469_v54 = vld [vmem:[%s17980_s13 + $0xc4] ss:$16 sps:$4 sm:$0xff]  }
 0xc28   :  { %v8765_v11 = vpop.f32.mrf.mxu1 }
 0xc29   :  { %v17485_v60 = vpack.c.bf16 %v8892_v42, %v8891_v12  ;;  %v8766_v36 = vadd.f32 %v8765_v11, %v18356_v62 }
 0xc2a   :  { %v8767_v8 = vpop.f32.mrf.mxu1 }
 0xc2b   :  { %9472 = vmatmul.mubr.bf16.gmra.mxu0 %v12452_v35  ;;  %v8893_v61 = vmax.f32 %v8766_v36, 0.0  ;;  %v12467_v36 = vld [vmem:[%s17980_s13 + $0xc0] ss:$16 sps:$4 sm:$0xff]  }
 0xc2c   :  { %v8768_v32 = vpop.f32.mrf.mxu1  ;;  %9479 = vmatprep.mubr.bf16.mxu0 %v12457_v46 }
 0xc2d   :  { %v8769_v17 = vadd.f32 %v8768_v32, %v18357_v6  ;;  %v12472_v32 = vld [vmem:[%s17980_s13 + $0xe4] ss:$16 sps:$4 sm:$0xff]  }
 0xc2e   :  { %v8770_v18 = vpop.f32.mrf.mxu1 }
 0xc2f   :  { %v8894_v48 = vmax.f32 %v8769_v17, 0.0 }
 0xc30   :  { %v8773_v16 = vpop.f32.mrf.mxu1 }
 0xc31   :  { %v17495_v47 = vpack.c.bf16 %v8894_v48, %v8893_v61  ;;  %v8774_v0 = vadd.f32 %v8773_v16, %v17205_v43 }
 0xc32   :  { %v8775_v27 = vpop.f32.mrf.mxu1 }
 0xc33   :  { %9480 = vmatmul.mubr.bf16.gmra.mxu0 %v12455_v13  ;;  %v8895_v50 = vmax.f32 %v8774_v0, 0.0  ;;  %v12475_v27 = vld [vmem:[%s17980_s13 + $0x104] ss:$16 sps:$4 sm:$0xff]  }
 0xc34   :  { %v8776_v55 = vpop.f32.mrf.mxu1  ;;  %9487 = vmatprep.mubr.bf16.mxu0 %v12460_v22  ;;  %v12470_v22 = vld [vmem:[%s17980_s13 + $0xe0] ss:$16 sps:$4 sm:$0xff]  }
 0xc35   :  { %v8777_v37 = vadd.f32 %v8776_v55, %v18358_v24  ;;  %v18360_v24 = vld [vmem:[#allocation50_spill] sm:$0xff] }
 0xc36   :  { %v8778_v52 = vpop.f32.mrf.mxu1 }
 0xc37   :  { %v8896_v4 = vmax.f32 %v8777_v37, 0.0 }
 0xc38   :  { %v8781_v21 = vpop.f32.mrf.mxu1 }
 0xc39   :  { %v17505_v45 = vpack.c.bf16 %v8896_v4, %v8895_v50  ;;  %v8782_v43 = vadd.f32 %v8781_v21, %v17220_v38  ;;  %v18361_v50 = vld [vmem:[#allocation43_spill] sm:$0xff] }
 0xc3a   :  { %v8783_v39 = vpop.f32.mrf.mxu1 }
 0xc3b   :  { %9488 = vmatmul.mubr.bf16.gmra.mxu0 %v12458_v28  ;;  %v8897_v19 = vmax.f32 %v8782_v43, 0.0  ;;  %v12473_v43 = vld [vmem:[%s17980_s13 + $0x100] ss:$16 sps:$4 sm:$0xff]  }
 0xc3c   :  { %v8784_v14 = vpop.f32.mrf.mxu1  ;;  %9495 = vmatprep.mubr.bf16.mxu0 %v12463_v30 }
 0xc3d   :  { %v8785_v20 = vadd.f32 %v8784_v14, %v17224_v59  ;;  %v12478_v14 = vld [vmem:[%s17980_s13 + $0x124] ss:$16 sps:$4 sm:$0xff]  }
 0xc3e   :  { %v8786_v10 = vpop.f32.mrf.mxu1 }
 0xc3f   :  { %v8898_v29 = vmax.f32 %v8785_v20, 0.0 }
 0xc40   :  { %v8789_v1 = vpop.f32.mrf.mxu1 }
 0xc41   :  { %v17515_v41 = vpack.c.bf16 %v8898_v29, %v8897_v19  ;;  %v8790_v38 = vadd.f32 %v8789_v1, %v17235_v3  ;;  %v18362_v19 = vld [vmem:[#allocation45_spill] sm:$0xff]  ;;  %v18363_v1 = vld [vmem:[#allocation38_spill] sm:$0xff] }
 0xc42   :  { %v8791_v56 = vpop.f32.mrf.mxu1 }
 0xc43   :  { %9496 = vmatmul.mubr.bf16.gmra.mxu0 %v12461_v49  ;;  %v8899_v44 = vmax.f32 %v8790_v38, 0.0 }
 0xc44   :  { %v8792_v31 = vpop.f32.mrf.mxu1  ;;  %9503 = vmatprep.mubr.bf16.mxu0 %v12466_v7 }
 0xc45   :  { %v8793_v59 = vadd.f32 %v8792_v31, %v17239_v34 }
 0xc46   :  { %v8794_v5 = vpop.f32.mrf.mxu1 }
 0xc47   :  { %v8900_v33 = vmax.f32 %v8793_v59, 0.0  ;;  %v12476_v59 = vld [vmem:[%s17980_s13 + $0x120] ss:$16 sps:$4 sm:$0xff]  }
 0xc48   :  { %v8797_v40 = vpop.f32.mrf.mxu1 }
 0xc49   :  { %v17525_v12 = vpack.c.bf16 %v8900_v33, %v8899_v44  ;;  %v8798_v3 = vadd.f32 %v8797_v40, %v17250_v26  ;;  %v12481_v44 = vld [vmem:[%s17980_s13 + $0x144] ss:$16 sps:$4 sm:$0xff]   ;;  %v18364_v40 = vld [vmem:[#allocation40_spill] sm:$0xff] }
 0xc4a   :  { %v8799_v42 = vpop.f32.mrf.mxu1 }
 0xc4b   :  { %9504 = vmatmul.mubr.bf16.gmra.mxu0 %v12464_v58  ;;  %v8901_v46 = vmax.f32 %v8798_v3, 0.0  ;;  %v18365_v42 = vld [vmem:[#allocation92_spill] sm:$0xff] }
 0xc4c   :  { %v8800_v35 = vpop.f32.mrf.mxu1  ;;  %9511 = vmatprep.mubr.bf16.mxu0 %v12469_v54 }
 0xc4d   :  { %v8801_v34 = vadd.f32 %v8800_v35, %v17254_v9  ;;  %v18359_v9 = vld [vmem:[#allocation48_spill] sm:$0xff] }
 0xc4e   :  { %v8802_v11 = vpop.f32.mrf.mxu1 }
 0xc4f   :  { %v8902_v62 = vmax.f32 %v8801_v34, 0.0 }
 0xc50   :  { %v8805_v8 = vpop.f32.mrf.mxu1 }
 0xc51   :  { %v17535_v6 = vpack.c.bf16 %v8902_v62, %v8901_v46  ;;  %v8806_v17 = vadd.f32 %v8805_v8, %v17265_v23  ;;  %v12479_v62 = vld [vmem:[%s17980_s13 + $0x140] ss:$16 sps:$4 sm:$0xff]   ;;  %v12484_v8 = vld [vmem:[%s17980_s13 + $0x164] ss:$16 sps:$4 sm:$0xff]  }
 0xc52   :  { %v8807_v26 = vpop.f32.mrf.mxu1 }
 0xc53   :  { %9512 = vmatmul.mubr.bf16.gmra.mxu0 %v12467_v36  ;;  %v8903_v13 = vmax.f32 %v8806_v17, 0.0 }
 0xc54   :  { %v8808_v18 = vpop.f32.mrf.mxu1  ;;  %9519 = vmatprep.mubr.bf16.mxu0 %v12472_v32 }
 0xc55   :  { %v8809_v61 = vadd.f32 %v8808_v18, %v18359_v9 }
 0xc56   :  { %v8810_v48 = vpop.f32.mrf.mxu1 }
 0xc57   :  { %v8904_v16 = vmax.f32 %v8809_v61, 0.0  ;;  %v8962_v61 = vld [vmem:[%s17980_s13 + $0x180] sm:$0xff] }
 0xc58   :  { %v8813_v0 = vpop.f32.mrf.mxu1 }
 0xc59   :  { %v17545_v55 = vpack.c.bf16 %v8904_v16, %v8903_v13  ;;  %v8814_v37 = vadd.f32 %v8813_v0, %v18360_v24 }
 0xc5a   :  { %v8815_v23 = vpop.f32.mrf.mxu1 }
 0xc5b   :  { %9520 = vmatmul.mubr.bf16.gmra.mxu0 %v12470_v22  ;;  %v8905_v21 = vmax.f32 %v8814_v37, 0.0  ;;  %v12482_v22 = vld [vmem:[%s17980_s13 + $0x160] ss:$16 sps:$4 sm:$0xff]  }
 0xc5c   :  { %v8816_v52 = vpop.f32.mrf.mxu1  ;;  %9527 = vmatprep.mubr.bf16.mxu0 %v12475_v27  ;;  %v10902_v27 = vcombine.high %v8962_v61, %v8962_v61 }
 0xc5d   :  { %v8817_v4 = vadd.f32 %v8816_v52, %v18361_v50 }
 0xc5e   :  { %v8818_v28 = vpop.f32.mrf.mxu1 }
 0xc5f   :  { %v8906_v30 = vmax.f32 %v8817_v4, 0.0  ;;  %v10901_v4 = vcombine.low %v8962_v61, %v8962_v61  ;;  %v12507_v28 = vld [vmem:[%s17980_s13 + $0xc8] ss:$16 sps:$4 sm:$0xff]  }
 0xc60   :  { %v8821_v39 = vpop.f32.mrf.mxu1 }
 0xc61   :  { %v8991_v20 = vpack.c.bf16 %v8906_v30, %v8905_v21  ;;  %v8822_v29 = vadd.f32 %v8821_v39, %v18362_v19  ;;  %v12508_v21 = vld [vmem:[%s17980_s13 + $0xec] ss:$16 sps:$4 sm:$0xff]   ;;  %v12510_v30 = vld [vmem:[%s17980_s13 + $0xe8] ss:$16 sps:$4 sm:$0xff]  }
 0xc62   :  { %v8823_v10 = vpop.f32.mrf.mxu1  ;;  %v12513_v39 = vld [vmem:[%s17980_s13 + $0x108] ss:$16 sps:$4 sm:$0xff]   ;;  %v12517_v19 = vld [vmem:[%s17980_s13 + $0x14c] ss:$16 sps:$4 sm:$0xff]  }
 0xc63   :  { %9528 = vmatmul.mubr.bf16.gmra.mxu0 %v12473_v43  ;;  %v8907_v56 = vmax.f32 %v8822_v29, 0.0  ;;  %v12511_v43 = vld [vmem:[%s17980_s13 + $0x10c] ss:$16 sps:$4 sm:$0xff]   ;;  %v12516_v10 = vld [vmem:[%s17980_s13 + $0x128] ss:$16 sps:$4 sm:$0xff]  }
 0xc64   :  { %v8824_v49 = vpop.f32.mrf.mxu1  ;;  %9535 = vmatprep.mubr.bf16.mxu0 %v12478_v14  ;;  %v12514_v14 = vld [vmem:[%s17980_s13 + $0x12c] ss:$16 sps:$4 sm:$0xff]  }
 0xc65   :  { %v8825_v7 = vadd.f32 %v8824_v49, %v18363_v1 }
 0xc66   :  { %v8826_v38 = vpop.f32.mrf.mxu1 }
 0xc67   :  { %v8908_v31 = vmax.f32 %v8825_v7, 0.0 }
 0xc68   :  { %v8829_v5 = vpop.f32.mrf.mxu1 }
 0xc69   :  { %v8992_v33 = vpack.c.bf16 %v8908_v31, %v8907_v56  ;;  %v8830_v54 = vadd.f32 %v8829_v5, %v18364_v40  ;;  %v12519_v31 = vld [vmem:[%s17980_s13 + $0x148] ss:$16 sps:$4 sm:$0xff]  }
 0xc6a   :  { %v8831_v58 = vpop.f32.mrf.mxu1  ;;  %v8963_v40 = vld [vmem:[%s17980_s13 + $0x188] sm:$0xff] }
 0xc6b   :  { %9536 = vmatmul.mubr.bf16.gmra.mxu0 %v12476_v59  ;;  %v8909_v11 = vmax.f32 %v8830_v54, 0.0  ;;  %v12520_v59 = vld [vmem:[%s17980_s13 + $0x16c] ss:$16 sps:$4 sm:$0xff]  }
 0xc6c   :  { %v8832_v3 = vpop.f32.mrf.mxu1  ;;  %9543 = vmatprep.mubr.bf16.mxu0 %v12481_v44 }
 0xc6d   :  { %v8833_v35 = vadd.f32 %v8832_v3, %v18365_v42  ;;  %v12522_v42 = vld [vmem:[%s17980_s13 + $0x168] ss:$16 sps:$4 sm:$0xff]  }
 0xc6e   :  { %v8834_v34 = vpop.f32.mrf.mxu1 }
 0xc6f   :  { %v8910_v46 = vmax.f32 %v8833_v35, 0.0  ;;  %v10904_v35 = vcombine.high %v8963_v40, %v8963_v40 }
 0xc70   :  { %v8837_v36 = vpop.f32.mrf.mxu1 }
 0xc71   :  { %v8993_v32 = vpack.c.bf16 %v8910_v46, %v8909_v11  ;;  %v8838_v17 = vadd.f32 %v8837_v36, %v17325_v15 }
 0xc72   :  { %v8839_v26 = vpop.f32.mrf.mxu1 }
 0xc73   :  { %9544 = vmatmul.mubr.bf16.gmra.mxu0 %v12479_v62  ;;  %v8911_v13 = vmax.f32 %v8838_v17, 0.0 }
 0xc74   :  { %v8840_v18 = vpop.f32.mrf.mxu1  ;;  %9551 = vmatprep.mubr.bf16.mxu0 %v12484_v8 }
 0xc75   :  { %v8841_v9 = vadd.f32 %v8840_v18, %v17329_v53 }
 0xc76   :  { %v8842_v48 = vpop.f32.mrf.mxu1 }
 0xc77   :  { %v8912_v16 = vmax.f32 %v8841_v9, 0.0 }
 0xc78   :  { %v8845_v0 = vpop.f32.mrf.mxu1 }
 0xc79   :  { %v8994_v23 = vpack.c.bf16 %v8912_v16, %v8911_v13  ;;  %v8846_v15 = vadd.f32 %v8845_v0, %v17338_v2  ;;  %v12487_v2 = vld [vmem:[%s17980_s13 + $0x8] ss:$16 sps:$4 sm:$0xff]  }
 0xc7a   :  { %v8847_v24 = vpop.f32.mrf.mxu1 }
 0xc7b   :  { %v8913_v37 = vmax.f32 %v8846_v15, 0.0  ;;  %9552 = vmatmul.mubr.bf16.gmra.mxu0 %v12482_v22 }
 0xc7c   :  { %9559 = vmatprep.mubr.bf16.mxu0 %v10902_v27  ;;  %v8848_v53 = vpop.f32.mrf.mxu1 }
 0xc7d   :  { %v8995_v52 = vpack.c.bf16 %v8913_v37, %v8913_v37 }
 0xc7e   :  { %v8849_v50 = vpop.f32.mrf.mxu1 }
 0xc7f   :  { %12136 = vmatprep.subr.msk.bf16.mxu1 %vm9427_vm4, %v8995_v52 }
 0xc80   :  { %11233 = vmatpush3.bf16.msra.mxu1 %v17515_v41  ;;  %v12501_v41 = vld [vmem:[%s17980_s13 + $0x88] ss:$16 sps:$4 sm:$0xff]  }
 0xc81   :  { %11234 = vmatprep.subr.bf16.mxu1 %v8994_v23 }
 0xc83   :  { %9560 = vmatmul.mubr.bf16.gmra.mxu0 %v10901_v4 }
 0xc84   :  { %11235 = vmatpush3.bf16.msra.mxu1 %v17505_v45  ;;  %v12499_v45 = vld [vmem:[%s17980_s13 + $0x8c] ss:$16 sps:$4 sm:$0xff]  }
 0xc85   :  { %11236 = vmatprep.subr.bf16.mxu1 %v8993_v32  ;;  %v10903_v32 = vcombine.low %v8963_v40, %v8963_v40 }
 0xc88   :  { %11237 = vmatpush3.bf16.msra.mxu1 %v17495_v47  ;;  %v12498_v47 = vld [vmem:[%s17980_s13 + $0x68] ss:$16 sps:$4 sm:$0xff]  }
 0xc89   :  { %11238 = vmatprep.subr.bf16.mxu1 %v8992_v33 }
 0xc8c   :  { %11239 = vmatpush3.bf16.msra.mxu1 %v17485_v60  ;;  %v12496_v60 = vld [vmem:[%s17980_s13 + $0x6c] ss:$16 sps:$4 sm:$0xff]  }
 0xc8d   :  { %11240 = vmatprep.subr.bf16.mxu1 %v8991_v20 }
 0xc90   :  { %11241 = vmatpush3.bf16.msra.mxu1 %v17475_v25  ;;  %v12490_v25 = vld [vmem:[%s17980_s13 + $0x2c] ss:$16 sps:$4 sm:$0xff]  }
 0xc91   :  { %11242 = vmatprep.subr.bf16.mxu1 %v17545_v55  ;;  %v12505_v55 = vld [vmem:[%s17980_s13 + $0xcc] ss:$16 sps:$4 sm:$0xff]  }
 0xc94   :  { %11243 = vmatpush3.bf16.msra.mxu1 %v17457_v57  ;;  %v12492_v57 = vld [vmem:[%s17980_s13 + $0x28] ss:$16 sps:$4 sm:$0xff]  }
 0xc95   :  { %11244 = vmatprep.subr.bf16.mxu1 %v17535_v6  ;;  %v12504_v6 = vld [vmem:[%s17980_s13 + $0xa8] ss:$16 sps:$4 sm:$0xff]  }
 0xc98   :  { %11245 = vmatpush3.bf16.msra.mxu1 %v17449_v51  ;;  %v12493_v51 = vld [vmem:[%s17980_s13 + $0x4c] ss:$16 sps:$4 sm:$0xff]  }
 0xc99   :  { %11246 = vmatprep.subr.bf16.mxu1 %v17525_v12  ;;  %v12502_v12 = vld [vmem:[%s17980_s13 + $0xac] ss:$16 sps:$4 sm:$0xff]  }
 0xc9c   :  { %11247 = vmatpush3.bf16.msra.mxu1 %v17443_v63  ;;  %v12495_v63 = vld [vmem:[%s17980_s13 + $0x48] ss:$16 sps:$4 sm:$0xff]  }
 0xc9f   :  { %9600 = vmatmul.mubr.bf16.vlgmr.msra.gmra.mxu1 %v12487_v2 }
 0xca0   :  { %10906 = vmatprep.mubr.msk.bf16.mxu1 %vm9387_vm3, %v12490_v25 }
 0xca7   :  { %9608 = vmatmul.mubr.bf16.gmra.mxu1 %v12492_v57 }
 0xca8   :  { %10907 = vmatprep.mubr.msk.bf16.mxu1 %vm9387_vm3, %v12493_v51 }
 0xcaf   :  { %9616 = vmatmul.mubr.bf16.gmra.mxu1 %v12495_v63 }
 0xcb0   :  { %10908 = vmatprep.mubr.msk.bf16.mxu1 %vm9387_vm3, %v12496_v60 }
 0xcb7   :  { %9624 = vmatmul.mubr.bf16.gmra.mxu1 %v12498_v47 }
 0xcb8   :  { %10909 = vmatprep.mubr.msk.bf16.mxu1 %vm9387_vm3, %v12499_v45 }
 0xcbf   :  { %9632 = vmatmul.mubr.bf16.gmra.mxu1 %v12501_v41 }
 0xcc0   :  { %10910 = vmatprep.mubr.msk.bf16.mxu1 %vm9387_vm3, %v12502_v12 }
 0xcc7   :  { %9640 = vmatmul.mubr.bf16.gmra.mxu1 %v12504_v6 }
 0xcc8   :  { %10911 = vmatprep.mubr.msk.bf16.mxu1 %vm9387_vm3, %v12505_v55 }
 0xccf   :  { %9648 = vmatmul.mubr.bf16.gmra.mxu1 %v12507_v28 }
 0xcd0   :  { %10912 = vmatprep.mubr.msk.bf16.mxu1 %vm9387_vm3, %v12508_v21 }
 0xcd7   :  { %9656 = vmatmul.mubr.bf16.gmra.mxu1 %v12510_v30 }
 0xcd8   :  { %10913 = vmatprep.mubr.msk.bf16.mxu1 %vm9387_vm3, %v12511_v43 }
 0xcdf   :  { %9664 = vmatmul.mubr.bf16.gmra.mxu1 %v12513_v39 }
 0xce0   :  { %10914 = vmatprep.mubr.msk.bf16.mxu1 %vm9387_vm3, %v12514_v14 }
 0xce3   :  { %v11154_v20 = vpop.f32.mrf.mxu0 }
 0xce5   :  { %v11155_v29 = vpop.f32.mrf.mxu0 }
 0xce6   :  { %v17660_v49 = vadd.f32 %v11155_v29, %v11154_v20 }
 0xce7   :  { %v11157_v1 = vpop.f32.mrf.mxu0  ;;  %9672 = vmatmul.mubr.bf16.gmra.mxu1 %v12516_v10 }
 0xce8   :  { %10915 = vmatprep.mubr.msk.bf16.mxu1 %vm9387_vm3, %v12517_v19 }
 0xce9   :  { %v11158_v7 = vpop.f32.mrf.mxu0 }
 0xcea   :  { %v17663_v38 = vadd.f32 %v11158_v7, %v11157_v1 }
 0xceb   :  { %v11160_v56 = vpop.f32.mrf.mxu0 }
 0xced   :  { %v11161_v5 = vpop.f32.mrf.mxu0 }
 0xcee   :  { %v17671_v44 = vadd.f32 %v11161_v5, %v11160_v56 }
 0xcef   :  { %v11163_v33 = vpop.f32.mrf.mxu0  ;;  %9680 = vmatmul.mubr.bf16.gmra.mxu1 %v12519_v31 }
 0xcf0   :  { %10916 = vmatprep.mubr.msk.bf16.mxu1 %vm9387_vm3, %v12520_v59 }
 0xcf1   :  { %v11164_v58 = vpop.f32.mrf.mxu0 }
 0xcf2   :  { %v17677_v54 = vadd.f32 %v11164_v58, %v11163_v33 }
 0xcf3   :  { %v11166_v3 = vpop.f32.mrf.mxu0 }
 0xcf5   :  { %v11167_v34 = vpop.f32.mrf.mxu0 }
 0xcf6   :  { %v17682_v11 = vadd.f32 %v11167_v34, %v11166_v3 }
 0xcf7   :  { %v11169_v46 = vpop.f32.mrf.mxu0  ;;  %9688 = vmatmul.mubr.bf16.gmra.mxu1 %v12522_v42 }
 0xcf8   :  { %10917 = vmatprep.mubr.msk.bf16.mxu1 %vm9387_vm3, %v10904_v35 }
 0xcf9   :  { %v11170_v62 = vpop.f32.mrf.mxu0 }
 0xcfa   :  { %v17685_v36 = vadd.f32 %v11170_v62, %v11169_v46 }
 0xcfb   :  { %v11172_v8 = vpop.f32.mrf.mxu0 }
 0xcfd   :  { %v11173_v26 = vpop.f32.mrf.mxu0 }
 0xcfe   :  { %v17687_v17 = vadd.f32 %v11173_v26, %v11172_v8 }
 0xcff   :  { %v11175_v18 = vpop.f32.mrf.mxu0  ;;  %9696 = vmatmul.mubr.bf16.gmra.mxu1 %v10903_v32 }
 0xd01   :  { %v11176_v9 = vpop.f32.mrf.mxu0 }
 0xd02   :  { %v17689_v61 = vadd.f32 %v11176_v9, %v11175_v18  ;;  %v9024_v18 = vpop.permute.xlu0 %9023 }
 0xd03   :  { %v11178_v48 = vpop.f32.mrf.mxu0 }
 0xd05   :  { %v11179_v13 = vpop.f32.mrf.mxu0 }
 0xd06   :  { %v17691_v16 = vadd.f32 %v11179_v13, %v11178_v48  ;;  %v9466_v48 = vadd.f32 %v17660_v49, %v9024_v18 }
 0xd07   :  { %v11181_v22 = vpop.f32.mrf.mxu0 }
 0xd09   :  { %v11182_v0 = vpop.f32.mrf.mxu0 }
 0xd0a   :  { %v17693_v27 = vadd.f32 %v11182_v0, %v11181_v22 }
 0xd0b   :  { %v11184_v23 = vpop.f32.mrf.mxu0 }
 0xd0d   :  { %v11185_v15 = vpop.f32.mrf.mxu0 }
 0xd0e   :  { %v17695_v24 = vadd.f32 %v11185_v15, %v11184_v23  ;;  %v9029_v23 = vpop.permute.xlu1 %9028 }
 0xd0f   :  { %v11187_v37 = vpop.f32.mrf.mxu0 }
 0xd11   :  { %v11188_v53 = vpop.f32.mrf.mxu0 }
 0xd12   :  { %v17697_v52 = vadd.f32 %v11188_v53, %v11187_v37  ;;  %v9469_v37 = vadd.f32 %v17663_v38, %v9029_v23 }
 0xd13   :  { %v11190_v50 = vpop.f32.mrf.mxu0 }
 0xd15   :  { %v11191_v4 = vpop.f32.mrf.mxu0 }
 0xd16   :  { %v17699_v2 = vadd.f32 %v11191_v4, %v11190_v50 }
 0xd17   :  { %v11193_v25 = vpop.f32.mrf.mxu0 }
 0xd19   :  { %v11194_v57 = vpop.f32.mrf.mxu0 }
 0xd1a   :  { %v17701_v51 = vadd.f32 %v11194_v57, %v11193_v25  ;;  %v9034_v57 = vpop.permute.xlu0 %9033 }
 0xd1b   :  { %v11196_v63 = vpop.f32.mrf.mxu0 }
 0xd1d   :  { %v11197_v60 = vpop.f32.mrf.mxu0 }
 0xd1e   :  { %v17703_v47 = vadd.f32 %v11197_v60, %v11196_v63  ;;  %v9474_v60 = vadd.f32 %v17671_v44, %v9034_v57  ;;  %v18367_v44 = vmov 0  }
 0xd1f   :  { %v11199_v45 = vpop.f32.mrf.mxu0 }
 0xd21   :  { %v11200_v41 = vpop.f32.mrf.mxu0 }
 0xd22   :  { %v17705_v12 = vadd.f32 %v11200_v41, %v11199_v45 }
 0xd23   :  { %v11202_v6 = vpop.f32.mrf.mxu0 }
 0xd25   :  { %v11203_v55 = vpop.f32.mrf.mxu0 }
 0xd26   :  { %v17707_v28 = vadd.f32 %v11203_v55, %v11202_v6  ;;  %v18366_v55 = vmov 1  }
 0xd27   :  { %v11205_v21 = vpop.f32.mrf.mxu0 }
 0xd29   :  { %v11206_v30 = vpop.f32.mrf.mxu0 }
 0xd2a   :  { %v17709_v43 = vadd.f32 %v11206_v30, %v11205_v21  ;;  %v9039_v21 = vpop.permute.xlu1 %9038 }
 0xd2b   :  { %v11208_v39 = vpop.f32.mrf.mxu0  ;;  %v9477_v38 = vadd.f32 %v17677_v54, %v9039_v21 }
 0xd2d   :  { %v11209_v14 = vpop.f32.mrf.mxu0 }
 0xd2e   :  { %v17711_v20 = vadd.f32 %v11209_v14, %v11208_v39 }
 0xd2f   :  { %v11211_v10 = vpop.f32.mrf.mxu0 }
 0xd31   :  { %v11212_v19 = vpop.f32.mrf.mxu0 }
 0xd32   :  { %v17713_v29 = vadd.f32 %v11212_v19, %v11211_v10 }
 0xd33   :  { %v11214_v1 = vpop.f32.mrf.mxu0 }
 0xd35   :  { %v11215_v7 = vpop.f32.mrf.mxu0 }
 0xd36   :  { %v17715_v56 = vadd.f32 %v11215_v7, %v11214_v1  ;;  %v9044_v7 = vpop.permute.xlu0 %9043 }
 0xd37   :  { %v11217_v31 = vpop.f32.mrf.mxu0 }
 0xd39   :  { %v11218_v59 = vpop.f32.mrf.mxu0 }
 0xd3a   :  { %v17717_v5 = vadd.f32 %v11218_v59, %v11217_v31  ;;  %v9482_v59 = vadd.f32 %v17682_v11, %v9044_v7 }
 0xd3b   :  { %v11220_v33 = vpop.f32.mrf.mxu0 }
 0xd3d   :  { %v11221_v58 = vpop.f32.mrf.mxu0 }
 0xd3e   :  { %v17719_v40 = vadd.f32 %v11221_v58, %v11220_v33 }
 0xd3f   :  { %v11223_v3 = vpop.f32.mrf.mxu0 }
 0xd41   :  { %v11224_v42 = vpop.f32.mrf.mxu0 }
 0xd42   :  { %v17721_v35 = vadd.f32 %v11224_v42, %v11223_v3 }
 0xd43   :  { %v11226_v34 = vpop.f32.mrf.mxu0 }
 0xd45   :  { %v11227_v46 = vpop.f32.mrf.mxu0 }
 0xd46   :  { %v17723_v62 = vadd.f32 %v11227_v46, %v11226_v34  ;;  %v9049_v34 = vpop.permute.xlu1 %9048 }
 0xd47   :  { %v11229_v8 = vpop.f32.mrf.mxu0 }
 0xd48   :  { %v9485_v8 = vadd.f32 %v17685_v36, %v9049_v34 }
 0xd49   :  { %v11230_v32 = vpop.f32.mrf.mxu0 }
 0xd5f   :  { %v11248_v26 = vpop.f32.mrf.mxu1 }
 0xd61   :  { %v11249_v9 = vpop.f32.mrf.mxu1 }
 0xd62   :  { %v11250_v13 = vadd.f32 %v11249_v9, %v11248_v26 }
 0xd63   :  { %v11251_v22 = vpop.f32.mrf.mxu1 }
 0xd64   :  { %v9602_v0 = vadd.f32 %v11250_v13, %v9466_v48  ;;  %v9054_v48 = vpop.permute.xlu0 %9053 }
 0xd65   :  { %v11252_v15 = vpop.f32.mrf.mxu1  ;;  %v9490_v13 = vadd.f32 %v17687_v17, %v9054_v48 }
 0xd66   :  { %v9703_v53 = vmax.f32 %v9602_v0, 0.0  ;;  %v11253_v50 = vadd.f32 %v11252_v15, %v11251_v22 }
 0xd67   :  { %v11254_v4 = vpop.f32.mrf.mxu1 }
 0xd68   :  { %v9605_v25 = vadd.f32 %v11253_v50, %v9469_v37  ;;  %9757 = vperm.xlu1 %12208, %v9703_v53   ;;  %v9059_v37 = vpop.permute.xlu1 %9058 }
 0xd69   :  { %v11255_v63 = vpop.f32.mrf.mxu1  ;;  %v9493_v50 = vadd.f32 %v17689_v61, %v9059_v37 }
 0xd6a   :  { %v9704_v45 = vmax.f32 %v9605_v25, 0.0  ;;  %v11256_v41 = vadd.f32 %v11255_v63, %v11254_v4 }
 0xd6b   :  { %v11257_v6 = vpop.f32.mrf.mxu1 }
 0xd6c   :  { %v9610_v49 = vadd.f32 %v11256_v41, %v9474_v60  ;;  %12210 = vset.pattern.permute.xlu1 %v18366_v55  ;;  %9762 = vperm.xlu0 %12209, %v9704_v45   ;;  %v9064_v60 = vpop.permute.xlu0 %9063 }
 0xd6d   :  { %v11258_v30 = vpop.f32.mrf.mxu1  ;;  %9967 = vperm.xlu1 %12210, %v9703_v53  }
 0xd6e   :  { %v11259_v39 = vadd.f32 %v11258_v30, %v11257_v6  ;;  %v9705_v10 = vmax.f32 %v9610_v49, 0.0  ;;  %v9069_v30 = vpop.permute.xlu1 %9068 }
 0xd6f   :  { %v11260_v14 = vpop.f32.mrf.mxu1 }
 0xd70   :  { %v9613_v19 = vadd.f32 %v11259_v39, %v9477_v38  ;;  %12211 = vset.pattern.permute.xlu0 %v18366_v55  ;;  %v9501_v39 = vadd.f32 %v17693_v27, %v9069_v30  ;;  %v9074_v7 = vpop.permute.xlu0 %9073 }
 0xd71   :  { %v11261_v1 = vpop.f32.mrf.mxu1  ;;  %12212 = vset.pattern.permute.xlu1 %v18367_v44  ;;  %9971 = vperm.xlu0 %12211, %v9704_v45   ;;  %v9498_v45 = vadd.f32 %v17691_v16, %v9064_v60 }
 0xd72   :  { %v11262_v31 = vadd.f32 %v11261_v1, %v11260_v14  ;;  %9767 = vperm.xlu1 %12212, %v9705_v10   ;;  %v9706_v58 = vmax.f32 %v9613_v19, 0.0 }
 0xd73   :  { %v11263_v33 = vpop.f32.mrf.mxu1 }
 0xd74   :  { %v9618_v3 = vadd.f32 %v11262_v31, %v9482_v59  ;;  %v9506_v31 = vadd.f32 %v17695_v24, %v9074_v7 }
 0xd75   :  { %v11264_v42 = vpop.f32.mrf.mxu1  ;;  %12214 = vset.pattern.permute.xlu0 %v18367_v44 }
 0xd76   :  { %v11265_v54 = vadd.f32 %v11264_v42, %v11263_v33  ;;  %12213 = vset.pattern.permute.xlu1 %v18366_v55  ;;  %9772 = vperm.xlu0 %12214, %v9706_v58   ;;  %v9707_v32 = vmax.f32 %v9618_v3, 0.0  ;;  %v9079_v42 = vpop.permute.xlu1 %9078 }
 0xd77   :  { %v11266_v46 = vpop.f32.mrf.mxu1  ;;  %9975 = vperm.xlu1 %12213, %v9705_v10   ;;  %v9509_v34 = vadd.f32 %v17697_v52, %v9079_v42 }
 0xd78   :  { %v9621_v18 = vadd.f32 %v11265_v54, %v9485_v8 }
 0xd79   :  { %v11267_v26 = vpop.f32.mrf.mxu1 }
 0xd7a   :  { %12216 = vset.pattern.permute.xlu0 %v18366_v55  ;;  %v11268_v11 = vadd.f32 %v11267_v26, %v11266_v46  ;;  %v9708_v0 = vmax.f32 %v9621_v18, 0.0  ;;  %v9084_v18 = vpop.permute.xlu0 %9083 }
 0xd7b   :  { %v11269_v9 = vpop.f32.mrf.mxu1  ;;  %9979 = vperm.xlu1 %12213, %v9706_v58   ;;  %9983 = vperm.xlu0 %12216, %v9707_v32  }
 0xd7c   :  { %v9626_v23 = vadd.f32 %v11268_v11, %v9490_v13  ;;  %v9514_v11 = vadd.f32 %v17699_v2, %v9084_v18 }
 0xd7d   :  { %v11270_v22 = vpop.f32.mrf.mxu1 }
 0xd7e   :  { %v11271_v36 = vadd.f32 %v11270_v22, %v11269_v9  ;;  %v9709_v4 = vmax.f32 %v9626_v23, 0.0 }
 0xd7f   :  { %v11272_v15 = vpop.f32.mrf.mxu1  ;;  %12215 = vset.pattern.permute.xlu1 %v18367_v44  ;;  %12217 = vset.pattern.permute.xlu0 %v18367_v44 }
 0xd80   :  { %9777 = vperm.xlu1 %12215, %v9707_v32   ;;  %9782 = vperm.xlu0 %12217, %v9708_v0   ;;  %v9629_v57 = vadd.f32 %v11271_v36, %v9493_v50 }
 0xd81   :  { %v11273_v53 = vpop.f32.mrf.mxu1 }
 0xd82   :  { %v11274_v17 = vadd.f32 %v11273_v53, %v11272_v15  ;;  %v9710_v6 = vmax.f32 %v9629_v57, 0.0 }
 0xd83   :  { %v11275_v25 = vpop.f32.mrf.mxu1 }
 0xd84   :  { %12218 = vset.pattern.permute.xlu1 %v18366_v55  ;;  %12220 = vset.pattern.permute.xlu0 %v18366_v55  ;;  %v9634_v49 = vadd.f32 %v11274_v17, %v9498_v45 }
 0xd85   :  { %v11276_v63 = vpop.f32.mrf.mxu1  ;;  %9987 = vperm.xlu1 %12218, %v9708_v0   ;;  %9991 = vperm.xlu0 %12220, %v9709_v4   ;;  %v9089_v0 = vpop.permute.xlu1 %9088 }
 0xd86   :  { %v11277_v61 = vadd.f32 %v11276_v63, %v11275_v25  ;;  %v9711_v14 = vmax.f32 %v9634_v49, 0.0  ;;  %v9517_v15 = vadd.f32 %v17701_v51, %v9089_v0 }
 0xd87   :  { %v11278_v41 = vpop.f32.mrf.mxu1 }
 0xd88   :  { %v9637_v19 = vadd.f32 %v11277_v61, %v9501_v39 }
 0xd89   :  { %v11279_v21 = vpop.f32.mrf.mxu1  ;;  %12219 = vset.pattern.permute.xlu1 %v18367_v44  ;;  %12221 = vset.pattern.permute.xlu0 %v18367_v44  ;;  %v9099_v45 = vpop.permute.xlu1 %9098 }
 0xd8a   :  { %9787 = vperm.xlu1 %12219, %v9709_v4   ;;  %9792 = vperm.xlu0 %12221, %v9710_v6   ;;  %v11280_v16 = vadd.f32 %v11279_v21, %v11278_v41  ;;  %v9712_v33 = vmax.f32 %v9637_v19, 0.0  ;;  %v9094_v4 = vpop.permute.xlu0 %9093 }
 0xd8b   :  { %v11281_v38 = vpop.f32.mrf.mxu1  ;;  %v9522_v25 = vadd.f32 %v17703_v47, %v9094_v4 }
 0xd8c   :  { %v9642_v58 = vadd.f32 %v11280_v16, %v9506_v31 }
 0xd8d   :  { %v11282_v10 = vpop.f32.mrf.mxu1 }
 0xd8e   :  { %12222 = vset.pattern.permute.xlu1 %v18366_v55  ;;  %12224 = vset.pattern.permute.xlu0 %v18366_v55  ;;  %v11283_v27 = vadd.f32 %v11282_v10, %v11281_v38  ;;  %v9713_v46 = vmax.f32 %v9642_v58, 0.0  ;;  %v9104_v38 = vpop.permute.xlu0 %9103 }
 0xd8f   :  { %v11284_v1 = vpop.f32.mrf.mxu1  ;;  %9995 = vperm.xlu1 %12222, %v9710_v6   ;;  %9999 = vperm.xlu0 %12224, %v9711_v14   ;;  %v9525_v6 = vadd.f32 %v17705_v12, %v9099_v45  ;;  %v9530_v39 = vadd.f32 %v17707_v28, %v9104_v38 }
 0xd90   :  { %v9645_v32 = vadd.f32 %v11283_v27, %v9509_v34 }
 0xd91   :  { %v11285_v59 = vpop.f32.mrf.mxu1 }
 0xd92   :  { %v11286_v24 = vadd.f32 %v11285_v59, %v11284_v1  ;;  %v9714_v48 = vmax.f32 %v9645_v32, 0.0  ;;  %v9109_v1 = vpop.permute.xlu1 %9108  ;;  %v9114_v28 = vpop.permute.xlu0 %9113 }
 0xd93   :  { %v11287_v3 = vpop.f32.mrf.mxu1  ;;  %12223 = vset.pattern.permute.xlu1 %v18367_v44  ;;  %12225 = vset.pattern.permute.xlu0 %v18367_v44  ;;  %v9533_v31 = vadd.f32 %v17709_v43, %v9109_v1  ;;  %v9538_v42 = vadd.f32 %v17711_v20, %v9114_v28  ;;  %v9729_v28 = vld [vmem:[%s17982_s15 + $0x8] sm:$0xff] }
 0xd94   :  { %9797 = vperm.xlu1 %12223, %v9711_v14   ;;  %9802 = vperm.xlu0 %12225, %v9712_v33   ;;  %v9650_v13 = vadd.f32 %v11286_v24, %v9514_v11 }
 0xd95   :  { %v11288_v54 = vpop.f32.mrf.mxu1 }
 0xd96   :  { %v11289_v52 = vadd.f32 %v11288_v54, %v11287_v3  ;;  %v9715_v36 = vmax.f32 %v9650_v13, 0.0  ;;  %v9124_v11 = vpop.permute.xlu0 %9123 }
 0xd97   :  { %v11290_v8 = vpop.f32.mrf.mxu1 }
 0xd98   :  { %12226 = vset.pattern.permute.xlu1 %v18366_v55  ;;  %12228 = vset.pattern.permute.xlu0 %v18366_v55  ;;  %v9653_v53 = vadd.f32 %v11289_v52, %v9517_v15 }
 0xd99   :  { %v11291_v26 = vpop.f32.mrf.mxu1  ;;  %10003 = vperm.xlu1 %12226, %v9712_v33   ;;  %10007 = vperm.xlu0 %12228, %v9713_v46  }
 0xd9a   :  { %v11292_v2 = vadd.f32 %v11291_v26, %v11290_v8  ;;  %v9716_v17 = vmax.f32 %v9653_v53, 0.0  ;;  %v9119_v8 = vpop.permute.xlu1 %9118 }
 0xd9b   :  { %v11293_v9 = vpop.f32.mrf.mxu1  ;;  %v9541_v24 = vadd.f32 %v17713_v29, %v9119_v8  ;;  %v9134_v29 = vpop.permute.xlu0 %9133  ;;  %v9731_v8 = vld [vmem:[%s17982_s15 + $0x18] sm:$0xff] }
 0xd9c   :  { %v9658_v63 = vadd.f32 %v11292_v2, %v9522_v25  ;;  %v9546_v2 = vadd.f32 %v17715_v56, %v9124_v11 }
 0xd9d   :  { %v11294_v22 = vpop.f32.mrf.mxu1  ;;  %12227 = vset.pattern.permute.xlu1 %v18367_v44  ;;  %12229 = vset.pattern.permute.xlu0 %v18367_v44 }
 0xd9e   :  { %9807 = vperm.xlu1 %12227, %v9713_v46   ;;  %9812 = vperm.xlu0 %12229, %v9714_v48   ;;  %v11295_v51 = vadd.f32 %v11294_v22, %v11293_v9  ;;  %v9717_v49 = vmax.f32 %v9658_v63, 0.0  ;;  %v9129_v13 = vpop.permute.xlu1 %9128 }
 0xd9f   :  { %v11296_v23 = vpop.f32.mrf.mxu1  ;;  %v9549_v52 = vadd.f32 %v17717_v5, %v9129_v13 }
 0xda0   :  { %v9661_v61 = vadd.f32 %v11295_v51, %v9525_v6 }
 0xda1   :  { %v11297_v37 = vpop.f32.mrf.mxu1 }
 0xda2   :  { %12230 = vset.pattern.permute.xlu1 %v18366_v55  ;;  %12232 = vset.pattern.permute.xlu0 %v18366_v55  ;;  %v11298_v47 = vadd.f32 %v11297_v37, %v11296_v23  ;;  %v9718_v10 = vmax.f32 %v9661_v61, 0.0 }
 0xda3   :  { %v11299_v50 = vpop.f32.mrf.mxu1  ;;  %10011 = vperm.xlu1 %12230, %v9714_v48   ;;  %10015 = vperm.xlu0 %12232, %v9715_v36  }
 0xda4   :  { %v9666_v19 = vadd.f32 %v11298_v47, %v9530_v39 }
 0xda5   :  { %v11300_v57 = vpop.f32.mrf.mxu1 }
 0xda6   :  { %v11301_v12 = vadd.f32 %v11300_v57, %v11299_v50  ;;  %v9719_v59 = vmax.f32 %v9666_v19, 0.0  ;;  %v9554_v50 = vadd.f32 %v17719_v40, %v9134_v29  ;;  %v9733_v29 = vld [vmem:[%s17982_s15 + $0x28] sm:$0xff] }
 0xda7   :  { %v11302_v60 = vpop.f32.mrf.mxu1  ;;  %12231 = vset.pattern.permute.xlu1 %v18367_v44  ;;  %12233 = vset.pattern.permute.xlu0 %v18367_v44 }
 0xda8   :  { %9817 = vperm.xlu1 %12231, %v9715_v36   ;;  %9822 = vperm.xlu0 %12233, %v9716_v17   ;;  %v9669_v58 = vadd.f32 %v11301_v12, %v9533_v31 }
 0xda9   :  { %v11303_v41 = vpop.f32.mrf.mxu1 }
 0xdaa   :  { %v11304_v3 = vadd.f32 %v11303_v41, %v11302_v60  ;;  %v9720_v34 = vmax.f32 %v9669_v58, 0.0  ;;  %v9139_v41 = vpop.permute.xlu1 %9138 }
 0xdab   :  { %v11305_v21 = vpop.f32.mrf.mxu1  ;;  %v9557_v6 = vadd.f32 %v17721_v35, %v9139_v41  ;;  %v9735_v41 = vld [vmem:[%s17982_s15 + $0x38] sm:$0xff] }
 0xdac   :  { %12234 = vset.pattern.permute.xlu1 %v18366_v55  ;;  %12236 = vset.pattern.permute.xlu0 %v18366_v55  ;;  %v9674_v46 = vadd.f32 %v11304_v3, %v9538_v42  ;;  %v9730_v42 = vld [vmem:[%s17982_s15 + $0x10] sm:$0xff] }
 0xdad   :  { %v11306_v30 = vpop.f32.mrf.mxu1  ;;  %10019 = vperm.xlu1 %12234, %v9716_v17   ;;  %10023 = vperm.xlu0 %12236, %v9717_v49   ;;  %v9144_v17 = vpop.permute.xlu0 %9143 }
 0xdae   :  { %v11307_v32 = vadd.f32 %v11306_v30, %v11305_v21  ;;  %v9721_v18 = vmax.f32 %v9674_v46, 0.0  ;;  %v9562_v63 = vadd.f32 %v17723_v62, %v9144_v17 }
 0xdaf   :  { %v11308_v14 = vpop.f32.mrf.mxu1 }
 0xdb0   :  { %v9677_v9 = vadd.f32 %v11307_v32, %v9541_v24 }
 0xdb1   :  { %v11309_v16 = vpop.f32.mrf.mxu1  ;;  %12235 = vset.pattern.permute.xlu1 %v18367_v44  ;;  %12237 = vset.pattern.permute.xlu0 %v18367_v44 }
 0xdb2   :  { %9827 = vperm.xlu1 %12235, %v9717_v49   ;;  %9832 = vperm.xlu0 %12237, %v9718_v10   ;;  %v9722_v0 = vmax.f32 %v9677_v9, 0.0  ;;  %v11310_v15 = vadd.f32 %v11309_v16, %v11308_v14  ;;  %v9732_v9 = vld [vmem:[%s17982_s15 + $0x20] sm:$0xff] }
 0xdb3   :  { %v11311_v7 = vpop.f32.mrf.mxu1 }
 0xdb4   :  { %v9682_v4 = vadd.f32 %v11310_v15, %v9546_v2 }
 0xdb5   :  { %v11312_v33 = vpop.f32.mrf.mxu1 }
 0xdb6   :  { %12238 = vset.pattern.permute.xlu1 %v18366_v55  ;;  %12240 = vset.pattern.permute.xlu0 %v18366_v55  ;;  %v11313_v20 = vadd.f32 %v11312_v33, %v11311_v7  ;;  %v9723_v60 = vmax.f32 %v9682_v4, 0.0 }
 0xdb7   :  { %v11314_v27 = vpop.f32.mrf.mxu1  ;;  %10027 = vperm.xlu1 %12238, %v9718_v10   ;;  %10031 = vperm.xlu0 %12240, %v9719_v59  }
 0xdb8   :  { %v9685_v36 = vadd.f32 %v11313_v20, %v9549_v52 }
 0xdb9   :  { %v11315_v54 = vpop.f32.mrf.mxu1 }
 0xdba   :  { %v11316_v37 = vadd.f32 %v11315_v54, %v11314_v27  ;;  %v9724_v25 = vmax.f32 %v9685_v36, 0.0  ;;  %v9728_v27 = vld [vmem:[%s17982_s15] sm:$0xff] }
 0xdbb   :  { %v11317_v43 = vpop.f32.mrf.mxu1  ;;  %12239 = vset.pattern.permute.xlu1 %v18367_v44  ;;  %12241 = vset.pattern.permute.xlu0 %v18367_v44 }
 0xdbc   :  { %9837 = vperm.xlu1 %12239, %v9719_v59   ;;  %9842 = vperm.xlu0 %12241, %v9720_v34   ;;  %v9690_v57 = vadd.f32 %v11316_v37, %v9554_v50 }
 0xdbd   :  { %v11318_v26 = vpop.f32.mrf.mxu1 }
 0xdbe   :  { %v9725_v51 = vmax.f32 %v9690_v57, 0.0  ;;  %v11319_v40 = vadd.f32 %v11318_v26, %v11317_v43  ;;  %v9734_v57 = vld [vmem:[%s17982_s15 + $0x30] sm:$0xff] }
 0xdbf   :  { %v11320_v48 = vpop.f32.mrf.mxu1 }
 0xdc0   :  { %12242 = vset.pattern.permute.xlu1 %v18366_v55  ;;  %9847 = vperm.xlu0 %12241, %v9721_v18   ;;  %v9693_v62 = vadd.f32 %v11319_v40, %v9557_v6 }
 0xdc1   :  { %v11321_v22 = vpop.f32.mrf.mxu1  ;;  %10035 = vperm.xlu1 %12242, %v9720_v34  }
 0xdc2   :  { %v11322_v5 = vadd.f32 %v11321_v22, %v11320_v48  ;;  %v9726_v49 = vmax.f32 %v9693_v62, 0.0 }
 0xdc3   :  { %v11323_v23 = vpop.f32.mrf.mxu1 }
 0xdc4   :  { %12244 = vset.pattern.permute.xlu0 %v18366_v55  ;;  %v9698_v45 = vadd.f32 %v11322_v5, %v9562_v63 }
 0xdc5   :  { %10039 = vperm.xlu1 %12242, %v9721_v18   ;;  %10043 = vperm.xlu0 %12244, %v9722_v0   ;;  %v11324_v53 = vpop.f32.mrf.mxu1 }
 0xdc6   :  { %v9727_v56 = vmax.f32 %v9698_v45, 0.0 }
 0xdc9   :  { %12243 = vset.pattern.permute.xlu1 %v18367_v44  ;;  %12246 = vset.pattern.permute.xlu0 %v18367_v44 }
 0xdca   :  { %9852 = vperm.xlu1 %12243, %v9722_v0   ;;  %9862 = vperm.xlu0 %12246, %v9724_v25  }
 0xdce   :  { %9857 = vperm.xlu1 %12243, %v9723_v60   ;;  %12248 = vset.pattern.permute.xlu0 %v18366_v55 }
 0xdcf   :  { %10055 = vperm.xlu0 %12248, %v9725_v51  }
 0xdd2   :  { %12245 = vset.pattern.permute.xlu1 %v18366_v55 }
 0xdd3   :  { %10047 = vperm.xlu1 %12245, %v9723_v60   ;;  %12250 = vset.pattern.permute.xlu0 %v18367_v44 }
 0xdd4   :  { %9877 = vperm.xlu0 %12250, %v9727_v56  }
 0xdd7   :  { %10051 = vperm.xlu1 %12245, %v9724_v25  }
 0xdd8   :  { %12251 = vset.pattern.permute.xlu0 %v18366_v55 }
 0xddb   :  { %12247 = vset.pattern.permute.xlu1 %v18367_v44 }
 0xddc   :  { %9867 = vperm.xlu1 %12247, %v9725_v51  }
 0xde0   :  { %9872 = vperm.xlu1 %12247, %v9726_v49  }
 0xde3   :  { %v9758_v21 = vpop.permute.xlu1 %9757 }
 0xde4   :  { %12249 = vset.pattern.permute.xlu1 %v18366_v55  ;;  %v9880_v32 = vmul.f32 %v9758_v21, %v9728_v27 }
 0xde5   :  { %10059 = vperm.xlu1 %12249, %v9726_v49  }
 0xde6   :  { %v9906_v48 = vsel %vm9905_vm5, %v9880_v32, 0.0  ;;  %v9738_v32 = vld [vmem:[%s17982_s15 + $0x50] sm:$0xff] }
 0xde7   :  { %v9763_v61 = vpop.permute.xlu0 %9762 }
 0xde8   :  { %v9968_v47 = vpop.permute.xlu1 %9967  ;;  %v9881_v46 = vmul.f32 %v9763_v61, %v9729_v28 }
 0xde9   :  { %10063 = vperm.xlu1 %12249, %v9727_v56   ;;  %v10066_v23 = vmul.f32 %v9968_v47, %v9728_v27  ;;  %v9737_v27 = vld [vmem:[%s17982_s15 + $0x48] sm:$0xff] }
 0xdea   :  { %v9907_v24 = vsel %vm9905_vm5, %v9881_v46, 0.0 }
 0xdeb   :  { %v9908_v22 = vadd.f32 %v9907_v24, %v9906_v48  ;;  %v10091_v63 = vsel %vm9905_vm5, %v10066_v23, 0.0 }
 0xdec   :  { %v9972_v30 = vpop.permute.xlu0 %9971 }
 0xded   :  { %v9768_v38 = vpop.permute.xlu1 %9767  ;;  %v10067_v52 = vmul.f32 %v9972_v30, %v9729_v28 }
 0xdee   :  { %v9882_v43 = vmul.f32 %v9768_v38, %v9730_v42  ;;  %v9736_v38 = vld [vmem:[%s17982_s15 + $0x40] sm:$0xff] }
 0xdef   :  { %v10092_v50 = vsel %vm9905_vm5, %v10067_v52, 0.0 }
 0xdf0   :  { %v9909_v20 = vsel %vm9905_vm5, %v9882_v43, 0.0  ;;  %v10093_v45 = vadd.f32 %v10092_v50, %v10091_v63 }
 0xdf1   :  { %v9773_v39 = vpop.permute.xlu0 %9772  ;;  %v9910_v15 = vadd.f32 %v9909_v20, %v9908_v22 }
 0xdf2   :  { %v9976_v14 = vpop.permute.xlu1 %9975  ;;  %v9883_v26 = vmul.f32 %v9773_v39, %v9731_v8 }
 0xdf3   :  { %v10068_v36 = vmul.f32 %v9976_v14, %v9730_v42 }
 0xdf4   :  { %v9911_v0 = vsel %vm9905_vm5, %v9883_v26, 0.0 }
 0xdf5   :  { %v9912_v4 = vadd.f32 %v9911_v0, %v9910_v15  ;;  %v10094_v60 = vsel %vm9905_vm5, %v10068_v36, 0.0  ;;  %v9740_v15 = vld [vmem:[%s17982_s15 + $0x60] sm:$0xff] }
 0xdf6   :  { %v9984_v35 = vpop.permute.xlu0 %9983  ;;  %v9980_v10 = vpop.permute.xlu1 %9979  ;;  %v10095_v62 = vadd.f32 %v10094_v60, %v10093_v45  ;;  %v9742_v45 = vld [vmem:[%s17982_s15 + $0x70] sm:$0xff] }
 0xdf7   :  { %v10069_v25 = vmul.f32 %v9980_v10, %v9731_v8  ;;  %v10070_v61 = vmul.f32 %v9984_v35, %v9732_v9 }
 0xdf9   :  { %v10096_v40 = vsel %vm9905_vm5, %v10069_v25, 0.0 }
 0xdfa   :  { %v10097_v39 = vadd.f32 %v10096_v40, %v10095_v62 }
 0xdfb   :  { %v9783_v19 = vpop.permute.xlu0 %9782  ;;  %v9778_v16 = vpop.permute.xlu1 %9777 }
 0xdfc   :  { %v9884_v13 = vmul.f32 %v9778_v16, %v9732_v9  ;;  %v9885_v5 = vmul.f32 %v9783_v19, %v9733_v29 }
 0xdfe   :  { %v9913_v2 = vsel %vm9905_vm5, %v9884_v13, 0.0  ;;  %v9915_v49 = vsel %vm9905_vm5, %v9885_v5, 0.0 }
 0xdff   :  { %v9914_v51 = vadd.f32 %v9913_v2, %v9912_v4 }
 0xe00   :  { %v17792_v12 = vpop.permute.xlu0 %9991  ;;  %v9988_v44 = vpop.permute.xlu1 %9987 }
 0xe01   :  { %v10071_v47 = vmul.f32 %v9988_v44, %v9733_v29  ;;  %v9916_v30 = vadd.f32 %v9915_v49, %v9914_v51  ;;  %v10072_v8 = vmul.f32 %v17792_v12, %v9734_v57  ;;  %v9739_v12 = vld [vmem:[%s17982_s15 + $0x58] sm:$0xff] }
 0xe03   :  { %v10100_v28 = vsel %vm9905_vm5, %v10071_v47, 0.0  ;;  %v10102_v20 = vsel %vm9905_vm5, %v10072_v8, 0.0 }
 0xe05   :  { %v9793_v1 = vpop.permute.xlu0 %9792  ;;  %v9788_v7 = vpop.permute.xlu1 %9787 }
 0xe06   :  { %v9886_v17 = vmul.f32 %v9788_v7, %v9734_v57  ;;  %v9887_v14 = vmul.f32 %v9793_v1, %v9735_v41  ;;  %v10098_v7 = vsel %vm9905_vm5, %v10070_v61, 0.0 }
 0xe07   :  { %v10099_v44 = vadd.f32 %v10098_v7, %v10097_v39 }
 0xe08   :  { %v9917_v21 = vsel %vm9905_vm5, %v9886_v17, 0.0  ;;  %v9919_v42 = vsel %vm9905_vm5, %v9887_v14, 0.0 }
 0xe09   :  { %v9918_v19 = vadd.f32 %v9917_v21, %v9916_v30  ;;  %v10101_v43 = vadd.f32 %v10100_v28, %v10099_v44 }
 0xe0a   :  { %v17794_v31 = vpop.permute.xlu0 %9999  ;;  %v17796_v55 = vpop.permute.xlu1 %9995 }
 0xe0b   :  { %v10073_v1 = vmul.f32 %v17796_v55, %v9735_v41  ;;  %v10103_v22 = vadd.f32 %v10102_v20, %v10101_v43 }
 0xe0d   :  { %v10104_v13 = vsel %vm9905_vm5, %v10073_v1, 0.0 }
 0xe0e   :  { %v10105_v29 = vadd.f32 %v10104_v13, %v10103_v22 }
 0xe0f   :  { %v17798_v59 = vpop.permute.xlu0 %9802  ;;  %v9798_v33 = vpop.permute.xlu1 %9797 }
 0xe10   :  { %v9888_v10 = vmul.f32 %v9798_v33, %v9736_v38  ;;  %v9920_v33 = vadd.f32 %v9919_v42, %v9918_v19  ;;  %v9889_v24 = vmul.f32 %v17798_v59, %v9737_v27  ;;  %v10074_v59 = vmul.f32 %v17794_v31, %v9736_v38  ;;  %v9741_v31 = vld [vmem:[%s17982_s15 + $0x68] sm:$0xff]  ;;  %v9744_v19 = vld [vmem:[%s17982_s15 + $0x80] sm:$0xff] }
 0xe12   :  { %v9921_v46 = vsel %vm9905_vm5, %v9888_v10, 0.0  ;;  %v9923_v52 = vsel %vm9905_vm5, %v9889_v24, 0.0  ;;  %v10106_v25 = vsel %vm9905_vm5, %v10074_v59, 0.0  ;;  %v9746_v24 = vld [vmem:[%s17982_s15 + $0x90] sm:$0xff] }
 0xe13   :  { %v9922_v48 = vadd.f32 %v9921_v46, %v9920_v33  ;;  %v10107_v5 = vadd.f32 %v10106_v25, %v10105_v29 }
 0xe14   :  { %v17800_v58 = vpop.permute.xlu0 %10007  ;;  %v17802_v3 = vpop.permute.xlu1 %10003 }
 0xe15   :  { %v9924_v23 = vadd.f32 %v9923_v52, %v9922_v48  ;;  %v10076_v51 = vmul.f32 %v17800_v58, %v9738_v32  ;;  %v9743_v58 = vld [vmem:[%s17982_s15 + $0x78] sm:$0xff] }
 0xe17   :  { %v10110_v61 = vsel %vm9905_vm5, %v10076_v51, 0.0  ;;  %v9749_v51 = vld [vmem:[%s17982_s15 + $0xa8] sm:$0xff] }
 0xe19   :  { %v17813_v54 = vpop.permute.xlu0 %9812  ;;  %v17815_v34 = vpop.permute.xlu1 %9807 }
 0xe1a   :  { %v9890_v26 = vmul.f32 %v17815_v34, %v9738_v32  ;;  %v10075_v34 = vmul.f32 %v17802_v3, %v9737_v27  ;;  %v9891_v2 = vmul.f32 %v17813_v54, %v9739_v12 }
 0xe1c   :  { %v9925_v0 = vsel %vm9905_vm5, %v9890_v26, 0.0  ;;  %v10108_v57 = vsel %vm9905_vm5, %v10075_v34, 0.0  ;;  %v9927_v17 = vsel %vm9905_vm5, %v9891_v2, 0.0 }
 0xe1d   :  { %v9926_v4 = vadd.f32 %v9925_v0, %v9924_v23  ;;  %v10109_v40 = vadd.f32 %v10108_v57, %v10107_v5  ;;  %v9747_v0 = vld [vmem:[%s17982_s15 + $0x98] sm:$0xff] }
 0xe1e   :  { %v17821_v18 = vpop.permute.xlu0 %10015  ;;  %v17823_v11 = vpop.permute.xlu1 %10011 }
 0xe1f   :  { %v10077_v54 = vmul.f32 %v17823_v11, %v9739_v12  ;;  %v10111_v30 = vadd.f32 %v10110_v61, %v10109_v40  ;;  %v10078_v14 = vmul.f32 %v17821_v18, %v9740_v15  ;;  %v9745_v18 = vld [vmem:[%s17982_s15 + $0x88] sm:$0xff] }
 0xe21   :  { %v10112_v47 = vsel %vm9905_vm5, %v10077_v54, 0.0  ;;  %v10114_v42 = vsel %vm9905_vm5, %v10078_v14, 0.0  ;;  %v9751_v14 = vld [vmem:[%s17982_s15 + $0xb8] sm:$0xff] }
 0xe23   :  { %v17834_v37 = vpop.permute.xlu0 %9822  ;;  %v9818_v53 = vpop.permute.xlu1 %9817 }
 0xe24   :  { %v9892_v50 = vmul.f32 %v9818_v53, %v9740_v15  ;;  %v9928_v53 = vadd.f32 %v9927_v17, %v9926_v4  ;;  %v9893_v41 = vmul.f32 %v17834_v37, %v9741_v31 }
 0xe26   :  { %v9929_v63 = vsel %vm9905_vm5, %v9892_v50, 0.0  ;;  %v9931_v38 = vsel %vm9905_vm5, %v9893_v41, 0.0 }
 0xe27   :  { %v9930_v49 = vadd.f32 %v9929_v63, %v9928_v53 }
 0xe28   :  { %v17843_v56 = vpop.permute.xlu1 %10019  ;;  %v17849_v6 = vpop.permute.xlu0 %10023 }
 0xe29   :  { %v10079_v37 = vmul.f32 %v17843_v56, %v9741_v31  ;;  %v9932_v10 = vadd.f32 %v9931_v38, %v9930_v49  ;;  %v10080_v32 = vmul.f32 %v17849_v6, %v9742_v45 }
 0xe2b   :  { %v10116_v46 = vsel %vm9905_vm5, %v10079_v37, 0.0  ;;  %v10118_v22 = vsel %vm9905_vm5, %v10080_v32, 0.0 }
 0xe2d   :  { %v9828_v16 = vpop.permute.xlu1 %9827  ;;  %v9833_v35 = vpop.permute.xlu0 %9832 }
 0xe2e   :  { %v9894_v62 = vmul.f32 %v9828_v16, %v9742_v45  ;;  %v10113_v16 = vadd.f32 %v10112_v47, %v10111_v30  ;;  %v9895_v7 = vmul.f32 %v9833_v35, %v9743_v58  ;;  %v9752_v30 = vld [vmem:[%s17982_s15 + $0xc0] sm:$0xff] }
 0xe30   :  { %v9933_v39 = vsel %vm9905_vm5, %v9894_v62, 0.0  ;;  %v10115_v56 = vadd.f32 %v10114_v42, %v10113_v16  ;;  %v9935_v1 = vsel %vm9905_vm5, %v9895_v7, 0.0 }
 0xe31   :  { %v9934_v27 = vadd.f32 %v9933_v39, %v9932_v10 }
 0xe32   :  { %v10028_v9 = vpop.permute.xlu1 %10027  ;;  %v17875_v55 = vpop.permute.xlu0 %10031  ;;  %v10117_v48 = vadd.f32 %v10116_v46, %v10115_v56 }
 0xe33   :  { %v10081_v35 = vmul.f32 %v10028_v9, %v9743_v58  ;;  %v9936_v43 = vadd.f32 %v9935_v1, %v9934_v27  ;;  %v9748_v9 = vld [vmem:[%s17982_s15 + $0xa0] sm:$0xff] }
 0xe34   :  { %v10119_v59 = vadd.f32 %v10118_v22, %v10117_v48 }
 0xe35   :  { %v10120_v52 = vsel %vm9905_vm5, %v10081_v35, 0.0 }
 0xe36   :  { %v10121_v50 = vadd.f32 %v10120_v52, %v10119_v59 }
 0xe37   :  { %v9838_v36 = vpop.permute.xlu1 %9837  ;;  %v9843_v3 = vpop.permute.xlu0 %9842 }
 0xe38   :  { %v9896_v28 = vmul.f32 %v9838_v36, %v9744_v19  ;;  %v9897_v20 = vmul.f32 %v9843_v3, %v9745_v18  ;;  %v10082_v36 = vmul.f32 %v17875_v55, %v9744_v19 }
 0xe3a   :  { %v9937_v33 = vsel %vm9905_vm5, %v9896_v28, 0.0  ;;  %v9939_v34 = vsel %vm9905_vm5, %v9897_v20, 0.0  ;;  %v10122_v5 = vsel %vm9905_vm5, %v10082_v36, 0.0 }
 0xe3b   :  { %v9848_v11 = vpop.permute.xlu0 %9847  ;;  %v9938_v13 = vadd.f32 %v9937_v33, %v9936_v43  ;;  %v10123_v54 = vadd.f32 %v10122_v5, %v10121_v50 }
 0xe3c   :  { %v10036_v60 = vpop.permute.xlu1 %10035  ;;  %v9898_v12 = vmul.f32 %v9848_v11, %v9746_v24 }
 0xe3d   :  { %v9940_v29 = vadd.f32 %v9939_v34, %v9938_v13  ;;  %v10083_v2 = vmul.f32 %v10036_v60, %v9745_v18 }
 0xe3e   :  { %v9941_v4 = vsel %vm9905_vm5, %v9898_v12, 0.0 }
 0xe3f   :  { %v9942_v17 = vadd.f32 %v9941_v4, %v9940_v29  ;;  %v10124_v63 = vsel %vm9905_vm5, %v10083_v2, 0.0 }
 0xe40   :  { %v10040_v21 = vpop.permute.xlu1 %10039  ;;  %v10044_v8 = vpop.permute.xlu0 %10043  ;;  %v10125_v40 = vadd.f32 %v10124_v63, %v10123_v54 }
 0xe41   :  { %v10084_v57 = vmul.f32 %v10040_v21, %v9746_v24  ;;  %v10085_v62 = vmul.f32 %v10044_v8, %v9747_v0  ;;  %v9750_v21 = vld [vmem:[%s17982_s15 + $0xb0] sm:$0xff] }
 0xe43   :  { %v10126_v53 = vsel %vm9905_vm5, %v10084_v57, 0.0  ;;  %v10128_v19 = vsel %vm9905_vm5, %v10085_v62, 0.0  ;;  %v18368_v57 = vld [vmem:[#allocation5_spill] sm:$0xff] }
 0xe44   :  { %v10127_v58 = vadd.f32 %v10126_v53, %v10125_v40  ;;  %vm9961_vm6 = vcmp.eq.s32.totalorder %v18368_v57, 0  ;;  %vm10146_vm7 = vcmp.eq.s32.totalorder %v18368_v57, 1 }
 0xe45   :  { %v9853_v44 = vpop.permute.xlu1 %9852  ;;  %v9863_v6 = vpop.permute.xlu0 %9862 }
 0xe46   :  { %v9899_v23 = vmul.f32 %v9853_v44, %v9747_v0  ;;  %v9901_v41 = vmul.f32 %v9863_v6, %v9749_v51  ;;  %v10129_v27 = vadd.f32 %v10128_v19, %v10127_v58 }
 0xe48   :  { %v9943_v31 = vsel %vm9905_vm5, %v9899_v23, 0.0  ;;  %v9947_v37 = vsel %vm9905_vm5, %v9901_v41, 0.0 }
 0xe49   :  { %v9858_v26 = vpop.permute.xlu1 %9857  ;;  %v9944_v45 = vadd.f32 %v9943_v31, %v9942_v17  ;;  %v10918_v17 = vld [vmem:[%s17983_s16] ss:$0 sm:$0xff] }
 0xe4a   :  { %v9900_v25 = vmul.f32 %v9858_v26, %v9748_v9  ;;  %v10056_v55 = vpop.permute.xlu0 %10055 }
 0xe4b   :  { %v10088_v1 = vmul.f32 %v10056_v55, %v9750_v21 }
 0xe4c   :  { %v9945_v60 = vsel %vm9905_vm5, %v9900_v25, 0.0 }
 0xe4d   :  { %v9946_v49 = vadd.f32 %v9945_v60, %v9944_v45  ;;  %v10134_v48 = vsel %vm9905_vm5, %v10088_v1, 0.0 }
 0xe4e   :  { %v10048_v15 = vpop.permute.xlu1 %10047 }
 0xe4f   :  { %v10086_v61 = vmul.f32 %v10048_v15, %v9748_v9  ;;  %v9878_v38 = vpop.permute.xlu0 %9877  ;;  %v9948_v7 = vadd.f32 %v9947_v37, %v9946_v49 }
 0xe50   :  { %v9904_v44 = vmul.f32 %v9878_v38, %v9752_v30 }
 0xe51   :  { %v10130_v16 = vsel %vm9905_vm5, %v10086_v61, 0.0 }
 0xe52   :  { %v10052_v3 = vpop.permute.xlu1 %10051  ;;  %v10131_v8 = vadd.f32 %v10130_v16, %v10129_v27  ;;  %v9953_v32 = vsel %vm9905_vm5, %v9904_v44, 0.0 }
 0xe53   :  { %v10087_v39 = vmul.f32 %v10052_v3, %v9749_v51 }
 0xe55   :  { %v10132_v46 = vsel %vm9905_vm5, %v10087_v39, 0.0 }
 0xe56   :  { %v10133_v35 = vadd.f32 %v10132_v46, %v10131_v8 }
 0xe57   :  { %v9868_v47 = vpop.permute.xlu1 %9867 }
 0xe58   :  { %v9902_v11 = vmul.f32 %v9868_v47, %v9750_v21  ;;  %v10135_v12 = vadd.f32 %v10134_v48, %v10133_v35 }
 0xe5a   :  { %v9949_v10 = vsel %vm9905_vm5, %v9902_v11, 0.0 }
 0xe5b   :  { %v9873_v28 = vpop.permute.xlu1 %9872  ;;  %v9950_v18 = vadd.f32 %v9949_v10, %v9948_v7 }
 0xe5c   :  { %v9903_v42 = vmul.f32 %v9873_v28, %v9751_v14 }
 0xe5e   :  { %v9951_v56 = vsel %vm9905_vm5, %v9903_v42, 0.0 }
 0xe5f   :  { %v9952_v33 = vadd.f32 %v9951_v56, %v9950_v18 }
 0xe60   :  { %v10060_v43 = vpop.permute.xlu1 %10059 }
 0xe61   :  { %v9954_v24 = vadd.f32 %v9953_v32, %v9952_v33  ;;  %v10089_v26 = vmul.f32 %v10060_v43, %v9751_v14 }
 0xe63   :  { %v9955_v20 = vrot.slane %v9954_v24, 4  ;;  %v10136_v13 = vsel %vm9905_vm5, %v10089_v26, 0.0 }
 0xe64   :  { %v10064_v22 = vpop.permute.xlu1 %10063  ;;  %v10137_v6 = vadd.f32 %v10136_v13, %v10135_v12 }
 0xe65   :  { %v9956_v52 = vadd.f32 %v9955_v20, %v9954_v24  ;;  %v10090_v0 = vmul.f32 %v10064_v22, %v9752_v30 }
 0xe67   :  { %v9957_v9 = vrot.slane %v9956_v52, 2  ;;  %v10138_v59 = vsel %vm9905_vm5, %v10090_v0, 0.0 }
 0xe68   :  { %v10139_v34 = vadd.f32 %v10138_v59, %v10137_v6 }
 0xe69   :  { %v9958_v23 = vadd.f32 %v9957_v9, %v9956_v52 }
 0xe6a   :  { %v10140_v15 = vrot.slane %v10139_v34, 4 }
 0xe6b   :  { %v9959_v2 = vrot.slane %v9958_v23, 1 }
 0xe6c   :  { %v10141_v36 = vadd.f32 %v10140_v15, %v10139_v34 }
 0xe6d   :  { %v9960_v25 = vadd.f32 %v9959_v2, %v9958_v23 }
 0xe6e   :  { %v10142_v29 = vrot.slane %v10141_v36, 2 }
 0xe6f   :  { %v9964_v3 = vsel %vm9961_vm6, %v9960_v25, 0.0 }
 0xe70   :  { %v10143_v50 = vadd.f32 %v10142_v29, %v10141_v36 }
 0xe72   :  { %v10144_v4 = vrot.slane %v10143_v50, 1 }
 0xe74   :  { %v10145_v31 = vadd.f32 %v10144_v4, %v10143_v50 }
 0xe76   :  { %v10149_v5 = vsel %vm10146_vm7, %v10145_v31, 0.0 }
 0xe77   :  { %v10150_v63 = vadd.f32 %v10149_v5, %v9964_v3 }
 0xe79   :  { %v10158_v51 = vadd.f32 %v10918_v17, %v10150_v63 }
 0xe7b   :  { %10160 = vst.msk [vmem:[#allocation2] sm:$0x3] %vm10159_vm8, %v10158_v51 }
 0xe7c   :  { %12536 = shalt.err (!%p12533_p4)
}
 0xe7d   :  { %10170 = dma.vmem_to_hbm [thread:$0]  %s10168_s5, 32, %s17984_s17, [#allocation3]  }
 0xe7e   :  { %12545 = dma.done.wait [#allocation3], 32  }
 0xe7f   :  { %12546 = vsyncadd [#allocation3], 4294967264 }
 0xe80   :  { %10174 = vsyncpa [#allocation3], 1 }

</bundles_post_ra>
